<compile_context>
chip_gen: v6e
topology: v6e:2x2x1
jax: 0.10.0
libtpu: 0.0.40
codegen_flags: <defaults>
</compile_context>

<pallas_src>
import functools

import jax
import jax.numpy as jnp
from jax.experimental import pallas as pl
from jax.experimental.pallas import tpu as pltpu

EPS = 1e-5
_TAPS = tuple((dy, dx) for dy in range(3) for dx in range(3))


def _vmem_limit_bytes():
    # ~3/4 of physical VMEM: 48 MiB on v7x (64 MiB), 96 MiB on v5e/v6e (128 MiB).
    try:
        cap = pltpu.get_tpu_info().vmem_capacity_bytes
        return int(min(cap * 3 // 4, 96 * 1024 * 1024))
    except Exception:
        return 32 * 1024 * 1024


def _const_spec(shape):
    """Full-array block that stays resident (same block index for every grid step)."""
    zeros = (0,) * len(shape)
    return pl.BlockSpec(shape, lambda n, _z=zeros: _z)


def resnet_block_forward(x_nchw, time_emb, params, *, mm_dtype=jnp.bfloat16):
    """x_nchw: [N, Cin, H, W] (PyTorch layout). time_emb: [N, time_dim]. Returns [N, Cout, H, W]."""
    f32 = jnp.float32
    N, Cin, H, W = x_nchw.shape
    Cmid = params['w1'].shape[3]
    Cout = params['w2'].shape[3]
    R = H * W
    identity_res = 'wr' not in params              # nn.Identity() residual path
    inv_count = 1.0 / float(N * R)                 # biased (train-mode) batch statistics
    vmem_limit = _vmem_limit_bytes()
    isz = int(jnp.dtype(mm_dtype).itemsize)

    # ---- wrapper-side prep (tiny XLA ops hoisted out of the kernels) ----
    x_nhwc = jnp.transpose(x_nchw, (0, 2, 3, 1)).astype(f32)
    # cast to matmul dtype first, then zero-pad ONCE in HBM (conv1 halo)
    xpad = jnp.pad(x_nhwc.astype(mm_dtype), ((0, 0), (1, 1), (1, 1), (0, 0)))
    x_flat = x_nhwc.reshape(N, R, Cin)                                   # f32 residual input

    w1 = params['w1'].reshape(9, Cin, Cmid).astype(mm_dtype)             # per-tap weights
    w2 = params['w2'].reshape(9, Cmid, Cout).astype(mm_dtype)
    b1 = params['b1'].reshape(1, Cmid).astype(f32)
    b2 = params['b2'].reshape(1, Cout).astype(f32)

    # time projection for all N in one XLA matmul (removes a degenerate M=1 MXU matmul/step)
    tproj = (jnp.maximum(time_emb.astype(f32), 0.0) @ params['wt'].astype(f32)
             + params['bt'].astype(f32)).reshape(N, 1, Cmid)

    def bn_affine(stats_per_n, gamma, beta):
        # stats_per_n: (N, 2, C) per-image [sum; sumsq] partials -> (1, C) scale / shift (f32)
        s = jnp.sum(stats_per_n, axis=0)
        mean = s[0] * inv_count
        var = jnp.maximum(s[1] * inv_count - mean * mean, 0.0)           # cancellation guard
        scale = gamma.astype(f32) * jax.lax.rsqrt(var + EPS)
        shift = beta.astype(f32) - mean * scale
        return scale.reshape(1, -1), shift.reshape(1, -1)

    def conv_taps(img, w_ref, C):
        # img: (H+2, W+2, C) value in mm_dtype. 9 tap matmuls accumulated in f32
        # (no (R, 9*C) im2col slab; no concat).
        acc = None
        for t, (dy, dx) in enumerate(_TAPS):
            view = img[dy:dy + H, dx:dx + W, :].reshape(R, C)
            part = jnp.dot(view, w_ref[t], preferred_element_type=f32)
            acc = part if acc is None else acc + part
        return acc

    def sum_sumsq(y):
        return jnp.concatenate([jnp.sum(y, axis=0, keepdims=True),
                                jnp.sum(y * y, axis=0, keepdims=True)], axis=0)

    # ---------------- pass 1: conv1 + per-image BN1 partial stats ----------------
    def conv1_kernel(xp_ref, w1_ref, b1_ref, y1_ref, s1_ref):
        y = conv_taps(xp_ref[0], w1_ref, Cin) + b1_ref[...]              # (R, Cmid) f32
        y1_ref[0] = y.astype(y1_ref.dtype)
        s1_ref[0] = sum_sumsq(y)                                         # (2, Cmid) f32

    y1, stats1 = pl.pallas_call(
        conv1_kernel,
        grid=(N,),
        in_specs=[
            pl.BlockSpec((1, H + 2, W + 2, Cin), lambda n: (n, 0, 0, 0)),
            _const_spec((9, Cin, Cmid)),
            _const_spec((1, Cmid)),
        ],
        out_specs=(
            pl.BlockSpec((1, R, Cmid), lambda n: (n, 0, 0)),
            pl.BlockSpec((1, 2, Cmid), lambda n: (n, 0, 0)),
        ),
        out_shape=(
            jax.ShapeDtypeStruct((N, R, Cmid), mm_dtype),
            jax.ShapeDtypeStruct((N, 2, Cmid), f32),
        ),
        compiler_params=pltpu.CompilerParams(
            dimension_semantics=("parallel",),
            vmem_limit_bytes=vmem_limit),
        cost_estimate=pl.CostEstimate(
            flops=2 * N * R * 9 * Cin * Cmid, transcendentals=0,
            bytes_accessed=isz * (N * (H + 2) * (W + 2) * Cin + 9 * Cin * Cmid
                                  + N * R * Cmid) + 4 * (N * 2 * Cmid + Cmid)),
    )(xpad, w1, b1)

    scale1, shift1 = bn_affine(stats1, params['g1'], params['be1'])

    # -------- pass 2: BN1 + ReLU + time add, conv2 + per-image BN2 partial stats --------
    def bn1_conv2_kernel(y1_ref, t_ref, sc1_ref, sh1_ref, w2_ref, b2_ref,
                         y2_ref, s2_ref, hp_ref):
        h = jnp.maximum(y1_ref[0].astype(f32) * sc1_ref[...] + sh1_ref[...], 0.0) \
            + t_ref[0]                                                   # (R, Cmid) f32
        # 1-pixel halo scratch (mm_dtype): border re-zeroed EVERY step (cheap, O((H+W)*C))
        # so this pass has no cross-step scratch dependency and can run "parallel".
        zrow = jnp.zeros((1, W + 2, Cmid), mm_dtype)
        zcol = jnp.zeros((H, 1, Cmid), mm_dtype)
        hp_ref[0:1, :, :] = zrow
        hp_ref[H + 1:H + 2, :, :] = zrow
        hp_ref[1:H + 1, 0:1, :] = zcol
        hp_ref[1:H + 1, W + 1:W + 2, :] = zcol
        hp_ref[1:H + 1, 1:W + 1, :] = h.astype(mm_dtype).reshape(H, W, Cmid)

        y = conv_taps(hp_ref[...], w2_ref, Cmid) + b2_ref[...]           # (R, Cout) f32
        y2_ref[0] = y.astype(y2_ref.dtype)
        s2_ref[0] = sum_sumsq(y)

    y2, stats2 = pl.pallas_call(
        bn1_conv2_kernel,
        grid=(N,),
        in_specs=[
            pl.BlockSpec((1, R, Cmid), lambda n: (n, 0, 0)),
            pl.BlockSpec((1, 1, Cmid), lambda n: (n, 0, 0)),
            _const_spec((1, Cmid)),
            _const_spec((1, Cmid)),
            _const_spec((9, Cmid, Cout)),
            _const_spec((1, Cout)),
        ],
        out_specs=(
            pl.BlockSpec((1, R, Cout), lambda n: (n, 0, 0)),
            pl.BlockSpec((1, 2, Cout), lambda n: (n, 0, 0)),
        ),
        out_shape=(
            jax.ShapeDtypeStruct((N, R, Cout), mm_dtype),
            jax.ShapeDtypeStruct((N, 2, Cout), f32),
        ),
        scratch_shapes=[pltpu.VMEM((H + 2, W + 2, Cmid), mm_dtype)],
        compiler_params=pltpu.CompilerParams(
            dimension_semantics=("parallel",),
            vmem_limit_bytes=vmem_limit),
        cost_estimate=pl.CostEstimate(
            flops=2 * N * R * 9 * Cmid * Cout, transcendentals=0,
            bytes_accessed=isz * (N * R * Cmid + 9 * Cmid * Cout + N * R * Cout)
                           + 4 * (N * Cmid + 2 * Cmid + N * 2 * Cout + Cout)),
    )(y1, tproj, scale1, shift1, w2, b2)

    scale2, shift2 = bn_affine(stats2, params['g2'], params['be2'])

    # ---------------- pass 3: BN2 + ReLU + residual ----------------
    if identity_res:
        # Cin == Cout: pure add, the 1x1 residual matmul is skipped entirely.
        def bn2_res_kernel(y2_ref, sc2_ref, sh2_ref, x_ref, o_ref):
            h2 = jnp.maximum(y2_ref[0].astype(f32) * sc2_ref[...] + sh2_ref[...], 0.0)
            o_ref[0] = h2 + x_ref[0]
        extra_args, extra_specs, res_flops = (), (), 0
    else:
        def bn2_res_kernel(y2_ref, sc2_ref, sh2_ref, x_ref, wr_ref, br_ref, o_ref):
            h2 = jnp.maximum(y2_ref[0].astype(f32) * sc2_ref[...] + sh2_ref[...], 0.0)
            res = jnp.dot(x_ref[0].astype(mm_dtype), wr_ref[...],
                          preferred_element_type=f32) + br_ref[...]
            o_ref[0] = h2 + res
        extra_args = (params['wr'].astype(mm_dtype),
                      params['br'].reshape(1, Cout).astype(f32))
        extra_specs = (_const_spec((Cin, Cout)), _const_spec((1, Cout)))
        res_flops = 2 * N * R * Cin * Cout

    out_flat = pl.pallas_call(
        bn2_res_kernel,
        grid=(N,),
        in_specs=[
            pl.BlockSpec((1, R, Cout), lambda n: (n, 0, 0)),
            _const_spec((1, Cout)),
            _const_spec((1, Cout)),
            pl.BlockSpec((1, R, Cin), lambda n: (n, 0, 0)),
            *extra_specs,
        ],
        out_specs=pl.BlockSpec((1, R, Cout), lambda n: (n, 0, 0)),
        out_shape=jax.ShapeDtypeStruct((N, R, Cout), f32),
        compiler_params=pltpu.CompilerParams(
            dimension_semantics=("parallel",),
            vmem_limit_bytes=vmem_limit),
        cost_estimate=pl.CostEstimate(
            flops=res_flops + 4 * N * R * Cout, transcendentals=0,
            bytes_accessed=isz * N * R * Cout + 4 * (N * R * Cin + N * R * Cout)),
    )(y2, scale2, shift2, x_flat, *extra_args)

    return jnp.transpose(out_flat.reshape(N, H, W, Cout), (0, 3, 1, 2))


def init_params(key, in_channels, out_channels, time_dim, middle_channels=None):
    if middle_channels is None:
        middle_channels = out_channels
    ks = jax.random.split(key, 10)
    rnd = lambda k, shape, s=0.1: (s * jax.random.normal(k, shape)).astype(jnp.float32)
    p = {
        # conv weights stored HWIO: [kh, kw, Cin, Cout]; Linear as [in, out]
        'w1': rnd(ks[0], (3, 3, in_channels, middle_channels)),
        'b1': rnd(ks[1], (middle_channels,)),
        'g1': 1.0 + rnd(ks[2], (middle_channels,)),
        'be1': rnd(ks[3], (middle_channels,)),
        'wt': rnd(ks[4], (time_dim, middle_channels)),
        'bt': rnd(ks[5], (middle_channels,)),
        'w2': rnd(ks[6], (3, 3, middle_channels, out_channels)),
        'b2': rnd(ks[7], (out_channels,)),
        'g2': 1.0 + rnd(ks[8], (out_channels,)),
        'be2': rnd(ks[9], (out_channels,)),
    }
    if in_channels != out_channels:
        k1, k2 = jax.random.split(jax.random.fold_in(key, 7), 2)
        p['wr'] = rnd(k1, (in_channels, out_channels))
        p['br'] = rnd(k2, (out_channels,))
    return p


def reference_forward(x_nchw, t, p):
    """Pure-JAX reference with identical semantics (numerical check)."""
    def conv3x3(x, w_hwio, b):
        w_oihw = jnp.transpose(w_hwio, (3, 2, 0, 1))
        y = jax.lax.conv_general_dilated(
            x, w_oihw, (1, 1), 'SAME',
            dimension_numbers=('NCHW', 'OIHW', 'NCHW'))
        return y + b[None, :, None, None]

    def bn(x, g, be):
        mean = jnp.mean(x, axis=(0, 2, 3), keepdims=True)
        var = jnp.mean((x - mean) ** 2, axis=(0, 2, 3), keepdims=True)
        return (x - mean) / jnp.sqrt(var + EPS) * g[None, :, None, None] \
            + be[None, :, None, None]

    h = jnp.maximum(bn(conv3x3(x_nchw, p['w1'], p['b1']), p['g1'], p['be1']), 0.0)
    tproj = jnp.maximum(t, 0.0) @ p['wt'] + p['bt']
    h = h + tproj[:, :, None, None]
    h2 = jnp.maximum(bn(conv3x3(h, p['w2'], p['b2']), p['g2'], p['be2']), 0.0)
    if 'wr' in p:
        res = jnp.einsum('nchw,cd->ndhw', x_nchw, p['wr']) + p['br'][None, :, None, None]
    else:
        res = x_nchw
    return h2 + res


if __name__ == "__main__":
    key = jax.random.PRNGKey(0)
    N, H, W, TDIM = 2, 16, 16, 32

    configs = [
        # (Cin, Cout, matmul/intermediate dtype, tolerance)
        (4, 8, jnp.float32, 5e-3),      # 1x1-conv residual path, f32 everywhere
        (8, 8, jnp.float32, 5e-3),      # identity residual path (1x1 matmul skipped)
        (4, 8, jnp.bfloat16, 2e-1),     # bf16 MXU operands + bf16 y1/y2, f32 stats/accumulate
    ]
    ok = True
    for i, (Cin, Cout, mmdt, tol) in enumerate(configs):
        kx, kt, kp = jax.random.split(jax.random.fold_in(key, i), 3)
        x = jax.random.normal(kx, (N, Cin, H, W), jnp.float32)
        t = jax.random.normal(kt, (N, TDIM), jnp.float32)
        p = init_params(kp, Cin, Cout, TDIM)

        fwd = jax.jit(functools.partial(resnet_block_forward, mm_dtype=mmdt))
        out = jax.block_until_ready(fwd(x, t, p))
        ref = reference_forward(x, t, p)
        err = float(jnp.max(jnp.abs(out - ref)))
        if out.shape != (N, Cout, H, W) or not (err < tol):
            ok = False
            print(f"FAIL cfg{i} Cin={Cin} Cout={Cout} dtype={jnp.dtype(mmdt).name} max_err={err}")

    if ok:
        print("KERNEL_OK")
</pallas_src>

<mosaic_0001>
module attributes {stable_mosaic.version = 11 : i64} {
  func.func @conv1_kernel(%arg0: i32, %arg1: memref<1x18x18x4xf32, #tpu.memory_space<vmem>>, %arg2: memref<9x4x8xf32, #tpu.memory_space<vmem>>, %arg3: memref<1x8xf32, #tpu.memory_space<vmem>>, %arg4: memref<1x256x8xf32, #tpu.memory_space<vmem>>, %arg5: memref<1x2x8xf32, #tpu.memory_space<vmem>>) attributes {dimension_semantics = [#tpu.dimension_semantics<parallel>], iteration_bounds = array<i64: 2>, scalar_prefetch = 0 : i64, scratch_operands = 0 : i64, tpu.core_type = #tpu.core_type<tc>, window_params = [{transform_indices = @transform_0, window_bounds = array<i64: 1, 18, 18, 4>}, {pipeline_mode = #tpu.pipeline_mode<synchronous>, transform_indices = @transform_1, window_bounds = array<i64: 9, 4, 8>}, {pipeline_mode = #tpu.pipeline_mode<synchronous>, transform_indices = @transform_2, window_bounds = array<i64: 1, 8>}, {transform_indices = @transform_3, window_bounds = array<i64: 1, 256, 8>}, {transform_indices = @transform_4, window_bounds = array<i64: 1, 2, 8>}]} {
    %c0 = arith.constant 0 : index
    %c0_0 = arith.constant 0 : index
    %c0_1 = arith.constant 0 : index
    %c0_2 = arith.constant 0 : index
    %0 = vector.load %arg1[%c0, %c0_0, %c0_1, %c0_2] : memref<1x18x18x4xf32, #tpu.memory_space<vmem>>, vector<1x18x18x4xf32>
    %1 = vector.shape_cast %0 : vector<1x18x18x4xf32> to vector<18x18x4xf32>
    %2 = vector.extract_strided_slice %1 {offsets = [0, 0, 0], sizes = [16, 16, 4], strides = [1, 1, 1]} : vector<18x18x4xf32> to vector<16x16x4xf32>
    %3 = vector.shape_cast %2 : vector<16x16x4xf32> to vector<256x4xf32>
    %c0_3 = arith.constant 0 : index
    %c0_4 = arith.constant 0 : index
    %c0_5 = arith.constant 0 : index
    %4 = vector.load %arg2[%c0_3, %c0_4, %c0_5] : memref<9x4x8xf32, #tpu.memory_space<vmem>>, vector<1x4x8xf32>
    %5 = vector.shape_cast %4 : vector<1x4x8xf32> to vector<4x8xf32>
    %cst = arith.constant dense<0.000000e+00> : vector<256x8xf32>
    %6 = tpu.matmul %3, %5, %cst {dimension_numbers = #tpu.dot_dimension_numbers<[1], [0], [0], [1], [0, 0, 1, 1], [], []>} : vector<256x4xf32>, vector<4x8xf32>, vector<256x8xf32> -> vector<256x8xf32>
    %7 = vector.extract_strided_slice %1 {offsets = [0, 1, 0], sizes = [16, 16, 4], strides = [1, 1, 1]} : vector<18x18x4xf32> to vector<16x16x4xf32>
    %8 = vector.shape_cast %7 : vector<16x16x4xf32> to vector<256x4xf32>
    %c1 = arith.constant 1 : index
    %c0_6 = arith.constant 0 : index
    %c0_7 = arith.constant 0 : index
    %9 = vector.load %arg2[%c1, %c0_6, %c0_7] : memref<9x4x8xf32, #tpu.memory_space<vmem>>, vector<1x4x8xf32>
    %10 = vector.shape_cast %9 : vector<1x4x8xf32> to vector<4x8xf32>
    %cst_8 = arith.constant dense<0.000000e+00> : vector<256x8xf32>
    %11 = tpu.matmul %8, %10, %cst_8 {dimension_numbers = #tpu.dot_dimension_numbers<[1], [0], [0], [1], [0, 0, 1, 1], [], []>} : vector<256x4xf32>, vector<4x8xf32>, vector<256x8xf32> -> vector<256x8xf32>
    %12 = arith.addf %6, %11 : vector<256x8xf32>
    %13 = vector.extract_strided_slice %1 {offsets = [0, 2, 0], sizes = [16, 16, 4], strides = [1, 1, 1]} : vector<18x18x4xf32> to vector<16x16x4xf32>
    %14 = vector.shape_cast %13 : vector<16x16x4xf32> to vector<256x4xf32>
    %c2 = arith.constant 2 : index
    %c0_9 = arith.constant 0 : index
    %c0_10 = arith.constant 0 : index
    %15 = vector.load %arg2[%c2, %c0_9, %c0_10] : memref<9x4x8xf32, #tpu.memory_space<vmem>>, vector<1x4x8xf32>
    %16 = vector.shape_cast %15 : vector<1x4x8xf32> to vector<4x8xf32>
    %cst_11 = arith.constant dense<0.000000e+00> : vector<256x8xf32>
    %17 = tpu.matmul %14, %16, %cst_11 {dimension_numbers = #tpu.dot_dimension_numbers<[1], [0], [0], [1], [0, 0, 1, 1], [], []>} : vector<256x4xf32>, vector<4x8xf32>, vector<256x8xf32> -> vector<256x8xf32>
    %18 = arith.addf %12, %17 : vector<256x8xf32>
    %19 = vector.extract_strided_slice %1 {offsets = [1, 0, 0], sizes = [16, 16, 4], strides = [1, 1, 1]} : vector<18x18x4xf32> to vector<16x16x4xf32>
    %20 = vector.shape_cast %19 : vector<16x16x4xf32> to vector<256x4xf32>
    %c3 = arith.constant 3 : index
    %c0_12 = arith.constant 0 : index
    %c0_13 = arith.constant 0 : index
    %21 = vector.load %arg2[%c3, %c0_12, %c0_13] : memref<9x4x8xf32, #tpu.memory_space<vmem>>, vector<1x4x8xf32>
    %22 = vector.shape_cast %21 : vector<1x4x8xf32> to vector<4x8xf32>
    %cst_14 = arith.constant dense<0.000000e+00> : vector<256x8xf32>
    %23 = tpu.matmul %20, %22, %cst_14 {dimension_numbers = #tpu.dot_dimension_numbers<[1], [0], [0], [1], [0, 0, 1, 1], [], []>} : vector<256x4xf32>, vector<4x8xf32>, vector<256x8xf32> -> vector<256x8xf32>
    %24 = arith.addf %18, %23 : vector<256x8xf32>
    %25 = vector.extract_strided_slice %1 {offsets = [1, 1, 0], sizes = [16, 16, 4], strides = [1, 1, 1]} : vector<18x18x4xf32> to vector<16x16x4xf32>
    %26 = vector.shape_cast %25 : vector<16x16x4xf32> to vector<256x4xf32>
    %c4 = arith.constant 4 : index
    %c0_15 = arith.constant 0 : index
    %c0_16 = arith.constant 0 : index
    %27 = vector.load %arg2[%c4, %c0_15, %c0_16] : memref<9x4x8xf32, #tpu.memory_space<vmem>>, vector<1x4x8xf32>
    %28 = vector.shape_cast %27 : vector<1x4x8xf32> to vector<4x8xf32>
    %cst_17 = arith.constant dense<0.000000e+00> : vector<256x8xf32>
    %29 = tpu.matmul %26, %28, %cst_17 {dimension_numbers = #tpu.dot_dimension_numbers<[1], [0], [0], [1], [0, 0, 1, 1], [], []>} : vector<256x4xf32>, vector<4x8xf32>, vector<256x8xf32> -> vector<256x8xf32>
    %30 = arith.addf %24, %29 : vector<256x8xf32>
    %31 = vector.extract_strided_slice %1 {offsets = [1, 2, 0], sizes = [16, 16, 4], strides = [1, 1, 1]} : vector<18x18x4xf32> to vector<16x16x4xf32>
    %32 = vector.shape_cast %31 : vector<16x16x4xf32> to vector<256x4xf32>
    %c5 = arith.constant 5 : index
    %c0_18 = arith.constant 0 : index
    %c0_19 = arith.constant 0 : index
    %33 = vector.load %arg2[%c5, %c0_18, %c0_19] : memref<9x4x8xf32, #tpu.memory_space<vmem>>, vector<1x4x8xf32>
    %34 = vector.shape_cast %33 : vector<1x4x8xf32> to vector<4x8xf32>
    %cst_20 = arith.constant dense<0.000000e+00> : vector<256x8xf32>
    %35 = tpu.matmul %32, %34, %cst_20 {dimension_numbers = #tpu.dot_dimension_numbers<[1], [0], [0], [1], [0, 0, 1, 1], [], []>} : vector<256x4xf32>, vector<4x8xf32>, vector<256x8xf32> -> vector<256x8xf32>
    %36 = arith.addf %30, %35 : vector<256x8xf32>
    %37 = vector.extract_strided_slice %1 {offsets = [2, 0, 0], sizes = [16, 16, 4], strides = [1, 1, 1]} : vector<18x18x4xf32> to vector<16x16x4xf32>
    %38 = vector.shape_cast %37 : vector<16x16x4xf32> to vector<256x4xf32>
    %c6 = arith.constant 6 : index
    %c0_21 = arith.constant 0 : index
    %c0_22 = arith.constant 0 : index
    %39 = vector.load %arg2[%c6, %c0_21, %c0_22] : memref<9x4x8xf32, #tpu.memory_space<vmem>>, vector<1x4x8xf32>
    %40 = vector.shape_cast %39 : vector<1x4x8xf32> to vector<4x8xf32>
    %cst_23 = arith.constant dense<0.000000e+00> : vector<256x8xf32>
    %41 = tpu.matmul %38, %40, %cst_23 {dimension_numbers = #tpu.dot_dimension_numbers<[1], [0], [0], [1], [0, 0, 1, 1], [], []>} : vector<256x4xf32>, vector<4x8xf32>, vector<256x8xf32> -> vector<256x8xf32>
    %42 = arith.addf %36, %41 : vector<256x8xf32>
    %43 = vector.extract_strided_slice %1 {offsets = [2, 1, 0], sizes = [16, 16, 4], strides = [1, 1, 1]} : vector<18x18x4xf32> to vector<16x16x4xf32>
    %44 = vector.shape_cast %43 : vector<16x16x4xf32> to vector<256x4xf32>
    %c7 = arith.constant 7 : index
    %c0_24 = arith.constant 0 : index
    %c0_25 = arith.constant 0 : index
    %45 = vector.load %arg2[%c7, %c0_24, %c0_25] : memref<9x4x8xf32, #tpu.memory_space<vmem>>, vector<1x4x8xf32>
    %46 = vector.shape_cast %45 : vector<1x4x8xf32> to vector<4x8xf32>
    %cst_26 = arith.constant dense<0.000000e+00> : vector<256x8xf32>
    %47 = tpu.matmul %44, %46, %cst_26 {dimension_numbers = #tpu.dot_dimension_numbers<[1], [0], [0], [1], [0, 0, 1, 1], [], []>} : vector<256x4xf32>, vector<4x8xf32>, vector<256x8xf32> -> vector<256x8xf32>
    %48 = arith.addf %42, %47 : vector<256x8xf32>
    %49 = vector.extract_strided_slice %1 {offsets = [2, 2, 0], sizes = [16, 16, 4], strides = [1, 1, 1]} : vector<18x18x4xf32> to vector<16x16x4xf32>
    %50 = vector.shape_cast %49 : vector<16x16x4xf32> to vector<256x4xf32>
    %c8 = arith.constant 8 : index
    %c0_27 = arith.constant 0 : index
    %c0_28 = arith.constant 0 : index
    %51 = vector.load %arg2[%c8, %c0_27, %c0_28] : memref<9x4x8xf32, #tpu.memory_space<vmem>>, vector<1x4x8xf32>
    %52 = vector.shape_cast %51 : vector<1x4x8xf32> to vector<4x8xf32>
    %cst_29 = arith.constant dense<0.000000e+00> : vector<256x8xf32>
    %53 = tpu.matmul %50, %52, %cst_29 {dimension_numbers = #tpu.dot_dimension_numbers<[1], [0], [0], [1], [0, 0, 1, 1], [], []>} : vector<256x4xf32>, vector<4x8xf32>, vector<256x8xf32> -> vector<256x8xf32>
    %54 = arith.addf %48, %53 : vector<256x8xf32>
    %c0_30 = arith.constant 0 : index
    %c0_31 = arith.constant 0 : index
    %55 = vector.load %arg3[%c0_30, %c0_31] : memref<1x8xf32, #tpu.memory_space<vmem>>, vector<1x8xf32>
    %56 = vector.broadcast %55 : vector<1x8xf32> to vector<256x8xf32>
    %57 = arith.addf %54, %56 : vector<256x8xf32>
    %c0_32 = arith.constant 0 : index
    %c0_33 = arith.constant 0 : index
    %c0_34 = arith.constant 0 : index
    %58 = vector.load %arg4[%c0_32, %c0_33, %c0_34] : memref<1x256x8xf32, #tpu.memory_space<vmem>>, vector<1x256x8xf32>
    %59 = vector.shape_cast %58 : vector<1x256x8xf32> to vector<256x8xf32>
    %60 = vector.shape_cast %57 : vector<256x8xf32> to vector<1x256x8xf32>
    tpu.vector_store %arg4[%c0_32, %c0_33, %c0_34], %60 {strides = array<i32>} : memref<1x256x8xf32, #tpu.memory_space<vmem>>, vector<1x256x8xf32>,
    %cst_35 = arith.constant dense<0.000000e+00> : vector<8xf32>
    %61 = vector.multi_reduction <add>, %57, %cst_35 [0] : vector<256x8xf32> to vector<8xf32>
    %62 = vector.shape_cast %61 : vector<8xf32> to vector<1x8xf32>
    %63 = arith.mulf %57, %57 : vector<256x8xf32>
    %cst_36 = arith.constant dense<0.000000e+00> : vector<8xf32>
    %64 = vector.multi_reduction <add>, %63, %cst_36 [0] : vector<256x8xf32> to vector<8xf32>
    %65 = vector.shape_cast %64 : vector<8xf32> to vector<1x8xf32>
    %66 = tpu.concatenate %62, %65 in 0 : vector<1x8xf32>, vector<1x8xf32> -> vector<2x8xf32>
    %c0_37 = arith.constant 0 : index
    %c0_38 = arith.constant 0 : index
    %c0_39 = arith.constant 0 : index
    %67 = vector.load %arg5[%c0_37, %c0_38, %c0_39] : memref<1x2x8xf32, #tpu.memory_space<vmem>>, vector<1x2x8xf32>
    %68 = vector.shape_cast %67 : vector<1x2x8xf32> to vector<2x8xf32>
    %69 = vector.shape_cast %66 : vector<2x8xf32> to vector<1x2x8xf32>
    tpu.vector_store %arg5[%c0_37, %c0_38, %c0_39], %69 {strides = array<i32>} : memref<1x2x8xf32, #tpu.memory_space<vmem>>, vector<1x2x8xf32>,
    return
  }
  func.func @transform_0(%arg0: i32) -> (i32, i32, i32, i32) {
    %c0_i32 = arith.constant 0 : i32
    %c0_i32_0 = arith.constant 0 : i32
    %c0_i32_1 = arith.constant 0 : i32
    %c0_i32_2 = arith.constant 0 : i32
    return %arg0, %c0_i32, %c0_i32_0, %c0_i32_1 : i32, i32, i32, i32
  }
  func.func @transform_1(%arg0: i32) -> (i32, i32, i32) {
    %c0_i32 = arith.constant 0 : i32
    %c0_i32_0 = arith.constant 0 : i32
    %c0_i32_1 = arith.constant 0 : i32
    %c0_i32_2 = arith.constant 0 : i32
    return %c0_i32, %c0_i32_0, %c0_i32_1 : i32, i32, i32
  }
  func.func @transform_2(%arg0: i32) -> (i32, i32) {
    %c0_i32 = arith.constant 0 : i32
    %c0_i32_0 = arith.constant 0 : i32
    %c0_i32_1 = arith.constant 0 : i32
    return %c0_i32, %c0_i32_0 : i32, i32
  }
  func.func @transform_3(%arg0: i32) -> (i32, i32, i32) {
    %c0_i32 = arith.constant 0 : i32
    %c0_i32_0 = arith.constant 0 : i32
    %c0_i32_1 = arith.constant 0 : i32
    return %arg0, %c0_i32, %c0_i32_0 : i32, i32, i32
  }
  func.func @transform_4(%arg0: i32) -> (i32, i32, i32) {
    %c0_i32 = arith.constant 0 : i32
    %c0_i32_0 = arith.constant 0 : i32
    %c0_i32_1 = arith.constant 0 : i32
    return %arg0, %c0_i32, %c0_i32_0 : i32, i32, i32
  }
}

module attributes {stable_mosaic.version = 11 : i64} {
  func.func @bn1_conv2_kernel(%arg0: i32, %arg1: memref<1x256x8xf32, #tpu.memory_space<vmem>>, %arg2: memref<1x1x8xf32, #tpu.memory_space<vmem>>, %arg3: memref<1x8xf32, #tpu.memory_space<vmem>>, %arg4: memref<1x8xf32, #tpu.memory_space<vmem>>, %arg5: memref<9x8x8xf32, #tpu.memory_space<vmem>>, %arg6: memref<1x8xf32, #tpu.memory_space<vmem>>, %arg7: memref<1x256x8xf32, #tpu.memory_space<vmem>>, %arg8: memref<1x2x8xf32, #tpu.memory_space<vmem>>, %arg9: memref<18x18x8xf32, #tpu.memory_space<vmem>>) attributes {dimension_semantics = [#tpu.dimension_semantics<parallel>], iteration_bounds = array<i64: 2>, scalar_prefetch = 0 : i64, scratch_operands = 1 : i64, tpu.core_type = #tpu.core_type<tc>, window_params = [{transform_indices = @transform_0, window_bounds = array<i64: 1, 256, 8>}, {transform_indices = @transform_1, window_bounds = array<i64: 1, 1, 8>}, {pipeline_mode = #tpu.pipeline_mode<synchronous>, transform_indices = @transform_2, window_bounds = array<i64: 1, 8>}, {pipeline_mode = #tpu.pipeline_mode<synchronous>, transform_indices = @transform_3, window_bounds = array<i64: 1, 8>}, {pipeline_mode = #tpu.pipeline_mode<synchronous>, transform_indices = @transform_4, window_bounds = array<i64: 9, 8, 8>}, {pipeline_mode = #tpu.pipeline_mode<synchronous>, transform_indices = @transform_5, window_bounds = array<i64: 1, 8>}, {transform_indices = @transform_6, window_bounds = array<i64: 1, 256, 8>}, {transform_indices = @transform_7, window_bounds = array<i64: 1, 2, 8>}]} {
    %c0 = arith.constant 0 : index
    %c0_0 = arith.constant 0 : index
    %c0_1 = arith.constant 0 : index
    %0 = vector.load %arg1[%c0, %c0_0, %c0_1] : memref<1x256x8xf32, #tpu.memory_space<vmem>>, vector<1x256x8xf32>
    %1 = vector.shape_cast %0 : vector<1x256x8xf32> to vector<256x8xf32>
    %c0_2 = arith.constant 0 : index
    %c0_3 = arith.constant 0 : index
    %2 = vector.load %arg3[%c0_2, %c0_3] : memref<1x8xf32, #tpu.memory_space<vmem>>, vector<1x8xf32>
    %3 = vector.broadcast %2 : vector<1x8xf32> to vector<256x8xf32>
    %4 = arith.mulf %1, %3 : vector<256x8xf32>
    %c0_4 = arith.constant 0 : index
    %c0_5 = arith.constant 0 : index
    %5 = vector.load %arg4[%c0_4, %c0_5] : memref<1x8xf32, #tpu.memory_space<vmem>>, vector<1x8xf32>
    %6 = vector.broadcast %5 : vector<1x8xf32> to vector<256x8xf32>
    %7 = arith.addf %4, %6 : vector<256x8xf32>
    %cst = arith.constant 0.000000e+00 : f32
    %8 = vector.broadcast %cst : f32 to vector<256x8xf32>
    %9 = arith.maximumf %7, %8 : vector<256x8xf32>
    %c0_6 = arith.constant 0 : index
    %c0_7 = arith.constant 0 : index
    %c0_8 = arith.constant 0 : index
    %10 = vector.load %arg2[%c0_6, %c0_7, %c0_8] : memref<1x1x8xf32, #tpu.memory_space<vmem>>, vector<1x1x8xf32>
    %11 = vector.shape_cast %10 : vector<1x1x8xf32> to vector<1x8xf32>
    %12 = vector.broadcast %11 : vector<1x8xf32> to vector<256x8xf32>
    %13 = arith.addf %9, %12 : vector<256x8xf32>
    %cst_9 = arith.constant 0.000000e+00 : f32
    %14 = vector.broadcast %cst_9 : f32 to vector<1x18x8xf32>
    %cst_10 = arith.constant 0.000000e+00 : f32
    %15 = vector.broadcast %cst_10 : f32 to vector<16x1x8xf32>
    %c0_11 = arith.constant 0 : index
    %c0_12 = arith.constant 0 : index
    %c0_13 = arith.constant 0 : index
    %16 = vector.load %arg9[%c0_11, %c0_12, %c0_13] : memref<18x18x8xf32, #tpu.memory_space<vmem>>, vector<1x18x8xf32>
    tpu.vector_store %arg9[%c0_11, %c0_12, %c0_13], %14 {strides = array<i32>} : memref<18x18x8xf32, #tpu.memory_space<vmem>>, vector<1x18x8xf32>,
    %c17 = arith.constant 17 : index
    %c0_14 = arith.constant 0 : index
    %c0_15 = arith.constant 0 : index
    %17 = vector.load %arg9[%c17, %c0_14, %c0_15] : memref<18x18x8xf32, #tpu.memory_space<vmem>>, vector<1x18x8xf32>
    tpu.vector_store %arg9[%c17, %c0_14, %c0_15], %14 {strides = array<i32>} : memref<18x18x8xf32, #tpu.memory_space<vmem>>, vector<1x18x8xf32>,
    %c1 = arith.constant 1 : index
    %c0_16 = arith.constant 0 : index
    %c0_17 = arith.constant 0 : index
    %18 = vector.load %arg9[%c1, %c0_16, %c0_17] : memref<18x18x8xf32, #tpu.memory_space<vmem>>, vector<16x1x8xf32>
    tpu.vector_store %arg9[%c1, %c0_16, %c0_17], %15 {strides = array<i32>} : memref<18x18x8xf32, #tpu.memory_space<vmem>>, vector<16x1x8xf32>,
    %c1_18 = arith.constant 1 : index
    %c17_19 = arith.constant 17 : index
    %c0_20 = arith.constant 0 : index
    %19 = vector.load %arg9[%c1_18, %c17_19, %c0_20] : memref<18x18x8xf32, #tpu.memory_space<vmem>>, vector<16x1x8xf32>
    tpu.vector_store %arg9[%c1_18, %c17_19, %c0_20], %15 {strides = array<i32>} : memref<18x18x8xf32, #tpu.memory_space<vmem>>, vector<16x1x8xf32>,
    %20 = vector.shape_cast %13 : vector<256x8xf32> to vector<16x16x8xf32>
    %c1_21 = arith.constant 1 : index
    %c1_22 = arith.constant 1 : index
    %c0_23 = arith.constant 0 : index
    %21 = vector.load %arg9[%c1_21, %c1_22, %c0_23] : memref<18x18x8xf32, #tpu.memory_space<vmem>>, vector<16x16x8xf32>
    tpu.vector_store %arg9[%c1_21, %c1_22, %c0_23], %20 {strides = array<i32>} : memref<18x18x8xf32, #tpu.memory_space<vmem>>, vector<16x16x8xf32>,
    %c0_24 = arith.constant 0 : index
    %c0_25 = arith.constant 0 : index
    %c0_26 = arith.constant 0 : index
    %22 = vector.load %arg9[%c0_24, %c0_25, %c0_26] : memref<18x18x8xf32, #tpu.memory_space<vmem>>, vector<18x18x8xf32>
    %23 = vector.extract_strided_slice %22 {offsets = [0, 0, 0], sizes = [16, 16, 8], strides = [1, 1, 1]} : vector<18x18x8xf32> to vector<16x16x8xf32>
    %24 = vector.shape_cast %23 : vector<16x16x8xf32> to vector<256x8xf32>
    %c0_27 = arith.constant 0 : index
    %c0_28 = arith.constant 0 : index
    %c0_29 = arith.constant 0 : index
    %25 = vector.load %arg5[%c0_27, %c0_28, %c0_29] : memref<9x8x8xf32, #tpu.memory_space<vmem>>, vector<1x8x8xf32>
    %26 = vector.shape_cast %25 : vector<1x8x8xf32> to vector<8x8xf32>
    %cst_30 = arith.constant dense<0.000000e+00> : vector<256x8xf32>
    %27 = tpu.matmul %24, %26, %cst_30 {dimension_numbers = #tpu.dot_dimension_numbers<[1], [0], [0], [1], [0, 0, 1, 1], [], []>} : vector<256x8xf32>, vector<8x8xf32>, vector<256x8xf32> -> vector<256x8xf32>
    %28 = vector.extract_strided_slice %22 {offsets = [0, 1, 0], sizes = [16, 16, 8], strides = [1, 1, 1]} : vector<18x18x8xf32> to vector<16x16x8xf32>
    %29 = vector.shape_cast %28 : vector<16x16x8xf32> to vector<256x8xf32>
    %c1_31 = arith.constant 1 : index
    %c0_32 = arith.constant 0 : index
    %c0_33 = arith.constant 0 : index
    %30 = vector.load %arg5[%c1_31, %c0_32, %c0_33] : memref<9x8x8xf32, #tpu.memory_space<vmem>>, vector<1x8x8xf32>
    %31 = vector.shape_cast %30 : vector<1x8x8xf32> to vector<8x8xf32>
    %cst_34 = arith.constant dense<0.000000e+00> : vector<256x8xf32>
    %32 = tpu.matmul %29, %31, %cst_34 {dimension_numbers = #tpu.dot_dimension_numbers<[1], [0], [0], [1], [0, 0, 1, 1], [], []>} : vector<256x8xf32>, vector<8x8xf32>, vector<256x8xf32> -> vector<256x8xf32>
    %33 = arith.addf %27, %32 : vector<256x8xf32>
    %34 = vector.extract_strided_slice %22 {offsets = [0, 2, 0], sizes = [16, 16, 8], strides = [1, 1, 1]} : vector<18x18x8xf32> to vector<16x16x8xf32>
    %35 = vector.shape_cast %34 : vector<16x16x8xf32> to vector<256x8xf32>
    %c2 = arith.constant 2 : index
    %c0_35 = arith.constant 0 : index
    %c0_36 = arith.constant 0 : index
    %36 = vector.load %arg5[%c2, %c0_35, %c0_36] : memref<9x8x8xf32, #tpu.memory_space<vmem>>, vector<1x8x8xf32>
    %37 = vector.shape_cast %36 : vector<1x8x8xf32> to vector<8x8xf32>
    %cst_37 = arith.constant dense<0.000000e+00> : vector<256x8xf32>
    %38 = tpu.matmul %35, %37, %cst_37 {dimension_numbers = #tpu.dot_dimension_numbers<[1], [0], [0], [1], [0, 0, 1, 1], [], []>} : vector<256x8xf32>, vector<8x8xf32>, vector<256x8xf32> -> vector<256x8xf32>
    %39 = arith.addf %33, %38 : vector<256x8xf32>
    %40 = vector.extract_strided_slice %22 {offsets = [1, 0, 0], sizes = [16, 16, 8], strides = [1, 1, 1]} : vector<18x18x8xf32> to vector<16x16x8xf32>
    %41 = vector.shape_cast %40 : vector<16x16x8xf32> to vector<256x8xf32>
    %c3 = arith.constant 3 : index
    %c0_38 = arith.constant 0 : index
    %c0_39 = arith.constant 0 : index
    %42 = vector.load %arg5[%c3, %c0_38, %c0_39] : memref<9x8x8xf32, #tpu.memory_space<vmem>>, vector<1x8x8xf32>
    %43 = vector.shape_cast %42 : vector<1x8x8xf32> to vector<8x8xf32>
    %cst_40 = arith.constant dense<0.000000e+00> : vector<256x8xf32>
    %44 = tpu.matmul %41, %43, %cst_40 {dimension_numbers = #tpu.dot_dimension_numbers<[1], [0], [0], [1], [0, 0, 1, 1], [], []>} : vector<256x8xf32>, vector<8x8xf32>, vector<256x8xf32> -> vector<256x8xf32>
    %45 = arith.addf %39, %44 : vector<256x8xf32>
    %46 = vector.extract_strided_slice %22 {offsets = [1, 1, 0], sizes = [16, 16, 8], strides = [1, 1, 1]} : vector<18x18x8xf32> to vector<16x16x8xf32>
    %47 = vector.shape_cast %46 : vector<16x16x8xf32> to vector<256x8xf32>
    %c4 = arith.constant 4 : index
    %c0_41 = arith.constant 0 : index
    %c0_42 = arith.constant 0 : index
    %48 = vector.load %arg5[%c4, %c0_41, %c0_42] : memref<9x8x8xf32, #tpu.memory_space<vmem>>, vector<1x8x8xf32>
    %49 = vector.shape_cast %48 : vector<1x8x8xf32> to vector<8x8xf32>
    %cst_43 = arith.constant dense<0.000000e+00> : vector<256x8xf32>
    %50 = tpu.matmul %47, %49, %cst_43 {dimension_numbers = #tpu.dot_dimension_numbers<[1], [0], [0], [1], [0, 0, 1, 1], [], []>} : vector<256x8xf32>, vector<8x8xf32>, vector<256x8xf32> -> vector<256x8xf32>
    %51 = arith.addf %45, %50 : vector<256x8xf32>
    %52 = vector.extract_strided_slice %22 {offsets = [1, 2, 0], sizes = [16, 16, 8], strides = [1, 1, 1]} : vector<18x18x8xf32> to vector<16x16x8xf32>
    %53 = vector.shape_cast %52 : vector<16x16x8xf32> to vector<256x8xf32>
    %c5 = arith.constant 5 : index
    %c0_44 = arith.constant 0 : index
    %c0_45 = arith.constant 0 : index
    %54 = vector.load %arg5[%c5, %c0_44, %c0_45] : memref<9x8x8xf32, #tpu.memory_space<vmem>>, vector<1x8x8xf32>
    %55 = vector.shape_cast %54 : vector<1x8x8xf32> to vector<8x8xf32>
    %cst_46 = arith.constant dense<0.000000e+00> : vector<256x8xf32>
    %56 = tpu.matmul %53, %55, %cst_46 {dimension_numbers = #tpu.dot_dimension_numbers<[1], [0], [0], [1], [0, 0, 1, 1], [], []>} : vector<256x8xf32>, vector<8x8xf32>, vector<256x8xf32> -> vector<256x8xf32>
    %57 = arith.addf %51, %56 : vector<256x8xf32>
    %58 = vector.extract_strided_slice %22 {offsets = [2, 0, 0], sizes = [16, 16, 8], strides = [1, 1, 1]} : vector<18x18x8xf32> to vector<16x16x8xf32>
    %59 = vector.shape_cast %58 : vector<16x16x8xf32> to vector<256x8xf32>
    %c6 = arith.constant 6 : index
    %c0_47 = arith.constant 0 : index
    %c0_48 = arith.constant 0 : index
    %60 = vector.load %arg5[%c6, %c0_47, %c0_48] : memref<9x8x8xf32, #tpu.memory_space<vmem>>, vector<1x8x8xf32>
    %61 = vector.shape_cast %60 : vector<1x8x8xf32> to vector<8x8xf32>
    %cst_49 = arith.constant dense<0.000000e+00> : vector<256x8xf32>
    %62 = tpu.matmul %59, %61, %cst_49 {dimension_numbers = #tpu.dot_dimension_numbers<[1], [0], [0], [1], [0, 0, 1, 1], [], []>} : vector<256x8xf32>, vector<8x8xf32>, vector<256x8xf32> -> vector<256x8xf32>
    %63 = arith.addf %57, %62 : vector<256x8xf32>
    %64 = vector.extract_strided_slice %22 {offsets = [2, 1, 0], sizes = [16, 16, 8], strides = [1, 1, 1]} : vector<18x18x8xf32> to vector<16x16x8xf32>
    %65 = vector.shape_cast %64 : vector<16x16x8xf32> to vector<256x8xf32>
    %c7 = arith.constant 7 : index
    %c0_50 = arith.constant 0 : index
    %c0_51 = arith.constant 0 : index
    %66 = vector.load %arg5[%c7, %c0_50, %c0_51] : memref<9x8x8xf32, #tpu.memory_space<vmem>>, vector<1x8x8xf32>
    %67 = vector.shape_cast %66 : vector<1x8x8xf32> to vector<8x8xf32>
    %cst_52 = arith.constant dense<0.000000e+00> : vector<256x8xf32>
    %68 = tpu.matmul %65, %67, %cst_52 {dimension_numbers = #tpu.dot_dimension_numbers<[1], [0], [0], [1], [0, 0, 1, 1], [], []>} : vector<256x8xf32>, vector<8x8xf32>, vector<256x8xf32> -> vector<256x8xf32>
    %69 = arith.addf %63, %68 : vector<256x8xf32>
    %70 = vector.extract_strided_slice %22 {offsets = [2, 2, 0], sizes = [16, 16, 8], strides = [1, 1, 1]} : vector<18x18x8xf32> to vector<16x16x8xf32>
    %71 = vector.shape_cast %70 : vector<16x16x8xf32> to vector<256x8xf32>
    %c8 = arith.constant 8 : index
    %c0_53 = arith.constant 0 : index
    %c0_54 = arith.constant 0 : index
    %72 = vector.load %arg5[%c8, %c0_53, %c0_54] : memref<9x8x8xf32, #tpu.memory_space<vmem>>, vector<1x8x8xf32>
    %73 = vector.shape_cast %72 : vector<1x8x8xf32> to vector<8x8xf32>
    %cst_55 = arith.constant dense<0.000000e+00> : vector<256x8xf32>
    %74 = tpu.matmul %71, %73, %cst_55 {dimension_numbers = #tpu.dot_dimension_numbers<[1], [0], [0], [1], [0, 0, 1, 1], [], []>} : vector<256x8xf32>, vector<8x8xf32>, vector<256x8xf32> -> vector<256x8xf32>
    %75 = arith.addf %69, %74 : vector<256x8xf32>
    %c0_56 = arith.constant 0 : index
    %c0_57 = arith.constant 0 : index
    %76 = vector.load %arg6[%c0_56, %c0_57] : memref<1x8xf32, #tpu.memory_space<vmem>>, vector<1x8xf32>
    %77 = vector.broadcast %76 : vector<1x8xf32> to vector<256x8xf32>
    %78 = arith.addf %75, %77 : vector<256x8xf32>
    %c0_58 = arith.constant 0 : index
    %c0_59 = arith.constant 0 : index
    %c0_60 = arith.constant 0 : index
    %79 = vector.load %arg7[%c0_58, %c0_59, %c0_60] : memref<1x256x8xf32, #tpu.memory_space<vmem>>, vector<1x256x8xf32>
    %80 = vector.shape_cast %79 : vector<1x256x8xf32> to vector<256x8xf32>
    %81 = vector.shape_cast %78 : vector<256x8xf32> to vector<1x256x8xf32>
    tpu.vector_store %arg7[%c0_58, %c0_59, %c0_60], %81 {strides = array<i32>} : memref<1x256x8xf32, #tpu.memory_space<vmem>>, vector<1x256x8xf32>,
    %cst_61 = arith.constant dense<0.000000e+00> : vector<8xf32>
    %82 = vector.multi_reduction <add>, %78, %cst_61 [0] : vector<256x8xf32> to vector<8xf32>
    %83 = vector.shape_cast %82 : vector<8xf32> to vector<1x8xf32>
    %84 = arith.mulf %78, %78 : vector<256x8xf32>
    %cst_62 = arith.constant dense<0.000000e+00> : vector<8xf32>
    %85 = vector.multi_reduction <add>, %84, %cst_62 [0] : vector<256x8xf32> to vector<8xf32>
    %86 = vector.shape_cast %85 : vector<8xf32> to vector<1x8xf32>
    %87 = tpu.concatenate %83, %86 in 0 : vector<1x8xf32>, vector<1x8xf32> -> vector<2x8xf32>
    %c0_63 = arith.constant 0 : index
    %c0_64 = arith.constant 0 : index
    %c0_65 = arith.constant 0 : index
    %88 = vector.load %arg8[%c0_63, %c0_64, %c0_65] : memref<1x2x8xf32, #tpu.memory_space<vmem>>, vector<1x2x8xf32>
    %89 = vector.shape_cast %88 : vector<1x2x8xf32> to vector<2x8xf32>
    %90 = vector.shape_cast %87 : vector<2x8xf32> to vector<1x2x8xf32>
    tpu.vector_store %arg8[%c0_63, %c0_64, %c0_65], %90 {strides = array<i32>} : memref<1x2x8xf32, #tpu.memory_space<vmem>>, vector<1x2x8xf32>,
    return
  }
  func.func @transform_0(%arg0: i32) -> (i32, i32, i32) {
    %c0_i32 = arith.constant 0 : i32
    %c0_i32_0 = arith.constant 0 : i32
    %c0_i32_1 = arith.constant 0 : i32
    return %arg0, %c0_i32, %c0_i32_0 : i32, i32, i32
  }
  func.func @transform_1(%arg0: i32) -> (i32, i32, i32) {
    %c0_i32 = arith.constant 0 : i32
    %c0_i32_0 = arith.constant 0 : i32
    %c0_i32_1 = arith.constant 0 : i32
    return %arg0, %c0_i32, %c0_i32_0 : i32, i32, i32
  }
  func.func @transform_2(%arg0: i32) -> (i32, i32) {
    %c0_i32 = arith.constant 0 : i32
    %c0_i32_0 = arith.constant 0 : i32
    %c0_i32_1 = arith.constant 0 : i32
    return %c0_i32, %c0_i32_0 : i32, i32
  }
  func.func @transform_3(%arg0: i32) -> (i32, i32) {
    %c0_i32 = arith.constant 0 : i32
    %c0_i32_0 = arith.constant 0 : i32
    %c0_i32_1 = arith.constant 0 : i32
    return %c0_i32, %c0_i32_0 : i32, i32
  }
  func.func @transform_4(%arg0: i32) -> (i32, i32, i32) {
    %c0_i32 = arith.constant 0 : i32
    %c0_i32_0 = arith.constant 0 : i32
    %c0_i32_1 = arith.constant 0 : i32
    %c0_i32_2 = arith.constant 0 : i32
    return %c0_i32, %c0_i32_0, %c0_i32_1 : i32, i32, i32
  }
  func.func @transform_5(%arg0: i32) -> (i32, i32) {
    %c0_i32 = arith.constant 0 : i32
    %c0_i32_0 = arith.constant 0 : i32
    %c0_i32_1 = arith.constant 0 : i32
    return %c0_i32, %c0_i32_0 : i32, i32
  }
  func.func @transform_6(%arg0: i32) -> (i32, i32, i32) {
    %c0_i32 = arith.constant 0 : i32
    %c0_i32_0 = arith.constant 0 : i32
    %c0_i32_1 = arith.constant 0 : i32
    return %arg0, %c0_i32, %c0_i32_0 : i32, i32, i32
  }
  func.func @transform_7(%arg0: i32) -> (i32, i32, i32) {
    %c0_i32 = arith.constant 0 : i32
    %c0_i32_0 = arith.constant 0 : i32
    %c0_i32_1 = arith.constant 0 : i32
    return %arg0, %c0_i32, %c0_i32_0 : i32, i32, i32
  }
}

module attributes {stable_mosaic.version = 11 : i64} {
  func.func @bn2_res_kernel(%arg0: i32, %arg1: memref<1x256x8xf32, #tpu.memory_space<vmem>>, %arg2: memref<1x8xf32, #tpu.memory_space<vmem>>, %arg3: memref<1x8xf32, #tpu.memory_space<vmem>>, %arg4: memref<1x256x4xf32, #tpu.memory_space<vmem>>, %arg5: memref<4x8xf32, #tpu.memory_space<vmem>>, %arg6: memref<1x8xf32, #tpu.memory_space<vmem>>, %arg7: memref<1x256x8xf32, #tpu.memory_space<vmem>>) attributes {dimension_semantics = [#tpu.dimension_semantics<parallel>], iteration_bounds = array<i64: 2>, scalar_prefetch = 0 : i64, scratch_operands = 0 : i64, tpu.core_type = #tpu.core_type<tc>, window_params = [{transform_indices = @transform_0, window_bounds = array<i64: 1, 256, 8>}, {pipeline_mode = #tpu.pipeline_mode<synchronous>, transform_indices = @transform_1, window_bounds = array<i64: 1, 8>}, {pipeline_mode = #tpu.pipeline_mode<synchronous>, transform_indices = @transform_2, window_bounds = array<i64: 1, 8>}, {transform_indices = @transform_3, window_bounds = array<i64: 1, 256, 4>}, {pipeline_mode = #tpu.pipeline_mode<synchronous>, transform_indices = @transform_4, window_bounds = array<i64: 4, 8>}, {pipeline_mode = #tpu.pipeline_mode<synchronous>, transform_indices = @transform_5, window_bounds = array<i64: 1, 8>}, {transform_indices = @transform_6, window_bounds = array<i64: 1, 256, 8>}]} {
    %c0 = arith.constant 0 : index
    %c0_0 = arith.constant 0 : index
    %c0_1 = arith.constant 0 : index
    %0 = vector.load %arg1[%c0, %c0_0, %c0_1] : memref<1x256x8xf32, #tpu.memory_space<vmem>>, vector<1x256x8xf32>
    %1 = vector.shape_cast %0 : vector<1x256x8xf32> to vector<256x8xf32>
    %c0_2 = arith.constant 0 : index
    %c0_3 = arith.constant 0 : index
    %2 = vector.load %arg2[%c0_2, %c0_3] : memref<1x8xf32, #tpu.memory_space<vmem>>, vector<1x8xf32>
    %3 = vector.broadcast %2 : vector<1x8xf32> to vector<256x8xf32>
    %4 = arith.mulf %1, %3 : vector<256x8xf32>
    %c0_4 = arith.constant 0 : index
    %c0_5 = arith.constant 0 : index
    %5 = vector.load %arg3[%c0_4, %c0_5] : memref<1x8xf32, #tpu.memory_space<vmem>>, vector<1x8xf32>
    %6 = vector.broadcast %5 : vector<1x8xf32> to vector<256x8xf32>
    %7 = arith.addf %4, %6 : vector<256x8xf32>
    %cst = arith.constant 0.000000e+00 : f32
    %8 = vector.broadcast %cst : f32 to vector<256x8xf32>
    %9 = arith.maximumf %7, %8 : vector<256x8xf32>
    %c0_6 = arith.constant 0 : index
    %c0_7 = arith.constant 0 : index
    %c0_8 = arith.constant 0 : index
    %10 = vector.load %arg4[%c0_6, %c0_7, %c0_8] : memref<1x256x4xf32, #tpu.memory_space<vmem>>, vector<1x256x4xf32>
    %11 = vector.shape_cast %10 : vector<1x256x4xf32> to vector<256x4xf32>
    %c0_9 = arith.constant 0 : index
    %c0_10 = arith.constant 0 : index
    %12 = vector.load %arg5[%c0_9, %c0_10] : memref<4x8xf32, #tpu.memory_space<vmem>>, vector<4x8xf32>
    %cst_11 = arith.constant dense<0.000000e+00> : vector<256x8xf32>
    %13 = tpu.matmul %11, %12, %cst_11 {dimension_numbers = #tpu.dot_dimension_numbers<[1], [0], [0], [1], [0, 0, 1, 1], [], []>} : vector<256x4xf32>, vector<4x8xf32>, vector<256x8xf32> -> vector<256x8xf32>
    %c0_12 = arith.constant 0 : index
    %c0_13 = arith.constant 0 : index
    %14 = vector.load %arg6[%c0_12, %c0_13] : memref<1x8xf32, #tpu.memory_space<vmem>>, vector<1x8xf32>
    %15 = vector.broadcast %14 : vector<1x8xf32> to vector<256x8xf32>
    %16 = arith.addf %13, %15 : vector<256x8xf32>
    %17 = arith.addf %9, %16 : vector<256x8xf32>
    %c0_14 = arith.constant 0 : index
    %c0_15 = arith.constant 0 : index
    %c0_16 = arith.constant 0 : index
    %18 = vector.load %arg7[%c0_14, %c0_15, %c0_16] : memref<1x256x8xf32, #tpu.memory_space<vmem>>, vector<1x256x8xf32>
    %19 = vector.shape_cast %18 : vector<1x256x8xf32> to vector<256x8xf32>
    %20 = vector.shape_cast %17 : vector<256x8xf32> to vector<1x256x8xf32>
    tpu.vector_store %arg7[%c0_14, %c0_15, %c0_16], %20 {strides = array<i32>} : memref<1x256x8xf32, #tpu.memory_space<vmem>>, vector<1x256x8xf32>,
    return
  }
  func.func @transform_0(%arg0: i32) -> (i32, i32, i32) {
    %c0_i32 = arith.constant 0 : i32
    %c0_i32_0 = arith.constant 0 : i32
    %c0_i32_1 = arith.constant 0 : i32
    return %arg0, %c0_i32, %c0_i32_0 : i32, i32, i32
  }
  func.func @transform_1(%arg0: i32) -> (i32, i32) {
    %c0_i32 = arith.constant 0 : i32
    %c0_i32_0 = arith.constant 0 : i32
    %c0_i32_1 = arith.constant 0 : i32
    return %c0_i32, %c0_i32_0 : i32, i32
  }
  func.func @transform_2(%arg0: i32) -> (i32, i32) {
    %c0_i32 = arith.constant 0 : i32
    %c0_i32_0 = arith.constant 0 : i32
    %c0_i32_1 = arith.constant 0 : i32
    return %c0_i32, %c0_i32_0 : i32, i32
  }
  func.func @transform_3(%arg0: i32) -> (i32, i32, i32) {
    %c0_i32 = arith.constant 0 : i32
    %c0_i32_0 = arith.constant 0 : i32
    %c0_i32_1 = arith.constant 0 : i32
    return %arg0, %c0_i32, %c0_i32_0 : i32, i32, i32
  }
  func.func @transform_4(%arg0: i32) -> (i32, i32) {
    %c0_i32 = arith.constant 0 : i32
    %c0_i32_0 = arith.constant 0 : i32
    %c0_i32_1 = arith.constant 0 : i32
    return %c0_i32, %c0_i32_0 : i32, i32
  }
  func.func @transform_5(%arg0: i32) -> (i32, i32) {
    %c0_i32 = arith.constant 0 : i32
    %c0_i32_0 = arith.constant 0 : i32
    %c0_i32_1 = arith.constant 0 : i32
    return %c0_i32, %c0_i32_0 : i32, i32
  }
  func.func @transform_6(%arg0: i32) -> (i32, i32, i32) {
    %c0_i32 = arith.constant 0 : i32
    %c0_i32_0 = arith.constant 0 : i32
    %c0_i32_1 = arith.constant 0 : i32
    return %arg0, %c0_i32, %c0_i32_0 : i32, i32, i32
  }
}

</mosaic_0001>

<bundles_post_ra>
// kernel: resnet_block_forward.5
= control target key start
LH: loop header
LB: loop body
LE: loop exit
PB: predicated region body
PF: predicated region fallthrough
CT: control target
= control target key end

     0   :  { %s1100_s21 = smov 0   ;;  %s1488_s0 = inlined_call_operand.vmem [shape: f32[2,256,8], index: 0, kind: input, shape index: {}]   ;;  %s1489_s1 = inlined_call_operand.vmem [shape: f32[1,8], index: 1, kind: input, shape index: {}]   ;;  %s1490_s2 = inlined_call_operand.vmem [shape: f32[1,8], index: 2, kind: input, shape index: {}]   ;;  %s1491_s3 = inlined_call_operand.vmem [shape: f32[2,256,4], index: 3, kind: input, shape index: {}]   ;;  %s1492_s4 = inlined_call_operand.vmem [shape: f32[4,8], index: 4, kind: input, shape index: {}]   ;;  %s1493_s5 = inlined_call_operand.vmem [shape: f32[1,8], index: 5, kind: input, shape index: {}]   ;;  %s1494_s6 = inlined_call_operand.vmem [shape: f32[2,256,8], index: 6, kind: output, shape index: {}]  }
   0x1 LB: > { %s912_s22 = sadd.s32 4294967295, %s1063_s21   ;;  %p916_p0 = scmp.ge.s32.totalorder %s1063_s21, 1  ;;  %s1063_s21 = sphi %s1100_s21, %s16_s21  }
   0x2   : > { %p222_p1 = scmp.lt.s32.totalorder %s1063_s21, 3 }
   0x4   : > { %p223_p2 = pnand %p916_p0, %p222_p1 }
   0x5   : > { %p257_p3 = scmp.lt.s32.totalorder (!%p223_p2), %s912_s22, 1 }
   0x6   : > { %226 = sbr.rel (%p223_p2) target bundleno = 245 (0xf5), region = 44 }
   0xb   : > { %v446_v0 = vld [vmem:[%s1492_s4] sm:$0xf]  ;;  %vm551_vm0 = vcmask 1043456   ;;  %s1496_s22 = smov (!%p257_p3, %s912_s22), 1  ;;  %vm454_vm1 = vcmask 31744   ;;  %vm812_vm2 = vcmask 64512  }
   0xc   : > { %997 = vmatprep.subr.msk.mxu0 %vm551_vm0, %v446_v0  ;;  %1047 = vmatprep.subr.msk.mxu1 %vm551_vm0, %v446_v0  ;;  %s1111_s25 = sshll.u32 %s1496_s22, 8  ;;  %v1193_v34 = vld [vmem:[%s1489_s1] ss:$0 sm:$0xff] }
   0xd   : > { %998 = vmatpush3.msk.msra.mxu0 %vm551_vm0, %v446_v0  ;;  %1048 = vmatpush3.msk.msra.mxu1 %vm551_vm0, %v446_v0  ;;  %s1117_s28 = scalar_lea.vmem %s1491_s3, %s1111_s25  ;;  %s1187_s7 = scalar_lea.vmem %s1488_s0, %s1111_s25  ;;  %v1199_v36 = vld [vmem:[%s1490_s2] ss:$0 sm:$0xff] }
   0xe   : > { %v414_v1 = vld [vmem:[%s1117_s28] sm:$0xff]  ;;  %v415_v3 = vld [vmem:[%s1117_s28 + $0x8] sm:$0xff]  ;;  %v416_v5 = vld [vmem:[%s1117_s28 + $0x10] sm:$0xff]  ;;  %s1297_s16 = scalar_lea.vmem %s1494_s6, %s1111_s25 }
   0xf   : > { %v430_v2 = vld [vmem:[%s1117_s28 + $0x80] sm:$0xff]  ;;  %999 = vmatprep.mubr.msk.f32.mxu0 %vm454_vm1, %v414_v1  ;;  %v431_v4 = vld [vmem:[%s1117_s28 + $0x88] sm:$0xff]  ;;  %v432_v6 = vld [vmem:[%s1117_s28 + $0x90] sm:$0xff] }
  0x10   : > { %1023 = vmatprep.mubr.msk.f32.mxu1 %vm454_vm1, %v430_v2  ;;  %1000 = vmatmul.mubr.msk.f32.vlgmr.msra.gmra.mxu0 %vm454_vm1, %v415_v3  ;;  %v417_v7 = vld [vmem:[%s1117_s28 + $0x18] sm:$0xff]  ;;  %v418_v9 = vld [vmem:[%s1117_s28 + $0x20] sm:$0xff]  ;;  %v419_v11 = vld [vmem:[%s1117_s28 + $0x28] sm:$0xff] }
  0x11   : > { %1024 = vmatmul.mubr.msk.f32.vlgmr.msra.gmra.mxu1 %vm454_vm1, %v431_v4  ;;  %1002 = vmatprep.mubr.msk.f32.mxu0 %vm454_vm1, %v416_v5  ;;  %v433_v8 = vld [vmem:[%s1117_s28 + $0x98] sm:$0xff]  ;;  %v434_v10 = vld [vmem:[%s1117_s28 + $0xa0] sm:$0xff]  ;;  %v435_v12 = vld [vmem:[%s1117_s28 + $0xa8] sm:$0xff] }
  0x12   : > { %1026 = vmatprep.mubr.msk.f32.mxu1 %vm454_vm1, %v432_v6  ;;  %v420_v13 = vld [vmem:[%s1117_s28 + $0x30] sm:$0xff]  ;;  %v421_v15 = vld [vmem:[%s1117_s28 + $0x38] sm:$0xff]  ;;  %v422_v17 = vld [vmem:[%s1117_s28 + $0x40] sm:$0xff] }
  0x13   : > { %v436_v14 = vld [vmem:[%s1117_s28 + $0xb0] sm:$0xff]  ;;  %v437_v16 = vld [vmem:[%s1117_s28 + $0xb8] sm:$0xff]  ;;  %v438_v18 = vld [vmem:[%s1117_s28 + $0xc0] sm:$0xff] }
  0x14   : > { %1003 = vmatmul.mubr.msk.f32.gmra.mxu0 %vm454_vm1, %v417_v7  ;;  %v423_v19 = vld [vmem:[%s1117_s28 + $0x48] sm:$0xff]  ;;  %v424_v21 = vld [vmem:[%s1117_s28 + $0x50] sm:$0xff]  ;;  %v425_v23 = vld [vmem:[%s1117_s28 + $0x58] sm:$0xff] }
  0x15   : > { %1027 = vmatmul.mubr.msk.f32.gmra.mxu1 %vm454_vm1, %v433_v8  ;;  %1005 = vmatprep.mubr.msk.f32.mxu0 %vm454_vm1, %v418_v9  ;;  %v439_v20 = vld [vmem:[%s1117_s28 + $0xc8] sm:$0xff]  ;;  %v440_v22 = vld [vmem:[%s1117_s28 + $0xd0] sm:$0xff]  ;;  %v441_v24 = vld [vmem:[%s1117_s28 + $0xd8] sm:$0xff] }
  0x16   : > { %1029 = vmatprep.mubr.msk.f32.mxu1 %vm454_vm1, %v434_v10  ;;  %v426_v25 = vld [vmem:[%s1117_s28 + $0x60] sm:$0xff]  ;;  %v427_v27 = vld [vmem:[%s1117_s28 + $0x68] sm:$0xff]  ;;  %v428_v29 = vld [vmem:[%s1117_s28 + $0x70] sm:$0xff] }
  0x17   : > { %v442_v26 = vld [vmem:[%s1117_s28 + $0xe0] sm:$0xff]  ;;  %v443_v28 = vld [vmem:[%s1117_s28 + $0xe8] sm:$0xff]  ;;  %v444_v30 = vld [vmem:[%s1117_s28 + $0xf0] sm:$0xff] }
  0x18   : > { %1006 = vmatmul.mubr.msk.f32.gmra.mxu0 %vm454_vm1, %v419_v11  ;;  %v429_v31 = vld [vmem:[%s1117_s28 + $0x78] sm:$0xff]  ;;  %v273_v33 = vld [vmem:[%s1187_s7 + $0x8] sm:$0xff]  ;;  %v272_v38 = vld [vmem:[%s1187_s7] sm:$0xff] }
  0x19   : > { %1030 = vmatmul.mubr.msk.f32.gmra.mxu1 %vm454_vm1, %v435_v12  ;;  %1008 = vmatprep.mubr.msk.f32.mxu0 %vm454_vm1, %v420_v13  ;;  %v445_v32 = vld [vmem:[%s1117_s28 + $0xf8] sm:$0xff]  ;;  %v312_v35 = vmul.f32 %v1193_v34, %v273_v33  ;;  %v289_v37 = vld [vmem:[%s1187_s7 + $0x88] sm:$0xff]  ;;  %v288_v39 = vld [vmem:[%s1187_s7 + $0x80] sm:$0xff]  ;;  %v311_v48 = vmul.f32 %v1193_v34, %v272_v38 }
  0x1a   : > { %1032 = vmatprep.mubr.msk.f32.mxu1 %vm454_vm1, %v436_v14  ;;  %v275_v40 = vld [vmem:[%s1187_s7 + $0x18] sm:$0xff]  ;;  %v274_v42 = vld [vmem:[%s1187_s7 + $0x10] sm:$0xff]  ;;  %v328_v45 = vmul.f32 %v1193_v34, %v289_v37  ;;  %v277_v46 = vld [vmem:[%s1187_s7 + $0x28] sm:$0xff]  ;;  %v327_v49 = vmul.f32 %v1193_v34, %v288_v39 }
  0x1b   : > { %v291_v41 = vld [vmem:[%s1187_s7 + $0x98] sm:$0xff]  ;;  %v290_v43 = vld [vmem:[%s1187_s7 + $0x90] sm:$0xff]  ;;  %v1209_v44 = vadd.f32 %v1199_v36, %v312_v35  ;;  %v293_v47 = vld [vmem:[%s1187_s7 + $0xa8] sm:$0xff]  ;;  %v314_v52 = vmul.f32 %v1193_v34, %v275_v40  ;;  %v313_v54 = vmul.f32 %v1193_v34, %v274_v42  ;;  %v316_v58 = vmul.f32 %v1193_v34, %v277_v46 }
  0x1c   : > { %1009 = vmatmul.mubr.msk.f32.gmra.mxu0 %vm454_vm1, %v421_v15  ;;  %v276_v50 = vld [vmem:[%s1187_s7 + $0x20] sm:$0xff]  ;;  %v330_v53 = vmul.f32 %v1193_v34, %v291_v41  ;;  %v329_v55 = vmul.f32 %v1193_v34, %v290_v43  ;;  %v279_v56 = vld [vmem:[%s1187_s7 + $0x38] sm:$0xff]  ;;  %v332_v59 = vmul.f32 %v1193_v34, %v293_v47  ;;  %v367_v61 = vadd.f32 %v1199_v36, %v328_v45  ;;  %v278_v0 = vld [vmem:[%s1187_s7 + $0x30] sm:$0xff] }
  0x1d   : > { %1033 = vmatmul.mubr.msk.f32.gmra.mxu1 %vm454_vm1, %v437_v16  ;;  %1011 = vmatprep.mubr.msk.f32.mxu0 %vm454_vm1, %v422_v17  ;;  %v292_v51 = vld [vmem:[%s1187_s7 + $0xa0] sm:$0xff]  ;;  %v295_v57 = vld [vmem:[%s1187_s7 + $0xb8] sm:$0xff]  ;;  %v383_v60 = vmax.f32 %v1209_v44, 0.0  ;;  %v315_v62 = vmul.f32 %v1193_v34, %v276_v50  ;;  %v294_v1 = vld [vmem:[%s1187_s7 + $0xb0] sm:$0xff]  ;;  %v350_v2 = vadd.f32 %v1199_v36, %v311_v48  ;;  %v366_v3 = vadd.f32 %v1199_v36, %v327_v49 }
  0x1e   : > { %1035 = vmatprep.mubr.msk.f32.mxu1 %vm454_vm1, %v438_v18  ;;  %v331_v63 = vmul.f32 %v1193_v34, %v292_v51  ;;  %v318_v4 = vmul.f32 %v1193_v34, %v279_v56  ;;  %v334_v5 = vmul.f32 %v1193_v34, %v295_v57  ;;  %v1237_v6 = vadd.f32 %v1199_v36, %v314_v52  ;;  %v1265_v17 = vld [vmem:[%s1493_s5] ss:$0 sm:$0xff]  ;;  %v283_v52 = vld [vmem:[%s1187_s7 + $0x58] sm:$0xff] }
  0x1f   : > { %v1240_v7 = vadd.f32 %v1199_v36, %v330_v53  ;;  %v1243_v8 = vadd.f32 %v1199_v36, %v313_v54  ;;  %v1246_v9 = vadd.f32 %v1199_v36, %v329_v55  ;;  %v1249_v10 = vadd.f32 %v1199_v36, %v316_v58  ;;  %v280_v40 = vld [vmem:[%s1187_s7 + $0x40] sm:$0xff]  ;;  %v299_v53 = vld [vmem:[%s1187_s7 + $0xd8] sm:$0xff] }
  0x20   : > { %1012 = vmatmul.mubr.msk.f32.gmra.mxu0 %vm454_vm1, %v423_v19  ;;  %v1252_v11 = vadd.f32 %v1199_v36, %v332_v59  ;;  %v317_v12 = vmul.f32 %v1193_v34, %v278_v0  ;;  %v333_v13 = vmul.f32 %v1193_v34, %v294_v1  ;;  %v399_v14 = vmax.f32 %v367_v61, 0.0  ;;  %v296_v41 = vld [vmem:[%s1187_s7 + $0xc0] sm:$0xff]  ;;  %v282_v0 = vld [vmem:[%s1187_s7 + $0x50] sm:$0xff] }
  0x21   : > { %1036 = vmatmul.mubr.msk.f32.gmra.mxu1 %vm454_vm1, %v439_v20  ;;  %1014 = vmatprep.mubr.msk.f32.mxu0 %vm454_vm1, %v424_v21  ;;  %v1257_v15 = vadd.f32 %v1199_v36, %v315_v62  ;;  %v1260_v16 = vadd.f32 %v1199_v36, %v331_v63  ;;  %v382_v18 = vmax.f32 %v350_v2, 0.0  ;;  %v398_v19 = vmax.f32 %v366_v3, 0.0  ;;  %v298_v1 = vld [vmem:[%s1187_s7 + $0xd0] sm:$0xff] }
  0x22   : > { %1038 = vmatprep.mubr.msk.f32.mxu1 %vm454_vm1, %v440_v22  ;;  %v1268_v20 = vadd.f32 %v1199_v36, %v318_v4  ;;  %v1271_v21 = vadd.f32 %v1199_v36, %v334_v5  ;;  %v385_v22 = vmax.f32 %v1237_v6, 0.0  ;;  %v1285_v33 = vadd.f32 %v1199_v36, %v333_v13 }
  0x23   : > { %v386_v38 = vmax.f32 %v1257_v15, 0.0  ;;  %v402_v39 = vmax.f32 %v1260_v16, 0.0  ;;  %v319_v58 = vmul.f32 %v1193_v34, %v280_v40  ;;  %v335_v59 = vmul.f32 %v1193_v34, %v296_v41 }
  0x24   : > { %1015 = vmatmul.mubr.msk.f32.gmra.mxu0 %vm454_vm1, %v425_v23  ;;  %v401_v23 = vmax.f32 %v1240_v7, 0.0  ;;  %v389_v44 = vmax.f32 %v1268_v20, 0.0  ;;  %v405_v45 = vmax.f32 %v1271_v21, 0.0  ;;  %v404_v57 = vmax.f32 %v1285_v33, 0.0 }
  0x25   : > { %1039 = vmatmul.mubr.msk.f32.gmra.mxu1 %vm454_vm1, %v441_v24  ;;  %1017 = vmatprep.mubr.msk.f32.mxu0 %vm454_vm1, %v426_v25  ;;  %v384_v24 = vmax.f32 %v1243_v8, 0.0  ;;  %v400_v25 = vmax.f32 %v1246_v9, 0.0  ;;  %v322_v6 = vmul.f32 %v1193_v34, %v283_v52  ;;  %v338_v7 = vmul.f32 %v1193_v34, %v299_v53 }
  0x26   : > { %1041 = vmatprep.mubr.msk.f32.mxu1 %vm454_vm1, %v442_v26  ;;  %v281_v26 = vld [vmem:[%s1187_s7 + $0x48] sm:$0xff] }
  0x27   : > { %v320_v46 = vmul.f32 %v1193_v34, %v281_v26  ;;  %v1357_v8 = vadd.f32 %v1199_v36, %v338_v7 }
  0x28   : > { %1018 = vmatmul.mubr.msk.f32.gmra.mxu0 %vm454_vm1, %v427_v27  ;;  %v297_v27 = vld [vmem:[%s1187_s7 + $0xc8] sm:$0xff] }
  0x29   : > { %1042 = vmatmul.mubr.msk.f32.gmra.mxu1 %vm454_vm1, %v443_v28  ;;  %1020 = vmatprep.mubr.msk.f32.mxu0 %vm454_vm1, %v428_v29  ;;  %v336_v47 = vmul.f32 %v1193_v34, %v297_v27  ;;  %v1320_v4 = vadd.f32 %v1199_v36, %v320_v46  ;;  %v1334_v27 = vadd.f32 %v1199_v36, %v319_v58 }
  0x2a   : > { %1044 = vmatprep.mubr.msk.f32.mxu1 %vm454_vm1, %v444_v30  ;;  %v387_v30 = vmax.f32 %v1249_v10, 0.0 }
  0x2b   : > { %v1323_v5 = vadd.f32 %v1199_v36, %v336_v47  ;;  %v1354_v47 = vadd.f32 %v1199_v36, %v322_v6  ;;  %v390_v53 = vmax.f32 %v1334_v27, 0.0 }
  0x2c   : > { %1021 = vmatmul.mubr.msk.f32.gmra.mxu0 %vm454_vm1, %v429_v31  ;;  %v403_v31 = vmax.f32 %v1252_v11, 0.0 }
  0x2d   : > { %1045 = vmatmul.mubr.msk.f32.gmra.mxu1 %vm454_vm1, %v445_v32  ;;  %v1282_v32 = vadd.f32 %v1199_v36, %v317_v12  ;;  %v407_v46 = vmax.f32 %v1323_v5, 0.0 }
  0x2f   : > { %v388_v56 = vmax.f32 %v1282_v32, 0.0 }
  0xd0   : > { %v1001_v28 = vpop.f32.mrf.mxu0 }
  0xd1   : > { %v1025_v29 = vpop.f32.mrf.mxu1  ;;  %v627_v35 = vadd.f32 %v1001_v28, %v1265_v17  ;;  %v1337_v28 = vadd.f32 %v1199_v36, %v335_v59  ;;  %v284_v59 = vld [vmem:[%s1187_s7 + $0x60] sm:$0xff] }
  0xd2   : > { %v707_v37 = vadd.f32 %v1025_v29, %v1265_v17  ;;  %v621_v42 = vpop.f32.mrf.mxu0  ;;  %v321_v29 = vmul.f32 %v1193_v34, %v282_v0  ;;  %v409_v0 = vmax.f32 %v1357_v8, 0.0  ;;  %v323_v20 = vmul.f32 %v1193_v34, %v284_v59 }
  0xd3   : > { %v701_v43 = vpop.f32.mrf.mxu1  ;;  %v781_v48 = vadd.f32 %v627_v35, %v383_v60  ;;  %v622_v50 = vadd.f32 %v1265_v17, %v621_v42  ;;  %v337_v35 = vmul.f32 %v1193_v34, %v298_v1 }
  0xd4   : > { %v797_v49 = vadd.f32 %v707_v37, %v399_v14  ;;  %v702_v51 = vadd.f32 %v1265_v17, %v701_v43  ;;  %v1004_v54 = vpop.f32.mrf.mxu0  ;;  %v391_v43 = vmax.f32 %v1320_v4, 0.0  ;;  %v1374_v10 = vadd.f32 %v1199_v36, %v321_v29  ;;  %v303_v4 = vld [vmem:[%s1187_s7 + $0xf8] sm:$0xff] }
  0xd5   : > { %v1028_v55 = vpop.f32.mrf.mxu1  ;;  %814 = vst.msk [vmem:[%s1297_s16 + $0x8] sm:$0xff] %vm812_vm2, %v781_v48  ;;  %v780_v60 = vadd.f32 %v622_v50, %v382_v18  ;;  %v637_v62 = vadd.f32 %v1004_v54, %v1265_v17  ;;  %v301_v50 = vld [vmem:[%s1187_s7 + $0xe8] sm:$0xff]  ;;  %v406_v54 = vmax.f32 %v1337_v28, 0.0  ;;  %v1377_v11 = vadd.f32 %v1199_v36, %v337_v35 }
  0xd6   : > { %830 = vst.msk [vmem:[%s1297_s16 + $0x88] sm:$0xff] %vm812_vm2, %v797_v49  ;;  %v796_v61 = vadd.f32 %v702_v51, %v398_v19  ;;  %v717_v63 = vadd.f32 %v1028_v55, %v1265_v17  ;;  %v631_v2 = vpop.f32.mrf.mxu0  ;;  %v285_v49 = vld [vmem:[%s1187_s7 + $0x68] sm:$0xff]  ;;  %v340_v16 = vmul.f32 %v1193_v34, %v301_v50  ;;  %v392_v7 = vmax.f32 %v1374_v10, 0.0 }
  0xd7   : > { %v711_v3 = vpop.f32.mrf.mxu1  ;;  %813 = vst.msk [vmem:[%s1297_s16] sm:$0xff] %vm812_vm2, %v780_v60  ;;  %v783_v12 = vadd.f32 %v637_v62, %v385_v22  ;;  %v632_v14 = vadd.f32 %v1265_v17, %v631_v2  ;;  %v300_v60 = vld [vmem:[%s1187_s7 + $0xe0] sm:$0xff]  ;;  %v324_v15 = vmul.f32 %v1193_v34, %v285_v49 }
  0xd8   : > { %829 = vst.msk [vmem:[%s1297_s16 + $0x80] sm:$0xff] %vm812_vm2, %v796_v61  ;;  %v799_v13 = vadd.f32 %v717_v63, %v401_v23  ;;  %v712_v18 = vadd.f32 %v1265_v17, %v711_v3  ;;  %v1007_v19 = vpop.f32.mrf.mxu0  ;;  %v393_v63 = vmax.f32 %v1354_v47, 0.0  ;;  %v287_v3 = vld [vmem:[%s1187_s7 + $0x78] sm:$0xff]  ;;  %v339_v21 = vmul.f32 %v1193_v34, %v300_v60 }
  0xd9   : > { %v1031_v26 = vpop.f32.mrf.mxu1  ;;  %816 = vst.msk [vmem:[%s1297_s16 + $0x18] sm:$0xff] %vm812_vm2, %v783_v12  ;;  %v782_v22 = vadd.f32 %v632_v14, %v384_v24  ;;  %v647_v37 = vadd.f32 %v1007_v19, %v1265_v17  ;;  %v408_v12 = vmax.f32 %v1377_v11, 0.0  ;;  %v302_v19 = vld [vmem:[%s1187_s7 + $0xf0] sm:$0xff]  ;;  %v363_v28 = vadd.f32 %v1199_v36, %v324_v15 }
  0xda   : > { %832 = vst.msk [vmem:[%s1297_s16 + $0x98] sm:$0xff] %vm812_vm2, %v799_v13  ;;  %v798_v23 = vadd.f32 %v712_v18, %v400_v25  ;;  %v727_v40 = vadd.f32 %v1031_v26, %v1265_v17  ;;  %v641_v41 = vpop.f32.mrf.mxu0  ;;  %v286_v18 = vld [vmem:[%s1187_s7 + $0x70] sm:$0xff]  ;;  %v379_v29 = vadd.f32 %v1199_v36, %v340_v16  ;;  %v326_v32 = vmul.f32 %v1193_v34, %v287_v3 }
  0xdb   : > { %v721_v42 = vpop.f32.mrf.mxu1  ;;  %815 = vst.msk [vmem:[%s1297_s16 + $0x10] sm:$0xff] %vm812_vm2, %v782_v22  ;;  %v785_v9 = vadd.f32 %v647_v37, %v387_v30  ;;  %v642_v25 = vadd.f32 %v1265_v17, %v641_v41  ;;  %v378_v41 = vadd.f32 %v1199_v36, %v339_v21  ;;  %v341_v47 = vmul.f32 %v1193_v34, %v302_v19 }
  0xdc   : > { %831 = vst.msk [vmem:[%s1297_s16 + $0x90] sm:$0xff] %vm812_vm2, %v798_v23  ;;  %v801_v24 = vadd.f32 %v727_v40, %v403_v31  ;;  %v722_v48 = vadd.f32 %v1265_v17, %v721_v42  ;;  %v1010_v51 = vpop.f32.mrf.mxu0  ;;  %v362_v40 = vadd.f32 %v1199_v36, %v323_v20  ;;  %v325_v42 = vmul.f32 %v1193_v34, %v286_v18 }
  0xdd   : > { %v1034_v52 = vpop.f32.mrf.mxu1  ;;  %818 = vst.msk [vmem:[%s1297_s16 + $0x28] sm:$0xff] %vm812_vm2, %v785_v9  ;;  %v784_v30 = vadd.f32 %v642_v25, %v386_v38  ;;  %v657_v55 = vadd.f32 %v1010_v51, %v1265_v17  ;;  %v411_v49 = vmax.f32 %v379_v29, 0.0  ;;  %v365_v50 = vadd.f32 %v1199_v36, %v326_v32 }
  0xde   : > { %834 = vst.msk [vmem:[%s1297_s16 + $0xa8] sm:$0xff] %vm812_vm2, %v801_v24  ;;  %v800_v31 = vadd.f32 %v722_v48, %v402_v39  ;;  %v737_v58 = vadd.f32 %v1034_v52, %v1265_v17  ;;  %v651_v61 = vpop.f32.mrf.mxu0  ;;  %v395_v48 = vmax.f32 %v363_v28, 0.0 }
  0xdf   : > { %v731_v62 = vpop.f32.mrf.mxu1  ;;  %817 = vst.msk [vmem:[%s1297_s16 + $0x20] sm:$0xff] %vm812_vm2, %v784_v30  ;;  %v787_v38 = vadd.f32 %v657_v55, %v389_v44  ;;  %v652_v1 = vadd.f32 %v1265_v17, %v651_v61  ;;  %v394_v30 = vmax.f32 %v362_v40, 0.0  ;;  %v364_v55 = vadd.f32 %v1199_v36, %v325_v42 }
  0xe0   : > { %833 = vst.msk [vmem:[%s1297_s16 + $0xa0] sm:$0xff] %vm812_vm2, %v800_v31  ;;  %v803_v39 = vadd.f32 %v737_v58, %v405_v45  ;;  %v732_v2 = vadd.f32 %v1265_v17, %v731_v62  ;;  %v1013_v5 = vpop.f32.mrf.mxu0  ;;  %v410_v31 = vmax.f32 %v378_v41, 0.0  ;;  %v380_v58 = vadd.f32 %v1199_v36, %v341_v47 }
  0xe1   : > { %v1037_v6 = vpop.f32.mrf.mxu1  ;;  %820 = vst.msk [vmem:[%s1297_s16 + $0x38] sm:$0xff] %vm812_vm2, %v787_v38  ;;  %v786_v44 = vadd.f32 %v652_v1, %v388_v56  ;;  %v667_v13 = vadd.f32 %v1013_v5, %v1265_v17  ;;  %v342_v56 = vmul.f32 %v1193_v34, %v303_v4  ;;  %v397_v15 = vmax.f32 %v365_v50, 0.0 }
  0xe2   : > { %836 = vst.msk [vmem:[%s1297_s16 + $0xb8] sm:$0xff] %vm812_vm2, %v803_v39  ;;  %v802_v45 = vadd.f32 %v732_v2, %v404_v57  ;;  %v747_v14 = vadd.f32 %v1037_v6, %v1265_v17  ;;  %v661_v26 = vpop.f32.mrf.mxu0  ;;  %v396_v4 = vmax.f32 %v364_v55, 0.0  ;;  %v412_v5 = vmax.f32 %v380_v58, 0.0 }
  0xe3   : > { %v741_v27 = vpop.f32.mrf.mxu1  ;;  %819 = vst.msk [vmem:[%s1297_s16 + $0x30] sm:$0xff] %vm812_vm2, %v786_v44  ;;  %v789_v33 = vadd.f32 %v667_v13, %v391_v43  ;;  %v662_v35 = vadd.f32 %v1265_v17, %v661_v26  ;;  %v381_v34 = vadd.f32 %v1199_v36, %v342_v56 }
  0xe4   : > { %835 = vst.msk [vmem:[%s1297_s16 + $0xb0] sm:$0xff] %vm812_vm2, %v802_v45  ;;  %v805_v57 = vadd.f32 %v747_v14, %v407_v46  ;;  %v742_v22 = vadd.f32 %v1265_v17, %v741_v27  ;;  %v1016_v23 = vpop.f32.mrf.mxu0 }
  0xe5   : > { %v1040_v37 = vpop.f32.mrf.mxu1  ;;  %822 = vst.msk [vmem:[%s1297_s16 + $0x48] sm:$0xff] %vm812_vm2, %v789_v33  ;;  %v788_v43 = vadd.f32 %v662_v35, %v390_v53  ;;  %v677_v8 = vadd.f32 %v1016_v23, %v1265_v17  ;;  %v413_v16 = vmax.f32 %v381_v34, 0.0 }
  0xe6   : > { %838 = vst.msk [vmem:[%s1297_s16 + $0xc8] sm:$0xff] %vm812_vm2, %v805_v57  ;;  %v804_v46 = vadd.f32 %v742_v22, %v406_v54  ;;  %v757_v9 = vadd.f32 %v1040_v37, %v1265_v17  ;;  %v671_v24 = vpop.f32.mrf.mxu0 }
  0xe7   : > { %v751_v25 = vpop.f32.mrf.mxu1  ;;  %821 = vst.msk [vmem:[%s1297_s16 + $0x40] sm:$0xff] %vm812_vm2, %v788_v43  ;;  %v791_v51 = vadd.f32 %v677_v8, %v393_v63  ;;  %v672_v53 = vadd.f32 %v1265_v17, %v671_v24 }
  0xe8   : > { %837 = vst.msk [vmem:[%s1297_s16 + $0xc0] sm:$0xff] %vm812_vm2, %v804_v46  ;;  %v807_v52 = vadd.f32 %v757_v9, %v409_v0  ;;  %v752_v54 = vadd.f32 %v1265_v17, %v751_v25  ;;  %v1019_v10 = vpop.f32.mrf.mxu0 }
  0xe9   : > { %v1043_v11 = vpop.f32.mrf.mxu1  ;;  %824 = vst.msk [vmem:[%s1297_s16 + $0x58] sm:$0xff] %vm812_vm2, %v791_v51  ;;  %v790_v59 = vadd.f32 %v672_v53, %v392_v7  ;;  %v687_v61 = vadd.f32 %v1019_v10, %v1265_v17 }
  0xea   : > { %840 = vst.msk [vmem:[%s1297_s16 + $0xd8] sm:$0xff] %vm812_vm2, %v807_v52  ;;  %v806_v60 = vadd.f32 %v752_v54, %v408_v12  ;;  %v767_v62 = vadd.f32 %v1043_v11, %v1265_v17  ;;  %v681_v63 = vpop.f32.mrf.mxu0 }
  0xeb   : > { %v761_v0 = vpop.f32.mrf.mxu1  ;;  %823 = vst.msk [vmem:[%s1297_s16 + $0x50] sm:$0xff] %vm812_vm2, %v790_v59  ;;  %v793_v36 = vadd.f32 %v687_v61, %v395_v48  ;;  %v682_v39 = vadd.f32 %v1265_v17, %v681_v63 }
  0xec   : > { %839 = vst.msk [vmem:[%s1297_s16 + $0xd0] sm:$0xff] %vm812_vm2, %v806_v60  ;;  %v809_v38 = vadd.f32 %v767_v62, %v411_v49  ;;  %v762_v1 = vadd.f32 %v1265_v17, %v761_v0  ;;  %v1022_v2 = vpop.f32.mrf.mxu0 }
  0xed   : > { %v1046_v3 = vpop.f32.mrf.mxu1  ;;  %826 = vst.msk [vmem:[%s1297_s16 + $0x68] sm:$0xff] %vm812_vm2, %v793_v36  ;;  %v792_v6 = vadd.f32 %v682_v39, %v394_v30  ;;  %v697_v12 = vadd.f32 %v1022_v2, %v1265_v17 }
  0xee   : > { %842 = vst.msk [vmem:[%s1297_s16 + $0xe8] sm:$0xff] %vm812_vm2, %v809_v38  ;;  %v808_v7 = vadd.f32 %v762_v1, %v410_v31  ;;  %v777_v20 = vadd.f32 %v1046_v3, %v1265_v17  ;;  %v691_v21 = vpop.f32.mrf.mxu0 }
  0xef   : > { %v771_v44 = vpop.f32.mrf.mxu1  ;;  %825 = vst.msk [vmem:[%s1297_s16 + $0x60] sm:$0xff] %vm812_vm2, %v792_v6  ;;  %v795_v45 = vadd.f32 %v697_v12, %v397_v15  ;;  %v692_v14 = vadd.f32 %v1265_v17, %v691_v21 }
  0xf0   : > { %841 = vst.msk [vmem:[%s1297_s16 + $0xe0] sm:$0xff] %vm812_vm2, %v808_v7  ;;  %v811_v13 = vadd.f32 %v777_v20, %v413_v16  ;;  %v772_v18 = vadd.f32 %v1265_v17, %v771_v44 }
  0xf1   : > { %828 = vst.msk [vmem:[%s1297_s16 + $0x78] sm:$0xff] %vm812_vm2, %v795_v45  ;;  %v794_v19 = vadd.f32 %v692_v14, %v396_v4 }
  0xf2   : > { %844 = vst.msk [vmem:[%s1297_s16 + $0xf8] sm:$0xff] %vm812_vm2, %v811_v13  ;;  %v810_v26 = vadd.f32 %v772_v18, %v412_v5 }
  0xf3   : > { %827 = vst.msk [vmem:[%s1297_s16 + $0x70] sm:$0xff] %vm812_vm2, %v794_v19 }
  0xf4   : > { %843 = vst.msk [vmem:[%s1297_s16 + $0xf0] sm:$0xff] %vm812_vm2, %v810_v26 }
  0xf5 PF: > { %s16_s21 = sadd.s32 1, %s1063_s21  }
  0xf6   : > { %p13_p4 = scmp.ge.s32.totalorder %s16_s21, 4  }
  0xf8   :  { %15 = sbr.rel (!%p13_p4) target bundleno = 1 (0x1), region = 77 }

// kernel: resnet_block_forward.3
= control target key start
LH: loop header
LB: loop body
LE: loop exit
PB: predicated region body
PF: predicated region fallthrough
CT: control target
= control target key end

     0   :  { %s4451_s15 = smov 0   ;;  %s6242_s0 = inlined_call_operand.vmem [shape: f32[2,18,18,4], index: 0, kind: input, shape index: {}]   ;;  %s6243_s1 = inlined_call_operand.vmem [shape: f32[9,4,8], index: 1, kind: input, shape index: {}]   ;;  %s6244_s2 = inlined_call_operand.vmem [shape: f32[1,8], index: 2, kind: input, shape index: {}]   ;;  %s6245_s3 = inlined_call_operand.vmem [shape: f32[2,256,8], index: 3, kind: output, shape index: {0}]   ;;  %s6246_s4 = inlined_call_operand.vmem [shape: f32[2,2,8], index: 4, kind: output, shape index: {1}]  }
   0x1 LB: > { %s3342_s16 = sadd.s32 4294967295, %s4424_s15   ;;  %p3346_p0 = scmp.ge.s32.totalorder %s4424_s15, 1  ;;  %s4424_s15 = sphi %s4451_s15, %s15_s15  }
   0x2   : > { %p165_p1 = scmp.lt.s32.totalorder %s4424_s15, 3 }
   0x4   : > { %p166_p2 = pnand %p3346_p0, %p165_p1 }
   0x6   : > { %169 = sbr.rel (%p166_p2) target bundleno = 529 (0x211), region = 32 }
   0xb   : > { %v3351_v0 = vld [vmem:[%s6243_s1 + $0x4] sm:$0xf]  ;;  %vm460_vm0 = vcmask 1043456   ;;  %p195_p3 = scmp.lt.s32.totalorder %s3342_s16, 1  ;;  %v263_v1 = vld [vmem:[%s6243_s1] sm:$0xf] }
   0xc   : > { %4407 = vmatprep.subr.msk.mxu1 %vm460_vm0, %v3351_v0  ;;  %3957 = vmatprep.subr.msk.mxu0 %vm460_vm0, %v3351_v0  ;;  %v3418_v2 = vld [vmem:[%s6243_s1 + $0x8] sm:$0xf]  ;;  %vm312_vm1 = vcmask 1046528   ;;  %vm395_vm2 = vcmask 31744   ;;  %v4523_v21 = vld [vmem:[%s6243_s1 + $0xc] sm:$0xf] }
   0xd   : > { %4408 = vmatpush3.msk.msra.mxu1 %vm460_vm0, %v3351_v0  ;;  %3958 = vmatpush3.msk.msra.mxu0 %vm460_vm0, %v3351_v0  ;;  %s6524_s16 = smov (!%p195_p3, %s3342_s16), 1  ;;  %v4541_v28 = vld [vmem:[%s6243_s1 + $0x10] sm:$0xf]  ;;  %vm981_vm3 = vcmask 1045504   ;;  %vm3049_vm4 = vcmask 64512   ;;  %vm3252_vm5 = vcmask 1040384  }
   0xe   : > { %4007 = vmatprep.subr.msk.mxu1 %vm460_vm0, %v263_v1  ;;  %4057 = vmatprep.subr.msk.mxu0 %vm460_vm0, %v3418_v2  ;;  %s4409_s23 = smul.u32 432, %s6524_s16  ;;  %s3659_s13 = sshll.u32 %s6524_s16, 8  ;;  %vm3254_vm6 = vcmask 58368  }
   0xf   : > { %s6004_s20 = scalar_lea.vmem %s6245_s3, %s3659_s13  ;;  %s3350_s21 = sshll.u32 %s6524_s16, 1 }
  0x10   : > { %s4480_s26 = scalar_lea.vmem %s6242_s0, %s4409_s23  ;;  %s208_s24 = scalar_lea.vmem %s6246_s4, %s3350_s21 }
  0x11   : > { %v4483_v3 = vld [vmem:[%s4480_s26] sm:$0xff]  ;;  %v4486_v4 = vld [vmem:[%s4480_s26 + $0x8] sm:$0xff]  ;;  %v4498_v10 = vld [vmem:[%s4480_s26 + $0x10] sm:$0x3] }
  0x12   : > { %v4489_v5 = vld [vmem:[%s4480_s26 + $0xc0] sm:$0xff]  ;;  %v313_v6 = vrot.slane %v4483_v3, 1  ;;  %v314_v7 = vrot.slane %v4486_v4, 1  ;;  %v4494_v8 = vld [vmem:[%s4480_s26 + $0xc8] sm:$0xff]  ;;  %v316_v12 = vrot.slane %v4498_v10, 1  ;;  %v4506_v14 = vld [vmem:[%s4480_s26 + $0x18] sm:$0xff] }
  0x13   : > { %v353_v9 = vrot.slane %v4489_v5, 1  ;;  %v354_v11 = vrot.slane %v4494_v8, 1  ;;  %v4503_v13 = vld [vmem:[%s4480_s26 + $0xd0] sm:$0x3]  ;;  %v4511_v17 = vld [vmem:[%s4480_s26 + $0x20] sm:$0xff]  ;;  %v318_v18 = vrot.slane %v4506_v14, 1 }
  0x14   : > { %v315_v15 = vsel %vm312_vm1, %v313_v6, %v314_v7  ;;  %v356_v16 = vrot.slane %v4503_v13, 1  ;;  %v4515_v19 = vld [vmem:[%s4480_s26 + $0xd8] sm:$0xff]  ;;  %v4518_v20 = vld [vmem:[%s4480_s26 + $0xe0] sm:$0xff]  ;;  %v317_v23 = vsel %vm312_vm1, %v314_v7, %v316_v12  ;;  %v319_v24 = vrot.slane %v4511_v17, 1  ;;  %v4533_v26 = vld [vmem:[%s4480_s26 + $0x28] sm:$0x3] }
  0x15   : > { %3959 = vmatprep.mubr.msk.f32.mxu0 %vm395_vm2, %v315_v15  ;;  %v4527_v22 = vsel %vm312_vm1, %v353_v9, %v354_v11  ;;  %v358_v25 = vrot.slane %v4515_v19, 1  ;;  %v4536_v27 = vld [vmem:[%s4480_s26 + $0xe8] sm:$0x3]  ;;  %v359_v30 = vrot.slane %v4518_v20, 1  ;;  %v321_v31 = vrot.slane %v4533_v26, 1  ;;  %v4553_v33 = vld [vmem:[%s4480_s26 + $0x30] sm:$0xff] }
  0x16   : > { %6329 = vst [vmem:[#allocation2_spill] sm:$0xff] %v4527_v22  ;;  %3983 = vmatprep.mubr.msk.f32.mxu1 %vm395_vm2, %v4527_v22  ;;  %3960 = vmatmul.mubr.msk.f32.vlgmr.msra.gmra.mxu0 %vm395_vm2, %v317_v23  ;;  %v4547_v29 = vsel %vm312_vm1, %v354_v11, %v356_v16  ;;  %v361_v32 = vrot.slane %v4536_v27, 1  ;;  %v4556_v34 = vld [vmem:[%s4480_s26 + $0x38] sm:$0xff]  ;;  %v4559_v35 = vld [vmem:[%s4480_s26 + $0xf0] sm:$0xff]  ;;  %v4565_v36 = vsel %vm312_vm1, %v318_v18, %v319_v24  ;;  %v323_v37 = vrot.slane %v4553_v33, 1  ;;  %v4593_v47 = vld [vmem:[%s4480_s26 + $0x48] sm:$0xff] }
  0x17   : > { %6330 = vst [vmem:[#allocation3_spill] sm:$0xff] %v4547_v29  ;;  %3984 = vmatmul.mubr.msk.f32.vlgmr.msra.gmra.mxu1 %vm395_vm2, %v4547_v29  ;;  %4058 = vmatpush3.msk.msra.mxu0 %vm460_vm0, %v3418_v2  ;;  %6331 = vst [vmem:[#allocation4_spill] sm:$0xff] %v4565_v36  ;;  %v324_v38 = vrot.slane %v4556_v34, 1  ;;  %v4570_v39 = vld [vmem:[%s4480_s26 + $0xf8] sm:$0xff]  ;;  %v363_v40 = vrot.slane %v4559_v35, 1  ;;  %v4580_v42 = vsel %vm312_vm1, %v358_v25, %v359_v30  ;;  %v4596_v48 = vld [vmem:[%s4480_s26 + $0x50] sm:$0xff] }
  0x18   : > { %v4574_v41 = vld [vmem:[%s4480_s26 + $0x40] sm:$0x3]  ;;  %4008 = vmatpush3.msk.msra.mxu1 %vm460_vm0, %v263_v1  ;;  %3962 = vmatprep.mubr.msk.f32.mxu0 %vm395_vm2, %v4565_v36  ;;  %6332 = vst [vmem:[#allocation5_spill] sm:$0xff] %v4580_v42  ;;  %v4583_v43 = vsel %vm312_vm1, %v319_v24, %v321_v31  ;;  %v4586_v44 = vsel %vm312_vm1, %v359_v30, %v361_v32  ;;  %v364_v45 = vrot.slane %v4570_v39, 1  ;;  %v328_v52 = vrot.slane %v4593_v47, 1  ;;  %v4607_v53 = vld [vmem:[%s4480_s26 + $0x108] sm:$0xff] }
  0x19   : > { %6333 = vst [vmem:[#allocation6_spill] sm:$0xff] %v4583_v43  ;;  %6334 = vst [vmem:[#allocation7_spill] sm:$0xff] %v4586_v44  ;;  %v4590_v46 = vld [vmem:[%s4480_s26 + $0x100] sm:$0x3]  ;;  %3986 = vmatprep.mubr.msk.f32.mxu1 %vm395_vm2, %v4580_v42  ;;  %v4601_v49 = vsel %vm312_vm1, %v323_v37, %v324_v38  ;;  %v326_v50 = vrot.slane %v4574_v41, 1  ;;  %v4610_v54 = vld [vmem:[%s4480_s26 + $0x110] sm:$0xff]  ;;  %4107 = vmatprep.subr.msk.mxu1 %vm460_vm0, %v4523_v21 }
  0x1a   : > { %6335 = vst [vmem:[#allocation8_spill] sm:$0xff] %v4601_v49  ;;  %v366_v51 = vrot.slane %v4590_v46, 1  ;;  %v4613_v55 = vld [vmem:[%s4480_s26 + $0x60] sm:$0xff]  ;;  %3963 = vmatmul.mubr.msk.f32.gmra.mxu0 %vm395_vm2, %v4583_v43  ;;  %v4620_v56 = vsel %vm312_vm1, %v363_v40, %v364_v45  ;;  %v329_v57 = vrot.slane %v4596_v48, 1  ;;  %v368_v58 = vrot.slane %v4607_v53, 1  ;;  %v4629_v61 = vld [vmem:[%s4480_s26 + $0x68] sm:$0xff]  ;;  %4157 = vmatprep.subr.msk.mxu0 %vm460_vm0, %v4541_v28 }
  0x1b   : > { %6336 = vst [vmem:[#allocation9_spill] sm:$0xff] %v4620_v56  ;;  %v369_v59 = vrot.slane %v4610_v54, 1  ;;  %v4626_v60 = vld [vmem:[%s4480_s26 + $0x58] sm:$0x3]  ;;  %3987 = vmatmul.mubr.msk.f32.gmra.mxu1 %vm395_vm2, %v4586_v44  ;;  %3965 = vmatprep.mubr.msk.f32.mxu0 %vm395_vm2, %v4601_v49  ;;  %v4638_v62 = vsel %vm312_vm1, %v324_v38, %v326_v50  ;;  %v333_v1 = vrot.slane %v4613_v55, 1  ;;  %v4646_v2 = vld [vmem:[%s4480_s26 + $0x120] sm:$0xff] }
  0x1c   : > { %6337 = vst [vmem:[#allocation10_spill] sm:$0xff] %v4638_v62  ;;  %v331_v63 = vrot.slane %v4626_v60, 1  ;;  %v4642_v0 = vld [vmem:[%s4480_s26 + $0x118] sm:$0x3]  ;;  %v4649_v6 = vld [vmem:[%s4480_s26 + $0x128] sm:$0xff]  ;;  %3989 = vmatprep.mubr.msk.f32.mxu1 %vm395_vm2, %v4620_v56  ;;  %v4654_v7 = vsel %vm312_vm1, %v364_v45, %v366_v51  ;;  %v4657_v9 = vsel %vm312_vm1, %v328_v52, %v329_v57  ;;  %v334_v12 = vrot.slane %v4629_v61, 1 }
  0x1d   : > { %6338 = vst [vmem:[#allocation11_spill] sm:$0xff] %v4654_v7  ;;  %6339 = vst [vmem:[#allocation12_spill] sm:$0xff] %v4657_v9  ;;  %v371_v11 = vrot.slane %v4642_v0, 1  ;;  %v4662_v15 = vld [vmem:[%s4480_s26 + $0x70] sm:$0x3]  ;;  %v4668_v18 = vsel %vm312_vm1, %v368_v58, %v369_v59  ;;  %v373_v23 = vrot.slane %v4646_v2, 1 }
  0x1e   : > { %v4665_v16 = vld [vmem:[%s4480_s26 + $0x130] sm:$0x3]  ;;  %6340 = vst [vmem:[#allocation13_spill] sm:$0xff] %v4668_v18  ;;  %v374_v24 = vrot.slane %v4649_v6, 1  ;;  %v4673_v25 = vld [vmem:[%s4480_s26 + $0x78] sm:$0xff]  ;;  %v4676_v30 = vld [vmem:[%s4480_s26 + $0x80] sm:$0xff]  ;;  %3966 = vmatmul.mubr.msk.f32.gmra.mxu0 %vm395_vm2, %v4638_v62  ;;  %v4691_v37 = vsel %vm312_vm1, %v329_v57, %v331_v63  ;;  %v4701_v50 = vsel %vm312_vm1, %v333_v1, %v334_v12 }
  0x1f   : > { %v4681_v31 = vld [vmem:[%s4480_s26 + $0x138] sm:$0xff]  ;;  %v4684_v32 = vld [vmem:[%s4480_s26 + $0x140] sm:$0xff]  ;;  %3990 = vmatmul.mubr.msk.f32.gmra.mxu1 %vm395_vm2, %v4654_v7  ;;  %3968 = vmatprep.mubr.msk.f32.mxu0 %vm395_vm2, %v4657_v9  ;;  %6341 = vst [vmem:[#allocation14_spill] sm:$0xff] %v4691_v37  ;;  %v336_v38 = vrot.slane %v4662_v15, 1  ;;  %v376_v40 = vrot.slane %v4665_v16, 1  ;;  %v4698_v45 = vsel %vm312_vm1, %v369_v59, %v371_v11  ;;  %6343 = vst [vmem:[#allocation16_spill] sm:$0xff] %v4701_v50 }
  0x20   : > { %3992 = vmatprep.mubr.msk.f32.mxu1 %vm395_vm2, %v4668_v18  ;;  %6342 = vst [vmem:[#allocation15_spill] sm:$0xff] %v4698_v45  ;;  %v338_v51 = vrot.slane %v4673_v25, 1  ;;  %v339_v52 = vrot.slane %v4676_v30, 1  ;;  %v4706_v57 = vld [vmem:[%s4480_s26 + $0x88] sm:$0x3]  ;;  %v4712_v63 = vsel %vm312_vm1, %v373_v23, %v374_v24  ;;  %v378_v7 = vrot.slane %v4681_v31, 1 }
  0x21   : > { %v4709_v58 = vld [vmem:[%s4480_s26 + $0x148] sm:$0x3]  ;;  %6344 = vst [vmem:[#allocation17_spill] sm:$0xff] %v4712_v63  ;;  %v379_v18 = vrot.slane %v4684_v32, 1  ;;  %v4717_v59 = vld [vmem:[%s4480_s26 + $0x90] sm:$0xff]  ;;  %v4720_v1 = vld [vmem:[%s4480_s26 + $0x98] sm:$0xff]  ;;  %v4735_v23 = vsel %vm312_vm1, %v334_v12, %v336_v38  ;;  %v4742_v29 = vsel %vm312_vm1, %v374_v24, %v376_v40 }
  0x22   : > { %3969 = vmatmul.mubr.msk.f32.gmra.mxu0 %vm395_vm2, %v4691_v37  ;;  %v4725_v11 = vld [vmem:[%s4480_s26 + $0x150] sm:$0xff]  ;;  %v4728_v56 = vld [vmem:[%s4480_s26 + $0x158] sm:$0xff]  ;;  %6346 = vst [vmem:[#allocation19_spill] sm:$0xff] %v4735_v23  ;;  %v341_v44 = vrot.slane %v4706_v57, 1  ;;  %v381_v42 = vrot.slane %v4709_v58, 1  ;;  %6347 = vst [vmem:[#allocation20_spill] sm:$0xff] %v4742_v29 }
  0x23   : > { %6345 = vst [vmem:[#allocation18_spill] sm:$0xff] %v4728_v56  ;;  %3993 = vmatmul.mubr.msk.f32.gmra.mxu1 %vm395_vm2, %v4698_v45  ;;  %3971 = vmatprep.mubr.msk.f32.mxu0 %vm395_vm2, %v4701_v50  ;;  %v4745_v45 = vsel %vm312_vm1, %v338_v51, %v339_v52  ;;  %v343_v22 = vrot.slane %v4717_v59, 1  ;;  %v344_v12 = vrot.slane %v4720_v1, 1  ;;  %v4750_v38 = vld [vmem:[%s4480_s26 + $0xa0] sm:$0x3]  ;;  %v4753_v50 = vsel %vm312_vm1, %v378_v7, %v379_v18  ;;  %v4761_v24 = vld [vmem:[%s4480_s26 + $0xa8] sm:$0xff] }
  0x24   : > { %3995 = vmatprep.mubr.msk.f32.mxu1 %vm395_vm2, %v4712_v63  ;;  %6348 = vst [vmem:[#allocation21_spill] sm:$0xff] %v4745_v45  ;;  %6349 = vst [vmem:[#allocation22_spill] sm:$0xff] %v4753_v50  ;;  %v383_v37 = vrot.slane %v4725_v11, 1  ;;  %v384_v9 = vrot.slane %v4728_v56, 1  ;;  %v4758_v63 = vld [vmem:[%s4480_s26 + $0x160] sm:$0x3]  ;;  %v4779_v7 = vsel %vm312_vm1, %v339_v52, %v341_v44  ;;  %v4782_v49 = vsel %vm312_vm1, %v379_v18, %v381_v42 }
  0x25   : > { %v4764_v40 = vld [vmem:[%s4480_s26 + $0xb0] sm:$0xff]  ;;  %v4769_v51 = vld [vmem:[%s4480_s26 + $0x168] sm:$0xff]  ;;  %6351 = vst [vmem:[#allocation24_spill] sm:$0xff] %v4779_v7  ;;  %6352 = vst [vmem:[#allocation25_spill] sm:$0xff] %v4782_v49  ;;  %v346_v43 = vrot.slane %v4750_v38, 1  ;;  %v386_v36 = vrot.slane %v4758_v63, 1 }
  0x26   : > { %3972 = vmatmul.mubr.msk.f32.gmra.mxu0 %vm395_vm2, %v4735_v23  ;;  %v4772_v62 = vld [vmem:[%s4480_s26 + $0x170] sm:$0xff]  ;;  %v4788_v23 = vsel %vm312_vm1, %v343_v22, %v344_v12  ;;  %v4794_v56 = vld [vmem:[%s4480_s26 + $0xb8] sm:$0x3]  ;;  %v4797_v44 = vsel %vm312_vm1, %v383_v37, %v384_v9  ;;  %v388_v42 = vrot.slane %v4769_v51, 1 }
  0x27   : > { %6350 = vst [vmem:[#allocation23_spill] sm:$0xff] %v4772_v62  ;;  %3996 = vmatmul.mubr.msk.f32.gmra.mxu1 %vm395_vm2, %v4742_v29  ;;  %3974 = vmatprep.mubr.msk.f32.mxu0 %vm395_vm2, %v4745_v45  ;;  %6353 = vst [vmem:[#allocation26_spill] sm:$0xff] %v4788_v23  ;;  %v348_v29 = vrot.slane %v4761_v24, 1  ;;  %v349_v45 = vrot.slane %v4764_v40, 1  ;;  %v389_v18 = vrot.slane %v4772_v62, 1  ;;  %v4811_v22 = vsel %vm312_vm1, %v344_v12, %v346_v43 }
  0x28   : > { %3998 = vmatprep.mubr.msk.f32.mxu1 %vm395_vm2, %v4753_v50  ;;  %6354 = vst [vmem:[#allocation27_spill] sm:$0xff] %v4797_v44  ;;  %v4802_v52 = vld [vmem:[%s4480_s26 + $0x178] sm:$0x3]  ;;  %6355 = vst [vmem:[#allocation28_spill] sm:$0xff] %v4811_v22  ;;  %v351_v37 = vrot.slane %v4794_v56, 1  ;;  %v982_v50 = vrot.slane %v4483_v3, 2  ;;  %v4818_v62 = vsel %vm312_vm1, %v384_v9, %v386_v36 }
  0x29   : > { %6356 = vst [vmem:[#allocation29_spill] sm:$0xff] %v4818_v62  ;;  %v4826_v43 = vsel %vm312_vm1, %v388_v42, %v389_v18  ;;  %v985_v12 = vrot.slane %v4498_v10, 2  ;;  %v987_v10 = vrot.slane %v4506_v14, 2  ;;  %v988_v42 = vrot.slane %v4511_v17, 2 }
  0x2a   : > { %3975 = vmatmul.mubr.msk.f32.gmra.mxu0 %vm395_vm2, %v4779_v7  ;;  %v4821_v7 = vsel %vm312_vm1, %v348_v29, %v349_v45  ;;  %6358 = vst [vmem:[#allocation31_spill] sm:$0xff] %v4826_v43  ;;  %v4836_v29 = vsel %vm312_vm1, %v349_v45, %v351_v37  ;;  %v990_v37 = vrot.slane %v4533_v26, 2  ;;  %v995_v26 = vrot.slane %v4574_v41, 2 }
  0x2b   : > { %3999 = vmatmul.mubr.msk.f32.gmra.mxu1 %vm395_vm2, %v4782_v49  ;;  %3977 = vmatprep.mubr.msk.f32.mxu0 %vm395_vm2, %v4788_v23  ;;  %6357 = vst [vmem:[#allocation30_spill] sm:$0xff] %v4821_v7  ;;  %v391_v49 = vrot.slane %v4802_v52, 1  ;;  %v983_v23 = vrot.slane %v4486_v4, 2  ;;  %6359 = vst [vmem:[#allocation32_spill] sm:$0xff] %v4836_v29  ;;  %v1000_v41 = vrot.slane %v4626_v60, 2 }
  0x2c   : > { %4001 = vmatprep.mubr.msk.f32.mxu1 %vm395_vm2, %v4797_v44 }
  0x2d   : > { %v4841_v36 = vsel %vm312_vm1, %v389_v18, %v391_v49  ;;  %v984_v9 = vsel %vm981_vm3, %v982_v50, %v983_v23  ;;  %v986_v45 = vsel %vm981_vm3, %v983_v23, %v985_v12  ;;  %v992_v49 = vrot.slane %v4553_v33, 2  ;;  %v4877_v23 = vld [vmem:[%s6243_s1 + $0x18] sm:$0xf] }
  0x2e   : > { %3978 = vmatmul.mubr.msk.f32.gmra.mxu0 %vm395_vm2, %v4811_v22  ;;  %6360 = vst [vmem:[#allocation33_spill] sm:$0xff] %v4841_v36  ;;  %v993_v50 = vrot.slane %v4556_v34, 2  ;;  %v4859_v18 = vsel %vm981_vm3, %v987_v10, %v988_v42  ;;  %v998_v12 = vrot.slane %v4596_v48, 2 }
  0x2f   : > { %4002 = vmatmul.mubr.msk.f32.gmra.mxu1 %vm395_vm2, %v4818_v62  ;;  %3980 = vmatprep.mubr.msk.f32.mxu0 %vm395_vm2, %v4821_v7 }
  0x30   : > { %4004 = vmatprep.mubr.msk.f32.mxu1 %vm395_vm2, %v4826_v43  ;;  %v4918_v60 = vsel %vm981_vm3, %v998_v12, %v1000_v41  ;;  %v1012_v41 = vrot.slane %v4717_v59, 2 }
  0x32   : > { %3981 = vmatmul.mubr.msk.f32.gmra.mxu0 %vm395_vm2, %v4836_v29 }
  0x33   : > { %4005 = vmatmul.mubr.msk.f32.gmra.mxu1 %vm395_vm2, %v4841_v36  ;;  %4059 = vmatprep.mubr.msk.f32.mxu0 %vm395_vm2, %v984_v9  ;;  %v4864_v9 = vld [vmem:[%s6243_s1 + $0x14] sm:$0xf] }
  0x34   : > { %4009 = vmatprep.mubr.msk.f32.mxu1 %vm395_vm2, %v4483_v3  ;;  %v4871_v3 = vsel %vm981_vm3, %v988_v42, %v990_v37  ;;  %v1002_v42 = vrot.slane %v4613_v55, 2  ;;  %v1005_v37 = vrot.slane %v4662_v15, 2 }
  0x36   : > { %4060 = vmatmul.mubr.msk.f32.vlgmr.msra.gmra.mxu0 %vm395_vm2, %v986_v45  ;;  %v1003_v45 = vrot.slane %v4629_v61, 2 }
  0x37   : > { %4010 = vmatmul.mubr.msk.f32.vlgmr.msra.gmra.mxu1 %vm395_vm2, %v4486_v4  ;;  %4158 = vmatpush3.msk.msra.mxu0 %vm460_vm0, %v4541_v28  ;;  %v4884_v4 = vsel %vm981_vm3, %v992_v49, %v993_v50  ;;  %v997_v28 = vrot.slane %v4593_v47, 2 }
  0x38   : > { %4108 = vmatpush3.msk.msra.mxu1 %vm460_vm0, %v4523_v21  ;;  %4012 = vmatprep.mubr.msk.f32.mxu1 %vm395_vm2, %v4506_v14  ;;  %v4901_v21 = vsel %vm981_vm3, %v993_v50, %v995_v26  ;;  %v4924_v49 = vsel %vm981_vm3, %v1002_v42, %v1003_v45  ;;  %v1007_v50 = vrot.slane %v4673_v25, 2  ;;  %v1008_v26 = vrot.slane %v4676_v30, 2 }
  0x39   : > { %4062 = vmatprep.mubr.msk.f32.mxu0 %vm395_vm2, %v4859_v18  ;;  %4207 = vmatprep.subr.msk.mxu1 %vm460_vm0, %v4864_v9  ;;  %v4907_v10 = vsel %vm981_vm3, %v997_v28, %v998_v12  ;;  %v4935_v15 = vsel %vm981_vm3, %v1003_v45, %v1005_v37  ;;  %v1010_v28 = vrot.slane %v4706_v57, 2  ;;  %v1013_v42 = vrot.slane %v4720_v1, 2 }
  0x3a   : > { %4063 = vmatmul.mubr.msk.f32.gmra.mxu0 %vm395_vm2, %v4871_v3  ;;  %4257 = vmatprep.subr.msk.mxu0 %vm460_vm0, %v4877_v23  ;;  %6361 = vst [vmem:[#allocation34_spill] sm:$0xff] %v4935_v15  ;;  %v4941_v12 = vsel %vm981_vm3, %v1007_v50, %v1008_v26  ;;  %v1015_v45 = vrot.slane %v4750_v38, 2  ;;  %v1017_v50 = vrot.slane %v4761_v24, 2 }
  0x3b   : > { %4013 = vmatmul.mubr.msk.f32.gmra.mxu1 %vm395_vm2, %v4511_v17  ;;  %4065 = vmatprep.mubr.msk.f32.mxu0 %vm395_vm2, %v4884_v4  ;;  %v4952_v57 = vsel %vm981_vm3, %v1008_v26, %v1010_v28  ;;  %v4958_v37 = vsel %vm981_vm3, %v1012_v41, %v1013_v42  ;;  %v1020_v26 = vrot.slane %v4794_v56, 2  ;;  %v1022_v41 = vrot.slane %v4489_v5, 2 }
  0x3c   : > { %4015 = vmatprep.mubr.msk.f32.mxu1 %vm395_vm2, %v4553_v33  ;;  %6362 = vst [vmem:[#allocation35_spill] sm:$0xff] %v4952_v57  ;;  %v4969_v38 = vsel %vm981_vm3, %v1013_v42, %v1015_v45  ;;  %v1025_v42 = vrot.slane %v4503_v13, 2 }
  0x3d   : > { %6363 = vst [vmem:[#allocation36_spill] sm:$0xff] %v4969_v38 }
  0x3e   : > { %4066 = vmatmul.mubr.msk.f32.gmra.mxu0 %vm395_vm2, %v4901_v21 }
  0x3f   : > { %4016 = vmatmul.mubr.msk.f32.gmra.mxu1 %vm395_vm2, %v4556_v34  ;;  %4068 = vmatprep.mubr.msk.f32.mxu0 %vm395_vm2, %v4907_v10 }
  0x40   : > { %4018 = vmatprep.mubr.msk.f32.mxu1 %vm395_vm2, %v4593_v47 }
  0x42   : > { %4069 = vmatmul.mubr.msk.f32.gmra.mxu0 %vm395_vm2, %v4918_v60 }
  0x43   : > { %4019 = vmatmul.mubr.msk.f32.gmra.mxu1 %vm395_vm2, %v4596_v48  ;;  %4071 = vmatprep.mubr.msk.f32.mxu0 %vm395_vm2, %v4924_v49 }
  0x44   : > { %4021 = vmatprep.mubr.msk.f32.mxu1 %vm395_vm2, %v4613_v55 }
  0x46   : > { %4072 = vmatmul.mubr.msk.f32.gmra.mxu0 %vm395_vm2, %v4935_v15  ;;  %v1018_v15 = vrot.slane %v4764_v40, 2 }
  0x47   : > { %4022 = vmatmul.mubr.msk.f32.gmra.mxu1 %vm395_vm2, %v4629_v61  ;;  %4074 = vmatprep.mubr.msk.f32.mxu0 %vm395_vm2, %v4941_v12 }
  0x48   : > { %4024 = vmatprep.mubr.msk.f32.mxu1 %vm395_vm2, %v4673_v25  ;;  %v4975_v28 = vsel %vm981_vm3, %v1017_v50, %v1018_v15  ;;  %v4986_v56 = vsel %vm981_vm3, %v1018_v15, %v1020_v26  ;;  %v1027_v50 = vrot.slane %v4515_v19, 2  ;;  %v1030_v15 = vrot.slane %v4536_v27, 2 }
  0x49   : > { %6364 = vst [vmem:[#allocation37_spill] sm:$0xff] %v4986_v56 }
  0x4a   : > { %4075 = vmatmul.mubr.msk.f32.gmra.mxu0 %vm395_vm2, %v4952_v57  ;;  %v1023_v57 = vrot.slane %v4494_v8, 2 }
  0x4b   : > { %4025 = vmatmul.mubr.msk.f32.gmra.mxu1 %vm395_vm2, %v4676_v30  ;;  %4077 = vmatprep.mubr.msk.f32.mxu0 %vm395_vm2, %v4958_v37 }
  0x4c   : > { %4027 = vmatprep.mubr.msk.f32.mxu1 %vm395_vm2, %v4717_v59  ;;  %v4992_v45 = vsel %vm981_vm3, %v1022_v41, %v1023_v57  ;;  %v5003_v13 = vsel %vm981_vm3, %v1023_v57, %v1025_v42  ;;  %v1032_v41 = vrot.slane %v4559_v35, 2  ;;  %v1035_v57 = vrot.slane %v4590_v46, 2 }
  0x4d   : > { %6365 = vst [vmem:[#allocation38_spill] sm:$0xff] %v5003_v13 }
  0x4e   : > { %4078 = vmatmul.mubr.msk.f32.gmra.mxu0 %vm395_vm2, %v4969_v38  ;;  %v1028_v38 = vrot.slane %v4518_v20, 2 }
  0x4f   : > { %4028 = vmatmul.mubr.msk.f32.gmra.mxu1 %vm395_vm2, %v4720_v1  ;;  %4080 = vmatprep.mubr.msk.f32.mxu0 %vm395_vm2, %v4975_v28 }
  0x50   : > { %4030 = vmatprep.mubr.msk.f32.mxu1 %vm395_vm2, %v4761_v24  ;;  %v5009_v26 = vsel %vm981_vm3, %v1027_v50, %v1028_v38  ;;  %v5020_v27 = vsel %vm981_vm3, %v1028_v38, %v1030_v15  ;;  %v1037_v50 = vrot.slane %v4607_v53, 2  ;;  %v1040_v38 = vrot.slane %v4642_v0, 2 }
  0x51   : > { %6366 = vst [vmem:[#allocation39_spill] sm:$0xff] %v5020_v27 }
  0x52   : > { %4081 = vmatmul.mubr.msk.f32.gmra.mxu0 %vm395_vm2, %v4986_v56  ;;  %v1033_v56 = vrot.slane %v4570_v39, 2 }
  0x53   : > { %4031 = vmatmul.mubr.msk.f32.gmra.mxu1 %vm395_vm2, %v4764_v40  ;;  %4083 = vmatprep.mubr.msk.f32.mxu0 %vm395_vm2, %v4992_v45 }
  0x54   : > { %4033 = vmatprep.mubr.msk.f32.mxu1 %vm395_vm2, %v4489_v5  ;;  %v5026_v42 = vsel %vm981_vm3, %v1032_v41, %v1033_v56  ;;  %v5037_v46 = vsel %vm981_vm3, %v1033_v56, %v1035_v57  ;;  %v1042_v41 = vrot.slane %v4646_v2, 2  ;;  %v1045_v56 = vrot.slane %v4665_v16, 2 }
  0x55   : > { %6367 = vst [vmem:[#allocation40_spill] sm:$0xff] %v5037_v46 }
  0x56   : > { %4084 = vmatmul.mubr.msk.f32.gmra.mxu0 %vm395_vm2, %v5003_v13  ;;  %v1038_v13 = vrot.slane %v4610_v54, 2 }
  0x57   : > { %4034 = vmatmul.mubr.msk.f32.gmra.mxu1 %vm395_vm2, %v4494_v8  ;;  %4086 = vmatprep.mubr.msk.f32.mxu0 %vm395_vm2, %v5009_v26 }
  0x58   : > { %4036 = vmatprep.mubr.msk.f32.mxu1 %vm395_vm2, %v4515_v19  ;;  %v5043_v15 = vsel %vm981_vm3, %v1037_v50, %v1038_v13  ;;  %v5054_v0 = vsel %vm981_vm3, %v1038_v13, %v1040_v38  ;;  %v1047_v50 = vrot.slane %v4681_v31, 2  ;;  %v1050_v13 = vrot.slane %v4709_v58, 2 }
  0x59   : > { %6368 = vst [vmem:[#allocation41_spill] sm:$0xff] %v5043_v15  ;;  %6369 = vst [vmem:[#allocation42_spill] sm:$0xff] %v5054_v0 }
  0x5a   : > { %4087 = vmatmul.mubr.msk.f32.gmra.mxu0 %vm395_vm2, %v5020_v27  ;;  %v1043_v27 = vrot.slane %v4649_v6, 2 }
  0x5b   : > { %4037 = vmatmul.mubr.msk.f32.gmra.mxu1 %vm395_vm2, %v4518_v20  ;;  %4089 = vmatprep.mubr.msk.f32.mxu0 %vm395_vm2, %v5026_v42 }
  0x5c   : > { %4039 = vmatprep.mubr.msk.f32.mxu1 %vm395_vm2, %v4559_v35  ;;  %v5060_v57 = vsel %vm981_vm3, %v1042_v41, %v1043_v27  ;;  %v5071_v16 = vsel %vm981_vm3, %v1043_v27, %v1045_v56  ;;  %v1052_v41 = vrot.slane %v4725_v11, 2  ;;  %v1055_v27 = vrot.slane %v4758_v63, 2 }
  0x5d   : > { %6370 = vst [vmem:[#allocation43_spill] sm:$0xff] %v5060_v57  ;;  %6371 = vst [vmem:[#allocation44_spill] sm:$0xff] %v5071_v16 }
  0x5e   : > { %4090 = vmatmul.mubr.msk.f32.gmra.mxu0 %vm395_vm2, %v5037_v46  ;;  %v1048_v46 = vrot.slane %v4684_v32, 2 }
  0x5f   : > { %4040 = vmatmul.mubr.msk.f32.gmra.mxu1 %vm395_vm2, %v4570_v39  ;;  %4092 = vmatprep.mubr.msk.f32.mxu0 %vm395_vm2, %v5043_v15 }
  0x60   : > { %4042 = vmatprep.mubr.msk.f32.mxu1 %vm395_vm2, %v4607_v53  ;;  %v5077_v38 = vsel %vm981_vm3, %v1047_v50, %v1048_v46  ;;  %v5088_v58 = vsel %vm981_vm3, %v1048_v46, %v1050_v13  ;;  %v1057_v50 = vrot.slane %v4769_v51, 2  ;;  %v1060_v46 = vrot.slane %v4802_v52, 2  ;;  %v6375_v52 = vld [vmem:[#allocation4_spill] sm:$0xff] }
  0x62   : > { %4093 = vmatmul.mubr.msk.f32.gmra.mxu0 %vm395_vm2, %v5054_v0  ;;  %v6372_v0 = vld [vmem:[#allocation18_spill] sm:$0xff] }
  0x63   : > { %4043 = vmatmul.mubr.msk.f32.gmra.mxu1 %vm395_vm2, %v4610_v54  ;;  %4095 = vmatprep.mubr.msk.f32.mxu0 %vm395_vm2, %v5060_v57  ;;  %v1053_v15 = vrot.slane %v6372_v0, 2 }
  0x64   : > { %4045 = vmatprep.mubr.msk.f32.mxu1 %vm395_vm2, %v4646_v2 }
  0x65   : > { %v5094_v56 = vsel %vm981_vm3, %v1052_v41, %v1053_v15  ;;  %v5105_v63 = vsel %vm981_vm3, %v1053_v15, %v1055_v27  ;;  %v6376_v41 = vld [vmem:[#allocation6_spill] sm:$0xff] }
  0x66   : > { %4096 = vmatmul.mubr.msk.f32.gmra.mxu0 %vm395_vm2, %v5071_v16  ;;  %v6373_v16 = vld [vmem:[#allocation23_spill] sm:$0xff]  ;;  %v5146_v27 = vld [vmem:[%s6243_s1 + $0x20] sm:$0xf] }
  0x67   : > { %4046 = vmatmul.mubr.msk.f32.gmra.mxu1 %vm395_vm2, %v4649_v6  ;;  %4098 = vmatprep.mubr.msk.f32.mxu0 %vm395_vm2, %v5077_v38  ;;  %v1058_v57 = vrot.slane %v6373_v16, 2 }
  0x68   : > { %4048 = vmatprep.mubr.msk.f32.mxu1 %vm395_vm2, %v4681_v31 }
  0x69   : > { %v5111_v13 = vsel %vm981_vm3, %v1057_v50, %v1058_v57  ;;  %v5120_v15 = vsel %vm981_vm3, %v1058_v57, %v1060_v46  ;;  %v5137_v57 = vld [vmem:[%s6243_s1 + $0x1c] sm:$0xf]  ;;  %v6381_v50 = vld [vmem:[#allocation16_spill] sm:$0xff]  ;;  %v6382_v46 = vld [vmem:[#allocation19_spill] sm:$0xff] }
  0x6a   : > { %4099 = vmatmul.mubr.msk.f32.gmra.mxu0 %vm395_vm2, %v5088_v58  ;;  %6374 = vst [vmem:[#allocation18_spill] sm:$0xff] %v5120_v15 }
  0x6b   : > { %4049 = vmatmul.mubr.msk.f32.gmra.mxu1 %vm395_vm2, %v4684_v32  ;;  %4101 = vmatprep.mubr.msk.f32.mxu0 %vm395_vm2, %v5094_v56 }
  0x6c   : > { %4051 = vmatprep.mubr.msk.f32.mxu1 %vm395_vm2, %v4725_v11 }
  0x6e   : > { %4102 = vmatmul.mubr.msk.f32.gmra.mxu0 %vm395_vm2, %v5105_v63 }
  0x6f   : > { %4052 = vmatmul.mubr.msk.f32.gmra.mxu1 %vm395_vm2, %v6372_v0  ;;  %4104 = vmatprep.mubr.msk.f32.mxu0 %vm395_vm2, %v5111_v13 }
  0x70   : > { %4054 = vmatprep.mubr.msk.f32.mxu1 %vm395_vm2, %v4769_v51 }
  0x72   : > { %4105 = vmatmul.mubr.msk.f32.gmra.mxu0 %vm395_vm2, %v5120_v15 }
  0x73   : > { %4055 = vmatmul.mubr.msk.f32.gmra.mxu1 %vm395_vm2, %v6373_v16  ;;  %4159 = vmatprep.mubr.msk.f32.mxu0 %vm395_vm2, %v6375_v52  ;;  %v6383_v52 = vld [vmem:[#allocation21_spill] sm:$0xff] }
  0x74   : > { %4109 = vmatprep.mubr.msk.f32.mxu1 %vm395_vm2, %v4506_v14  ;;  %v6377_v14 = vld [vmem:[#allocation8_spill] sm:$0xff] }
  0x76   : > { %4160 = vmatmul.mubr.msk.f32.vlgmr.msra.gmra.mxu0 %vm395_vm2, %v6376_v41  ;;  %v6384_v41 = vld [vmem:[#allocation24_spill] sm:$0xff] }
  0x77   : > { %4110 = vmatmul.mubr.msk.f32.vlgmr.msra.gmra.mxu1 %vm395_vm2, %v4511_v17  ;;  %4258 = vmatpush3.msk.msra.mxu0 %vm460_vm0, %v4877_v23  ;;  %v6378_v17 = vld [vmem:[#allocation10_spill] sm:$0xff]  ;;  %v6379_v23 = vld [vmem:[#allocation12_spill] sm:$0xff] }
  0x78   : > { %4208 = vmatpush3.msk.msra.mxu1 %vm460_vm0, %v4864_v9  ;;  %4112 = vmatprep.mubr.msk.f32.mxu1 %vm395_vm2, %v4553_v33  ;;  %v6380_v9 = vld [vmem:[#allocation14_spill] sm:$0xff] }
  0x79   : > { %4162 = vmatprep.mubr.msk.f32.mxu0 %vm395_vm2, %v6377_v14  ;;  %4307 = vmatprep.subr.msk.mxu1 %vm460_vm0, %v5137_v57 }
  0x7a   : > { %4163 = vmatmul.mubr.msk.f32.gmra.mxu0 %vm395_vm2, %v6378_v17  ;;  %4357 = vmatprep.subr.msk.mxu0 %vm460_vm0, %v5146_v27 }
  0x7b   : > { %4113 = vmatmul.mubr.msk.f32.gmra.mxu1 %vm395_vm2, %v4556_v34  ;;  %4165 = vmatprep.mubr.msk.f32.mxu0 %vm395_vm2, %v6379_v23 }
  0x7c   : > { %4115 = vmatprep.mubr.msk.f32.mxu1 %vm395_vm2, %v4593_v47 }
  0x7e   : > { %4166 = vmatmul.mubr.msk.f32.gmra.mxu0 %vm395_vm2, %v6380_v9 }
  0x7f   : > { %4116 = vmatmul.mubr.msk.f32.gmra.mxu1 %vm395_vm2, %v4596_v48  ;;  %4168 = vmatprep.mubr.msk.f32.mxu0 %vm395_vm2, %v6381_v50  ;;  %v6385_v50 = vld [vmem:[#allocation26_spill] sm:$0xff] }
  0x80   : > { %4118 = vmatprep.mubr.msk.f32.mxu1 %vm395_vm2, %v4613_v55 }
  0x82   : > { %4169 = vmatmul.mubr.msk.f32.gmra.mxu0 %vm395_vm2, %v6382_v46 }
  0x83   : > { %4119 = vmatmul.mubr.msk.f32.gmra.mxu1 %vm395_vm2, %v4629_v61  ;;  %4171 = vmatprep.mubr.msk.f32.mxu0 %vm395_vm2, %v6383_v52  ;;  %v5263_v52 = vld [vmem:[%s4480_s26 + $0x190] sm:$0x3] }
  0x84   : > { %4121 = vmatprep.mubr.msk.f32.mxu1 %vm395_vm2, %v4673_v25 }
  0x86   : > { %4172 = vmatmul.mubr.msk.f32.gmra.mxu0 %vm395_vm2, %v6384_v41  ;;  %v5250_v41 = vld [vmem:[%s4480_s26 + $0x188] sm:$0xff] }
  0x87   : > { %4122 = vmatmul.mubr.msk.f32.gmra.mxu1 %vm395_vm2, %v4676_v30  ;;  %4174 = vmatprep.mubr.msk.f32.mxu0 %vm395_vm2, %v6385_v50  ;;  %v6386_v50 = vld [vmem:[#allocation2_spill] sm:$0xff] }
  0x88   : > { %4124 = vmatprep.mubr.msk.f32.mxu1 %vm395_vm2, %v4717_v59 }
  0x8a   : > { %4175 = vmatmul.mubr.msk.f32.gmra.mxu0 %vm395_vm2, %v4811_v22  ;;  %v6387_v22 = vld [vmem:[#allocation3_spill] sm:$0xff] }
  0x8b   : > { %4125 = vmatmul.mubr.msk.f32.gmra.mxu1 %vm395_vm2, %v4720_v1  ;;  %4177 = vmatprep.mubr.msk.f32.mxu0 %vm395_vm2, %v4821_v7  ;;  %v6388_v7 = vld [vmem:[#allocation5_spill] sm:$0xff] }
  0x8c   : > { %4127 = vmatprep.mubr.msk.f32.mxu1 %vm395_vm2, %v4761_v24 }
  0x8e   : > { %4178 = vmatmul.mubr.msk.f32.gmra.mxu0 %vm395_vm2, %v4836_v29  ;;  %v6389_v29 = vld [vmem:[#allocation7_spill] sm:$0xff] }
  0x8f   : > { %4128 = vmatmul.mubr.msk.f32.gmra.mxu1 %vm395_vm2, %v4764_v40  ;;  %4180 = vmatprep.mubr.msk.f32.mxu0 %vm395_vm2, %v6386_v50  ;;  %v6390_v50 = vld [vmem:[#allocation9_spill] sm:$0xff] }
  0x90   : > { %4130 = vmatprep.mubr.msk.f32.mxu1 %vm395_vm2, %v4489_v5 }
  0x92   : > { %4181 = vmatmul.mubr.msk.f32.gmra.mxu0 %vm395_vm2, %v6387_v22  ;;  %v6391_v22 = vld [vmem:[#allocation11_spill] sm:$0xff] }
  0x93   : > { %4131 = vmatmul.mubr.msk.f32.gmra.mxu1 %vm395_vm2, %v4494_v8  ;;  %4183 = vmatprep.mubr.msk.f32.mxu0 %vm395_vm2, %v6388_v7  ;;  %v6392_v7 = vld [vmem:[#allocation13_spill] sm:$0xff] }
  0x94   : > { %4133 = vmatprep.mubr.msk.f32.mxu1 %vm395_vm2, %v4515_v19 }
  0x96   : > { %4184 = vmatmul.mubr.msk.f32.gmra.mxu0 %vm395_vm2, %v6389_v29  ;;  %v6393_v29 = vld [vmem:[#allocation15_spill] sm:$0xff] }
  0x97   : > { %4134 = vmatmul.mubr.msk.f32.gmra.mxu1 %vm395_vm2, %v4518_v20  ;;  %4186 = vmatprep.mubr.msk.f32.mxu0 %vm395_vm2, %v6390_v50  ;;  %v6394_v50 = vld [vmem:[#allocation17_spill] sm:$0xff] }
  0x98   : > { %4136 = vmatprep.mubr.msk.f32.mxu1 %vm395_vm2, %v4559_v35 }
  0x9a   : > { %4187 = vmatmul.mubr.msk.f32.gmra.mxu0 %vm395_vm2, %v6391_v22  ;;  %v6395_v22 = vld [vmem:[#allocation20_spill] sm:$0xff] }
  0x9b   : > { %4137 = vmatmul.mubr.msk.f32.gmra.mxu1 %vm395_vm2, %v4570_v39  ;;  %4189 = vmatprep.mubr.msk.f32.mxu0 %vm395_vm2, %v6392_v7  ;;  %v6396_v7 = vld [vmem:[#allocation22_spill] sm:$0xff] }
  0x9c   : > { %4139 = vmatprep.mubr.msk.f32.mxu1 %vm395_vm2, %v4607_v53 }
  0x9e   : > { %4190 = vmatmul.mubr.msk.f32.gmra.mxu0 %vm395_vm2, %v6393_v29  ;;  %v5247_v29 = vld [vmem:[%s4480_s26 + $0x180] sm:$0xff] }
  0x9f   : > { %4140 = vmatmul.mubr.msk.f32.gmra.mxu1 %vm395_vm2, %v4610_v54  ;;  %4192 = vmatprep.mubr.msk.f32.mxu0 %vm395_vm2, %v6394_v50  ;;  %v6397_v50 = vld [vmem:[#allocation25_spill] sm:$0xff] }
  0xa0   : > { %4142 = vmatprep.mubr.msk.f32.mxu1 %vm395_vm2, %v4646_v2 }
  0xa2   : > { %4193 = vmatmul.mubr.msk.f32.gmra.mxu0 %vm395_vm2, %v6395_v22  ;;  %v1658_v22 = vrot.slane %v5250_v41, 1 }
  0xa3   : > { %4143 = vmatmul.mubr.msk.f32.gmra.mxu1 %vm395_vm2, %v4649_v6  ;;  %4195 = vmatprep.mubr.msk.f32.mxu0 %vm395_vm2, %v6396_v7  ;;  %v1657_v7 = vrot.slane %v5247_v29, 1 }
  0xa4   : > { %4145 = vmatprep.mubr.msk.f32.mxu1 %vm395_vm2, %v4681_v31 }
  0xa6   : > { %4196 = vmatmul.mubr.msk.f32.gmra.mxu0 %vm395_vm2, %v6397_v50  ;;  %v5275_v50 = vsel %vm312_vm1, %v1657_v7, %v1658_v22 }
  0xa7   : > { %4146 = vmatmul.mubr.msk.f32.gmra.mxu1 %vm395_vm2, %v4684_v32  ;;  %4198 = vmatprep.mubr.msk.f32.mxu0 %vm395_vm2, %v4797_v44  ;;  %v1660_v44 = vrot.slane %v5263_v52, 1  ;;  %6398 = vst [vmem:[#allocation23_spill] sm:$0xff] %v5275_v50 }
  0xa8   : > { %4148 = vmatprep.mubr.msk.f32.mxu1 %vm395_vm2, %v4725_v11 }
  0xaa   : > { %4199 = vmatmul.mubr.msk.f32.gmra.mxu0 %vm395_vm2, %v4818_v62  ;;  %v5284_v62 = vsel %vm312_vm1, %v1658_v22, %v1660_v44  ;;  %v6410_v22 = vld [vmem:[#allocation44_spill] sm:$0xff] }
  0xab   : > { %4149 = vmatmul.mubr.msk.f32.gmra.mxu1 %vm395_vm2, %v6372_v0  ;;  %4201 = vmatprep.mubr.msk.f32.mxu0 %vm395_vm2, %v4826_v43  ;;  %6399 = vst [vmem:[#allocation4_spill] sm:$0xff] %v5284_v62 }
  0xac   : > { %4151 = vmatprep.mubr.msk.f32.mxu1 %vm395_vm2, %v4769_v51 }
  0xae   : > { %4202 = vmatmul.mubr.msk.f32.gmra.mxu0 %vm395_vm2, %v4841_v36  ;;  %v5461_v36 = vld [vmem:[%s4480_s26 + $0x198] sm:$0xff] }
  0xaf   : > { %4152 = vmatmul.mubr.msk.f32.gmra.mxu1 %vm395_vm2, %v6373_v16  ;;  %4204 = vmatprep.mubr.msk.f32.mxu0 %vm395_vm2, %v5275_v50 }
  0xb0   : > { %4154 = vmatprep.mubr.msk.f32.mxu1 %vm395_vm2, %v5247_v29 }
  0xb2   : > { %4205 = vmatmul.mubr.msk.f32.gmra.mxu0 %vm395_vm2, %v5284_v62 }
  0xb3   : > { %4155 = vmatmul.mubr.msk.f32.gmra.mxu1 %vm395_vm2, %v5250_v41  ;;  %4259 = vmatprep.mubr.msk.f32.mxu0 %vm395_vm2, %v4553_v33  ;;  %v6400_v33 = vld [vmem:[#allocation34_spill] sm:$0xff] }
  0xb4   : > { %4209 = vmatprep.mubr.msk.f32.mxu1 %vm395_vm2, %v4859_v18 }
  0xb6   : > { %4260 = vmatmul.mubr.msk.f32.vlgmr.msra.gmra.mxu0 %vm395_vm2, %v4556_v34  ;;  %v6401_v34 = vld [vmem:[#allocation35_spill] sm:$0xff] }
  0xb7   : > { %4210 = vmatmul.mubr.msk.f32.vlgmr.msra.gmra.mxu1 %vm395_vm2, %v4871_v3  ;;  %4358 = vmatpush3.msk.msra.mxu0 %vm460_vm0, %v5146_v27 }
  0xb8   : > { %4308 = vmatpush3.msk.msra.mxu1 %vm460_vm0, %v5137_v57  ;;  %4212 = vmatprep.mubr.msk.f32.mxu1 %vm395_vm2, %v4884_v4  ;;  %v1928_v57 = vrot.slane %v5247_v29, 2 }
  0xb9   : > { %4262 = vmatprep.mubr.msk.f32.mxu0 %vm395_vm2, %v4593_v47  ;;  %v6402_v47 = vld [vmem:[#allocation36_spill] sm:$0xff] }
  0xba   : > { %4263 = vmatmul.mubr.msk.f32.gmra.mxu0 %vm395_vm2, %v4596_v48  ;;  %v6403_v48 = vld [vmem:[#allocation37_spill] sm:$0xff] }
  0xbb   : > { %4213 = vmatmul.mubr.msk.f32.gmra.mxu1 %vm395_vm2, %v4901_v21  ;;  %4265 = vmatprep.mubr.msk.f32.mxu0 %vm395_vm2, %v4613_v55  ;;  %v6404_v55 = vld [vmem:[#allocation38_spill] sm:$0xff] }
  0xbc   : > { %4215 = vmatprep.mubr.msk.f32.mxu1 %vm395_vm2, %v4907_v10 }
  0xbe   : > { %4266 = vmatmul.mubr.msk.f32.gmra.mxu0 %vm395_vm2, %v4629_v61 }
  0xbf   : > { %4216 = vmatmul.mubr.msk.f32.gmra.mxu1 %vm395_vm2, %v4918_v60  ;;  %4268 = vmatprep.mubr.msk.f32.mxu0 %vm395_vm2, %v4673_v25  ;;  %v6406_v25 = vld [vmem:[#allocation40_spill] sm:$0xff] }
  0xc0   : > { %4218 = vmatprep.mubr.msk.f32.mxu1 %vm395_vm2, %v4924_v49 }
  0xc2   : > { %4269 = vmatmul.mubr.msk.f32.gmra.mxu0 %vm395_vm2, %v4676_v30  ;;  %v6407_v30 = vld [vmem:[#allocation41_spill] sm:$0xff] }
  0xc3   : > { %4219 = vmatmul.mubr.msk.f32.gmra.mxu1 %vm395_vm2, %v6400_v33  ;;  %4271 = vmatprep.mubr.msk.f32.mxu0 %vm395_vm2, %v4717_v59 }
  0xc4   : > { %4221 = vmatprep.mubr.msk.f32.mxu1 %vm395_vm2, %v4941_v12 }
  0xc6   : > { %4272 = vmatmul.mubr.msk.f32.gmra.mxu0 %vm395_vm2, %v4720_v1 }
  0xc7   : > { %4222 = vmatmul.mubr.msk.f32.gmra.mxu1 %vm395_vm2, %v6401_v34  ;;  %4274 = vmatprep.mubr.msk.f32.mxu0 %vm395_vm2, %v4761_v24  ;;  %v6408_v24 = vld [vmem:[#allocation42_spill] sm:$0xff] }
  0xc8   : > { %4224 = vmatprep.mubr.msk.f32.mxu1 %vm395_vm2, %v4958_v37 }
  0xca   : > { %4275 = vmatmul.mubr.msk.f32.gmra.mxu0 %vm395_vm2, %v4764_v40  ;;  %v6409_v40 = vld [vmem:[#allocation43_spill] sm:$0xff] }
  0xcb   : > { %4225 = vmatmul.mubr.msk.f32.gmra.mxu1 %vm395_vm2, %v6402_v47  ;;  %4277 = vmatprep.mubr.msk.f32.mxu0 %vm395_vm2, %v4489_v5 }
  0xcc   : > { %4227 = vmatprep.mubr.msk.f32.mxu1 %vm395_vm2, %v4975_v28 }
  0xce   : > { %4278 = vmatmul.mubr.msk.f32.gmra.mxu0 %vm395_vm2, %v4494_v8 }
  0xcf   : > { %4228 = vmatmul.mubr.msk.f32.gmra.mxu1 %vm395_vm2, %v6403_v48  ;;  %4280 = vmatprep.mubr.msk.f32.mxu0 %vm395_vm2, %v4515_v19  ;;  %v6405_v19 = vld [vmem:[#allocation39_spill] sm:$0xff] }
  0xd0   : > { %4230 = vmatprep.mubr.msk.f32.mxu1 %vm395_vm2, %v4992_v45 }
  0xd2   : > { %4281 = vmatmul.mubr.msk.f32.gmra.mxu0 %vm395_vm2, %v4518_v20 }
  0xd3   : > { %4231 = vmatmul.mubr.msk.f32.gmra.mxu1 %vm395_vm2, %v6404_v55  ;;  %4283 = vmatprep.mubr.msk.f32.mxu0 %vm395_vm2, %v4559_v35 }
  0xd4   : > { %4233 = vmatprep.mubr.msk.f32.mxu1 %vm395_vm2, %v5009_v26 }
  0xd6   : > { %v5364_v5 = vpop.f32.mrf.mxu0  ;;  %4284 = vmatmul.mubr.msk.f32.gmra.mxu0 %vm395_vm2, %v4570_v39 }
  0xd7   : > { %v5368_v8 = vpop.f32.mrf.mxu1  ;;  %4234 = vmatmul.mubr.msk.f32.gmra.mxu1 %vm395_vm2, %v6405_v19  ;;  %4286 = vmatprep.mubr.msk.f32.mxu0 %vm395_vm2, %v4607_v53 }
  0xd8   : > { %v5374_v20 = vpop.f32.mrf.mxu0  ;;  %4236 = vmatprep.mubr.msk.f32.mxu1 %vm395_vm2, %v5026_v42 }
  0xd9   : > { %v5378_v35 = vpop.f32.mrf.mxu1 }
  0xda   : > { %v5380_v61 = vpop.f32.mrf.mxu0  ;;  %4287 = vmatmul.mubr.msk.f32.gmra.mxu0 %vm395_vm2, %v4610_v54 }
  0xdb   : > { %v5384_v39 = vpop.f32.mrf.mxu1  ;;  %4237 = vmatmul.mubr.msk.f32.gmra.mxu1 %vm395_vm2, %v6406_v25  ;;  %4289 = vmatprep.mubr.msk.f32.mxu0 %vm395_vm2, %v4646_v2 }
  0xdc   : > { %v5390_v53 = vpop.f32.mrf.mxu0  ;;  %4239 = vmatprep.mubr.msk.f32.mxu1 %vm395_vm2, %v6407_v30 }
  0xdd   : > { %v5394_v59 = vpop.f32.mrf.mxu1 }
  0xde   : > { %v5396_v1 = vpop.f32.mrf.mxu0  ;;  %4290 = vmatmul.mubr.msk.f32.gmra.mxu0 %vm395_vm2, %v4649_v6 }
  0xdf   : > { %v5400_v54 = vpop.f32.mrf.mxu1  ;;  %4240 = vmatmul.mubr.msk.f32.gmra.mxu1 %vm395_vm2, %v6408_v24  ;;  %4292 = vmatprep.mubr.msk.f32.mxu0 %vm395_vm2, %v4681_v31 }
  0xe0   : > { %v5406_v2 = vpop.f32.mrf.mxu0  ;;  %4242 = vmatprep.mubr.msk.f32.mxu1 %vm395_vm2, %v6409_v40 }
  0xe1   : > { %v5410_v7 = vpop.f32.mrf.mxu1 }
  0xe2   : > { %v5412_v44 = vpop.f32.mrf.mxu0  ;;  %4293 = vmatmul.mubr.msk.f32.gmra.mxu0 %vm395_vm2, %v4684_v32 }
  0xe3   : > { %v5416_v6 = vpop.f32.mrf.mxu1  ;;  %4243 = vmatmul.mubr.msk.f32.gmra.mxu1 %vm395_vm2, %v6410_v22  ;;  %4295 = vmatprep.mubr.msk.f32.mxu0 %vm395_vm2, %v4725_v11 }
  0xe4   : > { %v5422_v31 = vpop.f32.mrf.mxu0  ;;  %4245 = vmatprep.mubr.msk.f32.mxu1 %vm395_vm2, %v5077_v38 }
  0xe5   : > { %v5426_v18 = vpop.f32.mrf.mxu1 }
  0xe6   : > { %v5428_v3 = vpop.f32.mrf.mxu0  ;;  %4296 = vmatmul.mubr.msk.f32.gmra.mxu0 %vm395_vm2, %v6372_v0  ;;  %v1929_v0 = vrot.slane %v5250_v41, 2 }
  0xe7   : > { %v5432_v32 = vpop.f32.mrf.mxu1  ;;  %4246 = vmatmul.mubr.msk.f32.gmra.mxu1 %vm395_vm2, %v5088_v58  ;;  %4298 = vmatprep.mubr.msk.f32.mxu0 %vm395_vm2, %v4769_v51 }
  0xe8   : > { %6411 = vst [vmem:[#allocation6_spill] sm:$0xff] %v5432_v32  ;;  %v5438_v11 = vpop.f32.mrf.mxu0  ;;  %4248 = vmatprep.mubr.msk.f32.mxu1 %vm395_vm2, %v5094_v56  ;;  %v5480_v32 = vld [vmem:[%s4480_s26 + $0x1a0] sm:$0xff] }
  0xe9   : > { %v5443_v27 = vpop.f32.mrf.mxu1 }
  0xea   : > { %6412 = vst [vmem:[#allocation8_spill] sm:$0xff] %v5443_v27  ;;  %v5446_v62 = vpop.f32.mrf.mxu0  ;;  %4299 = vmatmul.mubr.msk.f32.gmra.mxu0 %vm395_vm2, %v6373_v16  ;;  %v1931_v27 = vrot.slane %v5263_v52, 2  ;;  %v5467_v16 = vsel %vm981_vm3, %v1928_v57, %v1929_v0 }
  0xeb   : > { %v5450_v50 = vpop.f32.mrf.mxu1  ;;  %4249 = vmatmul.mubr.msk.f32.gmra.mxu1 %vm395_vm2, %v5105_v63  ;;  %4301 = vmatprep.mubr.msk.f32.mxu0 %vm395_vm2, %v5247_v29  ;;  %6415 = vst [vmem:[#allocation14_spill] sm:$0xff] %v5467_v16 }
  0xec   : > { %6413 = vst [vmem:[#allocation10_spill] sm:$0xff] %v5450_v50  ;;  %v5456_v51 = vpop.f32.mrf.mxu0  ;;  %4251 = vmatprep.mubr.msk.f32.mxu1 %vm395_vm2, %v5111_v13  ;;  %v5487_v57 = vsel %vm981_vm3, %v1929_v0, %v1931_v27 }
  0xed   : > { %v5464_v43 = vpop.f32.mrf.mxu1  ;;  %6417 = vst [vmem:[#allocation34_spill] sm:$0xff] %v5487_v57 }
  0xee   : > { %6414 = vst [vmem:[#allocation12_spill] sm:$0xff] %v5464_v43  ;;  %v5469_v50 = vpop.f32.mrf.mxu0  ;;  %4302 = vmatmul.mubr.msk.f32.gmra.mxu0 %vm395_vm2, %v5250_v41 }
  0xef   : > { %v5473_v29 = vpop.f32.mrf.mxu1  ;;  %4252 = vmatmul.mubr.msk.f32.gmra.mxu1 %vm395_vm2, %v5120_v15  ;;  %4304 = vmatprep.mubr.msk.f32.mxu0 %vm395_vm2, %v5461_v36 }
  0xf0   : > { %6416 = vst [vmem:[#allocation19_spill] sm:$0xff] %v5473_v29  ;;  %v5482_v52 = vpop.f32.mrf.mxu0  ;;  %4254 = vmatprep.mubr.msk.f32.mxu1 %vm395_vm2, %v5467_v16 }
  0xf1   : > { %v5489_v43 = vpop.f32.mrf.mxu1 }
  0xf2   : > { %6418 = vst [vmem:[#allocation35_spill] sm:$0xff] %v5489_v43  ;;  %v5491_v41 = vpop.f32.mrf.mxu0  ;;  %4305 = vmatmul.mubr.msk.f32.gmra.mxu0 %vm395_vm2, %v5480_v32 }
  0xf3   : > { %v5495_v29 = vpop.f32.mrf.mxu1  ;;  %4255 = vmatmul.mubr.msk.f32.gmra.mxu1 %vm395_vm2, %v5487_v57  ;;  %4359 = vmatprep.mubr.msk.f32.mxu0 %vm395_vm2, %v4884_v4 }
  0xf4   : > { %6419 = vst [vmem:[#allocation36_spill] sm:$0xff] %v5495_v29  ;;  %v5501_v15 = vpop.f32.mrf.mxu0  ;;  %4309 = vmatprep.mubr.msk.f32.mxu1 %vm395_vm2, %v6377_v14 }
  0xf5   : > { %v5505_v27 = vpop.f32.mrf.mxu1 }
  0xf6   : > { %6420 = vst [vmem:[#allocation37_spill] sm:$0xff] %v5505_v27  ;;  %v4061_v0 = vpop.f32.mrf.mxu0  ;;  %4360 = vmatmul.mubr.msk.f32.vlgmr.msra.gmra.mxu0 %vm395_vm2, %v4901_v21 }
  0xf7   : > { %v4011_v43 = vpop.f32.mrf.mxu1  ;;  %4310 = vmatmul.mubr.msk.f32.vlgmr.msra.gmra.mxu1 %vm395_vm2, %v6378_v17  ;;  %4362 = vmatprep.mubr.msk.f32.mxu0 %vm395_vm2, %v4907_v10 }
  0xf8   : > { %v828_v4 = vadd.f32 %v4011_v43, %v5364_v5  ;;  %v1197_v29 = vpop.f32.mrf.mxu0  ;;  %4312 = vmatprep.mubr.msk.f32.mxu1 %vm395_vm2, %v6379_v23  ;;  %v6421_v23 = vld [vmem:[#allocation16_spill] sm:$0xff] }
  0xf9   : > { %v822_v14 = vpop.f32.mrf.mxu1 }
  0xfa   : > { %v5516_v57 = vadd.f32 %v4061_v0, %v828_v4  ;;  %v823_v27 = vadd.f32 %v822_v14, %v5374_v20  ;;  %v4064_v16 = vpop.f32.mrf.mxu0  ;;  %4363 = vmatmul.mubr.msk.f32.gmra.mxu0 %vm395_vm2, %v4918_v60  ;;  %v6423_v14 = vld [vmem:[#allocation24_spill] sm:$0xff] }
  0xfb   : > { %v4014_v21 = vpop.f32.mrf.mxu1  ;;  %4313 = vmatmul.mubr.msk.f32.gmra.mxu1 %vm395_vm2, %v6380_v9  ;;  %4365 = vmatprep.mubr.msk.f32.mxu0 %vm395_vm2, %v4924_v49 }
  0xfc   : > { %v5525_v43 = vadd.f32 %v1197_v29, %v823_v27  ;;  %v838_v10 = vadd.f32 %v4014_v21, %v5380_v61  ;;  %v1207_v17 = vpop.f32.mrf.mxu0  ;;  %4315 = vmatprep.mubr.msk.f32.mxu1 %vm395_vm2, %v6421_v23 }
  0xfd   : > { %v832_v5 = vpop.f32.mrf.mxu1 }
  0xfe   : > { %v5530_v20 = vadd.f32 %v4064_v16, %v838_v10  ;;  %v833_v60 = vadd.f32 %v832_v5, %v5390_v53  ;;  %v4067_v0 = vpop.f32.mrf.mxu0  ;;  %4366 = vmatmul.mubr.msk.f32.gmra.mxu0 %vm395_vm2, %v6400_v33  ;;  %v6422_v16 = vld [vmem:[#allocation21_spill] sm:$0xff]  ;;  %v6424_v10 = vld [vmem:[#allocation26_spill] sm:$0xff] }
  0xff   : > { %v4017_v9 = vpop.f32.mrf.mxu1  ;;  %4316 = vmatmul.mubr.msk.f32.gmra.mxu1 %vm395_vm2, %v6382_v46  ;;  %4368 = vmatprep.mubr.msk.f32.mxu0 %vm395_vm2, %v4941_v12 }
 0x100   : > { %v5539_v49 = vadd.f32 %v1207_v17, %v833_v60  ;;  %v848_v61 = vadd.f32 %v4017_v9, %v5396_v1  ;;  %v1217_v29 = vpop.f32.mrf.mxu0  ;;  %4318 = vmatprep.mubr.msk.f32.mxu1 %vm395_vm2, %v6422_v16  ;;  %v6425_v60 = vld [vmem:[#allocation28_spill] sm:$0xff]  ;;  %v6426_v9 = vld [vmem:[#allocation30_spill] sm:$0xff] }
 0x101   : > { %v842_v53 = vpop.f32.mrf.mxu1 }
 0x102   : > { %v5544_v27 = vadd.f32 %v4067_v0, %v848_v61  ;;  %v843_v33 = vadd.f32 %v842_v53, %v5406_v2  ;;  %v4070_v4 = vpop.f32.mrf.mxu0  ;;  %4369 = vmatmul.mubr.msk.f32.gmra.mxu0 %vm395_vm2, %v6401_v34  ;;  %v6427_v53 = vld [vmem:[#allocation32_spill] sm:$0xff] }
 0x103   : > { %v4020_v46 = vpop.f32.mrf.mxu1  ;;  %4319 = vmatmul.mubr.msk.f32.gmra.mxu1 %vm395_vm2, %v6423_v14  ;;  %4371 = vmatprep.mubr.msk.f32.mxu0 %vm395_vm2, %v4958_v37 }
 0x104   : > { %v5553_v12 = vadd.f32 %v1217_v29, %v843_v33  ;;  %v858_v1 = vadd.f32 %v4020_v46, %v5412_v44  ;;  %v1227_v21 = vpop.f32.mrf.mxu0  ;;  %4321 = vmatprep.mubr.msk.f32.mxu1 %vm395_vm2, %v6424_v10 }
 0x105   : > { %v852_v2 = vpop.f32.mrf.mxu1 }
 0x106   : > { %v5558_v17 = vadd.f32 %v4070_v4, %v858_v1  ;;  %v853_v34 = vadd.f32 %v852_v2, %v5422_v31  ;;  %v4073_v23 = vpop.f32.mrf.mxu0  ;;  %4372 = vmatmul.mubr.msk.f32.gmra.mxu0 %vm395_vm2, %v6402_v47  ;;  %v6428_v4 = vld [vmem:[#allocation2_spill] sm:$0xff]  ;;  %v6430_v2 = vld [vmem:[#allocation5_spill] sm:$0xff] }
 0x107   : > { %v4023_v5 = vpop.f32.mrf.mxu1  ;;  %4322 = vmatmul.mubr.msk.f32.gmra.mxu1 %vm395_vm2, %v6425_v60  ;;  %4374 = vmatprep.mubr.msk.f32.mxu0 %vm395_vm2, %v4975_v28  ;;  %v6431_v60 = vld [vmem:[#allocation7_spill] sm:$0xff] }
 0x108   : > { %v5567_v37 = vadd.f32 %v1227_v21, %v853_v34  ;;  %v868_v44 = vadd.f32 %v4023_v5, %v5428_v3  ;;  %v1237_v0 = vpop.f32.mrf.mxu0  ;;  %4324 = vmatprep.mubr.msk.f32.mxu1 %vm395_vm2, %v6426_v9  ;;  %v6429_v21 = vld [vmem:[#allocation3_spill] sm:$0xff] }
 0x109   : > { %v862_v31 = vpop.f32.mrf.mxu1 }
 0x10a   : > { %v5572_v61 = vadd.f32 %v4073_v23, %v868_v44  ;;  %v863_v47 = vadd.f32 %v862_v31, %v5438_v11  ;;  %v4076_v29 = vpop.f32.mrf.mxu0  ;;  %4375 = vmatmul.mubr.msk.f32.gmra.mxu0 %vm395_vm2, %v6403_v48 }
 0x10b   : > { %v4026_v16 = vpop.f32.mrf.mxu1  ;;  %4325 = vmatmul.mubr.msk.f32.gmra.mxu1 %vm395_vm2, %v6427_v53  ;;  %4377 = vmatprep.mubr.msk.f32.mxu0 %vm395_vm2, %v4992_v45  ;;  %v6434_v53 = vld [vmem:[#allocation13_spill] sm:$0xff] }
 0x10c   : > { %v5581_v28 = vadd.f32 %v1237_v0, %v863_v47  ;;  %v878_v3 = vadd.f32 %v4026_v16, %v5446_v62  ;;  %v1247_v33 = vpop.f32.mrf.mxu0  ;;  %4327 = vmatprep.mubr.msk.f32.mxu1 %vm395_vm2, %v6428_v4  ;;  %v6432_v0 = vld [vmem:[#allocation9_spill] sm:$0xff] }
 0x10d   : > { %v872_v11 = vpop.f32.mrf.mxu1 }
 0x10e   : > { %v5586_v46 = vadd.f32 %v4076_v29, %v878_v3  ;;  %v873_v48 = vadd.f32 %v872_v11, %v5456_v51  ;;  %v4079_v14 = vpop.f32.mrf.mxu0  ;;  %4378 = vmatmul.mubr.msk.f32.gmra.mxu0 %vm395_vm2, %v6404_v55  ;;  %v6433_v29 = vld [vmem:[#allocation11_spill] sm:$0xff] }
 0x10f   : > { %v4029_v1 = vpop.f32.mrf.mxu1  ;;  %4328 = vmatmul.mubr.msk.f32.gmra.mxu1 %vm395_vm2, %v6429_v21  ;;  %4380 = vmatprep.mubr.msk.f32.mxu0 %vm395_vm2, %v5009_v26  ;;  %v6435_v11 = vld [vmem:[#allocation15_spill] sm:$0xff] }
 0x110   : > { %v5595_v62 = vadd.f32 %v1247_v33, %v873_v48  ;;  %v888_v45 = vadd.f32 %v4029_v1, %v5469_v50  ;;  %v1257_v10 = vpop.f32.mrf.mxu0  ;;  %4330 = vmatprep.mubr.msk.f32.mxu1 %vm395_vm2, %v6430_v2 }
 0x111   : > { %v882_v51 = vpop.f32.mrf.mxu1 }
 0x112   : > { %v5600_v34 = vadd.f32 %v4079_v14, %v888_v45  ;;  %v883_v55 = vadd.f32 %v882_v51, %v5482_v52  ;;  %v4082_v23 = vpop.f32.mrf.mxu0  ;;  %4381 = vmatmul.mubr.msk.f32.gmra.mxu0 %vm395_vm2, %v6405_v19  ;;  %v6436_v14 = vld [vmem:[#allocation17_spill] sm:$0xff]  ;;  %v6438_v51 = vld [vmem:[#allocation22_spill] sm:$0xff] }
 0x113   : > { %v4032_v5 = vpop.f32.mrf.mxu1  ;;  %4331 = vmatmul.mubr.msk.f32.gmra.mxu1 %vm395_vm2, %v6431_v60  ;;  %4383 = vmatprep.mubr.msk.f32.mxu0 %vm395_vm2, %v5026_v42  ;;  %v6439_v60 = vld [vmem:[#allocation25_spill] sm:$0xff] }
 0x114   : > { %v5609_v26 = vadd.f32 %v1257_v10, %v883_v55  ;;  %v898_v50 = vadd.f32 %v4032_v5, %v5491_v41  ;;  %v1267_v44 = vpop.f32.mrf.mxu0  ;;  %4333 = vmatprep.mubr.msk.f32.mxu1 %vm395_vm2, %v6432_v0  ;;  %v6437_v10 = vld [vmem:[#allocation20_spill] sm:$0xff] }
 0x115   : > { %v892_v52 = vpop.f32.mrf.mxu1 }
 0x116   : > { %v5614_v9 = vadd.f32 %v4082_v23, %v898_v50  ;;  %v893_v19 = vadd.f32 %v892_v52, %v5501_v15  ;;  %v4085_v31 = vpop.f32.mrf.mxu0  ;;  %4384 = vmatmul.mubr.msk.f32.gmra.mxu0 %vm395_vm2, %v6406_v25 }
 0x117   : > { %v4035_v47 = vpop.f32.mrf.mxu1  ;;  %4334 = vmatmul.mubr.msk.f32.gmra.mxu1 %vm395_vm2, %v6433_v29  ;;  %4386 = vmatprep.mubr.msk.f32.mxu0 %vm395_vm2, %v6407_v30  ;;  %v6442_v29 = vld [vmem:[#allocation6_spill] sm:$0xff] }
 0x118   : > { %v5623_v42 = vadd.f32 %v1267_v44, %v893_v19  ;;  %v908_v41 = vadd.f32 %v4035_v47, %v5368_v8  ;;  %v1277_v16 = vpop.f32.mrf.mxu0  ;;  %4336 = vmatprep.mubr.msk.f32.mxu1 %vm395_vm2, %v6434_v53  ;;  %v6440_v44 = vld [vmem:[#allocation27_spill] sm:$0xff]  ;;  %v2468_v53 = vrot.slane %v5461_v36, 1 }
 0x119   : > { %v902_v15 = vpop.f32.mrf.mxu1 }
 0x11a   : > { %v5628_v3 = vadd.f32 %v4085_v31, %v908_v41  ;;  %v903_v25 = vadd.f32 %v902_v15, %v5378_v35  ;;  %v4088_v33 = vpop.f32.mrf.mxu0  ;;  %4387 = vmatmul.mubr.msk.f32.gmra.mxu0 %vm395_vm2, %v6408_v24  ;;  %v2740_v31 = vrot.slane %v5480_v32, 2  ;;  %v2469_v15 = vrot.slane %v5480_v32, 1  ;;  %v6448_v32 = vld [vmem:[#allocation10_spill] sm:$0xff] }
 0x11b   : > { %v4038_v4 = vpop.f32.mrf.mxu1  ;;  %4337 = vmatmul.mubr.msk.f32.gmra.mxu1 %vm395_vm2, %v6435_v11  ;;  %4389 = vmatprep.mubr.msk.f32.mxu0 %vm395_vm2, %v6409_v40 }
 0x11c   : > { %v5637_v8 = vadd.f32 %v1277_v16, %v903_v25  ;;  %v918_v30 = vadd.f32 %v4038_v4, %v5384_v39  ;;  %v1287_v48 = vpop.f32.mrf.mxu0  ;;  %4339 = vmatprep.mubr.msk.f32.mxu1 %vm395_vm2, %v6436_v14  ;;  %v6443_v16 = vld [vmem:[#allocation31_spill] sm:$0xff]  ;;  %v6446_v14 = vld [vmem:[#allocation33_spill] sm:$0xff] }
 0x11d   : > { %v912_v35 = vpop.f32.mrf.mxu1 }
 0x11e   : > { %v5642_v1 = vadd.f32 %v4088_v33, %v918_v30  ;;  %v913_v24 = vadd.f32 %v912_v35, %v5394_v59  ;;  %v4091_v21 = vpop.f32.mrf.mxu0  ;;  %4390 = vmatmul.mubr.msk.f32.gmra.mxu0 %vm395_vm2, %v6410_v22  ;;  %v6445_v30 = vld [vmem:[#allocation18_spill] sm:$0xff] }
 0x11f   : > { %v4041_v45 = vpop.f32.mrf.mxu1  ;;  %4340 = vmatmul.mubr.msk.f32.gmra.mxu1 %vm395_vm2, %v6437_v10  ;;  %4392 = vmatprep.mubr.msk.f32.mxu0 %vm395_vm2, %v5077_v38  ;;  %v6447_v35 = vld [vmem:[#allocation14_spill] sm:$0xff]  ;;  %v6449_v10 = vld [vmem:[#allocation23_spill] sm:$0xff] }
 0x120   : > { %v5651_v39 = vadd.f32 %v1287_v48, %v913_v24  ;;  %v928_v40 = vadd.f32 %v4041_v45, %v5400_v54  ;;  %v1297_v2 = vpop.f32.mrf.mxu0  ;;  %4342 = vmatprep.mubr.msk.f32.mxu1 %vm395_vm2, %v6438_v51 }
 0x121   : > { %v922_v59 = vpop.f32.mrf.mxu1 }
 0x122   : > { %v5656_v55 = vadd.f32 %v4091_v21, %v928_v40  ;;  %v923_v22 = vadd.f32 %v922_v59, %v5410_v7  ;;  %v4094_v23 = vpop.f32.mrf.mxu0  ;;  %4393 = vmatmul.mubr.msk.f32.gmra.mxu0 %vm395_vm2, %v5088_v58  ;;  %v2470_v59 = vsel %vm312_vm1, %v2468_v53, %v2469_v15 }
 0x123   : > { %v4044_v5 = vpop.f32.mrf.mxu1  ;;  %4343 = vmatmul.mubr.msk.f32.gmra.mxu1 %vm395_vm2, %v6439_v60  ;;  %4395 = vmatprep.mubr.msk.f32.mxu0 %vm395_vm2, %v5094_v56  ;;  %v6441_v56 = vld [vmem:[#allocation29_spill] sm:$0xff] }
 0x124   : > { %v5665_v38 = vadd.f32 %v1297_v2, %v923_v22  ;;  %v938_v54 = vadd.f32 %v4044_v5, %v5416_v6  ;;  %v1307_v50 = vpop.f32.mrf.mxu0  ;;  %4345 = vmatprep.mubr.msk.f32.mxu1 %vm395_vm2, %v6440_v44  ;;  %v2739_v6 = vrot.slane %v5461_v36, 2  ;;  %v6452_v44 = vld [vmem:[#allocation4_spill] sm:$0xff] }
 0x125   : > { %v932_v7 = vpop.f32.mrf.mxu1 }
 0x126   : > { %v5670_v0 = vadd.f32 %v4094_v23, %v938_v54  ;;  %v933_v58 = vadd.f32 %v932_v7, %v5426_v18  ;;  %v4097_v52 = vpop.f32.mrf.mxu0  ;;  %4396 = vmatmul.mubr.msk.f32.gmra.mxu0 %vm395_vm2, %v5105_v63  ;;  %v262_v63 = vld [vmem:[%s4480_s26 + $0x1a8] sm:$0x3]  ;;  %v2741_v40 = vsel %vm981_vm3, %v2739_v6, %v2740_v31  ;;  %v6450_v23 = vld [vmem:[#allocation12_spill] sm:$0xff]  ;;  %v6451_v54 = vld [vmem:[#allocation34_spill] sm:$0xff] }
 0x127   : > { %v4047_v19 = vpop.f32.mrf.mxu1  ;;  %4346 = vmatmul.mubr.msk.f32.gmra.mxu1 %vm395_vm2, %v6441_v56  ;;  %4398 = vmatprep.mubr.msk.f32.mxu0 %vm395_vm2, %v5111_v13  ;;  %v6444_v13 = vld [vmem:[#allocation8_spill] sm:$0xff]  ;;  %v2742_v24 = vrot.slane %v262_v63, 2  ;;  %v2471_v2 = vrot.slane %v262_v63, 1 }
 0x128   : > { %v5681_v47 = vadd.f32 %v1307_v50, %v933_v58  ;;  %v948_v41 = vadd.f32 %v4047_v19, %v6442_v29  ;;  %v1317_v18 = vpop.f32.mrf.mxu0  ;;  %4348 = vmatprep.mubr.msk.f32.mxu1 %vm395_vm2, %v6443_v16 }
 0x129   : > { %v942_v25 = vpop.f32.mrf.mxu1  ;;  %v2743_v7 = vsel %vm981_vm3, %v2740_v31, %v2742_v24  ;;  %v2472_v6 = vsel %vm312_vm1, %v2469_v15, %v2471_v2  ;;  %v6456_v15 = vld [vmem:[#allocation37_spill] sm:$0xff] }
 0x12a   : > { %v5689_v33 = vadd.f32 %v4097_v52, %v948_v41  ;;  %v943_v4 = vadd.f32 %v942_v25, %v6444_v13  ;;  %v4100_v11 = vpop.f32.mrf.mxu0  ;;  %4399 = vmatmul.mubr.msk.f32.gmra.mxu0 %vm395_vm2, %v6445_v30  ;;  %v6453_v52 = vld [vmem:[#allocation19_spill] sm:$0xff]  ;;  %v6455_v25 = vld [vmem:[#allocation36_spill] sm:$0xff] }
 0x12b   : > { %v4050_v48 = vpop.f32.mrf.mxu1  ;;  %4349 = vmatmul.mubr.msk.f32.gmra.mxu1 %vm395_vm2, %v6446_v14  ;;  %4401 = vmatprep.mubr.msk.f32.mxu0 %vm395_vm2, %v6447_v35 }
 0x12c   : > { %v5698_v36 = vadd.f32 %v1317_v18, %v943_v4  ;;  %v958_v21 = vadd.f32 %v4050_v48, %v6448_v32  ;;  %v1327_v45 = vpop.f32.mrf.mxu0  ;;  %4351 = vmatprep.mubr.msk.f32.mxu1 %vm395_vm2, %v6449_v10  ;;  %v6454_v18 = vld [vmem:[#allocation35_spill] sm:$0xff] }
 0x12d   : > { %v952_v51 = vpop.f32.mrf.mxu1 }
 0x12e   : > { %v5705_v22 = vadd.f32 %v4100_v11, %v958_v21  ;;  %v953_v5 = vadd.f32 %v952_v51, %v6450_v23  ;;  %v4103_v60 = vpop.f32.mrf.mxu0  ;;  %4402 = vmatmul.mubr.msk.f32.gmra.mxu0 %vm395_vm2, %v6451_v54 }
 0x12f   : > { %v4053_v50 = vpop.f32.mrf.mxu1  ;;  %4352 = vmatmul.mubr.msk.f32.gmra.mxu1 %vm395_vm2, %v6452_v44  ;;  %4404 = vmatprep.mubr.msk.f32.mxu0 %vm395_vm2, %v2741_v40 }
 0x130   : > { %v5714_v58 = vadd.f32 %v1327_v45, %v953_v5  ;;  %v968_v19 = vadd.f32 %v4053_v50, %v6453_v52  ;;  %v1337_v56 = vpop.f32.mrf.mxu0  ;;  %4354 = vmatprep.mubr.msk.f32.mxu1 %vm395_vm2, %v2470_v59 }
 0x131   : > { %v962_v29 = vpop.f32.mrf.mxu1 }
 0x132   : > { %v5719_v41 = vadd.f32 %v4103_v60, %v968_v19  ;;  %v963_v16 = vadd.f32 %v962_v29, %v6454_v18  ;;  %v4106_v63 = vpop.f32.mrf.mxu0  ;;  %4405 = vmatmul.mubr.msk.f32.gmra.mxu0 %vm395_vm2, %v2743_v7 }
 0x133   : > { %v4056_v53 = vpop.f32.mrf.mxu1  ;;  %4355 = vmatmul.mubr.msk.f32.gmra.mxu1 %vm395_vm2, %v2472_v6 }
 0x134   : > { %v5724_v31 = vadd.f32 %v1337_v56, %v963_v16  ;;  %v978_v13 = vadd.f32 %v4056_v53, %v6455_v25  ;;  %v1347_v4 = vpop.f32.mrf.mxu0 }
 0x135   : > { %v972_v11 = vpop.f32.mrf.mxu1 }
 0x136   : > { %v5727_v30 = vadd.f32 %v4106_v63, %v978_v13  ;;  %v973_v48 = vadd.f32 %v972_v11, %v6456_v15  ;;  %v4161_v14 = vpop.f32.mrf.mxu0 }
 0x137   : > { %v4111_v35 = vpop.f32.mrf.mxu1 }
 0x138   : > { %v5730_v24 = vadd.f32 %v1347_v4, %v973_v48  ;;  %v1625_v32 = vadd.f32 %v4111_v35, %v5516_v57  ;;  %v1737_v21 = vpop.f32.mrf.mxu0 }
 0x139   : > { %v1465_v45 = vpop.f32.mrf.mxu1 }
 0x13a   : > { %v5733_v10 = vadd.f32 %v4161_v14, %v1625_v32  ;;  %v1624_v40 = vadd.f32 %v1465_v45, %v5525_v43  ;;  %v4164_v2 = vpop.f32.mrf.mxu0 }
 0x13b   : > { %v4114_v51 = vpop.f32.mrf.mxu1 }
 0x13c   : > { %v5736_v59 = vadd.f32 %v1737_v21, %v1624_v40  ;;  %v1627_v23 = vadd.f32 %v4114_v51, %v5530_v20  ;;  %v1747_v5 = vpop.f32.mrf.mxu0 }
 0x13d   : > { %v1475_v60 = vpop.f32.mrf.mxu1 }
 0x13e   : > { %v5739_v54 = vadd.f32 %v4164_v2, %v1627_v23  ;;  %v1626_v50 = vadd.f32 %v1475_v60, %v5539_v49  ;;  %v4167_v44 = vpop.f32.mrf.mxu0 }
 0x13f   : > { %v4117_v57 = vpop.f32.mrf.mxu1 }
 0x140   : > { %v5742_v7 = vadd.f32 %v1747_v5, %v1626_v50  ;;  %v1629_v52 = vadd.f32 %v4117_v57, %v5544_v27  ;;  %v1757_v19 = vpop.f32.mrf.mxu0 }
 0x141   : > { %v1485_v43 = vpop.f32.mrf.mxu1 }
 0x142   : > { %v5745_v56 = vadd.f32 %v4167_v44, %v1629_v52  ;;  %v1628_v6 = vadd.f32 %v1485_v43, %v5553_v12  ;;  %v4170_v29 = vpop.f32.mrf.mxu0 }
 0x143   : > { %v4120_v20 = vpop.f32.mrf.mxu1 }
 0x144   : > { %v5748_v18 = vadd.f32 %v1757_v19, %v1628_v6  ;;  %v1631_v16 = vadd.f32 %v4120_v20, %v5558_v17  ;;  %v1767_v63 = vpop.f32.mrf.mxu0 }
 0x145   : > { %v1495_v49 = vpop.f32.mrf.mxu1 }
 0x146   : > { %v5751_v53 = vadd.f32 %v4170_v29, %v1631_v16  ;;  %v1630_v25 = vadd.f32 %v1495_v49, %v5567_v37  ;;  %v4173_v13 = vpop.f32.mrf.mxu0 }
 0x147   : > { %v4123_v27 = vpop.f32.mrf.mxu1 }
 0x148   : > { %v5754_v4 = vadd.f32 %v1767_v63, %v1630_v25  ;;  %v1633_v11 = vadd.f32 %v4123_v27, %v5572_v61  ;;  %v1777_v15 = vpop.f32.mrf.mxu0 }
 0x149   : > { %v1505_v12 = vpop.f32.mrf.mxu1 }
 0x14a   : > { %v5757_v48 = vadd.f32 %v4173_v13, %v1633_v11  ;;  %v1632_v14 = vadd.f32 %v1505_v12, %v5581_v28  ;;  %v4176_v35 = vpop.f32.mrf.mxu0 }
 0x14b   : > { %v4126_v17 = vpop.f32.mrf.mxu1 }
 0x14c   : > { %v5760_v32 = vadd.f32 %v1777_v15, %v1632_v14  ;;  %v1635_v21 = vadd.f32 %v4126_v17, %v5586_v46  ;;  %v1787_v45 = vpop.f32.mrf.mxu0 }
 0x14d   : > { %v1515_v37 = vpop.f32.mrf.mxu1 }
 0x14e   : > { %v5763_v40 = vadd.f32 %v4176_v35, %v1635_v21  ;;  %v1634_v2 = vadd.f32 %v1515_v37, %v5595_v62  ;;  %v4179_v51 = vpop.f32.mrf.mxu0 }
 0x14f   : > { %v4129_v61 = vpop.f32.mrf.mxu1 }
 0x150   : > { %v5766_v23 = vadd.f32 %v1787_v45, %v1634_v2  ;;  %v1637_v5 = vadd.f32 %v4129_v61, %v5600_v34  ;;  %v1797_v60 = vpop.f32.mrf.mxu0 }
 0x151   : > { %v1525_v28 = vpop.f32.mrf.mxu1 }
 0x152   : > { %v5769_v50 = vadd.f32 %v4179_v51, %v1637_v5  ;;  %v1636_v44 = vadd.f32 %v1525_v28, %v5609_v26  ;;  %v4182_v57 = vpop.f32.mrf.mxu0 }
 0x153   : > { %v4132_v46 = vpop.f32.mrf.mxu1 }
 0x154   : > { %v5772_v52 = vadd.f32 %v1797_v60, %v1636_v44  ;;  %v1639_v19 = vadd.f32 %v4132_v46, %v5614_v9  ;;  %v1807_v43 = vpop.f32.mrf.mxu0 }
 0x155   : > { %v1535_v62 = vpop.f32.mrf.mxu1 }
 0x156   : > { %v5775_v6 = vadd.f32 %v4182_v57, %v1639_v19  ;;  %v1638_v29 = vadd.f32 %v1535_v62, %v5623_v42  ;;  %v4185_v20 = vpop.f32.mrf.mxu0 }
 0x157   : > { %v4135_v34 = vpop.f32.mrf.mxu1 }
 0x158   : > { %v5778_v16 = vadd.f32 %v1807_v43, %v1638_v29  ;;  %v1641_v63 = vadd.f32 %v4135_v34, %v5628_v3  ;;  %v1817_v49 = vpop.f32.mrf.mxu0 }
 0x159   : > { %v1545_v26 = vpop.f32.mrf.mxu1 }
 0x15a   : > { %v5781_v25 = vadd.f32 %v4185_v20, %v1641_v63  ;;  %v1640_v13 = vadd.f32 %v1545_v26, %v5637_v8  ;;  %v4188_v27 = vpop.f32.mrf.mxu0 }
 0x15b   : > { %v4138_v9 = vpop.f32.mrf.mxu1 }
 0x15c   : > { %v5784_v11 = vadd.f32 %v1817_v49, %v1640_v13  ;;  %v1643_v15 = vadd.f32 %v4138_v9, %v5642_v1  ;;  %v1827_v12 = vpop.f32.mrf.mxu0 }
 0x15d   : > { %v1555_v42 = vpop.f32.mrf.mxu1 }
 0x15e   : > { %6457 = vst [vmem:[#allocation38_spill] sm:$0xff] %v5784_v11  ;;  %v5787_v14 = vadd.f32 %v4188_v27, %v1643_v15  ;;  %v1642_v35 = vadd.f32 %v1555_v42, %v5651_v39  ;;  %v4191_v17 = vpop.f32.mrf.mxu0 }
 0x15f   : > { %v4141_v3 = vpop.f32.mrf.mxu1 }
 0x160   : > { %6458 = vst [vmem:[#allocation39_spill] sm:$0xff] %v5787_v14  ;;  %v5790_v21 = vadd.f32 %v1827_v12, %v1642_v35  ;;  %v1645_v45 = vadd.f32 %v4141_v3, %v5656_v55  ;;  %v1837_v37 = vpop.f32.mrf.mxu0 }
 0x161   : > { %v1565_v8 = vpop.f32.mrf.mxu1 }
 0x162   : > { %6459 = vst [vmem:[#allocation40_spill] sm:$0xff] %v5790_v21  ;;  %v5793_v2 = vadd.f32 %v4191_v17, %v1645_v45  ;;  %v1644_v51 = vadd.f32 %v1565_v8, %v5665_v38  ;;  %v4194_v61 = vpop.f32.mrf.mxu0 }
 0x163   : > { %v4144_v1 = vpop.f32.mrf.mxu1 }
 0x164   : > { %6460 = vst [vmem:[#allocation41_spill] sm:$0xff] %v5793_v2  ;;  %v5796_v5 = vadd.f32 %v1837_v37, %v1644_v51  ;;  %v1647_v60 = vadd.f32 %v4144_v1, %v5670_v0  ;;  %v1847_v28 = vpop.f32.mrf.mxu0 }
 0x165   : > { %v1575_v39 = vpop.f32.mrf.mxu1 }
 0x166   : > { %6461 = vst [vmem:[#allocation42_spill] sm:$0xff] %v5796_v5  ;;  %v5799_v44 = vadd.f32 %v4194_v61, %v1647_v60  ;;  %v1646_v57 = vadd.f32 %v1575_v39, %v5681_v47  ;;  %v4197_v46 = vpop.f32.mrf.mxu0 }
 0x167   : > { %v4147_v55 = vpop.f32.mrf.mxu1 }
 0x168   : > { %6462 = vst [vmem:[#allocation43_spill] sm:$0xff] %v5799_v44  ;;  %v5802_v19 = vadd.f32 %v1847_v28, %v1646_v57  ;;  %v1649_v43 = vadd.f32 %v4147_v55, %v5689_v33  ;;  %v1857_v62 = vpop.f32.mrf.mxu0 }
 0x169   : > { %v1585_v38 = vpop.f32.mrf.mxu1 }
 0x16a   : > { %6463 = vst [vmem:[#allocation44_spill] sm:$0xff] %v5802_v19  ;;  %v5805_v29 = vadd.f32 %v4197_v46, %v1649_v43  ;;  %v1648_v20 = vadd.f32 %v1585_v38, %v5698_v36  ;;  %v4200_v34 = vpop.f32.mrf.mxu0 }
 0x16b   : > { %v4150_v0 = vpop.f32.mrf.mxu1 }
 0x16c   : > { %6464 = vst [vmem:[#allocation16_spill] sm:$0xff] %v5805_v29  ;;  %v5808_v63 = vadd.f32 %v1857_v62, %v1648_v20  ;;  %v1651_v49 = vadd.f32 %v4150_v0, %v5705_v22  ;;  %v1867_v26 = vpop.f32.mrf.mxu0 }
 0x16d   : > { %v1595_v47 = vpop.f32.mrf.mxu1 }
 0x16e   : > { %6465 = vst [vmem:[#allocation21_spill] sm:$0xff] %v5808_v63  ;;  %v5811_v13 = vadd.f32 %v4200_v34, %v1651_v49  ;;  %v1650_v27 = vadd.f32 %v1595_v47, %v5714_v58  ;;  %v4203_v9 = vpop.f32.mrf.mxu0 }
 0x16f   : > { %v4153_v33 = vpop.f32.mrf.mxu1 }
 0x170   : > { %6466 = vst [vmem:[#allocation24_spill] sm:$0xff] %v5811_v13  ;;  %v5814_v15 = vadd.f32 %v1867_v26, %v1650_v27  ;;  %v1653_v12 = vadd.f32 %v4153_v33, %v5719_v41  ;;  %v1877_v42 = vpop.f32.mrf.mxu0 }
 0x171   : > { %v1605_v36 = vpop.f32.mrf.mxu1 }
 0x172   : > { %6467 = vst [vmem:[#allocation26_spill] sm:$0xff] %v5814_v15  ;;  %v5817_v35 = vadd.f32 %v4203_v9, %v1653_v12  ;;  %v1652_v17 = vadd.f32 %v1605_v36, %v5724_v31  ;;  %v4206_v3 = vpop.f32.mrf.mxu0 }
 0x173   : > { %v4156_v22 = vpop.f32.mrf.mxu1 }
 0x174   : > { %6468 = vst [vmem:[#allocation28_spill] sm:$0xff] %v5817_v35  ;;  %v5820_v45 = vadd.f32 %v1877_v42, %v1652_v17  ;;  %v1655_v37 = vadd.f32 %v4156_v22, %v5727_v30  ;;  %v1887_v8 = vpop.f32.mrf.mxu0 }
 0x175   : > { %v1615_v58 = vpop.f32.mrf.mxu1 }
 0x176   : > { %6469 = vst [vmem:[#allocation30_spill] sm:$0xff] %v5820_v45  ;;  %v5823_v51 = vadd.f32 %v4206_v3, %v1655_v37  ;;  %v1654_v61 = vadd.f32 %v1615_v58, %v5730_v24  ;;  %v5826_v1 = vpop.f32.mrf.mxu0 }
 0x177   : > { %v4211_v41 = vpop.f32.mrf.mxu1 }
 0x178   : > { %6470 = vst [vmem:[#allocation32_spill] sm:$0xff] %v5823_v51  ;;  %v5828_v60 = vadd.f32 %v1887_v8, %v1654_v61  ;;  %v5830_v28 = vpop.f32.mrf.mxu0 }
 0x179   : > { %v2008_v31 = vpop.f32.mrf.mxu1 }
 0x17a   : > { %6471 = vst [vmem:[#allocation2_spill] sm:$0xff] %v5828_v60  ;;  %v5832_v39 = vpop.f32.mrf.mxu0 }
 0x17b   : > { %v4214_v57 = vpop.f32.mrf.mxu1 }
 0x17c   : > { %v5834_v46 = vpop.f32.mrf.mxu0 }
 0x17d   : > { %v2018_v30 = vpop.f32.mrf.mxu1 }
 0x17e   : > { %v5836_v55 = vpop.f32.mrf.mxu0 }
 0x17f   : > { %v4217_v43 = vpop.f32.mrf.mxu1 }
 0x180   : > { %v5838_v62 = vpop.f32.mrf.mxu0 }
 0x181   : > { %v2028_v24 = vpop.f32.mrf.mxu1 }
 0x182   : > { %v5840_v38 = vpop.f32.mrf.mxu0 }
 0x183   : > { %v4220_v20 = vpop.f32.mrf.mxu1 }
 0x184   : > { %v5842_v34 = vpop.f32.mrf.mxu0 }
 0x185   : > { %v2038_v0 = vpop.f32.mrf.mxu1 }
 0x186   : > { %v5844_v49 = vpop.f32.mrf.mxu0 }
 0x187   : > { %v4223_v26 = vpop.f32.mrf.mxu1 }
 0x188   : > { %v5846_v47 = vpop.f32.mrf.mxu0 }
 0x189   : > { %v2048_v27 = vpop.f32.mrf.mxu1 }
 0x18a   : > { %v5848_v9 = vpop.f32.mrf.mxu0 }
 0x18b   : > { %v4226_v33 = vpop.f32.mrf.mxu1 }
 0x18c   : > { %v5850_v12 = vpop.f32.mrf.mxu0 }
 0x18d   : > { %6472 = vst [vmem:[#allocation3_spill] sm:$0xff] %v5850_v12  ;;  %v2058_v42 = vpop.f32.mrf.mxu1 }
 0x18e   : > { %v5852_v36 = vpop.f32.mrf.mxu0 }
 0x18f   : > { %6473 = vst [vmem:[#allocation5_spill] sm:$0xff] %v5852_v36  ;;  %v4229_v17 = vpop.f32.mrf.mxu1 }
 0x190   : > { %v5854_v3 = vpop.f32.mrf.mxu0 }
 0x191   : > { %6474 = vst [vmem:[#allocation7_spill] sm:$0xff] %v5854_v3  ;;  %v2068_v22 = vpop.f32.mrf.mxu1 }
 0x192   : > { %v5856_v37 = vpop.f32.mrf.mxu0 }
 0x193   : > { %6475 = vst [vmem:[#allocation9_spill] sm:$0xff] %v5856_v37  ;;  %v4232_v8 = vpop.f32.mrf.mxu1 }
 0x194   : > { %v5858_v58 = vpop.f32.mrf.mxu0 }
 0x195   : > { %6476 = vst [vmem:[#allocation11_spill] sm:$0xff] %v5858_v58  ;;  %v2078_v61 = vpop.f32.mrf.mxu1 }
 0x196   : > { %v5860_v60 = vpop.f32.mrf.mxu0 }
 0x197   : > { %6477 = vst [vmem:[#allocation13_spill] sm:$0xff] %v5860_v60  ;;  %v4235_v51 = vpop.f32.mrf.mxu1 }
 0x198   : > { %v5862_v45 = vpop.f32.mrf.mxu0 }
 0x199   : > { %6478 = vst [vmem:[#allocation15_spill] sm:$0xff] %v5862_v45  ;;  %v2088_v35 = vpop.f32.mrf.mxu1 }
 0x19a   : > { %v5864_v15 = vpop.f32.mrf.mxu0 }
 0x19b   : > { %6479 = vst [vmem:[#allocation17_spill] sm:$0xff] %v5864_v15  ;;  %v4238_v13 = vpop.f32.mrf.mxu1 }
 0x19c   : > { %v5866_v63 = vpop.f32.mrf.mxu0 }
 0x19d   : > { %6480 = vst [vmem:[#allocation20_spill] sm:$0xff] %v5866_v63  ;;  %v2098_v29 = vpop.f32.mrf.mxu1 }
 0x19e   : > { %v5868_v19 = vpop.f32.mrf.mxu0 }
 0x19f   : > { %6481 = vst [vmem:[#allocation22_spill] sm:$0xff] %v5868_v19  ;;  %v4241_v44 = vpop.f32.mrf.mxu1 }
 0x1a0   : > { %v5870_v37 = vpop.f32.mrf.mxu0 }
 0x1a1   : > { %6482 = vst [vmem:[#allocation25_spill] sm:$0xff] %v5870_v37  ;;  %v2108_v5 = vpop.f32.mrf.mxu1  ;;  %v2168_v37 = vadd.f32 %v4211_v41, %v5733_v10  ;;  %v2173_v10 = vadd.f32 %v2038_v0, %v5754_v4  ;;  %v2180_v4 = vadd.f32 %v4229_v17, %v5769_v50  ;;  %v6494_v0 = vld [vmem:[#allocation7_spill] sm:$0xff] }
 0x1a2   : > { %v5872_v58 = vpop.f32.mrf.mxu0 }
 0x1a3   : > { %6483 = vst [vmem:[#allocation27_spill] sm:$0xff] %v5872_v58  ;;  %v4244_v2 = vpop.f32.mrf.mxu1  ;;  %v5932_v50 = vadd.f32 %v5842_v34, %v2173_v10 }
 0x1a4   : > { %v5874_v60 = vpop.f32.mrf.mxu0 }
 0x1a5   : > { %6484 = vst [vmem:[#allocation29_spill] sm:$0xff] %v5874_v60  ;;  %v5876_v21 = vpop.f32.mrf.mxu1  ;;  %v2167_v60 = vadd.f32 %v2008_v31, %v5736_v59  ;;  %v2436_v59 = vadd.f32 %v5826_v1, %v2168_v37  ;;  %v2175_v31 = vadd.f32 %v2048_v27, %v5760_v32  ;;  %v6497_v27 = vld [vmem:[#allocation42_spill] sm:$0xff] }
 0x1a6   : > { %6485 = vst [vmem:[#allocation6_spill] sm:$0xff] %v5876_v21  ;;  %v5878_v45 = vpop.f32.mrf.mxu0  ;;  %v2170_v21 = vadd.f32 %v4214_v57, %v5739_v54  ;;  %v2176_v54 = vadd.f32 %v4223_v26, %v5757_v48  ;;  %v6495_v26 = vld [vmem:[#allocation40_spill] sm:$0xff] }
 0x1a7   : > { %6486 = vst [vmem:[#allocation31_spill] sm:$0xff] %v5878_v45  ;;  %v4247_v15 = vpop.f32.mrf.mxu1  ;;  %v2169_v45 = vadd.f32 %v2018_v30, %v5742_v7  ;;  %v2178_v7 = vadd.f32 %v4226_v33, %v5763_v40  ;;  %v2179_v40 = vadd.f32 %v2068_v22, %v5772_v52  ;;  %v5942_v52 = vadd.f32 %v5846_v47, %v2175_v31  ;;  %v6504_v31 = vld [vmem:[#allocation16_spill] sm:$0xff] }
 0x1a8   : > { %v5880_v3 = vpop.f32.mrf.mxu0  ;;  %v2185_v47 = vadd.f32 %v2098_v29, %v6495_v26  ;;  %v6502_v29 = vld [vmem:[#allocation44_spill] sm:$0xff] }
 0x1a9   : > { %6487 = vst [vmem:[#allocation8_spill] sm:$0xff] %v5880_v3  ;;  %v2128_v63 = vpop.f32.mrf.mxu1  ;;  %v2172_v3 = vadd.f32 %v4217_v43, %v5745_v56  ;;  %v2435_v56 = vadd.f32 %v5830_v28, %v2167_v60  ;;  %v5917_v1 = vadd.f32 %v5834_v46, %v2169_v45  ;;  %v2181_v45 = vadd.f32 %v2078_v61, %v5778_v16  ;;  %v6491_v16 = vld [vmem:[#allocation5_spill] sm:$0xff] }
 0x1aa   : > { %v5882_v14 = vpop.f32.mrf.mxu0  ;;  %v5954_v43 = vadd.f32 %v6491_v16, %v2180_v4  ;;  %v6501_v61 = vld [vmem:[#allocation13_spill] sm:$0xff]  ;;  %v5982_v4 = vld [vmem:[%s6244_s2] ss:$0 sm:$0xff] }
 0x1ab   : > { %6488 = vst [vmem:[#allocation18_spill] sm:$0xff] %v5882_v14  ;;  %v5884_v19 = vpop.f32.mrf.mxu1  ;;  %v2171_v14 = vadd.f32 %v2028_v24, %v5748_v18  ;;  %v2438_v18 = vadd.f32 %v5832_v39, %v2170_v21  ;;  %v5920_v48 = vadd.f32 %v5836_v55, %v2172_v3  ;;  %v2182_v21 = vadd.f32 %v4232_v8, %v5775_v6  ;;  %v6490_v55 = vld [vmem:[#allocation3_spill] sm:$0xff] }
 0x1ac   : > { %v5886_v11 = vpop.f32.mrf.mxu0  ;;  %v5945_v39 = vadd.f32 %v5848_v9, %v2178_v7  ;;  %v2187_v9 = vadd.f32 %v2108_v5, %v6497_v27  ;;  %v6499_v3 = vld [vmem:[#allocation11_spill] sm:$0xff]  ;;  %v2192_v5 = vadd.f32 %v4247_v15, %v6504_v31  ;;  %v6505_v7 = vld [vmem:[#allocation21_spill] sm:$0xff]  ;;  %v6509_v15 = vld [vmem:[#allocation22_spill] sm:$0xff] }
 0x1ad   : > { %6489 = vst [vmem:[#allocation33_spill] sm:$0xff] %v5886_v11  ;;  %v5889_v58 = vpop.f32.mrf.mxu1  ;;  %v2174_v11 = vadd.f32 %v4220_v20, %v5751_v53  ;;  %v2177_v53 = vadd.f32 %v2058_v42, %v5766_v23  ;;  %v5923_v32 = vadd.f32 %v5838_v62, %v2171_v14  ;;  %v5939_v14 = vadd.f32 %v5844_v49, %v2176_v54  ;;  %v6492_v62 = vld [vmem:[#allocation38_spill] sm:$0xff]  ;;  %v6498_v42 = vld [vmem:[#allocation9_spill] sm:$0xff] }
 0x1ae   : > { %v5893_v36 = vpop.f32.mrf.mxu0  ;;  %v2183_v24 = vadd.f32 %v2088_v35, %v6492_v62  ;;  %v5959_v49 = vadd.f32 %v6494_v0, %v2179_v40  ;;  %v5965_v17 = vadd.f32 %v6498_v42, %v2182_v21  ;;  %v5968_v22 = vadd.f32 %v6499_v3, %v2181_v45  ;;  %v6500_v35 = vld [vmem:[#allocation43_spill] sm:$0xff]  ;;  %v6503_v54 = vld [vmem:[#allocation6_spill] sm:$0xff]  ;;  %v6507_v21 = vld [vmem:[#allocation17_spill] sm:$0xff] }
 0x1af   : > { %v5898_v12 = vpop.f32.mrf.mxu1  ;;  %v5929_v23 = vadd.f32 %v5840_v38, %v2174_v11  ;;  %v2184_v11 = vadd.f32 %v4235_v51, %v5781_v25  ;;  %v5951_v6 = vadd.f32 %v6490_v55, %v2177_v53  ;;  %v6493_v38 = vld [vmem:[#allocation39_spill] sm:$0xff]  ;;  %v6496_v25 = vld [vmem:[#allocation41_spill] sm:$0xff]  ;;  %v2190_v37 = vadd.f32 %v4244_v2, %v6500_v35  ;;  %v6508_v62 = vld [vmem:[#allocation20_spill] sm:$0xff] }
 0x1b0   : > { %v5902_v41 = vpop.f32.mrf.mxu0  ;;  %v2186_v20 = vadd.f32 %v4238_v13, %v6493_v38  ;;  %v2188_v51 = vadd.f32 %v4241_v44, %v6496_v25  ;;  %v2189_v44 = vadd.f32 %v6503_v54, %v6502_v29  ;;  %v2191_v53 = vadd.f32 %v2128_v63, %v6505_v7  ;;  %v6506_v2 = vld [vmem:[#allocation15_spill] sm:$0xff]  ;;  %v6510_v0 = vld [vmem:[#allocation25_spill] sm:$0xff]  ;;  %v6511_v25 = vld [vmem:[#allocation24_spill] sm:$0xff] }
 0x1b1   : > { %v5908_v57 = vpop.f32.mrf.mxu1  ;;  %v5973_v10 = vadd.f32 %v6501_v61, %v2184_v11  ;;  %v5991_v38 = vadd.f32 %v6508_v62, %v2185_v47  ;;  %v5997_v26 = vadd.f32 %v6510_v0, %v2187_v9  ;;  %v2194_v27 = vadd.f32 %v5884_v19, %v6511_v25  ;;  %v6513_v9 = vld [vmem:[#allocation29_spill] sm:$0xff]  ;;  %v6514_v3 = vld [vmem:[#allocation31_spill] sm:$0xff]  ;;  %v6515_v35 = vld [vmem:[#allocation8_spill] sm:$0xff] }
 0x1b2   : > { %v5914_v30 = vpop.f32.mrf.mxu0  ;;  %v5988_v45 = vadd.f32 %v6507_v21, %v2186_v20  ;;  %v5994_v63 = vadd.f32 %v6509_v15, %v2188_v51  ;;  %v6011_v42 = vadd.f32 %v6513_v9, %v2189_v44  ;;  %v6014_v19 = vadd.f32 %v6514_v3, %v2192_v5  ;;  %v6516_v61 = vld [vmem:[#allocation26_spill] sm:$0xff]  ;;  %v6517_v54 = vld [vmem:[#allocation28_spill] sm:$0xff] }
 0x1b3   : > { %v5926_v60 = vpop.f32.mrf.mxu1  ;;  %v2193_v29 = vadd.f32 %v5889_v58, %v6516_v61  ;;  %v2196_v31 = vadd.f32 %v5898_v12, %v6517_v54  ;;  %v6518_v5 = vld [vmem:[#allocation18_spill] sm:$0xff]  ;;  %v6520_v21 = vld [vmem:[#allocation32_spill] sm:$0xff] }
 0x1b4   : > { %v5936_v28 = vpop.f32.mrf.mxu0  ;;  %v2198_v58 = vadd.f32 %v5926_v60, %v6520_v21  ;;  %v6521_v25 = vld [vmem:[#allocation33_spill] sm:$0xff]  ;;  %v6522_v3 = vld [vmem:[#allocation2_spill] sm:$0xff] }
 0x1b5   : > { %v5948_v46 = vpop.f32.mrf.mxu1 }
 0x1b6   : > { %v4361_v34 = vpop.f32.mrf.mxu0 }
 0x1b7   : > { %v4311_v33 = vpop.f32.mrf.mxu1 }
 0x1b8   : > { %v2708_v13 = vadd.f32 %v4311_v33, %v2436_v59  ;;  %v2819_v8 = vpop.f32.mrf.mxu0  ;;  %v5985_v59 = vadd.f32 %v6506_v2, %v2183_v24  ;;  %v6512_v24 = vld [vmem:[#allocation27_spill] sm:$0xff]  ;;  %v6519_v2 = vld [vmem:[#allocation30_spill] sm:$0xff] }
 0x1b9   : > { %v2548_v40 = vpop.f32.mrf.mxu1  ;;  %v6007_v20 = vadd.f32 %v6512_v24, %v2190_v37  ;;  %v6044_v24 = vadd.f32 %v5893_v36, %v2196_v31 }
 0x1ba   : > { %v2979_v11 = vadd.f32 %v4361_v34, %v2708_v13  ;;  %v2707_v55 = vadd.f32 %v2548_v40, %v2435_v56  ;;  %v4364_v16 = vpop.f32.mrf.mxu0  ;;  %v6017_v13 = vadd.f32 %v6515_v35, %v2191_v53  ;;  %v6027_v40 = vadd.f32 %v6518_v5, %v2194_v27 }
 0x1bb   : > { %v4314_v56 = vpop.f32.mrf.mxu1  ;;  %v2195_v53 = vadd.f32 %v5908_v57, %v6519_v2  ;;  %v6040_v27 = vadd.f32 %v6521_v25, %v2193_v29  ;;  %v2197_v35 = vadd.f32 %v5948_v46, %v6522_v3 }
 0x1bc   : > { %v3018_v34 = vadd.f32 %v5982_v4, %v2979_v11  ;;  %v2978_v47 = vadd.f32 %v2819_v8, %v2707_v55  ;;  %v2710_v51 = vadd.f32 %v4314_v56, %v2438_v18  ;;  %v2829_v33 = vpop.f32.mrf.mxu0 }
 0x1bd   : > { %v2558_v37 = vpop.f32.mrf.mxu1  ;;  %v6055_v36 = vadd.f32 %v5902_v41, %v2195_v53 }
 0x1be   : > { %3051 = vst.msk [vmem:[%s6004_s20 + $0x8] sm:$0xff] %vm3049_vm4, %v3018_v34  ;;  %v3152_v18 = vmul.f32 %v3018_v34, %v3018_v34  ;;  %v3017_v8 = vadd.f32 %v5982_v4, %v2978_v47  ;;  %v2981_v44 = vadd.f32 %v4364_v16, %v2710_v51  ;;  %v4367_v7 = vpop.f32.mrf.mxu0  ;;  %v2709_v11 = vadd.f32 %v2558_v37, %v5917_v1 }
 0x1bf   : > { %v4317_v12 = vpop.f32.mrf.mxu1  ;;  %v3083_v55 = vsel %vm3049_vm4, %v3018_v34, 0.0  ;;  %v6058_v37 = vadd.f32 %v5914_v30, %v2198_v58 }
 0x1c0   : > { %3050 = vst.msk [vmem:[%s6004_s20] sm:$0xff] %vm3049_vm4, %v3017_v8  ;;  %v3082_v16 = vsel %vm3049_vm4, %v3017_v8, 0.0  ;;  %v3151_v62 = vmul.f32 %v3017_v8, %v3017_v8  ;;  %v3020_v15 = vadd.f32 %v5982_v4, %v2981_v44  ;;  %v2839_v0 = vpop.f32.mrf.mxu0  ;;  %v2980_v56 = vadd.f32 %v2829_v33, %v2709_v11 }
 0x1c1   : > { %v3084_v57 = vadd.f32 %v3083_v55, %v3082_v16  ;;  %v2712_v60 = vadd.f32 %v4317_v12, %v5920_v48  ;;  %v2568_v1 = vpop.f32.mrf.mxu1  ;;  %v3184_v34 = vsel %vm3049_vm4, %v3152_v18, 0.0 }
 0x1c2   : > { %v3183_v47 = vsel %vm3049_vm4, %v3151_v62, 0.0  ;;  %3053 = vst.msk [vmem:[%s6004_s20 + $0x18] sm:$0xff] %vm3049_vm4, %v3020_v15  ;;  %v2711_v51 = vadd.f32 %v2568_v1, %v5923_v32  ;;  %v4370_v9 = vpop.f32.mrf.mxu0  ;;  %v3019_v48 = vadd.f32 %v5982_v4, %v2980_v56  ;;  %v3154_v18 = vmul.f32 %v3020_v15, %v3020_v15 }
 0x1c3   : > { %v3185_v33 = vadd.f32 %v3184_v34, %v3183_v47  ;;  %v2983_v61 = vadd.f32 %v4367_v7, %v2712_v60  ;;  %v4320_v29 = vpop.f32.mrf.mxu1  ;;  %v3087_v21 = vsel %vm3049_vm4, %v3020_v15, 0.0 }
 0x1c4   : > { %v2982_v54 = vadd.f32 %v2839_v0, %v2711_v51  ;;  %v2714_v31 = vadd.f32 %v4320_v29, %v5929_v23  ;;  %v2849_v32 = vpop.f32.mrf.mxu0  ;;  %3052 = vst.msk [vmem:[%s6004_s20 + $0x10] sm:$0xff] %vm3049_vm4, %v3019_v48  ;;  %v3085_v46 = vsel %vm3049_vm4, %v3019_v48, 0.0  ;;  %v3153_v8 = vmul.f32 %v3019_v48, %v3019_v48 }
 0x1c5   : > { %v3022_v44 = vadd.f32 %v5982_v4, %v2983_v61  ;;  %v2578_v7 = vpop.f32.mrf.mxu1  ;;  %v3086_v41 = vadd.f32 %v3085_v46, %v3084_v57  ;;  %v6068_v23 = vadd.f32 %v5936_v28, %v2197_v35  ;;  %v3188_v28 = vsel %vm3049_vm4, %v3154_v18, 0.0 }
 0x1c6   : > { %v3021_v5 = vadd.f32 %v5982_v4, %v2982_v54  ;;  %v2985_v30 = vadd.f32 %v4370_v9, %v2714_v31  ;;  %v2713_v2 = vadd.f32 %v2578_v7, %v5932_v50  ;;  %v4373_v53 = vpop.f32.mrf.mxu0  ;;  %v3186_v58 = vsel %vm3049_vm4, %v3153_v8, 0.0 }
 0x1c7   : > { %3055 = vst.msk [vmem:[%s6004_s20 + $0x28] sm:$0xff] %vm3049_vm4, %v3022_v44  ;;  %v3156_v11 = vmul.f32 %v3022_v44, %v3022_v44  ;;  %v4323_v12 = vpop.f32.mrf.mxu1  ;;  %v3187_v55 = vadd.f32 %v3186_v58, %v3185_v33  ;;  %v3088_v16 = vadd.f32 %v3087_v21, %v3086_v41  ;;  %v3091_v9 = vsel %vm3049_vm4, %v3022_v44, 0.0 }
 0x1c8   : > { %3054 = vst.msk [vmem:[%s6004_s20 + $0x20] sm:$0xff] %vm3049_vm4, %v3021_v5  ;;  %v3089_v62 = vsel %vm3049_vm4, %v3021_v5, 0.0  ;;  %v3155_v50 = vmul.f32 %v3021_v5, %v3021_v5  ;;  %v2859_v0 = vpop.f32.mrf.mxu0  ;;  %v3024_v25 = vadd.f32 %v5982_v4, %v2985_v30  ;;  %v2984_v15 = vadd.f32 %v2849_v32, %v2713_v2 }
 0x1c9   : > { %v2716_v57 = vadd.f32 %v4323_v12, %v5939_v14  ;;  %v2588_v56 = vpop.f32.mrf.mxu1  ;;  %v3090_v60 = vadd.f32 %v3089_v62, %v3088_v16  ;;  %v3189_v1 = vadd.f32 %v3188_v28, %v3187_v55  ;;  %v3192_v3 = vsel %vm3049_vm4, %v3156_v11, 0.0 }
 0x1ca   : > { %v3190_v34 = vsel %vm3049_vm4, %v3155_v50, 0.0  ;;  %v2715_v47 = vadd.f32 %v2588_v56, %v5942_v52  ;;  %v4376_v51 = vpop.f32.mrf.mxu0  ;;  %3057 = vst.msk [vmem:[%s6004_s20 + $0x38] sm:$0xff] %vm3049_vm4, %v3024_v25  ;;  %v3023_v35 = vadd.f32 %v5982_v4, %v2984_v15  ;;  %v3158_v32 = vmul.f32 %v3024_v25, %v3024_v25 }
 0x1cb   : > { %v2987_v33 = vadd.f32 %v4373_v53, %v2716_v57  ;;  %v4326_v48 = vpop.f32.mrf.mxu1  ;;  %v3191_v14 = vadd.f32 %v3190_v34, %v3189_v1  ;;  %v3092_v61 = vadd.f32 %v3091_v9, %v3090_v60  ;;  %v3095_v2 = vsel %vm3049_vm4, %v3024_v25, 0.0 }
 0x1cc   : > { %v2986_v29 = vadd.f32 %v2859_v0, %v2715_v47  ;;  %v2718_v54 = vadd.f32 %v4326_v48, %v5945_v39  ;;  %v2869_v31 = vpop.f32.mrf.mxu0  ;;  %3056 = vst.msk [vmem:[%s6004_s20 + $0x30] sm:$0xff] %vm3049_vm4, %v3023_v35  ;;  %v3093_v52 = vsel %vm3049_vm4, %v3023_v35, 0.0  ;;  %v3157_v18 = vmul.f32 %v3023_v35, %v3023_v35 }
 0x1cd   : > { %v3026_v46 = vadd.f32 %v5982_v4, %v2987_v33  ;;  %v2598_v8 = vpop.f32.mrf.mxu1  ;;  %v3094_v44 = vadd.f32 %v3093_v52, %v3092_v61  ;;  %v3193_v7 = vadd.f32 %v3192_v3, %v3191_v14  ;;  %v3196_v50 = vsel %vm3049_vm4, %v3158_v32, 0.0 }
 0x1ce   : > { %v3025_v41 = vadd.f32 %v5982_v4, %v2986_v29  ;;  %v2989_v5 = vadd.f32 %v4376_v51, %v2718_v54  ;;  %v4379_v30 = vpop.f32.mrf.mxu0  ;;  %v3194_v39 = vsel %vm3049_vm4, %v3157_v18, 0.0  ;;  %v2717_v21 = vadd.f32 %v2598_v8, %v5951_v6 }
 0x1cf   : > { %3059 = vst.msk [vmem:[%s6004_s20 + $0x48] sm:$0xff] %vm3049_vm4, %v3026_v46  ;;  %v3160_v53 = vmul.f32 %v3026_v46, %v3026_v46  ;;  %v4329_v58 = vpop.f32.mrf.mxu1  ;;  %v3195_v11 = vadd.f32 %v3194_v39, %v3193_v7  ;;  %v3096_v12 = vadd.f32 %v3095_v2, %v3094_v44  ;;  %v3099_v34 = vsel %vm3049_vm4, %v3026_v46, 0.0 }
 0x1d0   : > { %3058 = vst.msk [vmem:[%s6004_s20 + $0x40] sm:$0xff] %vm3049_vm4, %v3025_v41  ;;  %v3097_v55 = vsel %vm3049_vm4, %v3025_v41, 0.0  ;;  %v3159_v16 = vmul.f32 %v3025_v41, %v3025_v41  ;;  %v2879_v62 = vpop.f32.mrf.mxu0  ;;  %v3028_v0 = vadd.f32 %v5982_v4, %v2989_v5  ;;  %v2988_v28 = vadd.f32 %v2869_v31, %v2717_v21 }
 0x1d1   : > { %v2720_v25 = vadd.f32 %v4329_v58, %v5954_v43  ;;  %v2608_v15 = vpop.f32.mrf.mxu1  ;;  %v3098_v57 = vadd.f32 %v3097_v55, %v3096_v12  ;;  %v3197_v6 = vadd.f32 %v3196_v50, %v3195_v11  ;;  %v3200_v47 = vsel %vm3049_vm4, %v3160_v53, 0.0 }
 0x1d2   : > { %v3198_v56 = vsel %vm3049_vm4, %v3159_v16, 0.0  ;;  %v2719_v60 = vadd.f32 %v2608_v15, %v5959_v49  ;;  %v4382_v1 = vpop.f32.mrf.mxu0  ;;  %3061 = vst.msk [vmem:[%s6004_s20 + $0x58] sm:$0xff] %vm3049_vm4, %v3028_v0  ;;  %v3027_v51 = vadd.f32 %v5982_v4, %v2988_v28  ;;  %v3162_v61 = vmul.f32 %v3028_v0, %v3028_v0 }
 0x1d3   : > { %v2991_v9 = vadd.f32 %v4379_v30, %v2720_v25  ;;  %v4332_v3 = vpop.f32.mrf.mxu1  ;;  %v3199_v43 = vadd.f32 %v3198_v56, %v3197_v6  ;;  %v3100_v35 = vadd.f32 %v3099_v34, %v3098_v57  ;;  %v3103_v44 = vsel %vm3049_vm4, %v3028_v0, 0.0 }
 0x1d4   : > { %v2990_v33 = vadd.f32 %v2879_v62, %v2719_v60  ;;  %v2722_v48 = vadd.f32 %v4332_v3, %v5965_v17  ;;  %v2889_v14 = vpop.f32.mrf.mxu0  ;;  %3060 = vst.msk [vmem:[%s6004_s20 + $0x50] sm:$0xff] %vm3049_vm4, %v3027_v51  ;;  %v3101_v49 = vsel %vm3049_vm4, %v3027_v51, 0.0  ;;  %v3161_v29 = vmul.f32 %v3027_v51, %v3027_v51 }
 0x1d5   : > { %v3030_v54 = vadd.f32 %v5982_v4, %v2991_v9  ;;  %v2618_v31 = vpop.f32.mrf.mxu1  ;;  %v3102_v32 = vadd.f32 %v3101_v49, %v3100_v35  ;;  %v3201_v52 = vadd.f32 %v3200_v47, %v3199_v43  ;;  %v3204_v58 = vsel %vm3049_vm4, %v3162_v61, 0.0 }
 0x1d6   : > { %v3029_v18 = vadd.f32 %v5982_v4, %v2990_v33  ;;  %v2993_v46 = vadd.f32 %v4382_v1, %v2722_v48  ;;  %v4385_v8 = vpop.f32.mrf.mxu0  ;;  %v3202_v17 = vsel %vm3049_vm4, %v3161_v29, 0.0  ;;  %v2721_v41 = vadd.f32 %v2618_v31, %v5968_v22 }
 0x1d7   : > { %3063 = vst.msk [vmem:[%s6004_s20 + $0x68] sm:$0xff] %vm3049_vm4, %v3030_v54  ;;  %v3164_v7 = vmul.f32 %v3030_v54, %v3030_v54  ;;  %v4335_v5 = vpop.f32.mrf.mxu1  ;;  %v3203_v30 = vadd.f32 %v3202_v17, %v3201_v52  ;;  %v3104_v2 = vadd.f32 %v3103_v44, %v3102_v32  ;;  %v3107_v25 = vsel %vm3049_vm4, %v3030_v54, 0.0 }
 0x1d8   : > { %3062 = vst.msk [vmem:[%s6004_s20 + $0x60] sm:$0xff] %vm3049_vm4, %v3029_v18  ;;  %v3105_v39 = vsel %vm3049_vm4, %v3029_v18, 0.0  ;;  %v3163_v53 = vmul.f32 %v3029_v18, %v3029_v18  ;;  %v2899_v21 = vpop.f32.mrf.mxu0  ;;  %v3032_v11 = vadd.f32 %v5982_v4, %v2993_v46  ;;  %v2992_v12 = vadd.f32 %v2889_v14, %v2721_v41 }
 0x1d9   : > { %v2724_v55 = vadd.f32 %v4335_v5, %v5973_v10  ;;  %v2628_v16 = vpop.f32.mrf.mxu1  ;;  %v3106_v62 = vadd.f32 %v3105_v39, %v3104_v2  ;;  %v3205_v22 = vadd.f32 %v3204_v58, %v3203_v30  ;;  %v3208_v15 = vsel %vm3049_vm4, %v3164_v7, 0.0 }
 0x1da   : > { %v3206_v50 = vsel %vm3049_vm4, %v3163_v53, 0.0  ;;  %v2723_v0 = vadd.f32 %v2628_v16, %v5985_v59  ;;  %v4388_v28 = vpop.f32.mrf.mxu0  ;;  %3065 = vst.msk [vmem:[%s6004_s20 + $0x78] sm:$0xff] %vm3049_vm4, %v3032_v11  ;;  %v3031_v57 = vadd.f32 %v5982_v4, %v2992_v12  ;;  %v3166_v51 = vmul.f32 %v3032_v11, %v3032_v11 }
 0x1db   : > { %v2995_v6 = vadd.f32 %v4385_v8, %v2724_v55  ;;  %v4338_v56 = vpop.f32.mrf.mxu1  ;;  %v3207_v10 = vadd.f32 %v3206_v50, %v3205_v22  ;;  %v3108_v60 = vadd.f32 %v3107_v25, %v3106_v62  ;;  %v3111_v49 = vsel %vm3049_vm4, %v3032_v11, 0.0 }
 0x1dc   : > { %v2994_v1 = vadd.f32 %v2899_v21, %v2723_v0  ;;  %v2726_v34 = vadd.f32 %v4338_v56, %v5988_v45  ;;  %v2909_v47 = vpop.f32.mrf.mxu0  ;;  %3064 = vst.msk [vmem:[%s6004_s20 + $0x70] sm:$0xff] %vm3049_vm4, %v3031_v57  ;;  %v3109_v59 = vsel %vm3049_vm4, %v3031_v57, 0.0  ;;  %v3165_v9 = vmul.f32 %v3031_v57, %v3031_v57 }
 0x1dd   : > { %v3034_v3 = vadd.f32 %v5982_v4, %v2995_v6  ;;  %v2638_v43 = vpop.f32.mrf.mxu1  ;;  %v3110_v35 = vadd.f32 %v3109_v59, %v3108_v60  ;;  %v3209_v33 = vadd.f32 %v3208_v15, %v3207_v10  ;;  %v3212_v44 = vsel %vm3049_vm4, %v3166_v51, 0.0 }
 0x1de   : > { %v3033_v48 = vadd.f32 %v5982_v4, %v2994_v1  ;;  %v2997_v14 = vadd.f32 %v4388_v28, %v2726_v34  ;;  %v4391_v61 = vpop.f32.mrf.mxu0  ;;  %v3210_v45 = vsel %vm3049_vm4, %v3165_v9, 0.0  ;;  %v2725_v54 = vadd.f32 %v2638_v43, %v5991_v38 }
 0x1df   : > { %3067 = vst.msk [vmem:[%s6004_s20 + $0x88] sm:$0xff] %vm3049_vm4, %v3034_v3  ;;  %v3168_v29 = vmul.f32 %v3034_v3, %v3034_v3  ;;  %v4341_v31 = vpop.f32.mrf.mxu1  ;;  %v3211_v32 = vadd.f32 %v3210_v45, %v3209_v33  ;;  %v3112_v52 = vadd.f32 %v3111_v49, %v3110_v35  ;;  %v3115_v21 = vsel %vm3049_vm4, %v3034_v3, 0.0 }
 0x1e0   : > { %3066 = vst.msk [vmem:[%s6004_s20 + $0x80] sm:$0xff] %vm3049_vm4, %v3033_v48  ;;  %v3113_v18 = vsel %vm3049_vm4, %v3033_v48, 0.0  ;;  %v3167_v46 = vmul.f32 %v3033_v48, %v3033_v48  ;;  %v2919_v8 = vpop.f32.mrf.mxu0  ;;  %v3036_v17 = vadd.f32 %v5982_v4, %v2997_v14  ;;  %v2996_v7 = vadd.f32 %v2909_v47, %v2725_v54 }
 0x1e1   : > { %v2728_v41 = vadd.f32 %v4341_v31, %v5994_v63  ;;  %v2648_v5 = vpop.f32.mrf.mxu1  ;;  %v3114_v30 = vadd.f32 %v3113_v18, %v3112_v52  ;;  %v3213_v38 = vadd.f32 %v3212_v44, %v3211_v32  ;;  %v3216_v58 = vsel %vm3049_vm4, %v3168_v29, 0.0 }
 0x1e2   : > { %v3214_v2 = vsel %vm3049_vm4, %v3167_v46, 0.0  ;;  %v2727_v39 = vadd.f32 %v2648_v5, %v5997_v26  ;;  %v4394_v53 = vpop.f32.mrf.mxu0  ;;  %3069 = vst.msk [vmem:[%s6004_s20 + $0x98] sm:$0xff] %vm3049_vm4, %v3036_v17  ;;  %v3035_v11 = vadd.f32 %v5982_v4, %v2996_v7  ;;  %v3170_v0 = vmul.f32 %v3036_v17, %v3036_v17 }
 0x1e3   : > { %v2999_v12 = vadd.f32 %v4391_v61, %v2728_v41  ;;  %v4344_v55 = vpop.f32.mrf.mxu1  ;;  %v3215_v63 = vadd.f32 %v3214_v2, %v3213_v38  ;;  %v3116_v16 = vadd.f32 %v3115_v21, %v3114_v30  ;;  %v3119_v1 = vsel %vm3049_vm4, %v3036_v17, 0.0 }
 0x1e4   : > { %v2998_v62 = vadd.f32 %v2919_v8, %v2727_v39  ;;  %v2730_v22 = vadd.f32 %v4344_v55, %v6007_v20  ;;  %v2929_v50 = vpop.f32.mrf.mxu0  ;;  %3068 = vst.msk [vmem:[%s6004_s20 + $0x90] sm:$0xff] %vm3049_vm4, %v3035_v11  ;;  %v3117_v26 = vsel %vm3049_vm4, %v3035_v11, 0.0  ;;  %v3169_v28 = vmul.f32 %v3035_v11, %v3035_v11 }
 0x1e5   : > { %v3038_v25 = vadd.f32 %v5982_v4, %v2999_v12  ;;  %v2658_v15 = vpop.f32.mrf.mxu1  ;;  %v3118_v57 = vadd.f32 %v3117_v26, %v3116_v16  ;;  %v3217_v6 = vadd.f32 %v3216_v58, %v3215_v63  ;;  %v3220_v33 = vsel %vm3049_vm4, %v3170_v0, 0.0 }
 0x1e6   : > { %v3037_v56 = vadd.f32 %v5982_v4, %v2998_v62  ;;  %v3001_v10 = vadd.f32 %v4394_v53, %v2730_v22  ;;  %v4397_v60 = vpop.f32.mrf.mxu0  ;;  %v3218_v20 = vsel %vm3049_vm4, %v3169_v28, 0.0  ;;  %v2729_v47 = vadd.f32 %v2658_v15, %v6011_v42 }
 0x1e7   : > { %3071 = vst.msk [vmem:[%s6004_s20 + $0xa8] sm:$0xff] %vm3049_vm4, %v3038_v25  ;;  %v3172_v34 = vmul.f32 %v3038_v25, %v3038_v25  ;;  %v4347_v51 = vpop.f32.mrf.mxu1  ;;  %v3219_v59 = vadd.f32 %v3218_v20, %v3217_v6  ;;  %v3120_v9 = vadd.f32 %v3119_v1, %v3118_v57  ;;  %v3123_v32 = vsel %vm3049_vm4, %v3038_v25, 0.0 }
 0x1e8   : > { %3070 = vst.msk [vmem:[%s6004_s20 + $0xa0] sm:$0xff] %vm3049_vm4, %v3037_v56  ;;  %v3121_v3 = vsel %vm3049_vm4, %v3037_v56, 0.0  ;;  %v3171_v43 = vmul.f32 %v3037_v56, %v3037_v56  ;;  %v2939_v35 = vpop.f32.mrf.mxu0  ;;  %v3040_v48 = vadd.f32 %v5982_v4, %v3001_v10  ;;  %v3000_v14 = vadd.f32 %v2929_v50, %v2729_v47 }
 0x1e9   : > { %v2732_v61 = vadd.f32 %v4347_v51, %v6014_v19  ;;  %v2668_v49 = vpop.f32.mrf.mxu1  ;;  %v3122_v45 = vadd.f32 %v3121_v3, %v3120_v9  ;;  %v3221_v42 = vadd.f32 %v3220_v33, %v3219_v59  ;;  %v3224_v52 = vsel %vm3049_vm4, %v3172_v34, 0.0 }
 0x1ea   : > { %v3222_v29 = vsel %vm3049_vm4, %v3171_v43, 0.0  ;;  %v2731_v54 = vadd.f32 %v2668_v49, %v6017_v13  ;;  %v4400_v31 = vpop.f32.mrf.mxu0  ;;  %3073 = vst.msk [vmem:[%s6004_s20 + $0xb8] sm:$0xff] %vm3049_vm4, %v3040_v48  ;;  %v3039_v18 = vadd.f32 %v5982_v4, %v3000_v14  ;;  %v3174_v5 = vmul.f32 %v3040_v48, %v3040_v48 }
 0x1eb   : > { %v3003_v46 = vadd.f32 %v4397_v60, %v2732_v61  ;;  %v4350_v8 = vpop.f32.mrf.mxu1  ;;  %v3223_v19 = vadd.f32 %v3222_v29, %v3221_v42  ;;  %v3124_v44 = vadd.f32 %v3123_v32, %v3122_v45  ;;  %v3127_v12 = vsel %vm3049_vm4, %v3040_v48, 0.0 }
 0x1ec   : > { %v3002_v17 = vadd.f32 %v2939_v35, %v2731_v54  ;;  %v2734_v7 = vadd.f32 %v4350_v8, %v6027_v40  ;;  %v2949_v41 = vpop.f32.mrf.mxu0  ;;  %3072 = vst.msk [vmem:[%s6004_s20 + $0xb0] sm:$0xff] %vm3049_vm4, %v3039_v18  ;;  %v3125_v13 = vsel %vm3049_vm4, %v3039_v18, 0.0  ;;  %v3173_v30 = vmul.f32 %v3039_v18, %v3039_v18 }
 0x1ed   : > { %v3042_v38 = vadd.f32 %v5982_v4, %v3003_v46  ;;  %v2678_v2 = vpop.f32.mrf.mxu1  ;;  %v3126_v39 = vadd.f32 %v3125_v13, %v3124_v44  ;;  %v3225_v53 = vadd.f32 %v3224_v52, %v3223_v19  ;;  %v3228_v28 = vsel %vm3049_vm4, %v3174_v5, 0.0 }
 0x1ee   : > { %v3041_v21 = vadd.f32 %v5982_v4, %v3002_v17  ;;  %v3005_v58 = vadd.f32 %v4400_v31, %v2734_v7  ;;  %v4403_v11 = vpop.f32.mrf.mxu0  ;;  %v3226_v40 = vsel %vm3049_vm4, %v3173_v30, 0.0  ;;  %v2733_v63 = vadd.f32 %v2678_v2, %v6040_v27 }
 0x1ef   : > { %3075 = vst.msk [vmem:[%s6004_s20 + $0xc8] sm:$0xff] %vm3049_vm4, %v3042_v38  ;;  %v3176_v55 = vmul.f32 %v3042_v38, %v3042_v38  ;;  %v4353_v16 = vpop.f32.mrf.mxu1  ;;  %v3227_v62 = vadd.f32 %v3226_v40, %v3225_v53  ;;  %v3128_v22 = vadd.f32 %v3127_v12, %v3126_v39  ;;  %v3131_v1 = vsel %vm3049_vm4, %v3042_v38, 0.0 }
 0x1f0   : > { %3074 = vst.msk [vmem:[%s6004_s20 + $0xc0] sm:$0xff] %vm3049_vm4, %v3041_v21  ;;  %v3129_v50 = vsel %vm3049_vm4, %v3041_v21, 0.0  ;;  %v3175_v0 = vmul.f32 %v3041_v21, %v3041_v21  ;;  %v2959_v26 = vpop.f32.mrf.mxu0  ;;  %v3044_v25 = vadd.f32 %v5982_v4, %v3005_v58  ;;  %v3004_v15 = vadd.f32 %v2949_v41, %v2733_v63 }
 0x1f1   : > { %v2736_v57 = vadd.f32 %v4353_v16, %v6044_v24  ;;  %v2688_v6 = vpop.f32.mrf.mxu1  ;;  %v3130_v56 = vadd.f32 %v3129_v50, %v3128_v22  ;;  %v3229_v27 = vadd.f32 %v3228_v28, %v3227_v62  ;;  %v3232_v20 = vsel %vm3049_vm4, %v3176_v55, 0.0 }
 0x1f2   : > { %v3230_v10 = vsel %vm3049_vm4, %v3175_v0, 0.0  ;;  %v2735_v60 = vadd.f32 %v2688_v6, %v6055_v36  ;;  %3077 = vst.msk [vmem:[%s6004_s20 + $0xd8] sm:$0xff] %vm3049_vm4, %v3044_v25  ;;  %v3043_v34 = vadd.f32 %v5982_v4, %v3004_v15  ;;  %v4406_v43 = vpop.f32.mrf.mxu0  ;;  %v3178_v35 = vmul.f32 %v3044_v25, %v3044_v25 }
 0x1f3   : > { %v3007_v47 = vadd.f32 %v4403_v11, %v2736_v57  ;;  %v4356_v51 = vpop.f32.mrf.mxu1  ;;  %v3231_v59 = vadd.f32 %v3230_v10, %v3229_v27  ;;  %v3132_v24 = vadd.f32 %v3131_v1, %v3130_v56  ;;  %v3135_v29 = vsel %vm3049_vm4, %v3044_v25, 0.0 }
 0x1f4   : > { %v3006_v9 = vadd.f32 %v2959_v26, %v2735_v60  ;;  %v2738_v3 = vadd.f32 %v4356_v51, %v6058_v37  ;;  %3076 = vst.msk [vmem:[%s6004_s20 + $0xd0] sm:$0xff] %vm3049_vm4, %v3043_v34  ;;  %v3133_v36 = vsel %vm3049_vm4, %v3043_v34, 0.0  ;;  %v3177_v33 = vmul.f32 %v3043_v34, %v3043_v34  ;;  %v2969_v46 = vpop.f32.mrf.mxu0 }
 0x1f5   : > { %v3046_v48 = vadd.f32 %v5982_v4, %v3007_v47  ;;  %v2698_v14 = vpop.f32.mrf.mxu1  ;;  %v3134_v61 = vadd.f32 %v3133_v36, %v3132_v24  ;;  %v3233_v49 = vadd.f32 %v3232_v20, %v3231_v59  ;;  %v3236_v8 = vsel %vm3049_vm4, %v3178_v35, 0.0 }
 0x1f6   : > { %v3045_v45 = vadd.f32 %v5982_v4, %v3006_v9  ;;  %v3009_v42 = vadd.f32 %v4406_v43, %v2738_v3  ;;  %v3234_v37 = vsel %vm3049_vm4, %v3177_v33, 0.0  ;;  %v2737_v54 = vadd.f32 %v2698_v14, %v6068_v23 }
 0x1f7   : > { %3079 = vst.msk [vmem:[%s6004_s20 + $0xe8] sm:$0xff] %vm3049_vm4, %v3046_v48  ;;  %v3235_v31 = vadd.f32 %v3234_v37, %v3233_v49  ;;  %v3136_v32 = vadd.f32 %v3135_v29, %v3134_v61  ;;  %v3180_v19 = vmul.f32 %v3046_v48, %v3046_v48  ;;  %v3139_v23 = vsel %vm3049_vm4, %v3046_v48, 0.0 }
 0x1f8   : > { %3078 = vst.msk [vmem:[%s6004_s20 + $0xe0] sm:$0xff] %vm3049_vm4, %v3045_v45  ;;  %v3137_v52 = vsel %vm3049_vm4, %v3045_v45, 0.0  ;;  %v3179_v18 = vmul.f32 %v3045_v45, %v3045_v45  ;;  %v3048_v44 = vadd.f32 %v5982_v4, %v3009_v42  ;;  %v3008_v17 = vadd.f32 %v2969_v46, %v2737_v54 }
 0x1f9   : > { %v3138_v7 = vadd.f32 %v3137_v52, %v3136_v32  ;;  %v3237_v41 = vadd.f32 %v3236_v8, %v3235_v31  ;;  %v3240_v2 = vsel %vm3049_vm4, %v3180_v19, 0.0 }
 0x1fa   : > { %v3238_v5 = vsel %vm3049_vm4, %v3179_v18, 0.0  ;;  %3081 = vst.msk [vmem:[%s6004_s20 + $0xf8] sm:$0xff] %vm3049_vm4, %v3048_v44  ;;  %v3047_v13 = vadd.f32 %v5982_v4, %v3008_v17  ;;  %v3182_v39 = vmul.f32 %v3048_v44, %v3048_v44  ;;  %v3143_v12 = vsel %vm3049_vm4, %v3048_v44, 0.0 }
 0x1fb   : > { %v3239_v30 = vadd.f32 %v3238_v5, %v3237_v41  ;;  %v3140_v38 = vadd.f32 %v3139_v23, %v3138_v7 }
 0x1fc   : > { %3080 = vst.msk [vmem:[%s6004_s20 + $0xf0] sm:$0xff] %vm3049_vm4, %v3047_v13  ;;  %v3141_v53 = vsel %vm3049_vm4, %v3047_v13, 0.0  ;;  %v3181_v21 = vmul.f32 %v3047_v13, %v3047_v13  ;;  %v3244_v4 = vsel %vm3049_vm4, %v3182_v39, 0.0 }
 0x1fd   : > { %v3142_v58 = vadd.f32 %v3141_v53, %v3140_v38  ;;  %v3241_v11 = vadd.f32 %v3240_v2, %v3239_v30 }
 0x1fe   : > { %v3242_v40 = vsel %vm3049_vm4, %v3181_v21, 0.0 }
 0x1ff   : > { %v3144_v55 = vadd.f32 %v3143_v12, %v3142_v58  ;;  %v3243_v63 = vadd.f32 %v3242_v40, %v3241_v11 }
 0x201   : > { %v3145_v16 = vrot.slane %v3144_v55, 4  ;;  %v3245_v62 = vadd.f32 %v3244_v4, %v3243_v63 }
 0x203   : > { %v3146_v22 = vadd.f32 %v3145_v16, %v3144_v55  ;;  %v3246_v50 = vrot.slane %v3245_v62, 4 }
 0x205   : > { %v3147_v0 = vrot.slane %v3146_v22, 2  ;;  %v3247_v26 = vadd.f32 %v3246_v50, %v3245_v62 }
 0x207   : > { %v3148_v28 = vadd.f32 %v3147_v0, %v3146_v22  ;;  %v3248_v25 = vrot.slane %v3247_v26, 2 }
 0x209   : > { %v3149_v15 = vrot.slane %v3148_v28, 1  ;;  %v3249_v57 = vadd.f32 %v3248_v25, %v3247_v26 }
 0x20b   : > { %v3250_v6 = vrot.slane %v3249_v57, 1  ;;  %v3150_v56 = vadd.f32 %v3149_v15, %v3148_v28 }
 0x20d   : > { %v3251_v27 = vadd.f32 %v3250_v6, %v3249_v57 }
 0x20f   : > { %v3253_v10 = vsel %vm3252_vm5, %v3150_v56, %v3251_v27 }
 0x210   : > { %3255 = vst.msk [vmem:[%s208_s24] sm:$0x3] %vm3254_vm6, %v3253_v10 }
 0x211 PF: > { %s15_s15 = sadd.s32 1, %s4424_s15  }
 0x212   : > { %p12_p4 = scmp.ge.s32.totalorder %s15_s15, 4  }
 0x214   :  { %14 = sbr.rel (!%p12_p4) target bundleno = 1 (0x1), region = 82 }

// kernel: resnet_block_forward.4
= control target key start
LH: loop header
LB: loop body
LE: loop exit
PB: predicated region body
PF: predicated region fallthrough
CT: control target
= control target key end

     0   :  { %s4795_s24 = smov 0   ;;  %s6735_s0 = inlined_call_operand.vmem [shape: f32[2,256,8], index: 0, kind: input, shape index: {}]   ;;  %s6736_s1 = inlined_call_operand.vmem [shape: f32[2,1,8], index: 1, kind: input, shape index: {}]   ;;  %s6737_s2 = inlined_call_operand.vmem [shape: f32[1,8], index: 2, kind: input, shape index: {}]   ;;  %s6738_s3 = inlined_call_operand.vmem [shape: f32[1,8], index: 3, kind: input, shape index: {}]   ;;  %s6739_s4 = inlined_call_operand.vmem [shape: f32[9,8,8], index: 4, kind: input, shape index: {}]   ;;  %s6740_s5 = inlined_call_operand.vmem [shape: f32[1,8], index: 5, kind: input, shape index: {}]   ;;  %s6741_s6 = inlined_call_operand.vmem [shape: f32[2,256,8], index: 6, kind: output, shape index: {0}]   ;;  %s6742_s7 = inlined_call_operand.vmem [shape: f32[2,2,8], index: 7, kind: output, shape index: {1}]  }
   0x1 LB: > { %s3671_s25 = sadd.s32 4294967295, %s4752_s24   ;;  %p3675_p0 = scmp.ge.s32.totalorder %s4752_s24, 1  ;;  %s4752_s24 = sphi %s4795_s24, %s18_s24  }
   0x2   : > { %p248_p1 = scmp.lt.s32.totalorder %s4752_s24, 3 }
   0x4   : > { %p249_p2 = pnand %p3675_p0, %p248_p1 }
   0x6   : > { %252 = sbr.rel (%p249_p2) target bundleno = 567 (0x237), region = 44 }
   0xb   : > { %v3684_v0 = vld [vmem:[%s6739_s4 + $0x8] sm:$0xff]  ;;  %vm485_vm0 = vcmask 64512   ;;  %p4808_p3 = scmp.lt.s32.totalorder %s3671_s25, 1  ;;  %vm495_vm1 = vcmask 57344   ;;  %v4754_v1 = vmov 0.0   ;;  %v4851_v2 = vld [vmem:[%s6739_s4] sm:$0xff] }
   0xc   : > { %4732 = vmatprep.subr.mxu1 %v3684_v0  ;;  %4282 = vmatprep.subr.mxu0 %v3684_v0  ;;  %486 = vst.msk [vmem:[#allocation2] sm:$0xff] %vm485_vm0, %v4754_v1  ;;  %487 = vst.msk [vmem:[#allocation2 + $0x8] sm:$0xff] %vm485_vm0, %v4754_v1  ;;  %vm488_vm2 = vcmask 58368   ;;  %v3749_v3 = vld [vmem:[%s6739_s4 + $0x10] sm:$0xff]  ;;  %v4869_v4 = vld [vmem:[%s6737_s2] ss:$0 sm:$0xff] }
   0xd   : > { %491 = vst.msk [vmem:[#allocation2 + $0x198] sm:$0xff] %vm485_vm0, %v4754_v1  ;;  %492 = vst.msk [vmem:[#allocation2 + $0x1a0] sm:$0xff] %vm485_vm0, %v4754_v1  ;;  %4733 = vmatpush3.msra.mxu1 %v3684_v0  ;;  %4283 = vmatpush3.msra.mxu0 %v3684_v0  ;;  %s7021_s25 = smov (!%p4808_p3, %s3671_s25), 1  ;;  %v4881_v5 = vld [vmem:[%s6738_s3] ss:$0 sm:$0xff]  ;;  %vm663_vm3 = vcmask 1046528  }
   0xe   : > { %503 = vst.msk [vmem:[#allocation2 + $0xc0] sm:$0x1] %vm495_vm1, %v4754_v1  ;;  %496 = vst.msk [vmem:[#allocation2 + $0x18] sm:$0x1] %vm495_vm1, %v4754_v1  ;;  %4332 = vmatprep.subr.mxu1 %v4851_v2  ;;  %4382 = vmatprep.subr.mxu0 %v3749_v3  ;;  %s3983_s10 = sshll.u32 %s7021_s25, 8  ;;  %s294_s20 = scalar_lea.vmem %s6736_s1, %s7021_s25  ;;  %v4926_v41 = vld [vmem:[%s6739_s4 + $0x20] sm:$0xff] }
   0xf   : > { %497 = vst.msk [vmem:[#allocation2 + $0x30] sm:$0x1] %vm495_vm1, %v4754_v1  ;;  %498 = vst.msk [vmem:[#allocation2 + $0x48] sm:$0x1] %vm495_vm1, %v4754_v1  ;;  %s4876_s15 = scalar_lea.vmem %s6735_s0, %s3983_s10  ;;  %v4909_v25 = vld [vmem:[%s294_s20] ss:$0 sm:$0xff]  ;;  %s6497_s17 = scalar_lea.vmem %s6741_s6, %s3983_s10 }
  0x10   : > { %499 = vst.msk [vmem:[#allocation2 + $0x60] sm:$0x1] %vm495_vm1, %v4754_v1  ;;  %500 = vst.msk [vmem:[#allocation2 + $0x78] sm:$0x1] %vm495_vm1, %v4754_v1  ;;  %v318_v6 = vld [vmem:[%s4876_s15 + $0x70] sm:$0xff]  ;;  %v319_v7 = vld [vmem:[%s4876_s15 + $0x78] sm:$0xff] }
  0x11   : > { %501 = vst.msk [vmem:[#allocation2 + $0x90] sm:$0x1] %vm495_vm1, %v4754_v1  ;;  %502 = vst.msk [vmem:[#allocation2 + $0xa8] sm:$0x1] %vm495_vm1, %v4754_v1  ;;  %v304_v8 = vld [vmem:[%s4876_s15] sm:$0xff]  ;;  %v357_v9 = vmul.f32 %v4869_v4, %v318_v6  ;;  %v358_v10 = vmul.f32 %v4869_v4, %v319_v7  ;;  %v305_v11 = vld [vmem:[%s4876_s15 + $0x8] sm:$0xff] }
  0x12   : > { %504 = vst.msk [vmem:[#allocation2 + $0xd8] sm:$0x1] %vm495_vm1, %v4754_v1  ;;  %505 = vst.msk [vmem:[#allocation2 + $0xf0] sm:$0x1] %vm495_vm1, %v4754_v1  ;;  %v343_v12 = vmul.f32 %v4869_v4, %v304_v8  ;;  %v320_v13 = vld [vmem:[%s4876_s15 + $0x80] sm:$0xff]  ;;  %v321_v14 = vld [vmem:[%s4876_s15 + $0x88] sm:$0xff]  ;;  %v344_v17 = vmul.f32 %v4869_v4, %v305_v11 }
  0x13   : > { %506 = vst.msk [vmem:[#allocation2 + $0x108] sm:$0x1] %vm495_vm1, %v4754_v1  ;;  %507 = vst.msk [vmem:[#allocation2 + $0x120] sm:$0x1] %vm495_vm1, %v4754_v1  ;;  %v4896_v15 = vld [vmem:[#allocation2] sm:$0xff]  ;;  %v4898_v16 = vld [vmem:[#allocation2 + $0x8] sm:$0xff]  ;;  %v359_v18 = vmul.f32 %v4869_v4, %v320_v13  ;;  %v360_v19 = vmul.f32 %v4869_v4, %v321_v14  ;;  %v396_v22 = vadd.f32 %v4881_v5, %v357_v9 }
  0x14   : > { %508 = vst.msk [vmem:[#allocation2 + $0x138] sm:$0x1] %vm495_vm1, %v4754_v1  ;;  %509 = vst.msk [vmem:[#allocation2 + $0x150] sm:$0x1] %vm495_vm1, %v4754_v1  ;;  %v664_v20 = vrot.slane %v4896_v15, 1  ;;  %v665_v21 = vrot.slane %v4898_v16, 1  ;;  %v397_v23 = vadd.f32 %v4881_v5, %v358_v10  ;;  %v382_v27 = vadd.f32 %v4881_v5, %v343_v12 }
  0x15   : > { %510 = vst.msk [vmem:[#allocation2 + $0x168] sm:$0x1] %vm495_vm1, %v4754_v1  ;;  %511 = vst.msk [vmem:[#allocation2 + $0x180] sm:$0x1] %vm495_vm1, %v4754_v1  ;;  %v383_v28 = vadd.f32 %v4881_v5, %v344_v17  ;;  %v306_v29 = vld [vmem:[%s4876_s15 + $0x10] sm:$0xff]  ;;  %v428_v31 = vmax.f32 %v396_v22, 0.0  ;;  %v398_v33 = vadd.f32 %v4881_v5, %v359_v18  ;;  %v399_v38 = vadd.f32 %v4881_v5, %v360_v19 }
  0x16   : > { %512 = vst.msk [vmem:[#allocation2 + $0x29] sm:$0x1] %vm495_vm1, %v4754_v1  ;;  %513 = vst.msk [vmem:[#allocation2 + $0x41] sm:$0x1] %vm495_vm1, %v4754_v1  ;;  %v666_v30 = vsel %vm663_vm3, %v664_v20, %v665_v21  ;;  %v429_v32 = vmax.f32 %v397_v23, 0.0  ;;  %v307_v34 = vld [vmem:[%s4876_s15 + $0x18] sm:$0xff]  ;;  %v345_v45 = vmul.f32 %v4869_v4, %v306_v29 }
  0x17   : > { %514 = vst.msk [vmem:[#allocation2 + $0x59] sm:$0x1] %vm495_vm1, %v4754_v1  ;;  %515 = vst.msk [vmem:[#allocation2 + $0x71] sm:$0x1] %vm495_vm1, %v4754_v1  ;;  %4284 = vmatprep.mubr.msk.f32.mxu0 %vm485_vm0, %v666_v30  ;;  %v414_v36 = vmax.f32 %v382_v27, 0.0  ;;  %v415_v37 = vmax.f32 %v383_v28, 0.0  ;;  %v467_v42 = vadd.f32 %v4909_v25, %v428_v31  ;;  %v346_v51 = vmul.f32 %v4869_v4, %v307_v34 }
  0x18   : > { %516 = vst.msk [vmem:[#allocation2 + $0x89] sm:$0x1] %vm495_vm1, %v4754_v1  ;;  %517 = vst.msk [vmem:[#allocation2 + $0xa1] sm:$0x1] %vm495_vm1, %v4754_v1  ;;  %v322_v39 = vld [vmem:[%s4876_s15 + $0x90] sm:$0xff]  ;;  %v323_v40 = vld [vmem:[%s4876_s15 + $0x98] sm:$0xff]  ;;  %v468_v43 = vadd.f32 %v4909_v25, %v429_v32  ;;  %v384_v54 = vadd.f32 %v4881_v5, %v345_v45 }
  0x19   : > { %518 = vst.msk [vmem:[#allocation2 + $0xb9] sm:$0x1] %vm495_vm1, %v4754_v1  ;;  %519 = vst.msk [vmem:[#allocation2 + $0xd1] sm:$0x1] %vm495_vm1, %v4754_v1  ;;  %v430_v44 = vmax.f32 %v398_v33, 0.0  ;;  %v308_v46 = vld [vmem:[%s4876_s15 + $0x20] sm:$0xff]  ;;  %v453_v48 = vadd.f32 %v4909_v25, %v414_v36  ;;  %v454_v49 = vadd.f32 %v4909_v25, %v415_v37  ;;  %v361_v55 = vmul.f32 %v4869_v4, %v322_v39 }
  0x1a   : > { %520 = vst.msk [vmem:[#allocation2 + $0xe9] sm:$0x1] %vm495_vm1, %v4754_v1  ;;  %521 = vst.msk [vmem:[#allocation2 + $0x101] sm:$0x1] %vm495_vm1, %v4754_v1  ;;  %v309_v47 = vld [vmem:[%s4876_s15 + $0x28] sm:$0xff]  ;;  %v431_v50 = vmax.f32 %v399_v38, 0.0  ;;  %v362_v56 = vmul.f32 %v4869_v4, %v323_v40  ;;  %v385_v59 = vadd.f32 %v4881_v5, %v346_v51  ;;  %v347_v60 = vmul.f32 %v4869_v4, %v308_v46 }
  0x1b   : > { %522 = vst.msk [vmem:[#allocation2 + $0x119] sm:$0x1] %vm495_vm1, %v4754_v1  ;;  %523 = vst.msk [vmem:[#allocation2 + $0x131] sm:$0x1] %vm495_vm1, %v4754_v1  ;;  %v324_v52 = vld [vmem:[%s4876_s15 + $0xa0] sm:$0xff]  ;;  %v469_v53 = vadd.f32 %v4909_v25, %v430_v44  ;;  %v325_v57 = vld [vmem:[%s4876_s15 + $0xa8] sm:$0xff]  ;;  %v348_v61 = vmul.f32 %v4869_v4, %v309_v47  ;;  %v400_v63 = vadd.f32 %v4881_v5, %v361_v55 }
  0x1c   : > { %524 = vst.msk [vmem:[#allocation2 + $0x149] sm:$0x1] %vm495_vm1, %v4754_v1  ;;  %525 = vst.msk [vmem:[#allocation2 + $0x161] sm:$0x1] %vm495_vm1, %v4754_v1  ;;  %v470_v58 = vadd.f32 %v4909_v25, %v431_v50  ;;  %v416_v62 = vmax.f32 %v384_v54, 0.0  ;;  %v401_v0 = vadd.f32 %v4881_v5, %v362_v56  ;;  %v386_v6 = vadd.f32 %v4881_v5, %v347_v60  ;;  %v310_v9 = vld [vmem:[%s4876_s15 + $0x30] sm:$0xff] }
  0x1d   : > { %526 = vst.msk [vmem:[#allocation2 + $0x179] sm:$0x1] %vm495_vm1, %v4754_v1  ;;  %527 = vst.msk [vmem:[#allocation2 + $0x191] sm:$0x1] %vm495_vm1, %v4754_v1  ;;  %v387_v7 = vadd.f32 %v4881_v5, %v348_v61  ;;  %v364_v8 = vmul.f32 %v4869_v4, %v325_v57  ;;  %v432_v11 = vmax.f32 %v400_v63, 0.0  ;;  %v311_v14 = vld [vmem:[%s4876_s15 + $0x38] sm:$0xff] }
  0x1e   : > { %489 = vst.msk [vmem:[#allocation2 + $0x10] sm:$0x3] %vm488_vm2, %v4754_v1  ;;  %493 = vst.msk [vmem:[#allocation2 + $0x1a8] sm:$0x3] %vm488_vm2, %v4754_v1  ;;  %v363_v1 = vmul.f32 %v4869_v4, %v324_v52  ;;  %v455_v10 = vadd.f32 %v4909_v25, %v416_v62  ;;  %v433_v12 = vmax.f32 %v401_v0, 0.0  ;;  %v418_v18 = vmax.f32 %v386_v6, 0.0 }
  0x1f   : > { %542 = vst.msk [vmem:[#allocation2 + $0xc1] sm:$0xff] %vm485_vm0, %v467_v42  ;;  %543 = vst.msk [vmem:[#allocation2 + $0xc9] sm:$0xff] %vm485_vm0, %v468_v43  ;;  %v419_v19 = vmax.f32 %v387_v7, 0.0  ;;  %v403_v20 = vadd.f32 %v4881_v5, %v364_v8  ;;  %v350_v33 = vmul.f32 %v4869_v4, %v311_v14  ;;  %v326_v40 = vld [vmem:[%s4876_s15 + $0xb0] sm:$0xff]  ;;  %v312_v55 = vld [vmem:[%s4876_s15 + $0x40] sm:$0xff]  ;;  %vm1324_vm4 = vcmask 1045504  }
  0x20   : > { %528 = vst.msk [vmem:[#allocation2 + $0x19] sm:$0xff] %vm485_vm0, %v453_v48  ;;  %529 = vst.msk [vmem:[#allocation2 + $0x21] sm:$0xff] %vm485_vm0, %v454_v49  ;;  %v402_v13 = vadd.f32 %v4881_v5, %v363_v1  ;;  %v472_v22 = vadd.f32 %v4909_v25, %v433_v12  ;;  %v457_v30 = vadd.f32 %v4909_v25, %v418_v18  ;;  %v327_v48 = vld [vmem:[%s4876_s15 + $0xb8] sm:$0xff]  ;;  %v313_v1 = vld [vmem:[%s4876_s15 + $0x48] sm:$0xff]  ;;  %s3680_s10 = sshll.u32 %s7021_s25, 1  ;;  %vm3573_vm5 = vcmask 1040384  }
  0x21   : > { %544 = vst.msk [vmem:[#allocation2 + $0xd9] sm:$0xff] %vm485_vm0, %v469_v53  ;;  %545 = vst.msk [vmem:[#allocation2 + $0xe1] sm:$0xff] %vm485_vm0, %v470_v58  ;;  %v458_v31 = vadd.f32 %v4909_v25, %v419_v19  ;;  %v435_v32 = vmax.f32 %v403_v20, 0.0  ;;  %v5028_v60 = vld [vmem:[%s6739_s4 + $0x18] sm:$0xff]  ;;  %v365_v63 = vmul.f32 %v4869_v4, %v326_v40  ;;  %v366_v0 = vmul.f32 %v4869_v4, %v327_v48  ;;  %s303_s20 = scalar_lea.vmem %s6742_s7, %s3680_s10 }
  0x22   : > { %530 = vst.msk [vmem:[#allocation2 + $0x31] sm:$0xff] %vm485_vm0, %v455_v10  ;;  %v434_v23 = vmax.f32 %v402_v13, 0.0  ;;  %547 = vst.msk [vmem:[#allocation2 + $0xf9] sm:$0xff] %vm485_vm0, %v472_v22 }
  0x23   : > { %532 = vst.msk [vmem:[#allocation2 + $0x49] sm:$0xff] %vm485_vm0, %v457_v30  ;;  %533 = vst.msk [vmem:[#allocation2 + $0x51] sm:$0xff] %vm485_vm0, %v458_v31  ;;  %v474_v46 = vadd.f32 %v4909_v25, %v435_v32  ;;  %v404_v13 = vadd.f32 %v4881_v5, %v365_v63  ;;  %v405_v14 = vadd.f32 %v4881_v5, %v366_v0  ;;  %v328_v63 = vld [vmem:[%s4876_s15 + $0xc0] sm:$0xff]  ;;  %v329_v0 = vld [vmem:[%s4876_s15 + $0xc8] sm:$0xff] }
  0x24   : > { %v473_v39 = vadd.f32 %v4909_v25, %v434_v23  ;;  %v352_v23 = vmul.f32 %v4869_v4, %v313_v1  ;;  %v314_v1 = vld [vmem:[%s4876_s15 + $0x50] sm:$0xff] }
  0x25   : > { %v4907_v24 = vld [vmem:[#allocation2 + $0x10] sm:$0x3]  ;;  %549 = vst.msk [vmem:[#allocation2 + $0x111] sm:$0xff] %vm485_vm0, %v474_v46 }
  0x26   : > { %v667_v26 = vrot.slane %v4907_v24, 1  ;;  %v4970_v27 = vld [vmem:[#allocation2 + $0xc0] sm:$0xff]  ;;  %v4972_v28 = vld [vmem:[#allocation2 + $0xc8] sm:$0xff]  ;;  %v4974_v29 = vld [vmem:[#allocation2 + $0xd0] sm:$0x3]  ;;  %548 = vst.msk [vmem:[#allocation2 + $0x109] sm:$0xff] %vm485_vm0, %v473_v39 }
  0x27   : > { %v704_v34 = vrot.slane %v4970_v27, 1  ;;  %v707_v36 = vrot.slane %v4974_v29, 1  ;;  %v4983_v37 = vld [vmem:[#allocation2 + $0x18] sm:$0xff]  ;;  %v4985_v38 = vld [vmem:[#allocation2 + $0x20] sm:$0xff]  ;;  %v4995_v45 = vld [vmem:[#allocation2 + $0x28] sm:$0x3] }
  0x28   : > { %v668_v35 = vsel %vm663_vm3, %v665_v21, %v667_v26  ;;  %v471_v21 = vadd.f32 %v4909_v25, %v432_v11  ;;  %v349_v26 = vmul.f32 %v4869_v4, %v310_v9  ;;  %v669_v42 = vrot.slane %v4983_v37, 1  ;;  %v4993_v44 = vld [vmem:[#allocation2 + $0xd8] sm:$0xff]  ;;  %v5008_v51 = vld [vmem:[#allocation2 + $0xe0] sm:$0xff]  ;;  %v5012_v54 = vld [vmem:[#allocation2 + $0xe8] sm:$0x3] }
  0x29   : > { %4285 = vmatmul.mubr.msk.f32.vlgmr.msra.gmra.mxu0 %vm485_vm0, %v668_v35  ;;  %v705_v35 = vrot.slane %v4972_v28, 1  ;;  %v670_v43 = vrot.slane %v4985_v38, 1  ;;  %v709_v52 = vrot.slane %v4993_v44, 1  ;;  %v672_v53 = vrot.slane %v4995_v45, 1  ;;  %v5049_v7 = vld [vmem:[#allocation2 + $0x30] sm:$0xff] }
  0x2a   : > { %4383 = vmatpush3.msra.mxu0 %v3749_v3  ;;  %v417_v3 = vmax.f32 %v385_v59, 0.0  ;;  %546 = vst.msk [vmem:[#allocation2 + $0xf1] sm:$0xff] %vm485_vm0, %v471_v21  ;;  %v388_v47 = vadd.f32 %v4881_v5, %v349_v26  ;;  %v710_v57 = vrot.slane %v5008_v51, 1  ;;  %v712_v58 = vrot.slane %v5012_v54, 1  ;;  %v5069_v21 = vld [vmem:[#allocation2 + $0x100] sm:$0x3] }
  0x2b   : > { %4482 = vmatprep.subr.mxu0 %v4926_v41  ;;  %v5003_v49 = vsel %vm663_vm3, %v704_v34, %v705_v35  ;;  %v5006_v50 = vsel %vm663_vm3, %v705_v35, %v707_v36  ;;  %v5019_v56 = vsel %vm663_vm3, %v669_v42, %v670_v43  ;;  %v389_v59 = vadd.f32 %v4881_v5, %v350_v33  ;;  %v5078_v32 = vld [vmem:[#allocation2 + $0x48] sm:$0xff]  ;;  %v5080_v33 = vld [vmem:[#allocation2 + $0x50] sm:$0xff] }
  0x2c   : > { %v456_v17 = vadd.f32 %v4909_v25, %v417_v3  ;;  %6825 = vst [vmem:[#allocation3_spill] sm:$0xff] %v5003_v49  ;;  %6826 = vst [vmem:[#allocation4_spill] sm:$0xff] %v5006_v50  ;;  %4308 = vmatprep.mubr.msk.f32.mxu1 %vm485_vm0, %v5003_v49  ;;  %4287 = vmatprep.mubr.msk.f32.mxu0 %vm485_vm0, %v5019_v56  ;;  %v5035_v61 = vsel %vm663_vm3, %v670_v43, %v672_v53  ;;  %v420_v62 = vmax.f32 %v388_v47, 0.0  ;;  %v5093_v43 = vld [vmem:[#allocation2 + $0x58] sm:$0x3] }
  0x2d   : > { %6827 = vst [vmem:[#allocation5_spill] sm:$0xff] %v5019_v56  ;;  %4309 = vmatmul.mubr.msk.f32.vlgmr.msra.gmra.mxu1 %vm485_vm0, %v5006_v50  ;;  %6828 = vst [vmem:[#allocation6_spill] sm:$0xff] %v5035_v61  ;;  %v5042_v3 = vsel %vm663_vm3, %v709_v52, %v710_v57  ;;  %4288 = vmatmul.mubr.msk.f32.gmra.mxu0 %vm485_vm0, %v5035_v61  ;;  %v5047_v6 = vsel %vm663_vm3, %v710_v57, %v712_v58  ;;  %v421_v8 = vmax.f32 %v389_v59, 0.0  ;;  %v5091_v42 = vld [vmem:[#allocation2 + $0x108] sm:$0xff]  ;;  %v5104_v48 = vld [vmem:[#allocation2 + $0x110] sm:$0xff] }
  0x2e   : > { %531 = vst.msk [vmem:[#allocation2 + $0x39] sm:$0xff] %vm485_vm0, %v456_v17  ;;  %4333 = vmatpush3.msra.mxu1 %v4851_v2  ;;  %6829 = vst [vmem:[#allocation7_spill] sm:$0xff] %v5042_v3  ;;  %v351_v9 = vmul.f32 %v4869_v4, %v312_v55  ;;  %4311 = vmatprep.mubr.msk.f32.mxu1 %vm485_vm0, %v5042_v3  ;;  %v674_v2 = vrot.slane %v5049_v7, 1  ;;  %v459_v12 = vadd.f32 %v4909_v25, %v420_v62  ;;  %v5108_v55 = vld [vmem:[#allocation2 + $0x118] sm:$0x3] }
  0x2f   : > { %6830 = vst [vmem:[#allocation8_spill] sm:$0xff] %v5047_v6  ;;  %4432 = vmatprep.subr.mxu1 %v5028_v60  ;;  %v460_v22 = vadd.f32 %v4909_v25, %v421_v8  ;;  %v717_v31 = vrot.slane %v5069_v21, 1  ;;  %v436_v34 = vmax.f32 %v404_v13, 0.0  ;;  %v679_v39 = vrot.slane %v5078_v32, 1  ;;  %v315_v13 = vld [vmem:[%s4876_s15 + $0x58] sm:$0xff] }
  0x30   : > { %534 = vst.msk [vmem:[#allocation2 + $0x61] sm:$0xff] %vm485_vm0, %v459_v12  ;;  %v680_v40 = vrot.slane %v5080_v33, 1  ;;  %v719_v52 = vrot.slane %v5091_v42, 1  ;;  %v682_v53 = vrot.slane %v5093_v43, 1  ;;  %v720_v58 = vrot.slane %v5104_v48, 1 }
  0x31   : > { %v5064_v18 = vld [vmem:[#allocation2 + $0xf0] sm:$0xff]  ;;  %v5066_v19 = vld [vmem:[#allocation2 + $0xf8] sm:$0xff]  ;;  %4312 = vmatmul.mubr.msk.f32.gmra.mxu1 %vm485_vm0, %v5047_v6  ;;  %535 = vst.msk [vmem:[#allocation2 + $0x69] sm:$0xff] %vm485_vm0, %v460_v22  ;;  %v722_v59 = vrot.slane %v5108_v55, 1  ;;  %v437_v62 = vmax.f32 %v405_v14, 0.0  ;;  %v390_v12 = vadd.f32 %v4881_v5, %v351_v9  ;;  %v367_v9 = vmul.f32 %v4869_v4, %v328_v63 }
  0x32   : > { %v714_v26 = vrot.slane %v5064_v18, 1  ;;  %v715_v30 = vrot.slane %v5066_v19, 1  ;;  %v5115_v57 = vsel %vm663_vm3, %v679_v39, %v680_v40  ;;  %v5127_v8 = vsel %vm663_vm3, %v680_v40, %v682_v53 }
  0x33   : > { %6835 = vst [vmem:[#allocation13_spill] sm:$0xff] %v5115_v57  ;;  %6836 = vst [vmem:[#allocation14_spill] sm:$0xff] %v5127_v8  ;;  %v5135_v14 = vsel %vm663_vm3, %v719_v52, %v720_v58  ;;  %v5138_v22 = vsel %vm663_vm3, %v720_v58, %v722_v59  ;;  %v353_v39 = vmul.f32 %v4869_v4, %v314_v1  ;;  %v1328_v61 = vrot.slane %v4907_v24, 2 }
  0x34   : > { %v5099_v46 = vsel %vm663_vm3, %v714_v26, %v715_v30  ;;  %v5102_v47 = vsel %vm663_vm3, %v715_v30, %v717_v31  ;;  %6837 = vst [vmem:[#allocation15_spill] sm:$0xff] %v5135_v14  ;;  %6838 = vst [vmem:[#allocation16_spill] sm:$0xff] %v5138_v22  ;;  %v476_v26 = vadd.f32 %v4909_v25, %v437_v62  ;;  %v422_v31 = vmax.f32 %v390_v12, 0.0 }
  0x35   : > { %v5054_v10 = vld [vmem:[#allocation2 + $0x38] sm:$0xff]  ;;  %v5057_v11 = vld [vmem:[#allocation2 + $0x40] sm:$0x3]  ;;  %6833 = vst [vmem:[#allocation11_spill] sm:$0xff] %v5099_v46  ;;  %6834 = vst [vmem:[#allocation12_spill] sm:$0xff] %v5102_v47  ;;  %4314 = vmatprep.mubr.msk.f32.mxu1 %vm485_vm0, %v5099_v46  ;;  %v391_v30 = vadd.f32 %v4881_v5, %v352_v23  ;;  %v354_v52 = vmul.f32 %v4869_v4, %v315_v13  ;;  %v406_v1 = vadd.f32 %v4881_v5, %v367_v9 }
  0x36   : > { %v675_v17 = vrot.slane %v5054_v10, 1  ;;  %v677_v20 = vrot.slane %v5057_v11, 1  ;;  %4315 = vmatmul.mubr.msk.f32.gmra.mxu1 %vm485_vm0, %v5102_v47  ;;  %551 = vst.msk [vmem:[#allocation2 + $0x129] sm:$0xff] %vm485_vm0, %v476_v26  ;;  %v316_v9 = vld [vmem:[%s4876_s15 + $0x60] sm:$0xff] }
  0x37   : > { %4317 = vmatprep.mubr.msk.f32.mxu1 %vm485_vm0, %v5135_v14  ;;  %v5150_v40 = vld [vmem:[#allocation2 + $0x60] sm:$0xff]  ;;  %v423_v23 = vmax.f32 %v391_v30, 0.0  ;;  %v438_v26 = vmax.f32 %v406_v1, 0.0  ;;  %v317_v14 = vld [vmem:[%s4876_s15 + $0x68] sm:$0xff] }
  0x38   : > { %v5084_v35 = vsel %vm663_vm3, %v674_v2, %v675_v17  ;;  %v5087_v36 = vsel %vm663_vm3, %v675_v17, %v677_v20  ;;  %v475_v2 = vadd.f32 %v4909_v25, %v436_v34  ;;  %v330_v17 = vld [vmem:[%s4876_s15 + $0xd0] sm:$0xff]  ;;  %v331_v20 = vld [vmem:[%s4876_s15 + $0xd8] sm:$0xff]  ;;  %v368_v34 = vmul.f32 %v4869_v4, %v329_v0  ;;  %v5158_v59 = vld [vmem:[#allocation2 + $0x68] sm:$0xff] }
  0x39   : > { %6831 = vst [vmem:[#allocation9_spill] sm:$0xff] %v5084_v35  ;;  %6832 = vst [vmem:[#allocation10_spill] sm:$0xff] %v5087_v36  ;;  %4290 = vmatprep.mubr.msk.f32.mxu0 %vm485_vm0, %v5084_v35  ;;  %v369_v53 = vmul.f32 %v4869_v4, %v330_v17  ;;  %v370_v58 = vmul.f32 %v4869_v4, %v331_v20  ;;  %v684_v62 = vrot.slane %v5150_v40, 1  ;;  %v5161_v63 = vld [vmem:[#allocation2 + $0x70] sm:$0x3]  ;;  %v685_v12 = vrot.slane %v5158_v59, 1 }
  0x3a   : > { %4291 = vmatmul.mubr.msk.f32.gmra.mxu0 %vm485_vm0, %v5087_v36  ;;  %550 = vst.msk [vmem:[#allocation2 + $0x121] sm:$0xff] %vm485_vm0, %v475_v2  ;;  %4318 = vmatmul.mubr.msk.f32.gmra.mxu1 %vm485_vm0, %v5138_v22  ;;  %v461_v0 = vadd.f32 %v4909_v25, %v422_v31  ;;  %v407_v2 = vadd.f32 %v4881_v5, %v368_v34  ;;  %v687_v13 = vrot.slane %v5161_v63, 1 }
  0x3b   : > { %4293 = vmatprep.mubr.msk.f32.mxu0 %vm485_vm0, %v5115_v57  ;;  %v462_v17 = vadd.f32 %v4909_v25, %v423_v23  ;;  %v392_v20 = vadd.f32 %v4881_v5, %v353_v39  ;;  %v393_v22 = vadd.f32 %v4881_v5, %v354_v52  ;;  %v408_v31 = vadd.f32 %v4881_v5, %v369_v53  ;;  %v335_v57 = vld [vmem:[%s4876_s15 + $0xf8] sm:$0xff] }
  0x3c   : > { %536 = vst.msk [vmem:[#allocation2 + $0x79] sm:$0xff] %vm485_vm0, %v461_v0  ;;  %v439_v30 = vmax.f32 %v407_v2, 0.0  ;;  %v5176_v34 = vsel %vm663_vm3, %v684_v62, %v685_v12  ;;  %v5179_v47 = vsel %vm663_vm3, %v685_v12, %v687_v13  ;;  %v409_v23 = vadd.f32 %v4881_v5, %v370_v58  ;;  %v332_v0 = vld [vmem:[%s4876_s15 + $0xe0] sm:$0xff] }
  0x3d   : > { %6839 = vst [vmem:[#allocation17_spill] sm:$0xff] %v5176_v34  ;;  %6840 = vst [vmem:[#allocation18_spill] sm:$0xff] %v5179_v47  ;;  %v424_v39 = vmax.f32 %v392_v20, 0.0  ;;  %v477_v52 = vadd.f32 %v4909_v25, %v438_v26  ;;  %v425_v1 = vmax.f32 %v393_v22, 0.0  ;;  %v440_v62 = vmax.f32 %v408_v31, 0.0  ;;  %v333_v20 = vld [vmem:[%s4876_s15 + $0xe8] sm:$0xff] }
  0x3e   : > { %4294 = vmatmul.mubr.msk.f32.gmra.mxu0 %vm485_vm0, %v5127_v8  ;;  %537 = vst.msk [vmem:[#allocation2 + $0x81] sm:$0xff] %vm485_vm0, %v462_v17  ;;  %v478_v53 = vadd.f32 %v4909_v25, %v439_v30  ;;  %v441_v13 = vmax.f32 %v409_v23, 0.0  ;;  %v355_v58 = vmul.f32 %v4869_v4, %v316_v9  ;;  %v356_v17 = vmul.f32 %v4869_v4, %v317_v14  ;;  %v5199_v30 = vld [vmem:[#allocation2 + $0x130] sm:$0x3] }
  0x3f   : > { %4296 = vmatprep.mubr.msk.f32.mxu0 %vm485_vm0, %v5176_v34  ;;  %v463_v12 = vadd.f32 %v4909_v25, %v424_v39  ;;  %552 = vst.msk [vmem:[#allocation2 + $0x139] sm:$0xff] %vm485_vm0, %v477_v52  ;;  %v464_v22 = vadd.f32 %v4909_v25, %v425_v1  ;;  %v479_v31 = vadd.f32 %v4909_v25, %v440_v62  ;;  %v727_v14 = vrot.slane %v5199_v30, 1  ;;  %v334_v8 = vld [vmem:[%s4876_s15 + $0xf0] sm:$0xff] }
  0x40   : > { %553 = vst.msk [vmem:[#allocation2 + $0x141] sm:$0xff] %vm485_vm0, %v478_v53  ;;  %v371_v39 = vmul.f32 %v4869_v4, %v332_v0  ;;  %v480_v23 = vadd.f32 %v4909_v25, %v441_v13  ;;  %v394_v6 = vadd.f32 %v4881_v5, %v355_v58  ;;  %v395_v52 = vadd.f32 %v4881_v5, %v356_v17 }
  0x41   : > { %v5188_v2 = vld [vmem:[#allocation2 + $0x120] sm:$0xff]  ;;  %v5196_v46 = vld [vmem:[#allocation2 + $0x128] sm:$0xff]  ;;  %538 = vst.msk [vmem:[#allocation2 + $0x91] sm:$0xff] %vm485_vm0, %v463_v12  ;;  %539 = vst.msk [vmem:[#allocation2 + $0x99] sm:$0xff] %vm485_vm0, %v464_v22  ;;  %v372_v53 = vmul.f32 %v4869_v4, %v333_v20  ;;  %v1325_v34 = vrot.slane %v4896_v15, 2 }
  0x42   : > { %4297 = vmatmul.mubr.msk.f32.gmra.mxu0 %vm485_vm0, %v5179_v47  ;;  %v724_v26 = vrot.slane %v5188_v2, 1  ;;  %v725_v9 = vrot.slane %v5196_v46, 1  ;;  %554 = vst.msk [vmem:[#allocation2 + $0x151] sm:$0xff] %vm485_vm0, %v479_v31  ;;  %v410_v0 = vadd.f32 %v4881_v5, %v371_v39  ;;  %555 = vst.msk [vmem:[#allocation2 + $0x159] sm:$0xff] %vm485_vm0, %v480_v23  ;;  %v426_v13 = vmax.f32 %v394_v6, 0.0 }
  0x43   : > { %v5222_v12 = vld [vmem:[#allocation2 + $0x78] sm:$0xff]  ;;  %v427_v22 = vmax.f32 %v395_v52, 0.0 }
  0x44   : > { %v5217_v1 = vsel %vm663_vm3, %v724_v26, %v725_v9  ;;  %v5220_v62 = vsel %vm663_vm3, %v725_v9, %v727_v14  ;;  %v689_v17 = vrot.slane %v5222_v12, 1  ;;  %v411_v26 = vadd.f32 %v4881_v5, %v372_v53 }
  0x45   : > { %6841 = vst [vmem:[#allocation19_spill] sm:$0xff] %v5217_v1  ;;  %6842 = vst [vmem:[#allocation20_spill] sm:$0xff] %v5220_v62  ;;  %4320 = vmatprep.mubr.msk.f32.mxu1 %vm485_vm0, %v5217_v1  ;;  %v5227_v58 = vld [vmem:[#allocation2 + $0x80] sm:$0xff]  ;;  %v5230_v20 = vld [vmem:[#allocation2 + $0x88] sm:$0x3]  ;;  %v442_v31 = vmax.f32 %v410_v0, 0.0  ;;  %v465_v9 = vadd.f32 %v4909_v25, %v426_v13  ;;  %v466_v14 = vadd.f32 %v4909_v25, %v427_v22 }
  0x46   : > { %4321 = vmatmul.mubr.msk.f32.gmra.mxu1 %vm485_vm0, %v5220_v62  ;;  %v690_v39 = vrot.slane %v5227_v58, 1  ;;  %v692_v6 = vrot.slane %v5230_v20, 1  ;;  %v443_v23 = vmax.f32 %v411_v26, 0.0  ;;  %v5243_v52 = vld [vmem:[#allocation2 + $0x138] sm:$0xff] }
  0x47   : > { %v481_v1 = vadd.f32 %v4909_v25, %v442_v31  ;;  %v5245_v53 = vld [vmem:[#allocation2 + $0x140] sm:$0xff]  ;;  %v5250_v62 = vld [vmem:[#allocation2 + $0x148] sm:$0x3]  ;;  %540 = vst.msk [vmem:[#allocation2 + $0xa9] sm:$0xff] %vm485_vm0, %v465_v9  ;;  %v729_v13 = vrot.slane %v5243_v52, 1  ;;  %541 = vst.msk [vmem:[#allocation2 + $0xb1] sm:$0xff] %vm485_vm0, %v466_v14 }
  0x48   : > { %v5241_v3 = vsel %vm663_vm3, %v689_v17, %v690_v39  ;;  %v5248_v0 = vsel %vm663_vm3, %v690_v39, %v692_v6  ;;  %v730_v22 = vrot.slane %v5245_v53, 1  ;;  %v732_v17 = vrot.slane %v5250_v62, 1  ;;  %v5258_v26 = vld [vmem:[#allocation2 + $0x90] sm:$0xff]  ;;  %v5265_v39 = vld [vmem:[#allocation2 + $0x98] sm:$0xff]  ;;  %v5270_v50 = vld [vmem:[#allocation2 + $0xa0] sm:$0x3] }
  0x49   : > { %6843 = vst [vmem:[#allocation21_spill] sm:$0xff] %v5241_v3  ;;  %6844 = vst [vmem:[#allocation22_spill] sm:$0xff] %v5248_v0  ;;  %4299 = vmatprep.mubr.msk.f32.mxu0 %vm485_vm0, %v5241_v3  ;;  %v482_v31 = vadd.f32 %v4909_v25, %v443_v23  ;;  %v694_v6 = vrot.slane %v5258_v26, 1  ;;  %v5268_v9 = vld [vmem:[#allocation2 + $0x150] sm:$0xff]  ;;  %v5279_v23 = vld [vmem:[#allocation2 + $0x158] sm:$0xff] }
  0x4a   : > { %556 = vst.msk [vmem:[#allocation2 + $0x169] sm:$0xff] %vm485_vm0, %v481_v1  ;;  %4300 = vmatmul.mubr.msk.f32.gmra.mxu0 %vm485_vm0, %v5248_v0  ;;  %6845 = vst [vmem:[#allocation23_spill] sm:$0xff] %v5268_v9  ;;  %v5273_v49 = vsel %vm663_vm3, %v729_v13, %v730_v22  ;;  %v5276_v14 = vsel %vm663_vm3, %v730_v22, %v732_v17  ;;  %v695_v1 = vrot.slane %v5265_v39, 1  ;;  %v734_v0 = vrot.slane %v5268_v9, 1  ;;  %v5282_v3 = vld [vmem:[#allocation2 + $0x160] sm:$0x3] }
  0x4b   : > { %6846 = vst [vmem:[#allocation24_spill] sm:$0xff] %v5273_v49  ;;  %6847 = vst [vmem:[#allocation25_spill] sm:$0xff] %v5276_v14  ;;  %4323 = vmatprep.mubr.msk.f32.mxu1 %vm485_vm0, %v5273_v49  ;;  %v735_v47 = vrot.slane %v5279_v23, 1  ;;  %v697_v13 = vrot.slane %v5270_v50, 1  ;;  %v737_v22 = vrot.slane %v5282_v3, 1 }
  0x4c   : > { %6848 = vst [vmem:[#allocation26_spill] sm:$0xff] %v5279_v23  ;;  %6849 = vst [vmem:[#allocation27_spill] sm:$0xff] %v5282_v3  ;;  %4324 = vmatmul.mubr.msk.f32.gmra.mxu1 %vm485_vm0, %v5276_v14  ;;  %v5293_v17 = vsel %vm663_vm3, %v694_v6, %v695_v1  ;;  %v1326_v14 = vrot.slane %v4898_v16, 2 }
  0x4d   : > { %557 = vst.msk [vmem:[#allocation2 + $0x171] sm:$0xff] %vm485_vm0, %v482_v31  ;;  %6850 = vst [vmem:[#allocation28_spill] sm:$0xff] %v5293_v17  ;;  %4302 = vmatprep.mubr.msk.f32.mxu0 %vm485_vm0, %v5293_v17  ;;  %v5301_v31 = vsel %vm663_vm3, %v734_v0, %v735_v47  ;;  %v5304_v49 = vsel %vm663_vm3, %v695_v1, %v697_v13  ;;  %v5307_v36 = vsel %vm663_vm3, %v735_v47, %v737_v22 }
  0x4e   : > { %6851 = vst [vmem:[#allocation29_spill] sm:$0xff] %v5301_v31  ;;  %6852 = vst [vmem:[#allocation30_spill] sm:$0xff] %v5304_v49  ;;  %4326 = vmatprep.mubr.msk.f32.mxu1 %vm485_vm0, %v5301_v31  ;;  %4303 = vmatmul.mubr.msk.f32.gmra.mxu0 %vm485_vm0, %v5304_v49  ;;  %v5314_v6 = vld [vmem:[#allocation2 + $0xa8] sm:$0xff]  ;;  %v5316_v17 = vld [vmem:[#allocation2 + $0xb0] sm:$0xff]  ;;  %v373_v47 = vmul.f32 %v4869_v4, %v334_v8  ;;  %v374_v22 = vmul.f32 %v4869_v4, %v335_v57  ;;  %v1330_v8 = vrot.slane %v4983_v37, 2 }
  0x4f   : > { %6853 = vst [vmem:[#allocation31_spill] sm:$0xff] %v5307_v36  ;;  %v699_v0 = vrot.slane %v5314_v6, 1  ;;  %v5321_v13 = vld [vmem:[#allocation2 + $0xb8] sm:$0x3]  ;;  %v700_v31 = vrot.slane %v5316_v17, 1  ;;  %v1327_v23 = vsel %vm1324_vm4, %v1325_v34, %v1326_v14  ;;  %v1331_v4 = vrot.slane %v4985_v38, 2 }
  0x50   : > { %4327 = vmatmul.mubr.msk.f32.gmra.mxu1 %vm485_vm0, %v5307_v36  ;;  %v702_v35 = vrot.slane %v5321_v13, 1 }
  0x51   : > { %v5319_v1 = vld [vmem:[#allocation2 + $0x168] sm:$0xff]  ;;  %v5339_v57 = vsel %vm663_vm3, %v699_v0, %v700_v31  ;;  %v1335_v0 = vrot.slane %v5049_v7, 2 }
  0x52   : > { %6854 = vst [vmem:[#allocation32_spill] sm:$0xff] %v5319_v1  ;;  %v739_v49 = vrot.slane %v5319_v1, 1  ;;  %6855 = vst [vmem:[#allocation33_spill] sm:$0xff] %v5339_v57  ;;  %v5343_v1 = vsel %vm663_vm3, %v700_v31, %v702_v35  ;;  %4305 = vmatprep.mubr.msk.f32.mxu0 %vm485_vm0, %v5339_v57  ;;  %v1329_v35 = vsel %vm1324_vm4, %v1326_v14, %v1328_v61  ;;  %v1333_v31 = vrot.slane %v4995_v45, 2 }
  0x53   : > { %6856 = vst [vmem:[#allocation34_spill] sm:$0xff] %v5343_v1  ;;  %4306 = vmatmul.mubr.msk.f32.gmra.mxu0 %vm485_vm0, %v5343_v1  ;;  %v1338_v61 = vrot.slane %v5057_v11, 2  ;;  %v1343_v11 = vrot.slane %v5093_v43, 2  ;;  %v413_v43 = vadd.f32 %v4881_v5, %v374_v22 }
  0x54   : > { %v5331_v56 = vld [vmem:[#allocation2 + $0x170] sm:$0xff]  ;;  %v5333_v3 = vld [vmem:[#allocation2 + $0x178] sm:$0x3]  ;;  %4384 = vmatprep.mubr.msk.f32.mxu0 %vm485_vm0, %v1327_v23  ;;  %v5380_v45 = vsel %vm1324_vm4, %v1331_v4, %v1333_v31 }
  0x55   : > { %v740_v36 = vrot.slane %v5331_v56, 1  ;;  %v742_v24 = vrot.slane %v5333_v3, 1  ;;  %v5373_v23 = vld [vmem:[%s6739_s4 + $0x30] sm:$0xff] }
  0x57   : > { %v5349_v9 = vsel %vm663_vm3, %v739_v49, %v740_v36  ;;  %v5354_v34 = vsel %vm663_vm3, %v740_v36, %v742_v24  ;;  %v5364_v49 = vsel %vm1324_vm4, %v1330_v8, %v1331_v4  ;;  %v1336_v36 = vrot.slane %v5054_v10, 2  ;;  %4385 = vmatmul.mubr.msk.f32.vlgmr.msra.gmra.mxu0 %vm485_vm0, %v1329_v35 }
  0x58   : > { %6857 = vst [vmem:[#allocation35_spill] sm:$0xff] %v5349_v9  ;;  %6858 = vst [vmem:[#allocation36_spill] sm:$0xff] %v5354_v34  ;;  %4329 = vmatprep.mubr.msk.f32.mxu1 %vm485_vm0, %v5349_v9  ;;  %4483 = vmatpush3.msra.mxu0 %v4926_v41  ;;  %v1340_v41 = vrot.slane %v5078_v32, 2  ;;  %v1341_v8 = vrot.slane %v5080_v33, 2  ;;  %v1345_v4 = vrot.slane %v5150_v40, 2  ;;  %v412_v35 = vadd.f32 %v4881_v5, %v373_v47 }
  0x59   : > { %4330 = vmatmul.mubr.msk.f32.gmra.mxu1 %vm485_vm0, %v5354_v34  ;;  %4387 = vmatprep.mubr.msk.f32.mxu0 %vm485_vm0, %v5364_v49  ;;  %v5391_v14 = vsel %vm1324_vm4, %v1335_v0, %v1336_v36  ;;  %v1351_v47 = vrot.slane %v5227_v58, 2  ;;  %v445_v5 = vmax.f32 %v413_v43, 0.0  ;;  %v1356_v43 = vrot.slane %v5265_v39, 2 }
  0x5a   : > { %4334 = vmatprep.mubr.msk.f32.mxu1 %vm485_vm0, %v4896_v15  ;;  %v5386_v15 = vld [vmem:[%s6739_s4 + $0x28] sm:$0xff]  ;;  %4582 = vmatprep.subr.mxu0 %v5373_v23  ;;  %v5413_v24 = vsel %vm1324_vm4, %v1340_v41, %v1341_v8  ;;  %v5424_v31 = vsel %vm1324_vm4, %v1341_v8, %v1343_v11  ;;  %v444_v41 = vmax.f32 %v412_v35, 0.0  ;;  %v1353_v11 = vrot.slane %v5230_v20, 2 }
  0x5b   : > { %4388 = vmatmul.mubr.msk.f32.gmra.mxu0 %vm485_vm0, %v5380_v45  ;;  %v484_v8 = vadd.f32 %v4909_v25, %v445_v5  ;;  %v1355_v35 = vrot.slane %v5258_v26, 2  ;;  %v1358_v20 = vrot.slane %v5270_v50, 2  ;;  %v1365_v5 = vrot.slane %v4970_v27, 2 }
  0x5c   : > { %4390 = vmatprep.mubr.msk.f32.mxu0 %vm485_vm0, %v5391_v14  ;;  %v483_v22 = vadd.f32 %v4909_v25, %v444_v41  ;;  %v5462_v25 = vsel %vm1324_vm4, %v1351_v47, %v1353_v11 }
  0x5d   : > { %4335 = vmatmul.mubr.msk.f32.vlgmr.msra.gmra.mxu1 %vm485_vm0, %v4898_v16  ;;  %v5405_v16 = vsel %vm1324_vm4, %v1336_v36, %v1338_v61  ;;  %v1348_v36 = vrot.slane %v5161_v63, 2  ;;  %v1350_v61 = vrot.slane %v5222_v12, 2  ;;  %559 = vst.msk [vmem:[#allocation2 + $0x189] sm:$0xff] %vm485_vm0, %v484_v8  ;;  %v5479_v50 = vsel %vm1324_vm4, %v1356_v43, %v1358_v20 }
  0x5e   : > { %4433 = vmatpush3.msra.mxu1 %v5028_v60  ;;  %4337 = vmatprep.mubr.msk.f32.mxu1 %vm485_vm0, %v4983_v37  ;;  %v1346_v60 = vrot.slane %v5158_v59, 2  ;;  %558 = vst.msk [vmem:[#allocation2 + $0x181] sm:$0xff] %vm485_vm0, %v483_v22  ;;  %v1366_v22 = vrot.slane %v4972_v28, 2  ;;  %v1368_v8 = vrot.slane %v4974_v29, 2  ;;  %v1373_v20 = vrot.slane %v5012_v54, 2 }
  0x5f   : > { %4532 = vmatprep.subr.mxu1 %v5386_v15  ;;  %4391 = vmatmul.mubr.msk.f32.gmra.mxu0 %vm485_vm0, %v5405_v16 }
  0x60   : > { %4393 = vmatprep.mubr.msk.f32.mxu0 %vm485_vm0, %v5413_v24  ;;  %v5427_v0 = vsel %vm1324_vm4, %v1345_v4, %v1346_v60  ;;  %v5443_v63 = vsel %vm1324_vm4, %v1346_v60, %v1348_v36  ;;  %v5449_v4 = vsel %vm1324_vm4, %v1350_v61, %v1351_v47  ;;  %v5468_v60 = vsel %vm1324_vm4, %v1355_v35, %v1356_v43 }
  0x61   : > { %4338 = vmatmul.mubr.msk.f32.gmra.mxu1 %vm485_vm0, %v4985_v38  ;;  %v1360_v36 = vrot.slane %v5314_v6, 2  ;;  %v1361_v61 = vrot.slane %v5316_v17, 2  ;;  %v1363_v47 = vrot.slane %v5321_v13, 2  ;;  %v5502_v11 = vsel %vm1324_vm4, %v1365_v5, %v1366_v22 }
  0x62   : > { %4340 = vmatprep.mubr.msk.f32.mxu1 %vm485_vm0, %v5049_v7  ;;  %v1370_v35 = vrot.slane %v4993_v44, 2  ;;  %v1371_v43 = vrot.slane %v5008_v51, 2  ;;  %v5513_v29 = vsel %vm1324_vm4, %v1366_v22, %v1368_v8  ;;  %v1378_v5 = vrot.slane %v5069_v21, 2 }
  0x63   : > { %4394 = vmatmul.mubr.msk.f32.gmra.mxu0 %vm485_vm0, %v5424_v31  ;;  %v5485_v41 = vsel %vm1324_vm4, %v1360_v36, %v1361_v61  ;;  %v5496_v13 = vsel %vm1324_vm4, %v1361_v61, %v1363_v47  ;;  %6859 = vst [vmem:[#allocation37_spill] sm:$0xff] %v5513_v29  ;;  %v1375_v61 = vrot.slane %v5064_v18, 2  ;;  %v1376_v47 = vrot.slane %v5066_v19, 2 }
  0x64   : > { %4396 = vmatprep.mubr.msk.f32.mxu0 %vm485_vm0, %v5427_v0  ;;  %v5519_v36 = vsel %vm1324_vm4, %v1370_v35, %v1371_v43  ;;  %v5530_v54 = vsel %vm1324_vm4, %v1371_v43, %v1373_v20  ;;  %v1380_v8 = vrot.slane %v5091_v42, 2  ;;  %v1381_v35 = vrot.slane %v5104_v48, 2 }
  0x65   : > { %4341 = vmatmul.mubr.msk.f32.gmra.mxu1 %vm485_vm0, %v5054_v10  ;;  %6860 = vst [vmem:[#allocation38_spill] sm:$0xff] %v5519_v36  ;;  %6861 = vst [vmem:[#allocation39_spill] sm:$0xff] %v5530_v54  ;;  %v5536_v22 = vsel %vm1324_vm4, %v1375_v61, %v1376_v47  ;;  %v5547_v21 = vsel %vm1324_vm4, %v1376_v47, %v1378_v5  ;;  %v1383_v43 = vrot.slane %v5108_v55, 2  ;;  %v1385_v61 = vrot.slane %v5188_v2, 2 }
  0x66   : > { %4343 = vmatprep.mubr.msk.f32.mxu1 %vm485_vm0, %v5078_v32  ;;  %6862 = vst [vmem:[#allocation40_spill] sm:$0xff] %v5536_v22  ;;  %6863 = vst [vmem:[#allocation41_spill] sm:$0xff] %v5547_v21  ;;  %v5553_v20 = vsel %vm1324_vm4, %v1380_v8, %v1381_v35  ;;  %v1388_v47 = vrot.slane %v5199_v30, 2  ;;  %v1390_v8 = vrot.slane %v5243_v52, 2 }
  0x67   : > { %4397 = vmatmul.mubr.msk.f32.gmra.mxu0 %vm485_vm0, %v5443_v63  ;;  %6864 = vst [vmem:[#allocation42_spill] sm:$0xff] %v5553_v20  ;;  %v5564_v55 = vsel %vm1324_vm4, %v1381_v35, %v1383_v43  ;;  %v1393_v35 = vrot.slane %v5250_v62, 2 }
  0x68   : > { %4399 = vmatprep.mubr.msk.f32.mxu0 %vm485_vm0, %v5449_v4  ;;  %6865 = vst [vmem:[#allocation43_spill] sm:$0xff] %v5564_v55 }
  0x69   : > { %4344 = vmatmul.mubr.msk.f32.gmra.mxu1 %vm485_vm0, %v5080_v33 }
  0x6a   : > { %4346 = vmatprep.mubr.msk.f32.mxu1 %vm485_vm0, %v5150_v40 }
  0x6b   : > { %4400 = vmatmul.mubr.msk.f32.gmra.mxu0 %vm485_vm0, %v5462_v25 }
  0x6c   : > { %4402 = vmatprep.mubr.msk.f32.mxu0 %vm485_vm0, %v5468_v60 }
  0x6d   : > { %4347 = vmatmul.mubr.msk.f32.gmra.mxu1 %vm485_vm0, %v5158_v59 }
  0x6e   : > { %4349 = vmatprep.mubr.msk.f32.mxu1 %vm485_vm0, %v5222_v12 }
  0x6f   : > { %4403 = vmatmul.mubr.msk.f32.gmra.mxu0 %vm485_vm0, %v5479_v50 }
  0x70   : > { %4405 = vmatprep.mubr.msk.f32.mxu0 %vm485_vm0, %v5485_v41 }
  0x71   : > { %4350 = vmatmul.mubr.msk.f32.gmra.mxu1 %vm485_vm0, %v5227_v58 }
  0x72   : > { %4352 = vmatprep.mubr.msk.f32.mxu1 %vm485_vm0, %v5258_v26 }
  0x73   : > { %4406 = vmatmul.mubr.msk.f32.gmra.mxu0 %vm485_vm0, %v5496_v13 }
  0x74   : > { %4408 = vmatprep.mubr.msk.f32.mxu0 %vm485_vm0, %v5502_v11 }
  0x75   : > { %4353 = vmatmul.mubr.msk.f32.gmra.mxu1 %vm485_vm0, %v5265_v39 }
  0x76   : > { %4355 = vmatprep.mubr.msk.f32.mxu1 %vm485_vm0, %v5314_v6 }
  0x77   : > { %4409 = vmatmul.mubr.msk.f32.gmra.mxu0 %vm485_vm0, %v5513_v29  ;;  %v1401_v29 = vrot.slane %v5331_v56, 2 }
  0x78   : > { %4411 = vmatprep.mubr.msk.f32.mxu0 %vm485_vm0, %v5519_v36  ;;  %v1386_v36 = vrot.slane %v5196_v46, 2 }
  0x79   : > { %4356 = vmatmul.mubr.msk.f32.gmra.mxu1 %vm485_vm0, %v5316_v17 }
  0x7a   : > { %4358 = vmatprep.mubr.msk.f32.mxu1 %vm485_vm0, %v4970_v27  ;;  %v5570_v5 = vsel %vm1324_vm4, %v1385_v61, %v1386_v36  ;;  %v5581_v30 = vsel %vm1324_vm4, %v1386_v36, %v1388_v47  ;;  %v6867_v61 = vld [vmem:[#allocation23_spill] sm:$0xff] }
  0x7b   : > { %4412 = vmatmul.mubr.msk.f32.gmra.mxu0 %vm485_vm0, %v5530_v54  ;;  %6866 = vst [vmem:[#allocation44_spill] sm:$0xff] %v5570_v5  ;;  %v6869_v36 = vld [vmem:[#allocation27_spill] sm:$0xff] }
  0x7c   : > { %4414 = vmatprep.mubr.msk.f32.mxu0 %vm485_vm0, %v5536_v22  ;;  %v1391_v22 = vrot.slane %v5245_v53, 2  ;;  %v1398_v47 = vrot.slane %v6869_v36, 2  ;;  %v6874_v36 = vld [vmem:[#allocation9_spill] sm:$0xff] }
  0x7d   : > { %4359 = vmatmul.mubr.msk.f32.gmra.mxu1 %vm485_vm0, %v4972_v28 }
  0x7e   : > { %4361 = vmatprep.mubr.msk.f32.mxu1 %vm485_vm0, %v4993_v44  ;;  %v5587_v43 = vsel %vm1324_vm4, %v1390_v8, %v1391_v22  ;;  %v5598_v62 = vsel %vm1324_vm4, %v1391_v22, %v1393_v35  ;;  %v1403_v35 = vrot.slane %v5333_v3, 2  ;;  %v6872_v3 = vld [vmem:[#allocation5_spill] sm:$0xff] }
  0x7f   : > { %4415 = vmatmul.mubr.msk.f32.gmra.mxu0 %vm485_vm0, %v5547_v21  ;;  %v6868_v21 = vld [vmem:[#allocation26_spill] sm:$0xff] }
  0x80   : > { %4417 = vmatprep.mubr.msk.f32.mxu0 %vm485_vm0, %v5553_v20  ;;  %v1395_v20 = vrot.slane %v6867_v61, 2  ;;  %v1396_v54 = vrot.slane %v6868_v21, 2 }
  0x81   : > { %4362 = vmatmul.mubr.msk.f32.gmra.mxu1 %vm485_vm0, %v5008_v51 }
  0x82   : > { %4364 = vmatprep.mubr.msk.f32.mxu1 %vm485_vm0, %v5064_v18  ;;  %v5604_v8 = vsel %vm1324_vm4, %v1395_v20, %v1396_v54  ;;  %v5615_v22 = vsel %vm1324_vm4, %v1396_v54, %v1398_v47  ;;  %v5630_v54 = vsel %vm1324_vm4, %v1401_v29, %v1403_v35  ;;  %v5657_v47 = vld [vmem:[%s6739_s4 + $0x38] sm:$0xff]  ;;  %v6879_v35 = vld [vmem:[#allocation18_spill] sm:$0xff] }
  0x83   : > { %4418 = vmatmul.mubr.msk.f32.gmra.mxu0 %vm485_vm0, %v5564_v55 }
  0x84   : > { %4420 = vmatprep.mubr.msk.f32.mxu0 %vm485_vm0, %v5570_v5  ;;  %v6870_v5 = vld [vmem:[#allocation32_spill] sm:$0xff] }
  0x85   : > { %4365 = vmatmul.mubr.msk.f32.gmra.mxu1 %vm485_vm0, %v5066_v19  ;;  %v1400_v55 = vrot.slane %v6870_v5, 2 }
  0x86   : > { %4367 = vmatprep.mubr.msk.f32.mxu1 %vm485_vm0, %v5091_v42 }
  0x87   : > { %4421 = vmatmul.mubr.msk.f32.gmra.mxu0 %vm485_vm0, %v5581_v30  ;;  %v5621_v20 = vsel %vm1324_vm4, %v1400_v55, %v1401_v29  ;;  %v5647_v29 = vld [vmem:[%s6739_s4 + $0x40] sm:$0xff]  ;;  %v6873_v55 = vld [vmem:[#allocation6_spill] sm:$0xff] }
  0x88   : > { %4423 = vmatprep.mubr.msk.f32.mxu0 %vm485_vm0, %v5587_v43  ;;  %6871 = vst [vmem:[#allocation23_spill] sm:$0xff] %v5621_v20 }
  0x89   : > { %4368 = vmatmul.mubr.msk.f32.gmra.mxu1 %vm485_vm0, %v5104_v48 }
  0x8a   : > { %4370 = vmatprep.mubr.msk.f32.mxu1 %vm485_vm0, %v5188_v2 }
  0x8b   : > { %4424 = vmatmul.mubr.msk.f32.gmra.mxu0 %vm485_vm0, %v5598_v62 }
  0x8c   : > { %4426 = vmatprep.mubr.msk.f32.mxu0 %vm485_vm0, %v5604_v8 }
  0x8d   : > { %4371 = vmatmul.mubr.msk.f32.gmra.mxu1 %vm485_vm0, %v5196_v46 }
  0x8e   : > { %4373 = vmatprep.mubr.msk.f32.mxu1 %vm485_vm0, %v5243_v52 }
  0x8f   : > { %4427 = vmatmul.mubr.msk.f32.gmra.mxu0 %vm485_vm0, %v5615_v22 }
  0x90   : > { %4429 = vmatprep.mubr.msk.f32.mxu0 %vm485_vm0, %v5621_v20 }
  0x91   : > { %4374 = vmatmul.mubr.msk.f32.gmra.mxu1 %vm485_vm0, %v5245_v53 }
  0x92   : > { %4376 = vmatprep.mubr.msk.f32.mxu1 %vm485_vm0, %v6867_v61 }
  0x93   : > { %4430 = vmatmul.mubr.msk.f32.gmra.mxu0 %vm485_vm0, %v5630_v54 }
  0x94   : > { %4484 = vmatprep.mubr.msk.f32.mxu0 %vm485_vm0, %v6872_v3  ;;  %v6880_v3 = vld [vmem:[#allocation21_spill] sm:$0xff] }
  0x95   : > { %4377 = vmatmul.mubr.msk.f32.gmra.mxu1 %vm485_vm0, %v6868_v21 }
  0x96   : > { %4379 = vmatprep.mubr.msk.f32.mxu1 %vm485_vm0, %v6870_v5 }
  0x97   : > { %4485 = vmatmul.mubr.msk.f32.vlgmr.msra.gmra.mxu0 %vm485_vm0, %v6873_v55  ;;  %v6881_v55 = vld [vmem:[#allocation22_spill] sm:$0xff] }
  0x98   : > { %4583 = vmatpush3.msra.mxu0 %v5373_v23  ;;  %4487 = vmatprep.mubr.msk.f32.mxu0 %vm485_vm0, %v6874_v36  ;;  %v6876_v23 = vld [vmem:[#allocation13_spill] sm:$0xff] }
  0x99   : > { %4380 = vmatmul.mubr.msk.f32.gmra.mxu1 %vm485_vm0, %v5331_v56  ;;  %4682 = vmatprep.subr.mxu0 %v5647_v29 }
  0x9a   : > { %4434 = vmatprep.mubr.msk.f32.mxu1 %vm485_vm0, %v4983_v37  ;;  %v6875_v37 = vld [vmem:[#allocation10_spill] sm:$0xff] }
  0x9b   : > { %4488 = vmatmul.mubr.msk.f32.gmra.mxu0 %vm485_vm0, %v6875_v37 }
  0x9c   : > { %4490 = vmatprep.mubr.msk.f32.mxu0 %vm485_vm0, %v6876_v23 }
  0x9d   : > { %4435 = vmatmul.mubr.msk.f32.vlgmr.msra.gmra.mxu1 %vm485_vm0, %v4985_v38  ;;  %v6877_v38 = vld [vmem:[#allocation14_spill] sm:$0xff] }
  0x9e   : > { %4533 = vmatpush3.msra.mxu1 %v5386_v15  ;;  %4437 = vmatprep.mubr.msk.f32.mxu1 %vm485_vm0, %v5049_v7  ;;  %v6878_v15 = vld [vmem:[#allocation17_spill] sm:$0xff] }
  0x9f   : > { %4632 = vmatprep.subr.mxu1 %v5657_v47  ;;  %4491 = vmatmul.mubr.msk.f32.gmra.mxu0 %vm485_vm0, %v6877_v38 }
  0xa0   : > { %4493 = vmatprep.mubr.msk.f32.mxu0 %vm485_vm0, %v6878_v15  ;;  %v6882_v15 = vld [vmem:[#allocation28_spill] sm:$0xff] }
  0xa1   : > { %4438 = vmatmul.mubr.msk.f32.gmra.mxu1 %vm485_vm0, %v5054_v10 }
  0xa2   : > { %4440 = vmatprep.mubr.msk.f32.mxu1 %vm485_vm0, %v5078_v32 }
  0xa3   : > { %4494 = vmatmul.mubr.msk.f32.gmra.mxu0 %vm485_vm0, %v6879_v35  ;;  %v6883_v35 = vld [vmem:[#allocation30_spill] sm:$0xff] }
  0xa4   : > { %4496 = vmatprep.mubr.msk.f32.mxu0 %vm485_vm0, %v6880_v3 }
  0xa5   : > { %4441 = vmatmul.mubr.msk.f32.gmra.mxu1 %vm485_vm0, %v5080_v33 }
  0xa6   : > { %4443 = vmatprep.mubr.msk.f32.mxu1 %vm485_vm0, %v5150_v40 }
  0xa7   : > { %4497 = vmatmul.mubr.msk.f32.gmra.mxu0 %vm485_vm0, %v6881_v55  ;;  %v6897_v55 = vld [vmem:[#allocation31_spill] sm:$0xff] }
  0xa8   : > { %4499 = vmatprep.mubr.msk.f32.mxu0 %vm485_vm0, %v6882_v15  ;;  %v6884_v15 = vld [vmem:[#allocation3_spill] sm:$0xff] }
  0xa9   : > { %4444 = vmatmul.mubr.msk.f32.gmra.mxu1 %vm485_vm0, %v5158_v59 }
  0xaa   : > { %4446 = vmatprep.mubr.msk.f32.mxu1 %vm485_vm0, %v5222_v12 }
  0xab   : > { %4500 = vmatmul.mubr.msk.f32.gmra.mxu0 %vm485_vm0, %v6883_v35  ;;  %v6885_v35 = vld [vmem:[#allocation4_spill] sm:$0xff] }
  0xac   : > { %4502 = vmatprep.mubr.msk.f32.mxu0 %vm485_vm0, %v5339_v57  ;;  %v6886_v57 = vld [vmem:[#allocation7_spill] sm:$0xff] }
  0xad   : > { %4447 = vmatmul.mubr.msk.f32.gmra.mxu1 %vm485_vm0, %v5227_v58 }
  0xae   : > { %4449 = vmatprep.mubr.msk.f32.mxu1 %vm485_vm0, %v5258_v26 }
  0xaf   : > { %4503 = vmatmul.mubr.msk.f32.gmra.mxu0 %vm485_vm0, %v5343_v1  ;;  %v6887_v1 = vld [vmem:[#allocation8_spill] sm:$0xff] }
  0xb0   : > { %4505 = vmatprep.mubr.msk.f32.mxu0 %vm485_vm0, %v6884_v15  ;;  %v6888_v15 = vld [vmem:[#allocation11_spill] sm:$0xff] }
  0xb1   : > { %4450 = vmatmul.mubr.msk.f32.gmra.mxu1 %vm485_vm0, %v5265_v39 }
  0xb2   : > { %4452 = vmatprep.mubr.msk.f32.mxu1 %vm485_vm0, %v5314_v6 }
  0xb3   : > { %4506 = vmatmul.mubr.msk.f32.gmra.mxu0 %vm485_vm0, %v6885_v35  ;;  %v5766_v35 = vld [vmem:[#allocation2 + $0x190] sm:$0x3] }
  0xb4   : > { %4508 = vmatprep.mubr.msk.f32.mxu0 %vm485_vm0, %v6886_v57  ;;  %v6890_v57 = vld [vmem:[#allocation15_spill] sm:$0xff] }
  0xb5   : > { %4453 = vmatmul.mubr.msk.f32.gmra.mxu1 %vm485_vm0, %v5316_v17 }
  0xb6   : > { %4455 = vmatprep.mubr.msk.f32.mxu1 %vm485_vm0, %v4970_v27  ;;  %v6889_v27 = vld [vmem:[#allocation12_spill] sm:$0xff] }
  0xb7   : > { %4509 = vmatmul.mubr.msk.f32.gmra.mxu0 %vm485_vm0, %v6887_v1  ;;  %v6896_v1 = vld [vmem:[#allocation29_spill] sm:$0xff] }
  0xb8   : > { %4511 = vmatprep.mubr.msk.f32.mxu0 %vm485_vm0, %v6888_v15  ;;  %v6895_v15 = vld [vmem:[#allocation25_spill] sm:$0xff] }
  0xb9   : > { %4456 = vmatmul.mubr.msk.f32.gmra.mxu1 %vm485_vm0, %v4972_v28  ;;  %v6891_v28 = vld [vmem:[#allocation16_spill] sm:$0xff] }
  0xba   : > { %4458 = vmatprep.mubr.msk.f32.mxu1 %vm485_vm0, %v4993_v44  ;;  %v6892_v44 = vld [vmem:[#allocation19_spill] sm:$0xff] }
  0xbb   : > { %4512 = vmatmul.mubr.msk.f32.gmra.mxu0 %vm485_vm0, %v6889_v27  ;;  %v6893_v27 = vld [vmem:[#allocation20_spill] sm:$0xff] }
  0xbc   : > { %4514 = vmatprep.mubr.msk.f32.mxu0 %vm485_vm0, %v6890_v57  ;;  %v6894_v57 = vld [vmem:[#allocation24_spill] sm:$0xff] }
  0xbd   : > { %4459 = vmatmul.mubr.msk.f32.gmra.mxu1 %vm485_vm0, %v5008_v51 }
  0xbe   : > { %4461 = vmatprep.mubr.msk.f32.mxu1 %vm485_vm0, %v5064_v18 }
  0xbf   : > { %4515 = vmatmul.mubr.msk.f32.gmra.mxu0 %vm485_vm0, %v6891_v28  ;;  %v5754_v28 = vld [vmem:[#allocation2 + $0x180] sm:$0xff] }
  0xc0   : > { %4517 = vmatprep.mubr.msk.f32.mxu0 %vm485_vm0, %v6892_v44  ;;  %v5756_v44 = vld [vmem:[#allocation2 + $0x188] sm:$0xff] }
  0xc1   : > { %4462 = vmatmul.mubr.msk.f32.gmra.mxu1 %vm485_vm0, %v5066_v19 }
  0xc2   : > { %4464 = vmatprep.mubr.msk.f32.mxu1 %vm485_vm0, %v5091_v42 }
  0xc3   : > { %4518 = vmatmul.mubr.msk.f32.gmra.mxu0 %vm485_vm0, %v6893_v27  ;;  %v1995_v27 = vrot.slane %v5756_v44, 1 }
  0xc4   : > { %4520 = vmatprep.mubr.msk.f32.mxu0 %vm485_vm0, %v6894_v57  ;;  %v1994_v57 = vrot.slane %v5754_v28, 1 }
  0xc5   : > { %4465 = vmatmul.mubr.msk.f32.gmra.mxu1 %vm485_vm0, %v5104_v48 }
  0xc6   : > { %4467 = vmatprep.mubr.msk.f32.mxu1 %vm485_vm0, %v5188_v2 }
  0xc7   : > { %4521 = vmatmul.mubr.msk.f32.gmra.mxu0 %vm485_vm0, %v6895_v15  ;;  %v5778_v15 = vsel %vm663_vm3, %v1994_v57, %v1995_v27 }
  0xc8   : > { %4523 = vmatprep.mubr.msk.f32.mxu0 %vm485_vm0, %v6896_v1  ;;  %v1997_v1 = vrot.slane %v5766_v35, 1  ;;  %6898 = vst [vmem:[#allocation26_spill] sm:$0xff] %v5778_v15 }
  0xc9   : > { %4468 = vmatmul.mubr.msk.f32.gmra.mxu1 %vm485_vm0, %v5196_v46 }
  0xca   : > { %4470 = vmatprep.mubr.msk.f32.mxu1 %vm485_vm0, %v5243_v52 }
  0xcb   : > { %4524 = vmatmul.mubr.msk.f32.gmra.mxu0 %vm485_vm0, %v6897_v55  ;;  %v5787_v55 = vsel %vm663_vm3, %v1995_v27, %v1997_v1  ;;  %v6900_v1 = vld [vmem:[#allocation37_spill] sm:$0xff] }
  0xcc   : > { %4526 = vmatprep.mubr.msk.f32.mxu0 %vm485_vm0, %v5349_v9  ;;  %6899 = vst [vmem:[#allocation27_spill] sm:$0xff] %v5787_v55  ;;  %v5962_v9 = vld [vmem:[#allocation2 + $0x198] sm:$0xff] }
  0xcd   : > { %4471 = vmatmul.mubr.msk.f32.gmra.mxu1 %vm485_vm0, %v5245_v53 }
  0xce   : > { %4473 = vmatprep.mubr.msk.f32.mxu1 %vm485_vm0, %v6867_v61 }
  0xcf   : > { %4527 = vmatmul.mubr.msk.f32.gmra.mxu0 %vm485_vm0, %v5354_v34 }
  0xd0   : > { %4529 = vmatprep.mubr.msk.f32.mxu0 %vm485_vm0, %v5778_v15  ;;  %v2262_v15 = vrot.slane %v5754_v28, 2 }
  0xd1   : > { %4474 = vmatmul.mubr.msk.f32.gmra.mxu1 %vm485_vm0, %v6868_v21 }
  0xd2   : > { %4476 = vmatprep.mubr.msk.f32.mxu1 %vm485_vm0, %v6870_v5 }
  0xd3   : > { %4530 = vmatmul.mubr.msk.f32.gmra.mxu0 %vm485_vm0, %v5787_v55 }
  0xd4   : > { %4584 = vmatprep.mubr.msk.f32.mxu0 %vm485_vm0, %v5049_v7 }
  0xd5   : > { %4477 = vmatmul.mubr.msk.f32.gmra.mxu1 %vm485_vm0, %v5331_v56 }
  0xd6   : > { %4479 = vmatprep.mubr.msk.f32.mxu1 %vm485_vm0, %v5754_v28 }
  0xd7   : > { %4585 = vmatmul.mubr.msk.f32.vlgmr.msra.gmra.mxu0 %vm485_vm0, %v5054_v10 }
  0xd8   : > { %4683 = vmatpush3.msra.mxu0 %v5647_v29  ;;  %4587 = vmatprep.mubr.msk.f32.mxu0 %vm485_vm0, %v5078_v32  ;;  %v4743_v32 = vld [vmem:[#allocation2 + $0xc0] sm:$0xff]  ;;  %v6902_v29 = vld [vmem:[#allocation39_spill] sm:$0xff] }
  0xd9   : > { %4480 = vmatmul.mubr.msk.f32.gmra.mxu1 %vm485_vm0, %v5756_v44 }
  0xda   : > { %4534 = vmatprep.mubr.msk.f32.mxu1 %vm485_vm0, %v5364_v49  ;;  %v6901_v49 = vld [vmem:[#allocation38_spill] sm:$0xff] }
  0xdb   : > { %4588 = vmatmul.mubr.msk.f32.gmra.mxu0 %vm485_vm0, %v5080_v33 }
  0xdc   : > { %4590 = vmatprep.mubr.msk.f32.mxu0 %vm485_vm0, %v5150_v40 }
  0xdd   : > { %4535 = vmatmul.mubr.msk.f32.vlgmr.msra.gmra.mxu1 %vm485_vm0, %v5380_v45 }
  0xde   : > { %4633 = vmatpush3.msra.mxu1 %v5657_v47  ;;  %4537 = vmatprep.mubr.msk.f32.mxu1 %vm485_vm0, %v5391_v14  ;;  %v6903_v47 = vld [vmem:[#allocation40_spill] sm:$0xff] }
  0xdf   : > { %4591 = vmatmul.mubr.msk.f32.gmra.mxu0 %vm485_vm0, %v5158_v59  ;;  %v4744_v59 = vld [vmem:[#allocation2 + $0xc8] sm:$0xff] }
  0xe0   : > { %4593 = vmatprep.mubr.msk.f32.mxu0 %vm485_vm0, %v5222_v12 }
  0xe1   : > { %4538 = vmatmul.mubr.msk.f32.gmra.mxu1 %vm485_vm0, %v5405_v16 }
  0xe2   : > { %4540 = vmatprep.mubr.msk.f32.mxu1 %vm485_vm0, %v5413_v24 }
  0xe3   : > { %4594 = vmatmul.mubr.msk.f32.gmra.mxu0 %vm485_vm0, %v5227_v58  ;;  %v4745_v58 = vld [vmem:[#allocation2 + $0xd8] sm:$0xff] }
  0xe4   : > { %4596 = vmatprep.mubr.msk.f32.mxu0 %vm485_vm0, %v5258_v26 }
  0xe5   : > { %4541 = vmatmul.mubr.msk.f32.gmra.mxu1 %vm485_vm0, %v5424_v31 }
  0xe6   : > { %4543 = vmatprep.mubr.msk.f32.mxu1 %vm485_vm0, %v5427_v0 }
  0xe7   : > { %4597 = vmatmul.mubr.msk.f32.gmra.mxu0 %vm485_vm0, %v5265_v39 }
  0xe8   : > { %4599 = vmatprep.mubr.msk.f32.mxu0 %vm485_vm0, %v5314_v6 }
  0xe9   : > { %4544 = vmatmul.mubr.msk.f32.gmra.mxu1 %vm485_vm0, %v5443_v63  ;;  %v5835_v7 = vpop.f32.mrf.mxu0 }
  0xea   : > { %4546 = vmatprep.mubr.msk.f32.mxu1 %vm485_vm0, %v5449_v4 }
  0xeb   : > { %v5845_v10 = vpop.f32.mrf.mxu0  ;;  %4600 = vmatmul.mubr.msk.f32.gmra.mxu0 %vm485_vm0, %v5316_v17 }
  0xec   : > { %4602 = vmatprep.mubr.msk.f32.mxu0 %vm485_vm0, %v4743_v32  ;;  %v6905_v32 = vld [vmem:[#allocation42_spill] sm:$0xff] }
  0xed   : > { %4547 = vmatmul.mubr.msk.f32.gmra.mxu1 %vm485_vm0, %v5462_v25  ;;  %v5852_v33 = vpop.f32.mrf.mxu1  ;;  %v5856_v40 = vpop.f32.mrf.mxu0 }
  0xee   : > { %4549 = vmatprep.mubr.msk.f32.mxu1 %vm485_vm0, %v5468_v60 }
  0xef   : > { %4603 = vmatmul.mubr.msk.f32.gmra.mxu0 %vm485_vm0, %v4744_v59  ;;  %v5859_v12 = vpop.f32.mrf.mxu1  ;;  %v5862_v26 = vpop.f32.mrf.mxu0 }
  0xf0   : > { %4605 = vmatprep.mubr.msk.f32.mxu0 %vm485_vm0, %v4745_v58  ;;  %v6907_v58 = vld [vmem:[#allocation44_spill] sm:$0xff] }
  0xf1   : > { %4550 = vmatmul.mubr.msk.f32.gmra.mxu1 %vm485_vm0, %v5479_v50  ;;  %v5866_v39 = vpop.f32.mrf.mxu1 }
  0xf2   : > { %4552 = vmatprep.mubr.msk.f32.mxu1 %vm485_vm0, %v5485_v41 }
  0xf3   : > { %4606 = vmatmul.mubr.msk.f32.gmra.mxu0 %vm485_vm0, %v5008_v51  ;;  %v5872_v17 = vpop.f32.mrf.mxu1 }
  0xf4   : > { %4608 = vmatprep.mubr.msk.f32.mxu0 %vm485_vm0, %v5064_v18 }
  0xf5   : > { %4553 = vmatmul.mubr.msk.f32.gmra.mxu1 %vm485_vm0, %v5496_v13 }
  0xf6   : > { %4555 = vmatprep.mubr.msk.f32.mxu1 %vm485_vm0, %v5502_v11  ;;  %v5880_v57 = vpop.f32.mrf.mxu1 }
  0xf7   : > { %4609 = vmatmul.mubr.msk.f32.gmra.mxu0 %vm485_vm0, %v5066_v19 }
  0xf8   : > { %4611 = vmatprep.mubr.msk.f32.mxu0 %vm485_vm0, %v5091_v42  ;;  %v5890_v51 = vpop.f32.mrf.mxu1  ;;  %v6904_v42 = vld [vmem:[#allocation41_spill] sm:$0xff] }
  0xf9   : > { %4556 = vmatmul.mubr.msk.f32.gmra.mxu1 %vm485_vm0, %v6900_v1 }
  0xfa   : > { %v5876_v6 = vpop.f32.mrf.mxu0  ;;  %4558 = vmatprep.mubr.msk.f32.mxu1 %vm485_vm0, %v6901_v49  ;;  %v5902_v19 = vpop.f32.mrf.mxu1 }
  0xfb   : > { %4612 = vmatmul.mubr.msk.f32.gmra.mxu0 %vm485_vm0, %v5104_v48 }
  0xfc   : > { %v5884_v45 = vpop.f32.mrf.mxu0  ;;  %4614 = vmatprep.mubr.msk.f32.mxu0 %vm485_vm0, %v5188_v2  ;;  %v5914_v48 = vpop.f32.mrf.mxu1  ;;  %v6906_v2 = vld [vmem:[#allocation43_spill] sm:$0xff] }
  0xfd   : > { %4559 = vmatmul.mubr.msk.f32.gmra.mxu1 %vm485_vm0, %v6902_v29 }
  0xfe   : > { %v5892_v18 = vpop.f32.mrf.mxu0  ;;  %4561 = vmatprep.mubr.msk.f32.mxu1 %vm485_vm0, %v6903_v47 }
  0xff   : > { %4615 = vmatmul.mubr.msk.f32.gmra.mxu0 %vm485_vm0, %v5196_v46 }
 0x100   : > { %v5904_v27 = vpop.f32.mrf.mxu0  ;;  %4617 = vmatprep.mubr.msk.f32.mxu0 %vm485_vm0, %v5243_v52 }
 0x101   : > { %4562 = vmatmul.mubr.msk.f32.gmra.mxu1 %vm485_vm0, %v6904_v42 }
 0x102   : > { %4564 = vmatprep.mubr.msk.f32.mxu1 %vm485_vm0, %v6905_v32  ;;  %v5916_v59 = vpop.f32.mrf.mxu0 }
 0x103   : > { %4618 = vmatmul.mubr.msk.f32.gmra.mxu0 %vm485_vm0, %v5245_v53 }
 0x104   : > { %4620 = vmatprep.mubr.msk.f32.mxu0 %vm485_vm0, %v6867_v61  ;;  %v5928_v55 = vpop.f32.mrf.mxu0 }
 0x105   : > { %4565 = vmatmul.mubr.msk.f32.gmra.mxu1 %vm485_vm0, %v6906_v2 }
 0x106   : > { %4567 = vmatprep.mubr.msk.f32.mxu1 %vm485_vm0, %v6907_v58  ;;  %v5926_v46 = vpop.f32.mrf.mxu1 }
 0x107   : > { %6908 = vst [vmem:[#allocation32_spill] sm:$0xff] %v5926_v46  ;;  %4621 = vmatmul.mubr.msk.f32.gmra.mxu0 %vm485_vm0, %v6868_v21  ;;  %v2263_v21 = vrot.slane %v5756_v44, 2 }
 0x108   : > { %v5936_v52 = vpop.f32.mrf.mxu1  ;;  %4623 = vmatprep.mubr.msk.f32.mxu0 %vm485_vm0, %v6870_v5 }
 0x109   : > { %4568 = vmatmul.mubr.msk.f32.gmra.mxu1 %vm485_vm0, %v5581_v30  ;;  %6909 = vst [vmem:[#allocation5_spill] sm:$0xff] %v5936_v52  ;;  %v5974_v46 = vsel %vm1324_vm4, %v2262_v15, %v2263_v21 }
 0x10a   : > { %4570 = vmatprep.mubr.msk.f32.mxu1 %vm485_vm0, %v5587_v43  ;;  %v5940_v53 = vpop.f32.mrf.mxu0 }
 0x10b   : > { %4624 = vmatmul.mubr.msk.f32.gmra.mxu0 %vm485_vm0, %v5331_v56 }
 0x10c   : > { %v5946_v61 = vpop.f32.mrf.mxu0  ;;  %v5949_v34 = vpop.f32.mrf.mxu1  ;;  %4626 = vmatprep.mubr.msk.f32.mxu0 %vm485_vm0, %v5754_v28 }
 0x10d   : > { %4571 = vmatmul.mubr.msk.f32.gmra.mxu1 %vm485_vm0, %v5598_v62  ;;  %6910 = vst [vmem:[#allocation6_spill] sm:$0xff] %v5949_v34  ;;  %v2265_v34 = vrot.slane %v5766_v35, 2 }
 0x10e   : > { %4573 = vmatprep.mubr.msk.f32.mxu1 %vm485_vm0, %v5604_v8  ;;  %v5958_v5 = vpop.f32.mrf.mxu1  ;;  %v5960_v52 = vpop.f32.mrf.mxu0 }
 0x10f   : > { %6911 = vst [vmem:[#allocation9_spill] sm:$0xff] %v5958_v5  ;;  %4627 = vmatmul.mubr.msk.f32.gmra.mxu0 %vm485_vm0, %v5756_v44  ;;  %v5978_v5 = vld [vmem:[#allocation2 + $0x1a0] sm:$0xff]  ;;  %v5987_v35 = vsel %vm1324_vm4, %v2263_v21, %v2265_v34 }
 0x110   : > { %v5967_v56 = vpop.f32.mrf.mxu1  ;;  %v5971_v28 = vpop.f32.mrf.mxu0  ;;  %4629 = vmatprep.mubr.msk.f32.mxu0 %vm485_vm0, %v5962_v9  ;;  %6914 = vst [vmem:[#allocation14_spill] sm:$0xff] %v5987_v35 }
 0x111   : > { %4574 = vmatmul.mubr.msk.f32.gmra.mxu1 %vm485_vm0, %v5615_v22  ;;  %6912 = vst [vmem:[#allocation10_spill] sm:$0xff] %v5967_v56 }
 0x112   : > { %4576 = vmatprep.mubr.msk.f32.mxu1 %vm485_vm0, %v5621_v20  ;;  %v5982_v20 = vpop.f32.mrf.mxu1 }
 0x113   : > { %6913 = vst [vmem:[#allocation13_spill] sm:$0xff] %v5982_v20  ;;  %v5989_v44 = vpop.f32.mrf.mxu0  ;;  %4630 = vmatmul.mubr.msk.f32.gmra.mxu0 %vm485_vm0, %v5978_v5 }
 0x114   : > { %4684 = vmatprep.mubr.msk.f32.mxu0 %vm485_vm0, %v5391_v14 }
 0x115   : > { %4577 = vmatmul.mubr.msk.f32.gmra.mxu1 %vm485_vm0, %v5630_v54  ;;  %v5999_v20 = vpop.f32.mrf.mxu0 }
 0x116   : > { %4579 = vmatprep.mubr.msk.f32.mxu1 %vm485_vm0, %v5974_v46 }
 0x117   : > { %v4386_v21 = vpop.f32.mrf.mxu0  ;;  %4685 = vmatmul.mubr.msk.f32.vlgmr.msra.gmra.mxu0 %vm485_vm0, %v5405_v16 }
 0x118   : > { %4687 = vmatprep.mubr.msk.f32.mxu0 %vm485_vm0, %v5413_v24 }
 0x119   : > { %v5995_v15 = vpop.f32.mrf.mxu1  ;;  %4580 = vmatmul.mubr.msk.f32.gmra.mxu1 %vm485_vm0, %v5987_v35 }
 0x11a   : > { %6915 = vst [vmem:[#allocation21_spill] sm:$0xff] %v5995_v15  ;;  %4634 = vmatprep.mubr.msk.f32.mxu1 %vm485_vm0, %v6874_v36  ;;  %v1537_v15 = vpop.f32.mrf.mxu0 }
 0x11b   : > { %v6003_v34 = vpop.f32.mrf.mxu1  ;;  %4688 = vmatmul.mubr.msk.f32.gmra.mxu0 %vm485_vm0, %v5424_v31 }
 0x11c   : > { %6916 = vst [vmem:[#allocation37_spill] sm:$0xff] %v6003_v34  ;;  %v4389_v35 = vpop.f32.mrf.mxu0  ;;  %4690 = vmatprep.mubr.msk.f32.mxu0 %vm485_vm0, %v5427_v0 }
 0x11d   : > { %v4336_v14 = vpop.f32.mrf.mxu1  ;;  %4635 = vmatmul.mubr.msk.f32.vlgmr.msra.gmra.mxu1 %vm485_vm0, %v6875_v37 }
 0x11e   : > { %v1171_v56 = vadd.f32 %v4336_v14, %v5835_v7  ;;  %4637 = vmatprep.mubr.msk.f32.mxu1 %vm485_vm0, %v6876_v23  ;;  %v1547_v37 = vpop.f32.mrf.mxu0  ;;  %v6917_v14 = vld [vmem:[#allocation17_spill] sm:$0xff] }
 0x11f   : > { %v1165_v36 = vpop.f32.mrf.mxu1  ;;  %4691 = vmatmul.mubr.msk.f32.gmra.mxu0 %vm485_vm0, %v5443_v63 }
 0x120   : > { %v6016_v34 = vadd.f32 %v4386_v21, %v1171_v56  ;;  %v1166_v16 = vadd.f32 %v1165_v36, %v5845_v10  ;;  %v4392_v56 = vpop.f32.mrf.mxu0  ;;  %4693 = vmatprep.mubr.msk.f32.mxu0 %vm485_vm0, %v5449_v4 }
 0x121   : > { %v4339_v24 = vpop.f32.mrf.mxu1  ;;  %4638 = vmatmul.mubr.msk.f32.gmra.mxu1 %vm485_vm0, %v6877_v38 }
 0x122   : > { %v6023_v7 = vadd.f32 %v1537_v15, %v1166_v16  ;;  %v1181_v23 = vadd.f32 %v4339_v24, %v5856_v40  ;;  %4640 = vmatprep.mubr.msk.f32.mxu1 %vm485_vm0, %v6917_v14  ;;  %v6918_v15 = vld [vmem:[#allocation18_spill] sm:$0xff]  ;;  %v1557_v40 = vpop.f32.mrf.mxu0 }
 0x123   : > { %v1175_v31 = vpop.f32.mrf.mxu1  ;;  %4694 = vmatmul.mubr.msk.f32.gmra.mxu0 %vm485_vm0, %v5462_v25  ;;  %v6919_v24 = vld [vmem:[#allocation22_spill] sm:$0xff] }
 0x124   : > { %v6030_v10 = vadd.f32 %v4389_v35, %v1181_v23  ;;  %v1176_v0 = vadd.f32 %v1175_v31, %v5862_v26  ;;  %v4395_v35 = vpop.f32.mrf.mxu0  ;;  %4696 = vmatprep.mubr.msk.f32.mxu0 %vm485_vm0, %v5468_v60  ;;  %v6920_v23 = vld [vmem:[#allocation28_spill] sm:$0xff] }
 0x125   : > { %v4342_v38 = vpop.f32.mrf.mxu1  ;;  %4641 = vmatmul.mubr.msk.f32.gmra.mxu1 %vm485_vm0, %v6918_v15  ;;  %v6922_v15 = vld [vmem:[#allocation33_spill] sm:$0xff] }
 0x126   : > { %v6037_v21 = vadd.f32 %v1547_v37, %v1176_v0  ;;  %v1191_v36 = vadd.f32 %v4342_v38, %v5876_v6  ;;  %4643 = vmatprep.mubr.msk.f32.mxu1 %vm485_vm0, %v6880_v3  ;;  %v1567_v6 = vpop.f32.mrf.mxu0 }
 0x127   : > { %v1185_v63 = vpop.f32.mrf.mxu1  ;;  %4697 = vmatmul.mubr.msk.f32.gmra.mxu0 %vm485_vm0, %v5479_v50 }
 0x128   : > { %v6044_v26 = vadd.f32 %v4392_v56, %v1191_v36  ;;  %v1186_v4 = vadd.f32 %v1185_v63, %v5884_v45  ;;  %v4398_v14 = vpop.f32.mrf.mxu0  ;;  %4699 = vmatprep.mubr.msk.f32.mxu0 %vm485_vm0, %v5485_v41  ;;  %v6921_v56 = vld [vmem:[#allocation30_spill] sm:$0xff] }
 0x129   : > { %v4345_v16 = vpop.f32.mrf.mxu1  ;;  %4644 = vmatmul.mubr.msk.f32.gmra.mxu1 %vm485_vm0, %v6919_v24  ;;  %v6923_v63 = vld [vmem:[#allocation34_spill] sm:$0xff] }
 0x12a   : > { %v6051_v37 = vadd.f32 %v1557_v40, %v1186_v4  ;;  %v1201_v3 = vadd.f32 %v4345_v16, %v5892_v18  ;;  %4646 = vmatprep.mubr.msk.f32.mxu1 %vm485_vm0, %v6920_v23  ;;  %v1577_v18 = vpop.f32.mrf.mxu0  ;;  %v6924_v16 = vld [vmem:[#allocation3_spill] sm:$0xff] }
 0x12b   : > { %v1195_v25 = vpop.f32.mrf.mxu1  ;;  %4700 = vmatmul.mubr.msk.f32.gmra.mxu0 %vm485_vm0, %v5496_v13 }
 0x12c   : > { %v6058_v45 = vadd.f32 %v4395_v35, %v1201_v3  ;;  %v1196_v60 = vadd.f32 %v1195_v25, %v5904_v27  ;;  %v4401_v40 = vpop.f32.mrf.mxu0  ;;  %4702 = vmatprep.mubr.msk.f32.mxu0 %vm485_vm0, %v5502_v11  ;;  %v6925_v3 = vld [vmem:[#allocation4_spill] sm:$0xff] }
 0x12d   : > { %v4348_v31 = vpop.f32.mrf.mxu1  ;;  %4647 = vmatmul.mubr.msk.f32.gmra.mxu1 %vm485_vm0, %v6921_v56  ;;  %v6927_v56 = vld [vmem:[#allocation8_spill] sm:$0xff] }
 0x12e   : > { %v6065_v0 = vadd.f32 %v1567_v6, %v1196_v60  ;;  %v1211_v38 = vadd.f32 %v4348_v31, %v5916_v59  ;;  %4649 = vmatprep.mubr.msk.f32.mxu1 %vm485_vm0, %v6922_v15  ;;  %v1587_v59 = vpop.f32.mrf.mxu0  ;;  %v6928_v15 = vld [vmem:[#allocation11_spill] sm:$0xff] }
 0x12f   : > { %v1205_v50 = vpop.f32.mrf.mxu1  ;;  %4703 = vmatmul.mubr.msk.f32.gmra.mxu0 %vm485_vm0, %v6900_v1 }
 0x130   : > { %v6072_v27 = vadd.f32 %v4398_v14, %v1211_v38  ;;  %v1206_v41 = vadd.f32 %v1205_v50, %v5928_v55  ;;  %v4404_v24 = vpop.f32.mrf.mxu0  ;;  %4705 = vmatprep.mubr.msk.f32.mxu0 %vm485_vm0, %v6901_v49  ;;  %v6926_v14 = vld [vmem:[#allocation7_spill] sm:$0xff] }
 0x131   : > { %v4351_v36 = vpop.f32.mrf.mxu1  ;;  %4650 = vmatmul.mubr.msk.f32.gmra.mxu1 %vm485_vm0, %v6923_v63 }
 0x132   : > { %v6079_v35 = vadd.f32 %v1577_v18, %v1206_v41  ;;  %v1221_v4 = vadd.f32 %v4351_v36, %v5940_v53  ;;  %4652 = vmatprep.mubr.msk.f32.mxu1 %vm485_vm0, %v6924_v16  ;;  %v1597_v53 = vpop.f32.mrf.mxu0  ;;  %v6929_v41 = vld [vmem:[#allocation12_spill] sm:$0xff] }
 0x133   : > { %v1215_v13 = vpop.f32.mrf.mxu1  ;;  %4706 = vmatmul.mubr.msk.f32.gmra.mxu0 %vm485_vm0, %v6902_v29 }
 0x134   : > { %v6086_v55 = vadd.f32 %v4401_v40, %v1221_v4  ;;  %v1216_v11 = vadd.f32 %v1215_v13, %v5946_v61  ;;  %v4407_v60 = vpop.f32.mrf.mxu0  ;;  %4708 = vmatprep.mubr.msk.f32.mxu0 %vm485_vm0, %v6903_v47  ;;  %v6931_v13 = vld [vmem:[#allocation16_spill] sm:$0xff] }
 0x135   : > { %v4354_v6 = vpop.f32.mrf.mxu1  ;;  %4653 = vmatmul.mubr.msk.f32.gmra.mxu1 %vm485_vm0, %v6925_v3 }
 0x136   : > { %v6093_v23 = vadd.f32 %v1587_v59, %v1216_v11  ;;  %v1231_v25 = vadd.f32 %v4354_v6, %v5960_v52  ;;  %4655 = vmatprep.mubr.msk.f32.mxu1 %vm485_vm0, %v6926_v14  ;;  %v1607_v52 = vpop.f32.mrf.mxu0  ;;  %v6930_v59 = vld [vmem:[#allocation15_spill] sm:$0xff] }
 0x137   : > { %v1225_v1 = vpop.f32.mrf.mxu1  ;;  %4709 = vmatmul.mubr.msk.f32.gmra.mxu0 %vm485_vm0, %v6904_v42  ;;  %v6932_v6 = vld [vmem:[#allocation19_spill] sm:$0xff] }
 0x138   : > { %v6100_v61 = vadd.f32 %v4404_v24, %v1231_v25  ;;  %v1226_v49 = vadd.f32 %v1225_v1, %v5971_v28  ;;  %v4410_v50 = vpop.f32.mrf.mxu0  ;;  %4711 = vmatprep.mubr.msk.f32.mxu0 %vm485_vm0, %v6905_v32  ;;  %v6933_v25 = vld [vmem:[#allocation20_spill] sm:$0xff] }
 0x139   : > { %v4357_v31 = vpop.f32.mrf.mxu1  ;;  %4656 = vmatmul.mubr.msk.f32.gmra.mxu1 %vm485_vm0, %v6927_v56  ;;  %v6935_v56 = vld [vmem:[#allocation25_spill] sm:$0xff] }
 0x13a   : > { %v6107_v18 = vadd.f32 %v1597_v53, %v1226_v49  ;;  %v1241_v38 = vadd.f32 %v4357_v31, %v5989_v44  ;;  %4658 = vmatprep.mubr.msk.f32.mxu1 %vm485_vm0, %v6928_v15  ;;  %v1617_v44 = vpop.f32.mrf.mxu0  ;;  %v6936_v15 = vld [vmem:[#allocation29_spill] sm:$0xff] }
 0x13b   : > { %v1235_v29 = vpop.f32.mrf.mxu1  ;;  %4712 = vmatmul.mubr.msk.f32.gmra.mxu0 %vm485_vm0, %v6906_v2 }
 0x13c   : > { %v6114_v28 = vadd.f32 %v4407_v60, %v1241_v38  ;;  %v1236_v47 = vadd.f32 %v1235_v29, %v5999_v20  ;;  %v4413_v4 = vpop.f32.mrf.mxu0  ;;  %4714 = vmatprep.mubr.msk.f32.mxu0 %vm485_vm0, %v6907_v58  ;;  %v6934_v60 = vld [vmem:[#allocation24_spill] sm:$0xff] }
 0x13d   : > { %v4360_v40 = vpop.f32.mrf.mxu1  ;;  %4659 = vmatmul.mubr.msk.f32.gmra.mxu1 %vm485_vm0, %v6929_v41  ;;  %v6938_v41 = vld [vmem:[#allocation31_spill] sm:$0xff] }
 0x13e   : > { %v6121_v36 = vadd.f32 %v1607_v52, %v1236_v47  ;;  %v1251_v63 = vadd.f32 %v4360_v40, %v5852_v33  ;;  %4661 = vmatprep.mubr.msk.f32.mxu1 %vm485_vm0, %v6930_v59  ;;  %v1627_v33 = vpop.f32.mrf.mxu0  ;;  %v3064_v47 = vrot.slane %v5962_v9, 2  ;;  %v3065_v40 = vrot.slane %v5978_v5, 2 }
 0x13f   : > { %v1245_v42 = vpop.f32.mrf.mxu1  ;;  %4715 = vmatmul.mubr.msk.f32.gmra.mxu0 %vm485_vm0, %v5581_v30 }
 0x140   : > { %v6128_v20 = vadd.f32 %v4410_v50, %v1251_v63  ;;  %v1246_v32 = vadd.f32 %v1245_v42, %v5859_v12  ;;  %v4416_v3 = vpop.f32.mrf.mxu0  ;;  %4717 = vmatprep.mubr.msk.f32.mxu0 %vm485_vm0, %v5587_v43  ;;  %v6937_v50 = vld [vmem:[#allocation23_spill] sm:$0xff]  ;;  %v613_v63 = vld [vmem:[#allocation2 + $0x1a8] sm:$0x3] }
 0x141   : > { %v4363_v16 = vpop.f32.mrf.mxu1  ;;  %4662 = vmatmul.mubr.msk.f32.gmra.mxu1 %vm485_vm0, %v6931_v13 }
 0x142   : > { %v6135_v24 = vadd.f32 %v1617_v44, %v1246_v32  ;;  %v1261_v11 = vadd.f32 %v4363_v16, %v5866_v39  ;;  %4664 = vmatprep.mubr.msk.f32.mxu1 %vm485_vm0, %v6932_v6  ;;  %v1637_v39 = vpop.f32.mrf.mxu0  ;;  %v2797_v32 = vrot.slane %v5978_v5, 1  ;;  %v3066_v5 = vsel %vm1324_vm4, %v3064_v47, %v3065_v40 }
 0x143   : > { %v1255_v2 = vpop.f32.mrf.mxu1  ;;  %4718 = vmatmul.mubr.msk.f32.gmra.mxu0 %vm485_vm0, %v5598_v62 }
 0x144   : > { %v6142_v12 = vadd.f32 %v4413_v4, %v1261_v11  ;;  %v1256_v58 = vadd.f32 %v1255_v2, %v5872_v17  ;;  %v4419_v49 = vpop.f32.mrf.mxu0  ;;  %4720 = vmatprep.mubr.msk.f32.mxu0 %vm485_vm0, %v5604_v8  ;;  %v6940_v4 = vld [vmem:[#allocation35_spill] sm:$0xff]  ;;  %v6941_v11 = vld [vmem:[#allocation5_spill] sm:$0xff]  ;;  %v3067_v2 = vrot.slane %v613_v63, 2 }
 0x145   : > { %v4366_v53 = vpop.f32.mrf.mxu1  ;;  %4665 = vmatmul.mubr.msk.f32.gmra.mxu1 %vm485_vm0, %v6933_v25  ;;  %v6943_v25 = vld [vmem:[#allocation6_spill] sm:$0xff] }
 0x146   : > { %v6149_v14 = vadd.f32 %v1627_v33, %v1256_v58  ;;  %v1271_v1 = vadd.f32 %v4366_v53, %v5880_v57  ;;  %4667 = vmatprep.mubr.msk.f32.mxu1 %vm485_vm0, %v6934_v60  ;;  %v1647_v57 = vpop.f32.mrf.mxu0  ;;  %v6942_v58 = vld [vmem:[#allocation36_spill] sm:$0xff] }
 0x147   : > { %v1265_v30 = vpop.f32.mrf.mxu1  ;;  %4721 = vmatmul.mubr.msk.f32.gmra.mxu0 %vm485_vm0, %v5615_v22  ;;  %v6939_v22 = vld [vmem:[#allocation32_spill] sm:$0xff] }
 0x148   : > { %v6156_v17 = vadd.f32 %v4416_v3, %v1271_v1  ;;  %v1266_v43 = vadd.f32 %v1265_v30, %v5890_v51  ;;  %v4422_v29 = vpop.f32.mrf.mxu0  ;;  %4723 = vmatprep.mubr.msk.f32.mxu0 %vm485_vm0, %v6937_v50  ;;  %v2799_v1 = vrot.slane %v613_v63, 1 }
 0x149   : > { %v4369_v31 = vpop.f32.mrf.mxu1  ;;  %4668 = vmatmul.mubr.msk.f32.gmra.mxu1 %vm485_vm0, %v6935_v56 }
 0x14a   : > { %v6163_v52 = vadd.f32 %v1637_v39, %v1266_v43  ;;  %v1281_v38 = vadd.f32 %v4369_v31, %v5902_v19  ;;  %4670 = vmatprep.mubr.msk.f32.mxu1 %vm485_vm0, %v6936_v15  ;;  %v1657_v44 = vpop.f32.mrf.mxu0  ;;  %v6946_v31 = vld [vmem:[#allocation9_spill] sm:$0xff]  ;;  %v6947_v15 = vld [vmem:[#allocation27_spill] sm:$0xff]  ;;  %v2800_v47 = vsel %vm663_vm3, %v2797_v32, %v2799_v1 }
 0x14b   : > { %v1275_v62 = vpop.f32.mrf.mxu1  ;;  %4724 = vmatmul.mubr.msk.f32.gmra.mxu0 %vm485_vm0, %v5630_v54  ;;  %v6944_v54 = vld [vmem:[#allocation26_spill] sm:$0xff] }
 0x14c   : > { %v6170_v51 = vadd.f32 %v4419_v49, %v1281_v38  ;;  %v1276_v8 = vadd.f32 %v1275_v62, %v5914_v48  ;;  %v2796_v48 = vrot.slane %v5962_v9, 1  ;;  %v4425_v13 = vpop.f32.mrf.mxu0  ;;  %4726 = vmatprep.mubr.msk.f32.mxu0 %vm485_vm0, %v5974_v46  ;;  %v6945_v49 = vld [vmem:[#allocation14_spill] sm:$0xff] }
 0x14d   : > { %v4372_v19 = vpop.f32.mrf.mxu1  ;;  %4671 = vmatmul.mubr.msk.f32.gmra.mxu1 %vm485_vm0, %v6938_v41 }
 0x14e   : > { %v6179_v59 = vadd.f32 %v1647_v57, %v1276_v8  ;;  %v1291_v42 = vadd.f32 %v4372_v19, %v6939_v22  ;;  %4673 = vmatprep.mubr.msk.f32.mxu1 %vm485_vm0, %v6940_v4  ;;  %v1667_v9 = vpop.f32.mrf.mxu0  ;;  %v2798_v46 = vsel %vm663_vm3, %v2796_v48, %v2797_v32  ;;  %v3068_v57 = vsel %vm1324_vm4, %v3065_v40, %v3067_v2  ;;  %v6948_v8 = vld [vmem:[#allocation10_spill] sm:$0xff]  ;;  %v6949_v40 = vld [vmem:[#allocation13_spill] sm:$0xff] }
 0x14f   : > { %v1285_v16 = vpop.f32.mrf.mxu1  ;;  %4727 = vmatmul.mubr.msk.f32.gmra.mxu0 %vm485_vm0, %v6945_v49  ;;  %v6950_v48 = vld [vmem:[#allocation21_spill] sm:$0xff] }
 0x150   : > { %v6188_v33 = vadd.f32 %v4422_v29, %v1291_v42  ;;  %v1286_v6 = vadd.f32 %v1285_v16, %v6941_v11  ;;  %v4428_v30 = vpop.f32.mrf.mxu0  ;;  %4729 = vmatprep.mubr.msk.f32.mxu0 %vm485_vm0, %v3066_v5  ;;  %v6951_v32 = vld [vmem:[#allocation37_spill] sm:$0xff] }
 0x151   : > { %v4375_v3 = vpop.f32.mrf.mxu1  ;;  %4674 = vmatmul.mubr.msk.f32.gmra.mxu1 %vm485_vm0, %v6942_v58 }
 0x152   : > { %v6196_v53 = vadd.f32 %v1657_v44, %v1286_v6  ;;  %v1301_v39 = vadd.f32 %v4375_v3, %v6943_v25  ;;  %4676 = vmatprep.mubr.msk.f32.mxu1 %vm485_vm0, %v6944_v54  ;;  %v1677_v62 = vpop.f32.mrf.mxu0 }
 0x153   : > { %v1295_v60 = vpop.f32.mrf.mxu1  ;;  %4730 = vmatmul.mubr.msk.f32.gmra.mxu0 %vm485_vm0, %v3068_v57 }
 0x154   : > { %v6204_v43 = vadd.f32 %v4425_v13, %v1301_v39  ;;  %v1296_v56 = vadd.f32 %v1295_v60, %v6946_v31  ;;  %v4431_v41 = vpop.f32.mrf.mxu0 }
 0x155   : > { %v4378_v38 = vpop.f32.mrf.mxu1  ;;  %4677 = vmatmul.mubr.msk.f32.gmra.mxu1 %vm485_vm0, %v6947_v15 }
 0x156   : > { %v6211_v29 = vadd.f32 %v1667_v9, %v1296_v56  ;;  %v1311_v50 = vadd.f32 %v4378_v38, %v6948_v8  ;;  %4679 = vmatprep.mubr.msk.f32.mxu1 %vm485_vm0, %v2798_v46  ;;  %v1687_v42 = vpop.f32.mrf.mxu0 }
 0x157   : > { %v1305_v19 = vpop.f32.mrf.mxu1 }
 0x158   : > { %v6217_v44 = vadd.f32 %v4428_v30, %v1311_v50  ;;  %v1306_v63 = vadd.f32 %v1305_v19, %v6949_v40  ;;  %v4486_v11 = vpop.f32.mrf.mxu0 }
 0x159   : > { %v4381_v22 = vpop.f32.mrf.mxu1  ;;  %4680 = vmatmul.mubr.msk.f32.gmra.mxu1 %vm485_vm0, %v2800_v47 }
 0x15a   : > { %v6221_v4 = vadd.f32 %v1677_v62, %v1306_v63  ;;  %v1321_v16 = vadd.f32 %v4381_v22, %v6950_v48  ;;  %v2071_v58 = vpop.f32.mrf.mxu0 }
 0x15b   : > { %v1315_v13 = vpop.f32.mrf.mxu1 }
 0x15c   : > { %v6224_v6 = vadd.f32 %v4431_v41, %v1321_v16  ;;  %v1316_v2 = vadd.f32 %v1315_v13, %v6951_v32  ;;  %v4489_v39 = vpop.f32.mrf.mxu0 }
 0x15d   : > { %v4436_v3 = vpop.f32.mrf.mxu1 }
 0x15e   : > { %v6227_v9 = vadd.f32 %v1687_v42, %v1316_v2  ;;  %v1962_v5 = vadd.f32 %v4436_v3, %v6016_v34  ;;  %v2081_v30 = vpop.f32.mrf.mxu0 }
 0x15f   : > { %v1802_v25 = vpop.f32.mrf.mxu1 }
 0x160   : > { %v6230_v54 = vadd.f32 %v4486_v11, %v1962_v5  ;;  %v1961_v1 = vadd.f32 %v1802_v25, %v6023_v7  ;;  %v4492_v56 = vpop.f32.mrf.mxu0 }
 0x161   : > { %v4439_v60 = vpop.f32.mrf.mxu1 }
 0x162   : > { %v6233_v49 = vadd.f32 %v2071_v58, %v1961_v1  ;;  %v1964_v46 = vadd.f32 %v4439_v60, %v6030_v10  ;;  %v2091_v34 = vpop.f32.mrf.mxu0 }
 0x163   : > { %v1812_v31 = vpop.f32.mrf.mxu1 }
 0x164   : > { %v6236_v57 = vadd.f32 %v4489_v39, %v1964_v46  ;;  %v1963_v38 = vadd.f32 %v1812_v31, %v6037_v21  ;;  %v4495_v7 = vpop.f32.mrf.mxu0 }
 0x165   : > { %v4442_v15 = vpop.f32.mrf.mxu1 }
 0x166   : > { %v6239_v62 = vadd.f32 %v2081_v30, %v1963_v38  ;;  %v1966_v8 = vadd.f32 %v4442_v15, %v6044_v26  ;;  %v2101_v10 = vpop.f32.mrf.mxu0 }
 0x167   : > { %v1822_v50 = vpop.f32.mrf.mxu1 }
 0x168   : > { %v6242_v47 = vadd.f32 %v4492_v56, %v1966_v8  ;;  %v1965_v19 = vadd.f32 %v1822_v50, %v6051_v37  ;;  %v4498_v21 = vpop.f32.mrf.mxu0 }
 0x169   : > { %v4445_v41 = vpop.f32.mrf.mxu1 }
 0x16a   : > { %v6245_v40 = vadd.f32 %v2091_v34, %v1965_v19  ;;  %v1968_v63 = vadd.f32 %v4445_v41, %v6058_v45  ;;  %v2111_v26 = vpop.f32.mrf.mxu0 }
 0x16b   : > { %v1832_v22 = vpop.f32.mrf.mxu1 }
 0x16c   : > { %v6248_v42 = vadd.f32 %v4495_v7, %v1968_v63  ;;  %v1967_v48 = vadd.f32 %v1832_v22, %v6065_v0  ;;  %v4501_v37 = vpop.f32.mrf.mxu0 }
 0x16d   : > { %v4448_v16 = vpop.f32.mrf.mxu1 }
 0x16e   : > { %v6251_v13 = vadd.f32 %v2101_v10, %v1967_v48  ;;  %v1970_v11 = vadd.f32 %v4448_v16, %v6072_v27  ;;  %v2121_v45 = vpop.f32.mrf.mxu0 }
 0x16f   : > { %v1842_v32 = vpop.f32.mrf.mxu1 }
 0x170   : > { %v6254_v2 = vadd.f32 %v4498_v21, %v1970_v11  ;;  %v1969_v3 = vadd.f32 %v1842_v32, %v6079_v35  ;;  %v4504_v0 = vpop.f32.mrf.mxu0 }
 0x171   : > { %v4451_v58 = vpop.f32.mrf.mxu1 }
 0x172   : > { %v6257_v5 = vadd.f32 %v2111_v26, %v1969_v3  ;;  %v1972_v25 = vadd.f32 %v4451_v58, %v6086_v55  ;;  %v2131_v27 = vpop.f32.mrf.mxu0 }
 0x173   : > { %v1852_v39 = vpop.f32.mrf.mxu1 }
 0x174   : > { %v6260_v1 = vadd.f32 %v4501_v37, %v1972_v25  ;;  %v1971_v60 = vadd.f32 %v1852_v39, %v6093_v23  ;;  %v4507_v35 = vpop.f32.mrf.mxu0 }
 0x175   : > { %v4454_v30 = vpop.f32.mrf.mxu1 }
 0x176   : > { %v6263_v46 = vadd.f32 %v2121_v45, %v1971_v60  ;;  %v1974_v31 = vadd.f32 %v4454_v30, %v6100_v61  ;;  %v2141_v55 = vpop.f32.mrf.mxu0 }
 0x177   : > { %v1862_v56 = vpop.f32.mrf.mxu1 }
 0x178   : > { %v6266_v38 = vadd.f32 %v4504_v0, %v1974_v31  ;;  %v1973_v15 = vadd.f32 %v1862_v56, %v6107_v18  ;;  %v4510_v23 = vpop.f32.mrf.mxu0 }
 0x179   : > { %v4457_v34 = vpop.f32.mrf.mxu1 }
 0x17a   : > { %v6269_v8 = vadd.f32 %v2131_v27, %v1973_v15  ;;  %v1976_v50 = vadd.f32 %v4457_v34, %v6114_v28  ;;  %v2151_v61 = vpop.f32.mrf.mxu0 }
 0x17b   : > { %v1872_v7 = vpop.f32.mrf.mxu1 }
 0x17c   : > { %v6272_v19 = vadd.f32 %v4507_v35, %v1976_v50  ;;  %v1975_v41 = vadd.f32 %v1872_v7, %v6121_v36  ;;  %v4513_v18 = vpop.f32.mrf.mxu0 }
 0x17d   : > { %v4460_v10 = vpop.f32.mrf.mxu1 }
 0x17e   : > { %v6275_v63 = vadd.f32 %v2141_v55, %v1975_v41  ;;  %v1978_v22 = vadd.f32 %v4460_v10, %v6128_v20  ;;  %v2161_v28 = vpop.f32.mrf.mxu0 }
 0x17f   : > { %v1882_v21 = vpop.f32.mrf.mxu1 }
 0x180   : > { %v6278_v48 = vadd.f32 %v4510_v23, %v1978_v22  ;;  %v1977_v16 = vadd.f32 %v1882_v21, %v6135_v24  ;;  %v4516_v36 = vpop.f32.mrf.mxu0 }
 0x181   : > { %v4463_v26 = vpop.f32.mrf.mxu1 }
 0x182   : > { %6952 = vst [vmem:[#allocation38_spill] sm:$0xff] %v6278_v48  ;;  %v6281_v11 = vadd.f32 %v2151_v61, %v1977_v16  ;;  %v1980_v32 = vadd.f32 %v4463_v26, %v6142_v12  ;;  %v2171_v20 = vpop.f32.mrf.mxu0 }
 0x183   : > { %v1892_v37 = vpop.f32.mrf.mxu1 }
 0x184   : > { %6953 = vst [vmem:[#allocation39_spill] sm:$0xff] %v6281_v11  ;;  %v6284_v3 = vadd.f32 %v4513_v18, %v1980_v32  ;;  %v1979_v58 = vadd.f32 %v1892_v37, %v6149_v14  ;;  %v4519_v24 = vpop.f32.mrf.mxu0 }
 0x185   : > { %v4466_v45 = vpop.f32.mrf.mxu1 }
 0x186   : > { %6954 = vst [vmem:[#allocation40_spill] sm:$0xff] %v6284_v3  ;;  %v6287_v25 = vadd.f32 %v2161_v28, %v1979_v58  ;;  %v1982_v39 = vadd.f32 %v4466_v45, %v6156_v17  ;;  %v2181_v12 = vpop.f32.mrf.mxu0 }
 0x187   : > { %v1902_v0 = vpop.f32.mrf.mxu1 }
 0x188   : > { %6955 = vst [vmem:[#allocation41_spill] sm:$0xff] %v6287_v25  ;;  %v6290_v60 = vadd.f32 %v4516_v36, %v1982_v39  ;;  %v1981_v30 = vadd.f32 %v1902_v0, %v6163_v52  ;;  %v4522_v14 = vpop.f32.mrf.mxu0 }
 0x189   : > { %v4469_v27 = vpop.f32.mrf.mxu1 }
 0x18a   : > { %6956 = vst [vmem:[#allocation42_spill] sm:$0xff] %v6290_v60  ;;  %v6293_v31 = vadd.f32 %v2171_v20, %v1981_v30  ;;  %v1984_v56 = vadd.f32 %v4469_v27, %v6170_v51  ;;  %v2191_v17 = vpop.f32.mrf.mxu0 }
 0x18b   : > { %v1912_v35 = vpop.f32.mrf.mxu1 }
 0x18c   : > { %6957 = vst [vmem:[#allocation43_spill] sm:$0xff] %v6293_v31  ;;  %v6296_v15 = vadd.f32 %v4519_v24, %v1984_v56  ;;  %v1983_v34 = vadd.f32 %v1912_v35, %v6179_v59  ;;  %v4525_v52 = vpop.f32.mrf.mxu0 }
 0x18d   : > { %v4472_v55 = vpop.f32.mrf.mxu1 }
 0x18e   : > { %6958 = vst [vmem:[#allocation44_spill] sm:$0xff] %v6296_v15  ;;  %v6299_v50 = vadd.f32 %v2181_v12, %v1983_v34  ;;  %v1986_v7 = vadd.f32 %v4472_v55, %v6188_v33  ;;  %v2201_v51 = vpop.f32.mrf.mxu0 }
 0x18f   : > { %v1922_v23 = vpop.f32.mrf.mxu1 }
 0x190   : > { %6959 = vst [vmem:[#allocation17_spill] sm:$0xff] %v6299_v50  ;;  %v6302_v41 = vadd.f32 %v4522_v14, %v1986_v7  ;;  %v1985_v10 = vadd.f32 %v1922_v23, %v6196_v53  ;;  %v4528_v59 = vpop.f32.mrf.mxu0 }
 0x191   : > { %v4475_v61 = vpop.f32.mrf.mxu1 }
 0x192   : > { %6960 = vst [vmem:[#allocation18_spill] sm:$0xff] %v6302_v41  ;;  %v6305_v22 = vadd.f32 %v2191_v17, %v1985_v10  ;;  %v1988_v21 = vadd.f32 %v4475_v61, %v6204_v43  ;;  %v2211_v33 = vpop.f32.mrf.mxu0 }
 0x193   : > { %v1932_v18 = vpop.f32.mrf.mxu1 }
 0x194   : > { %6961 = vst [vmem:[#allocation22_spill] sm:$0xff] %v6305_v22  ;;  %v6308_v16 = vadd.f32 %v4525_v52, %v1988_v21  ;;  %v1987_v26 = vadd.f32 %v1932_v18, %v6211_v29  ;;  %v4531_v53 = vpop.f32.mrf.mxu0 }
 0x195   : > { %v4478_v28 = vpop.f32.mrf.mxu1 }
 0x196   : > { %6962 = vst [vmem:[#allocation28_spill] sm:$0xff] %v6308_v16  ;;  %v6311_v32 = vadd.f32 %v2201_v51, %v1987_v26  ;;  %v1990_v37 = vadd.f32 %v4478_v28, %v6217_v44  ;;  %v2221_v43 = vpop.f32.mrf.mxu0 }
 0x197   : > { %v1942_v36 = vpop.f32.mrf.mxu1 }
 0x198   : > { %6963 = vst [vmem:[#allocation30_spill] sm:$0xff] %v6311_v32  ;;  %v6314_v58 = vadd.f32 %v4528_v59, %v1990_v37  ;;  %v1989_v45 = vadd.f32 %v1942_v36, %v6221_v4  ;;  %v6320_v29 = vpop.f32.mrf.mxu0 }
 0x199   : > { %v4481_v20 = vpop.f32.mrf.mxu1 }
 0x19a   : > { %6964 = vst [vmem:[#allocation33_spill] sm:$0xff] %v6314_v58  ;;  %v6317_v39 = vadd.f32 %v2211_v33, %v1989_v45  ;;  %v1992_v0 = vadd.f32 %v4481_v20, %v6224_v6  ;;  %v6325_v12 = vpop.f32.mrf.mxu0 }
 0x19b   : > { %v1952_v24 = vpop.f32.mrf.mxu1 }
 0x19c   : > { %6965 = vst [vmem:[#allocation34_spill] sm:$0xff] %v6317_v39  ;;  %v6322_v30 = vadd.f32 %v4531_v53, %v1992_v0  ;;  %v1991_v27 = vadd.f32 %v1952_v24, %v6227_v9  ;;  %v6329_v4 = vpop.f32.mrf.mxu0 }
 0x19d   : > { %v4536_v44 = vpop.f32.mrf.mxu1 }
 0x19e   : > { %6966 = vst [vmem:[#allocation3_spill] sm:$0xff] %v6322_v30  ;;  %v6327_v56 = vadd.f32 %v2221_v43, %v1991_v27  ;;  %v6331_v34 = vpop.f32.mrf.mxu0 }
 0x19f   : > { %v2339_v35 = vpop.f32.mrf.mxu1 }
 0x1a0   : > { %6967 = vst [vmem:[#allocation4_spill] sm:$0xff] %v6327_v56  ;;  %v6333_v6 = vpop.f32.mrf.mxu0 }
 0x1a1   : > { %v4539_v14 = vpop.f32.mrf.mxu1 }
 0x1a2   : > { %v6335_v7 = vpop.f32.mrf.mxu0 }
 0x1a3   : > { %v2349_v55 = vpop.f32.mrf.mxu1 }
 0x1a4   : > { %v6337_v52 = vpop.f32.mrf.mxu0 }
 0x1a5   : > { %v4542_v17 = vpop.f32.mrf.mxu1 }
 0x1a6   : > { %v6339_v10 = vpop.f32.mrf.mxu0 }
 0x1a7   : > { %v2359_v23 = vpop.f32.mrf.mxu1 }
 0x1a8   : > { %v6341_v51 = vpop.f32.mrf.mxu0 }
 0x1a9   : > { %v4545_v9 = vpop.f32.mrf.mxu1 }
 0x1aa   : > { %v6343_v18 = vpop.f32.mrf.mxu0 }
 0x1ab   : > { %v2369_v61 = vpop.f32.mrf.mxu1 }
 0x1ac   : > { %v6345_v26 = vpop.f32.mrf.mxu0 }
 0x1ad   : > { %v4548_v21 = vpop.f32.mrf.mxu1 }
 0x1ae   : > { %v6347_v33 = vpop.f32.mrf.mxu0 }
 0x1af   : > { %v2379_v59 = vpop.f32.mrf.mxu1  ;;  %6968 = vst [vmem:[#allocation7_spill] sm:$0xff] %v6347_v33  ;;  %v2500_v33 = vadd.f32 %v2349_v55, %v6239_v62 }
 0x1b0   : > { %v6349_v36 = vpop.f32.mrf.mxu0 }
 0x1b1   : > { %v4551_v28 = vpop.f32.mrf.mxu1  ;;  %6969 = vst [vmem:[#allocation8_spill] sm:$0xff] %v6349_v36 }
 0x1b2   : > { %v6351_v45 = vpop.f32.mrf.mxu0  ;;  %v2509_v62 = vadd.f32 %v4551_v28, %v6260_v1  ;;  %v6994_v28 = vld [vmem:[#allocation43_spill] sm:$0xff] }
 0x1b3   : > { %v2389_v37 = vpop.f32.mrf.mxu1  ;;  %6970 = vst [vmem:[#allocation11_spill] sm:$0xff] %v6351_v45 }
 0x1b4   : > { %v6353_v43 = vpop.f32.mrf.mxu0 }
 0x1b5   : > { %v4554_v53 = vpop.f32.mrf.mxu1  ;;  %6971 = vst [vmem:[#allocation12_spill] sm:$0xff] %v6353_v43 }
 0x1b6   : > { %v6355_v24 = vpop.f32.mrf.mxu0 }
 0x1b7   : > { %v2399_v20 = vpop.f32.mrf.mxu1  ;;  %6972 = vst [vmem:[#allocation15_spill] sm:$0xff] %v6355_v24 }
 0x1b8   : > { %v6357_v56 = vpop.f32.mrf.mxu0  ;;  %v2510_v1 = vadd.f32 %v2399_v20, %v6269_v8  ;;  %v6438_v8 = vadd.f32 %v6345_v26, %v2509_v62  ;;  %v6993_v26 = vld [vmem:[#allocation42_spill] sm:$0xff] }
 0x1b9   : > { %v4557_v0 = vpop.f32.mrf.mxu1  ;;  %6973 = vst [vmem:[#allocation16_spill] sm:$0xff] %v6357_v56 }
 0x1ba   : > { %v6359_v39 = vpop.f32.mrf.mxu0 }
 0x1bb   : > { %v2409_v27 = vpop.f32.mrf.mxu1  ;;  %6974 = vst [vmem:[#allocation19_spill] sm:$0xff] %v6359_v39 }
 0x1bc   : > { %v6361_v32 = vpop.f32.mrf.mxu0  ;;  %v6995_v20 = vld [vmem:[#allocation12_spill] sm:$0xff] }
 0x1bd   : > { %v4560_v30 = vpop.f32.mrf.mxu1  ;;  %6975 = vst [vmem:[#allocation20_spill] sm:$0xff] %v6361_v32 }
 0x1be   : > { %v6363_v22 = vpop.f32.mrf.mxu0 }
 0x1bf   : > { %v2419_v58 = vpop.f32.mrf.mxu1  ;;  %6976 = vst [vmem:[#allocation24_spill] sm:$0xff] %v6363_v22 }
 0x1c0   : > { %v6365_v50 = vpop.f32.mrf.mxu0 }
 0x1c1   : > { %v4563_v16 = vpop.f32.mrf.mxu1  ;;  %6977 = vst [vmem:[#allocation25_spill] sm:$0xff] %v6365_v50 }
 0x1c2   : > { %v6367_v43 = vpop.f32.mrf.mxu0 }
 0x1c3   : > { %v2429_v41 = vpop.f32.mrf.mxu1  ;;  %6978 = vst [vmem:[#allocation29_spill] sm:$0xff] %v6367_v43  ;;  %v2499_v43 = vadd.f32 %v4536_v44, %v6230_v54  ;;  %v2505_v54 = vadd.f32 %v4545_v9, %v6248_v42  ;;  %v2504_v44 = vadd.f32 %v2369_v61, %v6251_v13  ;;  %v2508_v42 = vadd.f32 %v2389_v37, %v6263_v46 }
 0x1c4   : > { %v6369_v24 = vpop.f32.mrf.mxu0  ;;  %v2511_v13 = vadd.f32 %v4554_v53, %v6266_v38  ;;  %v2513_v38 = vadd.f32 %v4557_v0, %v6272_v19  ;;  %v6988_v19 = vld [vmem:[#allocation8_spill] sm:$0xff]  ;;  %v6996_v0 = vld [vmem:[#allocation15_spill] sm:$0xff] }
 0x1c5   : > { %v4566_v15 = vpop.f32.mrf.mxu1  ;;  %6979 = vst [vmem:[#allocation23_spill] sm:$0xff] %v6369_v24  ;;  %v6427_v46 = vadd.f32 %v6339_v10, %v2504_v44  ;;  %v6990_v10 = vld [vmem:[#allocation40_spill] sm:$0xff] }
 0x1c6   : > { %v6371_v56 = vpop.f32.mrf.mxu0  ;;  %v2517_v61 = vadd.f32 %v4563_v16, %v6990_v10  ;;  %v6998_v44 = vld [vmem:[#allocation16_spill] sm:$0xff] }
 0x1c7   : > { %v2439_v31 = vpop.f32.mrf.mxu1  ;;  %6980 = vst [vmem:[#allocation31_spill] sm:$0xff] %v6371_v56  ;;  %v2498_v56 = vadd.f32 %v2339_v35, %v6233_v49  ;;  %v2507_v49 = vadd.f32 %v4548_v21, %v6254_v2 }
 0x1c8   : > { %v6373_v39 = vpop.f32.mrf.mxu0 }
 0x1c9   : > { %v4569_v60 = vpop.f32.mrf.mxu1  ;;  %6981 = vst [vmem:[#allocation32_spill] sm:$0xff] %v6373_v39  ;;  %v2501_v39 = vadd.f32 %v4539_v14, %v6236_v57  ;;  %v2506_v57 = vadd.f32 %v2379_v59, %v6257_v5 }
 0x1ca   : > { %v6375_v32 = vpop.f32.mrf.mxu0 }
 0x1cb   : > { %v2449_v25 = vpop.f32.mrf.mxu1  ;;  %6982 = vst [vmem:[#allocation35_spill] sm:$0xff] %v6375_v32  ;;  %v2503_v32 = vadd.f32 %v4542_v17, %v6242_v47  ;;  %v2766_v14 = vadd.f32 %v6329_v4, %v2501_v39  ;;  %v6424_v39 = vadd.f32 %v6337_v52, %v2505_v54  ;;  %v6447_v52 = vadd.f32 %v6988_v19, %v2511_v13  ;;  %v6473_v13 = vld [vmem:[%s6740_s5] ss:$0 sm:$0xff] }
 0x1cc   : > { %v6377_v22 = vpop.f32.mrf.mxu0 }
 0x1cd   : > { %v4572_v45 = vpop.f32.mrf.mxu1  ;;  %6983 = vst [vmem:[#allocation5_spill] sm:$0xff] %v6377_v22  ;;  %v2502_v22 = vadd.f32 %v2359_v23, %v6245_v40  ;;  %v2763_v40 = vadd.f32 %v6325_v12, %v2498_v56  ;;  %v6415_v2 = vadd.f32 %v6333_v6, %v2503_v32  ;;  %v2512_v12 = vadd.f32 %v2409_v27, %v6275_v63  ;;  %v6986_v56 = vld [vmem:[#allocation38_spill] sm:$0xff]  ;;  %v6989_v63 = vld [vmem:[#allocation39_spill] sm:$0xff] }
 0x1ce   : > { %v6381_v50 = vpop.f32.mrf.mxu0  ;;  %v6432_v32 = vadd.f32 %v6341_v51, %v2507_v49  ;;  %v2515_v4 = vadd.f32 %v4560_v30, %v6986_v56  ;;  %v2514_v9 = vadd.f32 %v2419_v58, %v6989_v63  ;;  %v6991_v51 = vld [vmem:[#allocation11_spill] sm:$0xff]  ;;  %v2519_v30 = vadd.f32 %v4566_v15, %v6993_v26  ;;  %v6997_v58 = vld [vmem:[#allocation44_spill] sm:$0xff]  ;;  %v7000_v15 = vld [vmem:[#allocation18_spill] sm:$0xff] }
 0x1cf   : > { %v2459_v3 = vpop.f32.mrf.mxu1  ;;  %v6418_v5 = vadd.f32 %v6335_v7, %v2502_v22  ;;  %v6435_v22 = vadd.f32 %v6343_v18, %v2506_v57  ;;  %v6987_v7 = vld [vmem:[#allocation7_spill] sm:$0xff]  ;;  %v6452_v21 = vadd.f32 %v6991_v51, %v2510_v1  ;;  %v6992_v18 = vld [vmem:[#allocation41_spill] sm:$0xff]  ;;  %v6461_v27 = vadd.f32 %v6996_v0, %v2512_v12  ;;  %v7007_v51 = vld [vmem:[#allocation28_spill] sm:$0xff] }
 0x1d0   : > { %v6386_v24 = vpop.f32.mrf.mxu0  ;;  %v6444_v23 = vadd.f32 %v6987_v7, %v2508_v42  ;;  %v2516_v59 = vadd.f32 %v2429_v41, %v6992_v18  ;;  %v2521_v54 = vadd.f32 %v4569_v60, %v6997_v58  ;;  %v6465_v49 = vadd.f32 %v6998_v44, %v2515_v4  ;;  %v6999_v41 = vld [vmem:[#allocation17_spill] sm:$0xff]  ;;  %v7002_v12 = vld [vmem:[#allocation19_spill] sm:$0xff]  ;;  %v7013_v44 = vld [vmem:[#allocation30_spill] sm:$0xff] }
 0x1d1   : > { %v6379_v11 = vpop.f32.mrf.mxu1  ;;  %6985 = vst [vmem:[#allocation6_spill] sm:$0xff] %v6386_v24  ;;  %v2764_v24 = vadd.f32 %v6320_v29, %v2499_v43  ;;  %v6412_v29 = vadd.f32 %v6331_v34, %v2500_v33  ;;  %v2518_v33 = vadd.f32 %v2439_v31, %v6994_v28  ;;  %v6458_v43 = vadd.f32 %v6995_v20, %v2513_v38  ;;  %v7001_v31 = vld [vmem:[#allocation22_spill] sm:$0xff]  ;;  %v7006_v63 = vld [vmem:[#allocation29_spill] sm:$0xff]  ;;  %v7011_v20 = vld [vmem:[#allocation32_spill] sm:$0xff] }
 0x1d2   : > { %6984 = vst [vmem:[#allocation36_spill] sm:$0xff] %v6379_v11  ;;  %v6395_v11 = vpop.f32.mrf.mxu0  ;;  %v2520_v57 = vadd.f32 %v2449_v25, %v6999_v41  ;;  %v2523_v62 = vadd.f32 %v4572_v45, %v7000_v15  ;;  %v2522_v42 = vadd.f32 %v2459_v3, %v7001_v31  ;;  %v6476_v60 = vadd.f32 %v7002_v12, %v2514_v9  ;;  %v7004_v25 = vld [vmem:[#allocation24_spill] sm:$0xff]  ;;  %v7005_v45 = vld [vmem:[#allocation25_spill] sm:$0xff]  ;;  %v7009_v9 = vld [vmem:[#allocation23_spill] sm:$0xff] }
 0x1d3   : > { %v6384_v36 = vpop.f32.mrf.mxu1  ;;  %v6482_v19 = vadd.f32 %v7004_v25, %v2516_v59  ;;  %v6485_v3 = vadd.f32 %v7005_v45, %v2519_v30  ;;  %v6488_v10 = vadd.f32 %v7006_v63, %v2518_v33  ;;  %v7010_v33 = vld [vmem:[#allocation31_spill] sm:$0xff]  ;;  %v7014_v31 = vld [vmem:[#allocation33_spill] sm:$0xff] }
 0x1d4   : > { %v6405_v47 = vpop.f32.mrf.mxu0  ;;  %v6507_v0 = vadd.f32 %v7011_v20, %v2523_v62  ;;  %v7012_v58 = vld [vmem:[#allocation35_spill] sm:$0xff]  ;;  %v2524_v41 = vadd.f32 %v6384_v36, %v7013_v44  ;;  %v7015_v62 = vld [vmem:[#allocation5_spill] sm:$0xff] }
 0x1d5   : > { %v6393_v48 = vpop.f32.mrf.mxu1 }
 0x1d6   : > { %v6421_v17 = vpop.f32.mrf.mxu0 }
 0x1d7   : > { %v6403_v35 = vpop.f32.mrf.mxu1 }
 0x1d8   : > { %v4686_v6 = vpop.f32.mrf.mxu0 }
 0x1d9   : > { %v4581_v55 = vpop.f32.mrf.mxu1  ;;  %v7008_v18 = vld [vmem:[#allocation36_spill] sm:$0xff] }
 0x1da   : > { %v3141_v53 = vpop.f32.mrf.mxu0  ;;  %v2525_v26 = vadd.f32 %v7008_v18, %v7007_v51  ;;  %v6532_v18 = vadd.f32 %v6381_v50, %v2524_v41  ;;  %v7019_v50 = vld [vmem:[#allocation4_spill] sm:$0xff] }
 0x1db   : > { %v6441_v34 = vpop.f32.mrf.mxu1 }
 0x1dc   : > { %v4689_v38 = vpop.f32.mrf.mxu0  ;;  %v6520_v12 = vadd.f32 %v7015_v62, %v2525_v26  ;;  %v2528_v20 = vadd.f32 %v6441_v34, %v7019_v50 }
 0x1dd   : > { %v4636_v37 = vpop.f32.mrf.mxu1 }
 0x1de   : > { %v3033_v16 = vadd.f32 %v4636_v37, %v2764_v24  ;;  %v7003_v24 = vld [vmem:[#allocation20_spill] sm:$0xff]  ;;  %v6504_v37 = vadd.f32 %v7010_v33, %v2520_v57 }
 0x1df   : > { %v2873_v1 = vpop.f32.mrf.mxu1  ;;  %v6479_v56 = vadd.f32 %v7003_v24, %v2517_v61  ;;  %v6500_v61 = vadd.f32 %v7009_v9, %v2521_v54  ;;  %v7018_v9 = vld [vmem:[#allocation6_spill] sm:$0xff] }
 0x1e0   : > { %v3301_v4 = vadd.f32 %v4686_v6, %v3033_v16  ;;  %v3032_v7 = vadd.f32 %v2873_v1, %v2763_v40  ;;  %v3151_v6 = vpop.f32.mrf.mxu0  ;;  %v6510_v16 = vadd.f32 %v7012_v58, %v2522_v42  ;;  %v2527_v1 = vadd.f32 %v6393_v48, %v7014_v31  ;;  %v7016_v42 = vld [vmem:[#allocation34_spill] sm:$0xff] }
 0x1e1   : > { %v4639_v40 = vpop.f32.mrf.mxu1  ;;  %v2526_v24 = vadd.f32 %v6403_v35, %v7016_v42 }
 0x1e2   : > { %v3340_v59 = vadd.f32 %v6473_v13, %v3301_v4  ;;  %v3300_v30 = vadd.f32 %v3141_v53, %v3032_v7  ;;  %v3035_v28 = vadd.f32 %v4639_v40, %v2766_v14  ;;  %v4692_v54 = vpop.f32.mrf.mxu0  ;;  %v7017_v4 = vld [vmem:[#allocation3_spill] sm:$0xff] }
 0x1e3   : > { %v2883_v15 = vpop.f32.mrf.mxu1  ;;  %v2529_v7 = vadd.f32 %v4581_v55, %v7017_v4  ;;  %v6560_v4 = vadd.f32 %v6421_v17, %v2528_v20 }
 0x1e4   : > { %3372 = vst.msk [vmem:[%s6497_s17 + $0x8] sm:$0xff] %vm485_vm0, %v3340_v59  ;;  %v3473_v14 = vmul.f32 %v3340_v59, %v3340_v59  ;;  %v3339_v53 = vadd.f32 %v6473_v13, %v3300_v30  ;;  %v3303_v57 = vadd.f32 %v4689_v38, %v3035_v28  ;;  %v3034_v36 = vadd.f32 %v2883_v15, %v6412_v29  ;;  %v3161_v45 = vpop.f32.mrf.mxu0 }
 0x1e5   : > { %v4642_v25 = vpop.f32.mrf.mxu1  ;;  %v3404_v48 = vsel %vm485_vm0, %v3340_v59, 0.0  ;;  %v6536_v30 = vadd.f32 %v7018_v9, %v2527_v1  ;;  %v6547_v15 = vadd.f32 %v6395_v11, %v2526_v24  ;;  %v6550_v31 = vadd.f32 %v6405_v47, %v2529_v7 }
 0x1e6   : > { %3371 = vst.msk [vmem:[%s6497_s17] sm:$0xff] %vm485_vm0, %v3339_v53  ;;  %v3403_v63 = vsel %vm485_vm0, %v3339_v53, 0.0  ;;  %v3472_v38 = vmul.f32 %v3339_v53, %v3339_v53  ;;  %v3342_v51 = vadd.f32 %v6473_v13, %v3303_v57  ;;  %v3302_v26 = vadd.f32 %v3151_v6, %v3034_v36  ;;  %v4695_v40 = vpop.f32.mrf.mxu0 }
 0x1e7   : > { %v3405_v35 = vadd.f32 %v3404_v48, %v3403_v63  ;;  %v3037_v55 = vadd.f32 %v4642_v25, %v6415_v2  ;;  %v2893_v29 = vpop.f32.mrf.mxu1  ;;  %v3505_v59 = vsel %vm485_vm0, %v3473_v14, 0.0 }
 0x1e8   : > { %v3504_v28 = vsel %vm485_vm0, %v3472_v38, 0.0  ;;  %3374 = vst.msk [vmem:[%s6497_s17 + $0x18] sm:$0xff] %vm485_vm0, %v3342_v51  ;;  %v3036_v33 = vadd.f32 %v2893_v29, %v6418_v5  ;;  %v3341_v2 = vadd.f32 %v6473_v13, %v3302_v26  ;;  %v3171_v41 = vpop.f32.mrf.mxu0  ;;  %v3475_v5 = vmul.f32 %v3342_v51, %v3342_v51 }
 0x1e9   : > { %v3506_v6 = vadd.f32 %v3505_v59, %v3504_v28  ;;  %v3305_v58 = vadd.f32 %v4692_v54, %v3037_v55  ;;  %v4645_v44 = vpop.f32.mrf.mxu1 }
 0x1ea   : > { %v3304_v1 = vadd.f32 %v3161_v45, %v3036_v33  ;;  %v3039_v14 = vadd.f32 %v4645_v44, %v6424_v39  ;;  %3373 = vst.msk [vmem:[%s6497_s17 + $0x10] sm:$0xff] %vm485_vm0, %v3341_v2  ;;  %v3406_v34 = vsel %vm485_vm0, %v3341_v2, 0.0  ;;  %v3474_v53 = vmul.f32 %v3341_v2, %v3341_v2  ;;  %v4698_v62 = vpop.f32.mrf.mxu0 }
 0x1eb   : > { %v3344_v54 = vadd.f32 %v6473_v13, %v3305_v58  ;;  %v2903_v57 = vpop.f32.mrf.mxu1  ;;  %v3407_v11 = vadd.f32 %v3406_v34, %v3405_v35  ;;  %v3408_v39 = vsel %vm485_vm0, %v3342_v51, 0.0  ;;  %v3509_v17 = vsel %vm485_vm0, %v3475_v5, 0.0 }
 0x1ec   : > { %v3343_v42 = vadd.f32 %v6473_v13, %v3304_v1  ;;  %v3307_v47 = vadd.f32 %v4695_v40, %v3039_v14  ;;  %v3038_v24 = vadd.f32 %v2903_v57, %v6427_v46  ;;  %v3507_v7 = vsel %vm485_vm0, %v3474_v53, 0.0  ;;  %v3181_v45 = vpop.f32.mrf.mxu0 }
 0x1ed   : > { %3376 = vst.msk [vmem:[%s6497_s17 + $0x28] sm:$0xff] %vm485_vm0, %v3344_v54  ;;  %v3477_v36 = vmul.f32 %v3344_v54, %v3344_v54  ;;  %v4648_v25 = vpop.f32.mrf.mxu1  ;;  %v3508_v48 = vadd.f32 %v3507_v7, %v3506_v6  ;;  %v3409_v63 = vadd.f32 %v3408_v39, %v3407_v11  ;;  %v3412_v33 = vsel %vm485_vm0, %v3344_v54, 0.0 }
 0x1ee   : > { %3375 = vst.msk [vmem:[%s6497_s17 + $0x20] sm:$0xff] %vm485_vm0, %v3343_v42  ;;  %v3410_v38 = vsel %vm485_vm0, %v3343_v42, 0.0  ;;  %v3476_v46 = vmul.f32 %v3343_v42, %v3343_v42  ;;  %v3346_v35 = vadd.f32 %v6473_v13, %v3307_v47  ;;  %v3306_v51 = vadd.f32 %v3171_v41, %v3038_v24  ;;  %v4701_v29 = vpop.f32.mrf.mxu0 }
 0x1ef   : > { %v3041_v26 = vadd.f32 %v4648_v25, %v6432_v32  ;;  %v2913_v55 = vpop.f32.mrf.mxu1  ;;  %v3411_v40 = vadd.f32 %v3410_v38, %v3409_v63  ;;  %v3510_v9 = vadd.f32 %v3509_v17, %v3508_v48  ;;  %v3513_v50 = vsel %vm485_vm0, %v3477_v36, 0.0 }
 0x1f0   : > { %v3511_v59 = vsel %vm485_vm0, %v3476_v46, 0.0  ;;  %v3040_v28 = vadd.f32 %v2913_v55, %v6435_v22  ;;  %3378 = vst.msk [vmem:[%s6497_s17 + $0x38] sm:$0xff] %vm485_vm0, %v3346_v35  ;;  %v3345_v20 = vadd.f32 %v6473_v13, %v3306_v51  ;;  %v3191_v32 = vpop.f32.mrf.mxu0  ;;  %v3479_v14 = vmul.f32 %v3346_v35, %v3346_v35 }
 0x1f1   : > { %v3309_v6 = vadd.f32 %v4698_v62, %v3041_v26  ;;  %v4651_v2 = vpop.f32.mrf.mxu1  ;;  %v3512_v58 = vadd.f32 %v3511_v59, %v3510_v9  ;;  %v3413_v44 = vadd.f32 %v3412_v33, %v3411_v40  ;;  %v3416_v47 = vsel %vm485_vm0, %v3346_v35, 0.0 }
 0x1f2   : > { %v3308_v41 = vadd.f32 %v3181_v45, %v3040_v28  ;;  %v3043_v1 = vadd.f32 %v4651_v2, %v6438_v8  ;;  %3377 = vst.msk [vmem:[%s6497_s17 + $0x30] sm:$0xff] %vm485_vm0, %v3345_v20  ;;  %v3414_v22 = vsel %vm485_vm0, %v3345_v20, 0.0  ;;  %v3478_v5 = vmul.f32 %v3345_v20, %v3345_v20  ;;  %v4704_v54 = vpop.f32.mrf.mxu0 }
 0x1f3   : > { %v3348_v34 = vadd.f32 %v6473_v13, %v3309_v6  ;;  %v2923_v53 = vpop.f32.mrf.mxu1  ;;  %v3415_v57 = vadd.f32 %v3414_v22, %v3413_v44  ;;  %v3514_v62 = vadd.f32 %v3513_v50, %v3512_v58  ;;  %v3517_v38 = vsel %vm485_vm0, %v3479_v14, 0.0 }
 0x1f4   : > { %v3347_v11 = vadd.f32 %v6473_v13, %v3308_v41  ;;  %v3311_v42 = vadd.f32 %v4701_v29, %v3043_v1  ;;  %v3515_v8 = vsel %vm485_vm0, %v3478_v5, 0.0  ;;  %v3042_v39 = vadd.f32 %v2923_v53, %v6444_v23  ;;  %v3201_v36 = vpop.f32.mrf.mxu0 }
 0x1f5   : > { %3380 = vst.msk [vmem:[%s6497_s17 + $0x48] sm:$0xff] %vm485_vm0, %v3348_v34  ;;  %v3481_v24 = vmul.f32 %v3348_v34, %v3348_v34  ;;  %v4654_v7 = vpop.f32.mrf.mxu1  ;;  %v3516_v25 = vadd.f32 %v3515_v8, %v3514_v62  ;;  %v3417_v45 = vadd.f32 %v3416_v47, %v3415_v57  ;;  %v3420_v9 = vsel %vm485_vm0, %v3348_v34, 0.0 }
 0x1f6   : > { %3379 = vst.msk [vmem:[%s6497_s17 + $0x40] sm:$0xff] %vm485_vm0, %v3347_v11  ;;  %v3418_v48 = vsel %vm485_vm0, %v3347_v11, 0.0  ;;  %v3480_v63 = vmul.f32 %v3347_v11, %v3347_v11  ;;  %v3350_v46 = vadd.f32 %v6473_v13, %v3311_v42  ;;  %v3310_v17 = vadd.f32 %v3191_v32, %v3042_v39  ;;  %v4707_v26 = vpop.f32.mrf.mxu0 }
 0x1f7   : > { %v3045_v35 = vadd.f32 %v4654_v7, %v6447_v52  ;;  %v2933_v51 = vpop.f32.mrf.mxu1  ;;  %v3419_v23 = vadd.f32 %v3418_v48, %v3417_v45  ;;  %v3518_v55 = vadd.f32 %v3517_v38, %v3516_v25  ;;  %v3521_v59 = vsel %vm485_vm0, %v3481_v24, 0.0 }
 0x1f8   : > { %v3519_v29 = vsel %vm485_vm0, %v3480_v63, 0.0  ;;  %v3044_v40 = vadd.f32 %v2933_v51, %v6452_v21  ;;  %3382 = vst.msk [vmem:[%s6497_s17 + $0x58] sm:$0xff] %vm485_vm0, %v3350_v46  ;;  %v3349_v28 = vadd.f32 %v6473_v13, %v3310_v17  ;;  %v3211_v52 = vpop.f32.mrf.mxu0  ;;  %v3483_v58 = vmul.f32 %v3350_v46, %v3350_v46 }
 0x1f9   : > { %v3313_v33 = vadd.f32 %v4704_v54, %v3045_v35  ;;  %v4657_v50 = vpop.f32.mrf.mxu1  ;;  %v3520_v20 = vadd.f32 %v3519_v29, %v3518_v55  ;;  %v3421_v6 = vadd.f32 %v3420_v9, %v3419_v23  ;;  %v3424_v54 = vsel %vm485_vm0, %v3350_v46, 0.0 }
 0x1fa   : > { %v3312_v2 = vadd.f32 %v3201_v36, %v3044_v40  ;;  %v3047_v32 = vadd.f32 %v4657_v50, %v6458_v43  ;;  %3381 = vst.msk [vmem:[%s6497_s17 + $0x50] sm:$0xff] %vm485_vm0, %v3349_v28  ;;  %v3422_v21 = vsel %vm485_vm0, %v3349_v28, 0.0  ;;  %v3482_v44 = vmul.f32 %v3349_v28, %v3349_v28  ;;  %v4710_v14 = vpop.f32.mrf.mxu0 }
 0x1fb   : > { %v3352_v41 = vadd.f32 %v6473_v13, %v3313_v33  ;;  %v2943_v1 = vpop.f32.mrf.mxu1  ;;  %v3423_v22 = vadd.f32 %v3422_v21, %v3421_v6  ;;  %v3522_v5 = vadd.f32 %v3521_v59, %v3520_v20  ;;  %v3525_v7 = vsel %vm485_vm0, %v3483_v58, 0.0 }
 0x1fc   : > { %v3351_v34 = vadd.f32 %v6473_v13, %v3312_v2  ;;  %v3315_v53 = vadd.f32 %v4707_v26, %v3047_v32  ;;  %v3523_v43 = vsel %vm485_vm0, %v3482_v44, 0.0  ;;  %v3046_v62 = vadd.f32 %v2943_v1, %v6461_v27  ;;  %v3221_v42 = vpop.f32.mrf.mxu0 }
 0x1fd   : > { %3384 = vst.msk [vmem:[%s6497_s17 + $0x68] sm:$0xff] %vm485_vm0, %v3352_v41  ;;  %v3485_v57 = vmul.f32 %v3352_v41, %v3352_v41  ;;  %v4660_v11 = vpop.f32.mrf.mxu1  ;;  %v3524_v47 = vadd.f32 %v3523_v43, %v3522_v5  ;;  %v3425_v8 = vadd.f32 %v3424_v54, %v3423_v22  ;;  %v3428_v35 = vsel %vm485_vm0, %v3352_v41, 0.0 }
 0x1fe   : > { %3383 = vst.msk [vmem:[%s6497_s17 + $0x60] sm:$0xff] %vm485_vm0, %v3351_v34  ;;  %v3426_v24 = vsel %vm485_vm0, %v3351_v34, 0.0  ;;  %v3484_v39 = vmul.f32 %v3351_v34, %v3351_v34  ;;  %v3354_v36 = vadd.f32 %v6473_v13, %v3315_v53  ;;  %v3314_v25 = vadd.f32 %v3211_v52, %v3046_v62  ;;  %v4713_v63 = vpop.f32.mrf.mxu0 }
 0x1ff   : > { %v3049_v45 = vadd.f32 %v4660_v11, %v6465_v49  ;;  %v2953_v48 = vpop.f32.mrf.mxu1  ;;  %v3427_v27 = vadd.f32 %v3426_v24, %v3425_v8  ;;  %v3526_v38 = vadd.f32 %v3525_v7, %v3524_v47  ;;  %v3529_v51 = vsel %vm485_vm0, %v3485_v57, 0.0 }
 0x200   : > { %v3527_v46 = vsel %vm485_vm0, %v3484_v39, 0.0  ;;  %v3048_v17 = vadd.f32 %v2953_v48, %v6476_v60  ;;  %3386 = vst.msk [vmem:[%s6497_s17 + $0x78] sm:$0xff] %vm485_vm0, %v3354_v36  ;;  %v3353_v26 = vadd.f32 %v6473_v13, %v3314_v25  ;;  %v3231_v49 = vpop.f32.mrf.mxu0  ;;  %v3487_v28 = vmul.f32 %v3354_v36, %v3354_v36 }
 0x201   : > { %v3317_v23 = vadd.f32 %v4710_v14, %v3049_v45  ;;  %v4663_v55 = vpop.f32.mrf.mxu1  ;;  %v3528_v29 = vadd.f32 %v3527_v46, %v3526_v38  ;;  %v3429_v40 = vadd.f32 %v3428_v35, %v3427_v27  ;;  %v3432_v21 = vsel %vm485_vm0, %v3354_v36, 0.0 }
 0x202   : > { %v3316_v9 = vadd.f32 %v3221_v42, %v3048_v17  ;;  %v3051_v59 = vadd.f32 %v4663_v55, %v6479_v56  ;;  %3385 = vst.msk [vmem:[%s6497_s17 + $0x70] sm:$0xff] %vm485_vm0, %v3353_v26  ;;  %v3430_v60 = vsel %vm485_vm0, %v3353_v26, 0.0  ;;  %v3486_v33 = vmul.f32 %v3353_v26, %v3353_v26  ;;  %v4716_v20 = vpop.f32.mrf.mxu0 }
 0x203   : > { %v3356_v50 = vadd.f32 %v6473_v13, %v3317_v23  ;;  %v2963_v52 = vpop.f32.mrf.mxu1  ;;  %v3431_v6 = vadd.f32 %v3430_v60, %v3429_v40  ;;  %v3530_v2 = vadd.f32 %v3529_v51, %v3528_v29  ;;  %v3533_v54 = vsel %vm485_vm0, %v3487_v28, 0.0 }
 0x204   : > { %v3355_v32 = vadd.f32 %v6473_v13, %v3316_v9  ;;  %v3319_v58 = vadd.f32 %v4713_v63, %v3051_v59  ;;  %v3531_v56 = vsel %vm485_vm0, %v3486_v33, 0.0  ;;  %v3050_v41 = vadd.f32 %v2963_v52, %v6482_v19  ;;  %v3241_v14 = vpop.f32.mrf.mxu0 }
 0x205   : > { %3388 = vst.msk [vmem:[%s6497_s17 + $0x88] sm:$0xff] %vm485_vm0, %v3356_v50  ;;  %v3489_v44 = vmul.f32 %v3356_v50, %v3356_v50  ;;  %v4666_v1 = vpop.f32.mrf.mxu1  ;;  %v3532_v22 = vadd.f32 %v3531_v56, %v3530_v2  ;;  %v3433_v5 = vadd.f32 %v3432_v21, %v3431_v6  ;;  %v3436_v39 = vsel %vm485_vm0, %v3356_v50, 0.0 }
 0x206   : > { %3387 = vst.msk [vmem:[%s6497_s17 + $0x80] sm:$0xff] %vm485_vm0, %v3355_v32  ;;  %v3434_v34 = vsel %vm485_vm0, %v3355_v32, 0.0  ;;  %v3488_v53 = vmul.f32 %v3355_v32, %v3355_v32  ;;  %v3358_v43 = vadd.f32 %v6473_v13, %v3319_v58  ;;  %v3318_v57 = vadd.f32 %v3231_v49, %v3050_v41  ;;  %v4719_v42 = vpop.f32.mrf.mxu0 }
 0x207   : > { %v3053_v62 = vadd.f32 %v4666_v1, %v6485_v3  ;;  %v2973_v11 = vpop.f32.mrf.mxu1  ;;  %v3435_v19 = vadd.f32 %v3434_v34, %v3433_v5  ;;  %v3534_v47 = vadd.f32 %v3533_v54, %v3532_v22  ;;  %v3537_v7 = vsel %vm485_vm0, %v3489_v44, 0.0 }
 0x208   : > { %v3535_v8 = vsel %vm485_vm0, %v3488_v53, 0.0  ;;  %v3052_v24 = vadd.f32 %v2973_v11, %v6488_v10  ;;  %3390 = vst.msk [vmem:[%s6497_s17 + $0x98] sm:$0xff] %vm485_vm0, %v3358_v43  ;;  %v3357_v36 = vadd.f32 %v6473_v13, %v3318_v57  ;;  %v3251_v3 = vpop.f32.mrf.mxu0  ;;  %v3491_v46 = vmul.f32 %v3358_v43, %v3358_v43 }
 0x209   : > { %v3321_v25 = vadd.f32 %v4716_v20, %v3053_v62  ;;  %v4669_v45 = vpop.f32.mrf.mxu1  ;;  %v3536_v48 = vadd.f32 %v3535_v8, %v3534_v47  ;;  %v3437_v63 = vadd.f32 %v3436_v39, %v3435_v19  ;;  %v3440_v40 = vsel %vm485_vm0, %v3358_v43, 0.0 }
 0x20a   : > { %v3320_v27 = vadd.f32 %v3241_v14, %v3052_v24  ;;  %v3055_v38 = vadd.f32 %v4669_v45, %v6500_v61  ;;  %3389 = vst.msk [vmem:[%s6497_s17 + $0x90] sm:$0xff] %vm485_vm0, %v3357_v36  ;;  %v3438_v10 = vsel %vm485_vm0, %v3357_v36, 0.0  ;;  %v3490_v17 = vmul.f32 %v3357_v36, %v3357_v36  ;;  %v4722_v26 = vpop.f32.mrf.mxu0 }
 0x20b   : > { %v3360_v35 = vadd.f32 %v6473_v13, %v3321_v25  ;;  %v2983_v51 = vpop.f32.mrf.mxu1  ;;  %v3439_v23 = vadd.f32 %v3438_v10, %v3437_v63  ;;  %v3538_v55 = vadd.f32 %v3537_v7, %v3536_v48  ;;  %v3541_v6 = vsel %vm485_vm0, %v3491_v46, 0.0 }
 0x20c   : > { %v3359_v49 = vadd.f32 %v6473_v13, %v3320_v27  ;;  %v3323_v29 = vadd.f32 %v4719_v42, %v3055_v38  ;;  %v3539_v61 = vsel %vm485_vm0, %v3490_v17, 0.0  ;;  %v3054_v59 = vadd.f32 %v2983_v51, %v6504_v37  ;;  %v3261_v60 = vpop.f32.mrf.mxu0 }
 0x20d   : > { %3392 = vst.msk [vmem:[%s6497_s17 + $0xa8] sm:$0xff] %vm485_vm0, %v3360_v35  ;;  %v3493_v9 = vmul.f32 %v3360_v35, %v3360_v35  ;;  %v4672_v28 = vpop.f32.mrf.mxu1  ;;  %v3540_v33 = vadd.f32 %v3539_v61, %v3538_v55  ;;  %v3441_v50 = vadd.f32 %v3440_v40, %v3439_v23  ;;  %v3444_v14 = vsel %vm485_vm0, %v3360_v35, 0.0 }
 0x20e   : > { %3391 = vst.msk [vmem:[%s6497_s17 + $0xa0] sm:$0xff] %vm485_vm0, %v3359_v49  ;;  %v3442_v52 = vsel %vm485_vm0, %v3359_v49, 0.0  ;;  %v3492_v20 = vmul.f32 %v3359_v49, %v3359_v49  ;;  %v3362_v2 = vadd.f32 %v6473_v13, %v3323_v29  ;;  %v3322_v32 = vadd.f32 %v3251_v3, %v3054_v59  ;;  %v4725_v56 = vpop.f32.mrf.mxu0 }
 0x20f   : > { %v3057_v58 = vadd.f32 %v4672_v28, %v6507_v0  ;;  %v2993_v21 = vpop.f32.mrf.mxu1  ;;  %v3443_v37 = vadd.f32 %v3442_v52, %v3441_v50  ;;  %v3542_v44 = vadd.f32 %v3541_v6, %v3540_v33  ;;  %v3545_v22 = vsel %vm485_vm0, %v3493_v9, 0.0 }
 0x210   : > { %v3543_v41 = vsel %vm485_vm0, %v3492_v20, 0.0  ;;  %v3056_v1 = vadd.f32 %v2993_v21, %v6510_v16  ;;  %3394 = vst.msk [vmem:[%s6497_s17 + $0xb8] sm:$0xff] %vm485_vm0, %v3362_v2  ;;  %v3361_v5 = vadd.f32 %v6473_v13, %v3322_v32  ;;  %v3271_v0 = vpop.f32.mrf.mxu0  ;;  %v3495_v11 = vmul.f32 %v3362_v2, %v3362_v2 }
 0x211   : > { %v3325_v34 = vadd.f32 %v4722_v26, %v3057_v58  ;;  %v4675_v53 = vpop.f32.mrf.mxu1  ;;  %v3544_v54 = vadd.f32 %v3543_v41, %v3542_v44  ;;  %v3445_v43 = vadd.f32 %v3444_v14, %v3443_v37  ;;  %v3448_v25 = vsel %vm485_vm0, %v3362_v2, 0.0 }
 0x212   : > { %v3324_v57 = vadd.f32 %v3261_v60, %v3056_v1  ;;  %v3059_v62 = vadd.f32 %v4675_v53, %v6520_v12  ;;  %3393 = vst.msk [vmem:[%s6497_s17 + $0xb0] sm:$0xff] %vm485_vm0, %v3361_v5  ;;  %v3446_v16 = vsel %vm485_vm0, %v3361_v5, 0.0  ;;  %v3494_v42 = vmul.f32 %v3361_v5, %v3361_v5  ;;  %v4728_v8 = vpop.f32.mrf.mxu0 }
 0x213   : > { %v3364_v19 = vadd.f32 %v6473_v13, %v3325_v34  ;;  %v3003_v47 = vpop.f32.mrf.mxu1  ;;  %v3447_v24 = vadd.f32 %v3446_v16, %v3445_v43  ;;  %v3546_v39 = vadd.f32 %v3545_v22, %v3544_v54  ;;  %v3549_v17 = vsel %vm485_vm0, %v3495_v11, 0.0 }
 0x214   : > { %v3363_v7 = vadd.f32 %v6473_v13, %v3324_v57  ;;  %v3327_v36 = vadd.f32 %v4725_v56, %v3059_v62  ;;  %v3547_v12 = vsel %vm485_vm0, %v3494_v42, 0.0  ;;  %v3058_v3 = vadd.f32 %v3003_v47, %v6532_v18  ;;  %v3281_v10 = vpop.f32.mrf.mxu0 }
 0x215   : > { %3396 = vst.msk [vmem:[%s6497_s17 + $0xc8] sm:$0xff] %vm485_vm0, %v3364_v19  ;;  %v3497_v45 = vmul.f32 %v3364_v19, %v3364_v19  ;;  %v4678_v48 = vpop.f32.mrf.mxu1  ;;  %v3548_v63 = vadd.f32 %v3547_v12, %v3546_v39  ;;  %v3449_v27 = vadd.f32 %v3448_v25, %v3447_v24  ;;  %v3452_v40 = vsel %vm485_vm0, %v3364_v19, 0.0 }
 0x216   : > { %3395 = vst.msk [vmem:[%s6497_s17 + $0xc0] sm:$0xff] %vm485_vm0, %v3363_v7  ;;  %v3450_v38 = vsel %vm485_vm0, %v3363_v7, 0.0  ;;  %v3496_v46 = vmul.f32 %v3363_v7, %v3363_v7  ;;  %v3366_v35 = vadd.f32 %v6473_v13, %v3327_v36  ;;  %v3326_v51 = vadd.f32 %v3271_v0, %v3058_v3  ;;  %v4731_v52 = vpop.f32.mrf.mxu0 }
 0x217   : > { %v3061_v26 = vadd.f32 %v4678_v48, %v6536_v30  ;;  %v3013_v23 = vpop.f32.mrf.mxu1  ;;  %v3451_v55 = vadd.f32 %v3450_v38, %v3449_v27  ;;  %v3550_v18 = vadd.f32 %v3549_v17, %v3548_v63  ;;  %v3553_v61 = vsel %vm485_vm0, %v3497_v45, 0.0 }
 0x218   : > { %v3551_v49 = vsel %vm485_vm0, %v3496_v46, 0.0  ;;  %v3060_v29 = vadd.f32 %v3013_v23, %v6547_v15  ;;  %3398 = vst.msk [vmem:[%s6497_s17 + $0xd8] sm:$0xff] %vm485_vm0, %v3366_v35  ;;  %v3365_v9 = vadd.f32 %v6473_v13, %v3326_v51  ;;  %v3499_v20 = vmul.f32 %v3366_v35, %v3366_v35  ;;  %v3291_v34 = vpop.f32.mrf.mxu0 }
 0x219   : > { %v3329_v59 = vadd.f32 %v4728_v8, %v3061_v26  ;;  %v4681_v28 = vpop.f32.mrf.mxu1  ;;  %v3552_v60 = vadd.f32 %v3551_v49, %v3550_v18  ;;  %v3453_v30 = vadd.f32 %v3452_v40, %v3451_v55  ;;  %v3456_v44 = vsel %vm485_vm0, %v3366_v35, 0.0 }
 0x21a   : > { %v3328_v33 = vadd.f32 %v3281_v10, %v3060_v29  ;;  %v3063_v50 = vadd.f32 %v4681_v28, %v6550_v31  ;;  %3397 = vst.msk [vmem:[%s6497_s17 + $0xd0] sm:$0xff] %vm485_vm0, %v3365_v9  ;;  %v3454_v15 = vsel %vm485_vm0, %v3365_v9, 0.0  ;;  %v3498_v6 = vmul.f32 %v3365_v9, %v3365_v9 }
 0x21b   : > { %v3368_v2 = vadd.f32 %v6473_v13, %v3329_v59  ;;  %v3023_v32 = vpop.f32.mrf.mxu1  ;;  %v3455_v58 = vadd.f32 %v3454_v15, %v3453_v30  ;;  %v3554_v21 = vadd.f32 %v3553_v61, %v3552_v60  ;;  %v3557_v53 = vsel %vm485_vm0, %v3499_v20, 0.0 }
 0x21c   : > { %v3367_v56 = vadd.f32 %v6473_v13, %v3328_v33  ;;  %v3331_v37 = vadd.f32 %v4731_v52, %v3063_v50  ;;  %v3555_v31 = vsel %vm485_vm0, %v3498_v6, 0.0  ;;  %v3062_v41 = vadd.f32 %v3023_v32, %v6560_v4 }
 0x21d   : > { %3400 = vst.msk [vmem:[%s6497_s17 + $0xe8] sm:$0xff] %vm485_vm0, %v3368_v2  ;;  %v3556_v1 = vadd.f32 %v3555_v31, %v3554_v21  ;;  %v3457_v14 = vadd.f32 %v3456_v44, %v3455_v58  ;;  %v3501_v0 = vmul.f32 %v3368_v2, %v3368_v2  ;;  %v3460_v4 = vsel %vm485_vm0, %v3368_v2, 0.0 }
 0x21e   : > { %3399 = vst.msk [vmem:[%s6497_s17 + $0xe0] sm:$0xff] %vm485_vm0, %v3367_v56  ;;  %v3458_v22 = vsel %vm485_vm0, %v3367_v56, 0.0  ;;  %v3500_v5 = vmul.f32 %v3367_v56, %v3367_v56  ;;  %v3370_v54 = vadd.f32 %v6473_v13, %v3331_v37  ;;  %v3330_v43 = vadd.f32 %v3291_v34, %v3062_v41 }
 0x21f   : > { %v3459_v57 = vadd.f32 %v3458_v22, %v3457_v14  ;;  %v3558_v62 = vadd.f32 %v3557_v53, %v3556_v1  ;;  %v3561_v47 = vsel %vm485_vm0, %v3501_v0, 0.0 }
 0x220   : > { %v3559_v11 = vsel %vm485_vm0, %v3500_v5, 0.0  ;;  %3402 = vst.msk [vmem:[%s6497_s17 + $0xf8] sm:$0xff] %vm485_vm0, %v3370_v54  ;;  %v3369_v16 = vadd.f32 %v6473_v13, %v3330_v43  ;;  %v3503_v8 = vmul.f32 %v3370_v54, %v3370_v54  ;;  %v3464_v25 = vsel %vm485_vm0, %v3370_v54, 0.0 }
 0x221   : > { %v3560_v42 = vadd.f32 %v3559_v11, %v3558_v62  ;;  %v3461_v19 = vadd.f32 %v3460_v4, %v3459_v57 }
 0x222   : > { %3401 = vst.msk [vmem:[%s6497_s17 + $0xf0] sm:$0xff] %vm485_vm0, %v3369_v16  ;;  %v3462_v24 = vsel %vm485_vm0, %v3369_v16, 0.0  ;;  %v3502_v39 = vmul.f32 %v3369_v16, %v3369_v16  ;;  %v3565_v13 = vsel %vm485_vm0, %v3503_v8, 0.0 }
 0x223   : > { %v3463_v7 = vadd.f32 %v3462_v24, %v3461_v19  ;;  %v3562_v36 = vadd.f32 %v3561_v47, %v3560_v42 }
 0x224   : > { %v3563_v12 = vsel %vm485_vm0, %v3502_v39, 0.0 }
 0x225   : > { %v3465_v45 = vadd.f32 %v3464_v25, %v3463_v7  ;;  %v3564_v3 = vadd.f32 %v3563_v12, %v3562_v36 }
 0x227   : > { %v3466_v48 = vrot.slane %v3465_v45, 4  ;;  %v3566_v63 = vadd.f32 %v3565_v13, %v3564_v3 }
 0x229   : > { %v3467_v27 = vadd.f32 %v3466_v48, %v3465_v45  ;;  %v3567_v38 = vrot.slane %v3566_v63, 4 }
 0x22b   : > { %v3468_v46 = vrot.slane %v3467_v27, 2  ;;  %v3568_v10 = vadd.f32 %v3567_v38, %v3566_v63 }
 0x22d   : > { %v3469_v17 = vadd.f32 %v3468_v46, %v3467_v27  ;;  %v3569_v35 = vrot.slane %v3568_v10, 2 }
 0x22f   : > { %v3470_v51 = vrot.slane %v3469_v17, 1  ;;  %v3570_v26 = vadd.f32 %v3569_v35, %v3568_v10 }
 0x231   : > { %v3571_v23 = vrot.slane %v3570_v26, 1  ;;  %v3471_v55 = vadd.f32 %v3470_v51, %v3469_v17 }
 0x233   : > { %v3572_v18 = vadd.f32 %v3571_v23, %v3570_v26 }
 0x235   : > { %v3574_v49 = vsel %vm3573_vm5, %v3471_v55, %v3572_v18 }
 0x236   : > { %3575 = vst.msk [vmem:[%s303_s20] sm:$0x3] %vm488_vm2, %v3574_v49 }
 0x237 PF: > { %s18_s24 = sadd.s32 1, %s4752_s24  }
 0x238   : > { %p15_p4 = scmp.ge.s32.totalorder %s18_s24, 4  }
 0x23a   :  { %17 = sbr.rel (!%p15_p4) target bundleno = 1 (0x1), region = 99 }

</bundles_post_ra>
